<compile_context>
chip_gen: v5e
topology: v5e:2x2
jax: 0.10.0
libtpu: 0.0.40
codegen_flags: <defaults>
</compile_context>

<pallas_src>
import functools

import numpy as np

import jax
import jax.numpy as jnp
from jax import lax
from jax.experimental import pallas as pl
from jax.experimental.pallas import tpu as pltpu


# ----------------------------------------------------------------------------
# helpers
# ----------------------------------------------------------------------------
def _bn_fold(gamma, beta, mean, var, eps=1e-5):
    scale = gamma / jnp.sqrt(var + eps)
    return scale, beta - mean * scale


def _interior_mask(H, W):
    """((H+2)*(W+2), 1) mask: 1 on the interior, 0 on the 1-px border."""
    m = np.zeros((H + 2, W + 2), np.float32)
    m[1:H + 1, 1:W + 1] = 1.0
    return jnp.asarray(m.reshape((H + 2) * (W + 2), 1))


def _pad_flatten(x):
    """NHWC -> zero-pad 1px spatially and flatten to (N, (H+2)*(W+2), C)."""
    N, H, W, C = x.shape
    xp = jnp.pad(x, ((0, 0), (1, 1), (1, 1), (0, 0)))
    return xp.reshape(N, (H + 2) * (W + 2), C)


_PARALLEL = pltpu.CompilerParams(dimension_semantics=("parallel",))


# ----------------------------------------------------------------------------
# Pallas kernels (all operate on one image per grid step; channels on lanes)
# ----------------------------------------------------------------------------
def _stem_kernel(col_ref, m_ref, w_ref, b_ref, o_ref, y_scr, p_scr, *, Hc, Wc):
    """First 3x3/s2 conv (im2col matmul) + BN + ReLU fused with 3x3/s2 maxpool.

    col_ref: (1, (Hc+2)*(Wc+2), 9*Cin) patches laid out on the pool-padded
             conv-output grid (border rows/cols are zero patches).
    o_ref  : (1, Hc//2, Wc, Cout) -- even pool rows, full width; the column
             decimation (stride 2) happens in glue.
    """
    f32 = jnp.float32
    Wcp = Wc + 2
    L = (Hc - 1) * Wcp + Wc

    # conv + BN + ReLU; force the pool-padding positions to 0 (equivalent to
    # -inf padding because everything is post-ReLU >= 0).
    y = jnp.dot(col_ref[0], w_ref[...], preferred_element_type=f32) + b_ref[...]
    y_scr[...] = jnp.maximum(y, 0.0) * m_ref[...]

    # "same" 3x3 max over the flattened padded grid via 9 shifted slices.
    pooled = y_scr[0:L, :]
    for kh in range(3):
        for kw in range(3):
            if kh == 0 and kw == 0:
                continue
            off = kh * Wcp + kw
            pooled = jnp.maximum(pooled, y_scr[off:off + L, :])
    p_scr[...] = pooled

    # keep only even rows (pool stride 2); copy the Wc valid columns per row.
    for io in range(Hc // 2):
        r = 2 * io * Wcp
        o_ref[0, io] = p_scr[r:r + Wc, :].astype(o_ref.dtype)


def _block_s1_kernel(xp_ref, m_ref, w1_ref, b1_ref, wd_ref, bd_ref,
                     w2_ref, b2_ref, o_ref, y1_scr, o_scr, *, H, W):
    """Fused stride-1 ShuffleV2 main branch: pw1+BN+ReLU -> dw3x3+BN -> pw2+BN+ReLU.

    xp_ref: (1, (H+2)*(W+2), C2) zero-padded, flattened branch input.
    o_ref : (1, H, W, outC).
    """
    f32 = jnp.float32
    Wp = W + 2
    L = (H - 1) * Wp + W
    mid = y1_scr.shape[-1]

    # pw1 (1x1 conv) + BN + ReLU over the whole padded image; mask keeps the
    # border at exactly zero (= zero padding of the pw1 output).
    y1 = jnp.dot(xp_ref[0], w1_ref[...], preferred_element_type=f32) + b1_ref[...]
    y1_scr[...] = jnp.maximum(y1, 0.0) * m_ref[...]

    # depthwise 3x3 / s1 + BN as 9 shifted flat taps (all data stays in VMEM).
    acc = jnp.zeros((L, mid), f32) + bd_ref[...]
    for kh in range(3):
        for kw in range(3):
            off = kh * Wp + kw
            acc = acc + y1_scr[off:off + L, :] * wd_ref[kh * 3 + kw]

    # pw2 (1x1 conv) + BN + ReLU.
    out = jnp.dot(acc, w2_ref[...], preferred_element_type=f32) + b2_ref[...]
    o_scr[...] = jnp.maximum(out, 0.0)

    # de-flatten: copy the W valid columns of each row into the output.
    for i in range(H):
        r = i * Wp
        o_ref[0, i] = o_scr[r:r + W, :].astype(o_ref.dtype)


def _block_s2_kernel(xp_ref, m_ref,
                     w1_ref, b1_ref, wd_ref, bd_ref, w2_ref, b2_ref,
                     wpd_ref, bpd_ref, wpp_ref, bpp_ref,
                     om_ref, op_ref, y1_scr, om_scr, op_scr, *, H, W):
    """Fused stride-2 ShuffleV2 block: main branch AND proj branch in one kernel.

    Outputs are full-width rows at even spatial rows only; the stride-2 column
    decimation happens in glue (pw2 / proj-pw are pointwise so this commutes).
    """
    f32 = jnp.float32
    Wp = W + 2
    L = (H - 1) * Wp + W
    mid = y1_scr.shape[-1]
    C = xp_ref.shape[-1]

    # main branch pw1 + BN + ReLU over the full padded image.
    y1 = jnp.dot(xp_ref[0], w1_ref[...], preferred_element_type=f32) + b1_ref[...]
    y1_scr[...] = jnp.maximum(y1, 0.0) * m_ref[...]

    # depthwise 3x3 (+BN) for both branches as shifted flat taps; stride 2 is
    # handled later by keeping only even rows / even columns.
    acc = jnp.zeros((L, mid), f32) + bd_ref[...]
    pac = jnp.zeros((L, C), f32) + bpd_ref[...]
    for kh in range(3):
        for kw in range(3):
            off = kh * Wp + kw
            acc = acc + y1_scr[off:off + L, :] * wd_ref[kh * 3 + kw]
            pac = pac + xp_ref[0, off:off + L, :] * wpd_ref[kh * 3 + kw]

    om = jnp.dot(acc, w2_ref[...], preferred_element_type=f32) + b2_ref[...]
    om_scr[...] = jnp.maximum(om, 0.0)
    op = jnp.dot(pac, wpp_ref[...], preferred_element_type=f32) + bpp_ref[...]
    op_scr[...] = jnp.maximum(op, 0.0)

    for io in range(H // 2):
        r = 2 * io * Wp
        om_ref[0, io] = om_scr[r:r + W, :].astype(om_ref.dtype)
        op_ref[0, io] = op_scr[r:r + W, :].astype(op_ref.dtype)


def _mm_bias_relu_kernel(x_ref, w_ref, b_ref, o_ref):
    """Plain (M, K) x (K, N) matmul + bias + ReLU (conv_last)."""
    y = jnp.dot(x_ref[...], w_ref[...], preferred_element_type=jnp.float32)
    o_ref[...] = jnp.maximum(y + b_ref[...], 0.0).astype(o_ref.dtype)


# ----------------------------------------------------------------------------
# Pallas-backed layer wrappers (NHWC activations)
# ----------------------------------------------------------------------------
def stem_forward(x, wp):
    """Conv2d(3, C, 3, 2, 1) + BN + ReLU + MaxPool2d(3, 2, 1)."""
    N, H, W, Cin = x.shape
    Cout = wp["w"].shape[-1]
    Hc, Wc = (H - 1) // 2 + 1, (W - 1) // 2 + 1          # conv output size
    assert Hc % 2 == 0 and Wc % 2 == 0
    Ho = Hc // 2
    K = 9 * Cin

    # im2col for the 3x3/s2 conv (tap order kh, kw, cin).
    xpad = jnp.pad(x, ((0, 0), (1, 1), (1, 1), (0, 0)))
    cols = []
    for kh in range(3):
        for kw in range(3):
            cols.append(
                lax.slice(
                    xpad,
                    (0, kh, kw, 0),
                    (N, kh + (Hc - 1) * 2 + 1, kw + (Wc - 1) * 2 + 1, Cin),
                    (1, 2, 2, 1),
                )
            )
    col = jnp.concatenate(cols, axis=-1)                  # (N, Hc, Wc, 9*Cin)
    # Zero patches on a 1-px border of the conv-output grid double as the
    # maxpool padding (the kernel masks the conv output to 0 there).
    col = jnp.pad(col, ((0, 0), (1, 1), (1, 1), (0, 0)))
    col = col.reshape(N, (Hc + 2) * (Wc + 2), K)
    mask = _interior_mask(Hc, Wc)

    Wcp = Wc + 2
    HW = (Hc + 2) * Wcp
    L = (Hc - 1) * Wcp + Wc

    kern = functools.partial(_stem_kernel, Hc=Hc, Wc=Wc)
    out = pl.pallas_call(
        kern,
        out_shape=jax.ShapeDtypeStruct((N, Ho, Wc, Cout), jnp.float32),
        grid=(N,),
        in_specs=[
            pl.BlockSpec((1, HW, K), lambda n: (n, 0, 0)),
            pl.BlockSpec((HW, 1), lambda n: (0, 0)),
            pl.BlockSpec((K, Cout), lambda n: (0, 0)),
            pl.BlockSpec((1, Cout), lambda n: (0, 0)),
        ],
        out_specs=pl.BlockSpec((1, Ho, Wc, Cout), lambda n: (n, 0, 0, 0)),
        scratch_shapes=[
            pltpu.VMEM((HW, Cout), jnp.float32),
            pltpu.VMEM((L, Cout), jnp.float32),
        ],
        compiler_params=_PARALLEL,
    )(col, mask, wp["w"], wp["b"])
    return out[:, :, 0:Wc:2, :]                           # (N, Ho, Wc//2, Cout)


def block_s1_forward(x, p):
    """Stride-1 ShuffleV2 block (channel shuffle in glue, branch fused)."""
    N, H, W, C = x.shape
    x_proj = x[..., 0::2]                                 # even channels
    xb = x[..., 1::2]                                     # odd channels -> main
    C2 = C // 2
    mid = p["w1"].shape[-1]
    outC = p["w2"].shape[-1]
    Wp = W + 2
    HW = (H + 2) * Wp
    L = (H - 1) * Wp + W

    xpf = _pad_flatten(xb)
    mask = _interior_mask(H, W)

    kern = functools.partial(_block_s1_kernel, H=H, W=W)
    main = pl.pallas_call(
        kern,
        out_shape=jax.ShapeDtypeStruct((N, H, W, outC), jnp.float32),
        grid=(N,),
        in_specs=[
            pl.BlockSpec((1, HW, C2), lambda n: (n, 0, 0)),
            pl.BlockSpec((HW, 1), lambda n: (0, 0)),
            pl.BlockSpec((C2, mid), lambda n: (0, 0)),
            pl.BlockSpec((1, mid), lambda n: (0, 0)),
            pl.BlockSpec((9, 1, mid), lambda n: (0, 0, 0)),
            pl.BlockSpec((1, mid), lambda n: (0, 0)),
            pl.BlockSpec((mid, outC), lambda n: (0, 0)),
            pl.BlockSpec((1, outC), lambda n: (0, 0)),
        ],
        out_specs=pl.BlockSpec((1, H, W, outC), lambda n: (n, 0, 0, 0)),
        scratch_shapes=[
            pltpu.VMEM((HW, mid), jnp.float32),
            pltpu.VMEM((L, outC), jnp.float32),
        ],
        compiler_params=_PARALLEL,
    )(xpf, mask, p["w1"], p["b1"], p["wd"], p["bd"], p["w2"], p["b2"])
    return jnp.concatenate([x_proj, main], axis=-1)


def block_s2_forward(x, p):
    """Stride-2 ShuffleV2 block (main + proj branch fused in one kernel)."""
    N, H, W, C = x.shape
    assert H % 2 == 0 and W % 2 == 0
    mid = p["w1"].shape[-1]
    outC = p["w2"].shape[-1]
    Wp = W + 2
    HW = (H + 2) * Wp
    L = (H - 1) * Wp + W
    Ho = H // 2

    xpf = _pad_flatten(x)
    mask = _interior_mask(H, W)

    kern = functools.partial(_block_s2_kernel, H=H, W=W)
    main, proj = pl.pallas_call(
        kern,
        out_shape=(
            jax.ShapeDtypeStruct((N, Ho, W, outC), jnp.float32),
            jax.ShapeDtypeStruct((N, Ho, W, C), jnp.float32),
        ),
        grid=(N,),
        in_specs=[
            pl.BlockSpec((1, HW, C), lambda n: (n, 0, 0)),
            pl.BlockSpec((HW, 1), lambda n: (0, 0)),
            pl.BlockSpec((C, mid), lambda n: (0, 0)),
            pl.BlockSpec((1, mid), lambda n: (0, 0)),
            pl.BlockSpec((9, 1, mid), lambda n: (0, 0, 0)),
            pl.BlockSpec((1, mid), lambda n: (0, 0)),
            pl.BlockSpec((mid, outC), lambda n: (0, 0)),
            pl.BlockSpec((1, outC), lambda n: (0, 0)),
            pl.BlockSpec((9, 1, C), lambda n: (0, 0, 0)),
            pl.BlockSpec((1, C), lambda n: (0, 0)),
            pl.BlockSpec((C, C), lambda n: (0, 0)),
            pl.BlockSpec((1, C), lambda n: (0, 0)),
        ],
        out_specs=(
            pl.BlockSpec((1, Ho, W, outC), lambda n: (n, 0, 0, 0)),
            pl.BlockSpec((1, Ho, W, C), lambda n: (n, 0, 0, 0)),
        ),
        scratch_shapes=[
            pltpu.VMEM((HW, mid), jnp.float32),
            pltpu.VMEM((L, outC), jnp.float32),
            pltpu.VMEM((L, C), jnp.float32),
        ],
        compiler_params=_PARALLEL,
    )(xpf, mask, p["w1"], p["b1"], p["wd"], p["bd"], p["w2"], p["b2"],
      p["wpd"], p["bpd"], p["wpp"], p["bpp"])
    main = main[:, :, 0:W:2, :]
    proj = proj[:, :, 0:W:2, :]
    return jnp.concatenate([proj, main], axis=-1)


def conv_last_forward(x, p):
    """1x1 conv + BN + ReLU (BN folded)."""
    N, H, W, C = x.shape
    Cout = p["w"].shape[-1]
    M = N * H * W
    x2 = x.reshape(M, C)
    out = pl.pallas_call(
        _mm_bias_relu_kernel,
        out_shape=jax.ShapeDtypeStruct((M, Cout), jnp.float32),
        grid=(1,),
        in_specs=[
            pl.BlockSpec((M, C), lambda i: (0, 0)),
            pl.BlockSpec((C, Cout), lambda i: (0, 0)),
            pl.BlockSpec((1, Cout), lambda i: (0, 0)),
        ],
        out_specs=pl.BlockSpec((M, Cout), lambda i: (0, 0)),
    )(x2, p["w"], p["b"])
    return out.reshape(N, H, W, Cout)


# ----------------------------------------------------------------------------
# full forward (public interface NCHW, internal NHWC)
# ----------------------------------------------------------------------------
def shufflenet_v2_forward(prep, x_nchw):
    x = jnp.transpose(x_nchw, (0, 2, 3, 1)).astype(jnp.float32)
    x = stem_forward(x, prep["stem"])
    for bp in prep["blocks"]:
        if bp["stride"] == 2:
            x = block_s2_forward(x, bp)
        else:
            x = block_s1_forward(x, bp)
    x = conv_last_forward(x, prep["last"])
    return jnp.transpose(x, (0, 3, 1, 2))


# ----------------------------------------------------------------------------
# one-time parameter preparation: fold BN, pre-transpose to kernel layouts
# ----------------------------------------------------------------------------
def prepare_params(params):
    def fold_pw(w, bn):                      # w: (Cout, Cin, 1, 1)
        s, b = _bn_fold(**bn)
        Cout, Cin = w.shape[0], w.shape[1]
        w2d = jnp.transpose(w.reshape(Cout, Cin) * s[:, None], (1, 0))
        return w2d, b.reshape(1, Cout)

    def fold_dw(w, bn):                      # w: (C, 1, 3, 3)
        s, b = _bn_fold(**bn)
        C = w.shape[0]
        wk = jnp.transpose(w.reshape(C, 9) * s[:, None], (1, 0)).reshape(9, 1, C)
        return wk, b.reshape(1, C)

    def fold_first(w, bn):                   # w: (Cout, Cin, 3, 3)
        s, b = _bn_fold(**bn)
        Cout = w.shape[0]
        w2d = jnp.transpose(w, (2, 3, 1, 0)).reshape(-1, Cout) * s[None, :]
        return w2d, b.reshape(1, Cout)

    prep = {}
    w2d, b = fold_first(params["first_conv_w"], params["first_conv_bn"])
    prep["stem"] = {"w": w2d, "b": b}

    blocks = []
    for bp, ksize, stride in params["blocks"]:
        assert ksize == 3
        w1, b1 = fold_pw(bp["pw1_w"], bp["pw1_bn"])
        wd, bd = fold_dw(bp["dw_w"], bp["dw_bn"])
        w2, b2 = fold_pw(bp["pw2_w"], bp["pw2_bn"])
        entry = {"stride": stride, "w1": w1, "b1": b1, "wd": wd, "bd": bd,
                 "w2": w2, "b2": b2}
        if stride == 2:
            wpd, bpd = fold_dw(bp["proj_dw_w"], bp["proj_dw_bn"])
            wpp, bpp = fold_pw(bp["proj_pw_w"], bp["proj_pw_bn"])
            entry.update({"wpd": wpd, "bpd": bpd, "wpp": wpp, "bpp": bpp})
        blocks.append(entry)
    prep["blocks"] = blocks

    w2d, b = fold_pw(params["conv_last_w"], params["conv_last_bn"])
    prep["last"] = {"w": w2d, "b": b}
    return prep


# ----------------------------------------------------------------------------
# deterministic parameter construction (mirrors _initialize_weights, eval BN)
# ----------------------------------------------------------------------------
class _KeyGen:
    def __init__(self, key):
        self._key = key
        self._i = 0

    def __call__(self):
        self._i += 1
        return jax.random.fold_in(self._key, self._i)


def _conv_init(key, out_c, in_per_group, kh, kw, std):
    return jax.random.normal(key, (out_c, in_per_group, kh, kw), jnp.float32) * std


def _make_bn(c):
    # BatchNorm2d in eval mode: weight=1, bias=1e-4, running_mean=0, running_var=1
    return dict(
        gamma=jnp.ones((c,), jnp.float32),
        beta=jnp.full((c,), 1e-4, jnp.float32),
        mean=jnp.zeros((c,), jnp.float32),
        var=jnp.ones((c,), jnp.float32),
    )


def _make_block_params(kg, inp, oup, mid, ksize, stride):
    outputs = oup - inp
    p = {
        "pw1_w": _conv_init(kg(), mid, inp, 1, 1, 1.0 / inp),
        "pw1_bn": _make_bn(mid),
        "dw_w": _conv_init(kg(), mid, 1, ksize, ksize, 1.0),   # groups=mid
        "dw_bn": _make_bn(mid),
        "pw2_w": _conv_init(kg(), outputs, mid, 1, 1, 1.0 / mid),
        "pw2_bn": _make_bn(outputs),
    }
    if stride == 2:
        p["proj_dw_w"] = _conv_init(kg(), inp, 1, ksize, ksize, 1.0)
        p["proj_dw_bn"] = _make_bn(inp)
        p["proj_pw_w"] = _conv_init(kg(), inp, inp, 1, 1, 1.0 / inp)
        p["proj_pw_bn"] = _make_bn(inp)
    return p


def make_shufflenet_params(key, model_size="0.5x"):
    stage_repeats = [4, 8, 4]
    stage_out_channels = {
        "0.5x": [-1, 24, 48, 96, 192, 1024],
        "1.0x": [-1, 24, 116, 232, 464, 1024],
        "1.5x": [-1, 24, 176, 352, 704, 1024],
        "2.0x": [-1, 24, 244, 488, 976, 2048],
    }[model_size]

    kg = _KeyGen(key)
    input_channel = stage_out_channels[1]
    params = {
        "first_conv_w": _conv_init(kg(), input_channel, 3, 3, 3, 0.01),  # 'first' -> std 0.01
        "first_conv_bn": _make_bn(input_channel),
    }
    blocks = []
    for idxstage in range(len(stage_repeats)):
        numrepeat = stage_repeats[idxstage]
        output_channel = stage_out_channels[idxstage + 2]
        for i in range(numrepeat):
            if i == 0:
                bp = _make_block_params(
                    kg, input_channel, output_channel, output_channel // 2, 3, 2
                )
                blocks.append((bp, 3, 2))
            else:
                bp = _make_block_params(
                    kg, input_channel // 2, output_channel, output_channel // 2, 3, 1
                )
                blocks.append((bp, 3, 1))
            input_channel = output_channel
    params["blocks"] = blocks
    params["conv_last_w"] = _conv_init(
        kg(), stage_out_channels[-1], input_channel, 1, 1, 1.0 / input_channel
    )
    params["conv_last_bn"] = _make_bn(stage_out_channels[-1])
    return params


# ----------------------------------------------------------------------------
if __name__ == "__main__":
    root = jax.random.PRNGKey(0)
    k_params, k_x = jax.random.split(root)

    # ShuffleNetV2 '0.5x', batch=2, 3x32x32 input (NCHW).
    params = make_shufflenet_params(k_params, model_size="0.5x")
    prep = prepare_params(params)          # BN folded, kernel layouts, done once
    x = jax.random.normal(k_x, (2, 3, 32, 32), jnp.float32)

    fwd = jax.jit(functools.partial(shufflenet_v2_forward, prep))
    out = jax.block_until_ready(fwd(x))

    assert out.shape == (2, 1024, 1, 1), out.shape
    assert bool(jnp.all(jnp.isfinite(out)))
    print("KERNEL_OK")
</pallas_src>

<mosaic_0001>
module attributes {stable_mosaic.version = 11 : i64} {
  func.func @_stem_kernel(%arg0: i32, %arg1: memref<1x324x27xf32, #tpu.memory_space<vmem>>, %arg2: memref<324x1xf32, #tpu.memory_space<vmem>>, %arg3: memref<27x24xf32, #tpu.memory_space<vmem>>, %arg4: memref<1x24xf32, #tpu.memory_space<vmem>>, %arg5: memref<1x8x16x24xf32, #tpu.memory_space<vmem>>, %arg6: memref<324x24xf32, #tpu.memory_space<vmem>>, %arg7: memref<286x24xf32, #tpu.memory_space<vmem>>) attributes {dimension_semantics = [#tpu.dimension_semantics<parallel>], iteration_bounds = array<i64: 2>, scalar_prefetch = 0 : i64, scratch_operands = 2 : i64, tpu.core_type = #tpu.core_type<tc>, window_params = [{transform_indices = @transform_0, window_bounds = array<i64: 1, 324, 27>}, {pipeline_mode = #tpu.pipeline_mode<synchronous>, transform_indices = @transform_1, window_bounds = array<i64: 324, 1>}, {pipeline_mode = #tpu.pipeline_mode<synchronous>, transform_indices = @transform_2, window_bounds = array<i64: 27, 24>}, {pipeline_mode = #tpu.pipeline_mode<synchronous>, transform_indices = @transform_3, window_bounds = array<i64: 1, 24>}, {transform_indices = @transform_4, window_bounds = array<i64: 1, 8, 16, 24>}]} {
    %c0 = arith.constant 0 : index
    %c0_0 = arith.constant 0 : index
    %c0_1 = arith.constant 0 : index
    %0 = vector.load %arg1[%c0, %c0_0, %c0_1] : memref<1x324x27xf32, #tpu.memory_space<vmem>>, vector<1x324x27xf32>
    %1 = vector.shape_cast %0 : vector<1x324x27xf32> to vector<324x27xf32>
    %c0_2 = arith.constant 0 : index
    %c0_3 = arith.constant 0 : index
    %2 = vector.load %arg3[%c0_2, %c0_3] : memref<27x24xf32, #tpu.memory_space<vmem>>, vector<27x24xf32>
    %cst = arith.constant dense<0.000000e+00> : vector<324x24xf32>
    %3 = tpu.matmul %1, %2, %cst {dimension_numbers = #tpu.dot_dimension_numbers<[1], [0], [0], [1], [0, 0, 1, 1], [], []>} : vector<324x27xf32>, vector<27x24xf32>, vector<324x24xf32> -> vector<324x24xf32>
    %c0_4 = arith.constant 0 : index
    %c0_5 = arith.constant 0 : index
    %4 = vector.load %arg4[%c0_4, %c0_5] : memref<1x24xf32, #tpu.memory_space<vmem>>, vector<1x24xf32>
    %5 = vector.broadcast %4 : vector<1x24xf32> to vector<324x24xf32>
    %6 = arith.addf %3, %5 : vector<324x24xf32>
    %cst_6 = arith.constant 0.000000e+00 : f32
    %7 = vector.broadcast %cst_6 : f32 to vector<324x24xf32>
    %8 = arith.maximumf %6, %7 : vector<324x24xf32>
    %c0_7 = arith.constant 0 : index
    %c0_8 = arith.constant 0 : index
    %9 = vector.load %arg2[%c0_7, %c0_8] : memref<324x1xf32, #tpu.memory_space<vmem>>, vector<324x1xf32>
    %10 = vector.broadcast %9 : vector<324x1xf32> to vector<324x24xf32>
    %11 = arith.mulf %8, %10 : vector<324x24xf32>
    %c0_9 = arith.constant 0 : index
    %c0_10 = arith.constant 0 : index
    %12 = vector.load %arg6[%c0_9, %c0_10] : memref<324x24xf32, #tpu.memory_space<vmem>>, vector<324x24xf32>
    tpu.vector_store %arg6[%c0_9, %c0_10], %11 {strides = array<i32>} : memref<324x24xf32, #tpu.memory_space<vmem>>, vector<324x24xf32>,
    %c0_11 = arith.constant 0 : index
    %c0_12 = arith.constant 0 : index
    %13 = vector.load %arg6[%c0_11, %c0_12] : memref<324x24xf32, #tpu.memory_space<vmem>>, vector<286x24xf32>
    %c1 = arith.constant 1 : index
    %c0_13 = arith.constant 0 : index
    %14 = vector.load %arg6[%c1, %c0_13] : memref<324x24xf32, #tpu.memory_space<vmem>>, vector<286x24xf32>
    %15 = arith.maximumf %13, %14 : vector<286x24xf32>
    %c2 = arith.constant 2 : index
    %c0_14 = arith.constant 0 : index
    %16 = vector.load %arg6[%c2, %c0_14] : memref<324x24xf32, #tpu.memory_space<vmem>>, vector<286x24xf32>
    %17 = arith.maximumf %15, %16 : vector<286x24xf32>
    %c18 = arith.constant 18 : index
    %c0_15 = arith.constant 0 : index
    %18 = vector.load %arg6[%c18, %c0_15] : memref<324x24xf32, #tpu.memory_space<vmem>>, vector<286x24xf32>
    %19 = arith.maximumf %17, %18 : vector<286x24xf32>
    %c19 = arith.constant 19 : index
    %c0_16 = arith.constant 0 : index
    %20 = vector.load %arg6[%c19, %c0_16] : memref<324x24xf32, #tpu.memory_space<vmem>>, vector<286x24xf32>
    %21 = arith.maximumf %19, %20 : vector<286x24xf32>
    %c20 = arith.constant 20 : index
    %c0_17 = arith.constant 0 : index
    %22 = vector.load %arg6[%c20, %c0_17] : memref<324x24xf32, #tpu.memory_space<vmem>>, vector<286x24xf32>
    %23 = arith.maximumf %21, %22 : vector<286x24xf32>
    %c36 = arith.constant 36 : index
    %c0_18 = arith.constant 0 : index
    %24 = vector.load %arg6[%c36, %c0_18] : memref<324x24xf32, #tpu.memory_space<vmem>>, vector<286x24xf32>
    %25 = arith.maximumf %23, %24 : vector<286x24xf32>
    %c37 = arith.constant 37 : index
    %c0_19 = arith.constant 0 : index
    %26 = vector.load %arg6[%c37, %c0_19] : memref<324x24xf32, #tpu.memory_space<vmem>>, vector<286x24xf32>
    %27 = arith.maximumf %25, %26 : vector<286x24xf32>
    %c38 = arith.constant 38 : index
    %c0_20 = arith.constant 0 : index
    %28 = vector.load %arg6[%c38, %c0_20] : memref<324x24xf32, #tpu.memory_space<vmem>>, vector<286x24xf32>
    %29 = arith.maximumf %27, %28 : vector<286x24xf32>
    %c0_21 = arith.constant 0 : index
    %c0_22 = arith.constant 0 : index
    %30 = vector.load %arg7[%c0_21, %c0_22] : memref<286x24xf32, #tpu.memory_space<vmem>>, vector<286x24xf32>
    tpu.vector_store %arg7[%c0_21, %c0_22], %29 {strides = array<i32>} : memref<286x24xf32, #tpu.memory_space<vmem>>, vector<286x24xf32>,
    %c0_23 = arith.constant 0 : index
    %c0_24 = arith.constant 0 : index
    %31 = vector.load %arg7[%c0_23, %c0_24] : memref<286x24xf32, #tpu.memory_space<vmem>>, vector<16x24xf32>
    %c0_25 = arith.constant 0 : index
    %c0_26 = arith.constant 0 : index
    %c0_27 = arith.constant 0 : index
    %c0_28 = arith.constant 0 : index
    %32 = vector.load %arg5[%c0_25, %c0_26, %c0_27, %c0_28] : memref<1x8x16x24xf32, #tpu.memory_space<vmem>>, vector<1x1x16x24xf32>
    %33 = vector.shape_cast %32 : vector<1x1x16x24xf32> to vector<16x24xf32>
    %34 = vector.shape_cast %31 : vector<16x24xf32> to vector<1x1x16x24xf32>
    tpu.vector_store %arg5[%c0_25, %c0_26, %c0_27, %c0_28], %34 {strides = array<i32>} : memref<1x8x16x24xf32, #tpu.memory_space<vmem>>, vector<1x1x16x24xf32>,
    %c36_29 = arith.constant 36 : index
    %c0_30 = arith.constant 0 : index
    %35 = vector.load %arg7[%c36_29, %c0_30] : memref<286x24xf32, #tpu.memory_space<vmem>>, vector<16x24xf32>
    %c0_31 = arith.constant 0 : index
    %c1_32 = arith.constant 1 : index
    %c0_33 = arith.constant 0 : index
    %c0_34 = arith.constant 0 : index
    %36 = vector.load %arg5[%c0_31, %c1_32, %c0_33, %c0_34] : memref<1x8x16x24xf32, #tpu.memory_space<vmem>>, vector<1x1x16x24xf32>
    %37 = vector.shape_cast %36 : vector<1x1x16x24xf32> to vector<16x24xf32>
    %38 = vector.shape_cast %35 : vector<16x24xf32> to vector<1x1x16x24xf32>
    tpu.vector_store %arg5[%c0_31, %c1_32, %c0_33, %c0_34], %38 {strides = array<i32>} : memref<1x8x16x24xf32, #tpu.memory_space<vmem>>, vector<1x1x16x24xf32>,
    %c72 = arith.constant 72 : index
    %c0_35 = arith.constant 0 : index
    %39 = vector.load %arg7[%c72, %c0_35] : memref<286x24xf32, #tpu.memory_space<vmem>>, vector<16x24xf32>
    %c0_36 = arith.constant 0 : index
    %c2_37 = arith.constant 2 : index
    %c0_38 = arith.constant 0 : index
    %c0_39 = arith.constant 0 : index
    %40 = vector.load %arg5[%c0_36, %c2_37, %c0_38, %c0_39] : memref<1x8x16x24xf32, #tpu.memory_space<vmem>>, vector<1x1x16x24xf32>
    %41 = vector.shape_cast %40 : vector<1x1x16x24xf32> to vector<16x24xf32>
    %42 = vector.shape_cast %39 : vector<16x24xf32> to vector<1x1x16x24xf32>
    tpu.vector_store %arg5[%c0_36, %c2_37, %c0_38, %c0_39], %42 {strides = array<i32>} : memref<1x8x16x24xf32, #tpu.memory_space<vmem>>, vector<1x1x16x24xf32>,
    %c108 = arith.constant 108 : index
    %c0_40 = arith.constant 0 : index
    %43 = vector.load %arg7[%c108, %c0_40] : memref<286x24xf32, #tpu.memory_space<vmem>>, vector<16x24xf32>
    %c0_41 = arith.constant 0 : index
    %c3 = arith.constant 3 : index
    %c0_42 = arith.constant 0 : index
    %c0_43 = arith.constant 0 : index
    %44 = vector.load %arg5[%c0_41, %c3, %c0_42, %c0_43] : memref<1x8x16x24xf32, #tpu.memory_space<vmem>>, vector<1x1x16x24xf32>
    %45 = vector.shape_cast %44 : vector<1x1x16x24xf32> to vector<16x24xf32>
    %46 = vector.shape_cast %43 : vector<16x24xf32> to vector<1x1x16x24xf32>
    tpu.vector_store %arg5[%c0_41, %c3, %c0_42, %c0_43], %46 {strides = array<i32>} : memref<1x8x16x24xf32, #tpu.memory_space<vmem>>, vector<1x1x16x24xf32>,
    %c144 = arith.constant 144 : index
    %c0_44 = arith.constant 0 : index
    %47 = vector.load %arg7[%c144, %c0_44] : memref<286x24xf32, #tpu.memory_space<vmem>>, vector<16x24xf32>
    %c0_45 = arith.constant 0 : index
    %c4 = arith.constant 4 : index
    %c0_46 = arith.constant 0 : index
    %c0_47 = arith.constant 0 : index
    %48 = vector.load %arg5[%c0_45, %c4, %c0_46, %c0_47] : memref<1x8x16x24xf32, #tpu.memory_space<vmem>>, vector<1x1x16x24xf32>
    %49 = vector.shape_cast %48 : vector<1x1x16x24xf32> to vector<16x24xf32>
    %50 = vector.shape_cast %47 : vector<16x24xf32> to vector<1x1x16x24xf32>
    tpu.vector_store %arg5[%c0_45, %c4, %c0_46, %c0_47], %50 {strides = array<i32>} : memref<1x8x16x24xf32, #tpu.memory_space<vmem>>, vector<1x1x16x24xf32>,
    %c180 = arith.constant 180 : index
    %c0_48 = arith.constant 0 : index
    %51 = vector.load %arg7[%c180, %c0_48] : memref<286x24xf32, #tpu.memory_space<vmem>>, vector<16x24xf32>
    %c0_49 = arith.constant 0 : index
    %c5 = arith.constant 5 : index
    %c0_50 = arith.constant 0 : index
    %c0_51 = arith.constant 0 : index
    %52 = vector.load %arg5[%c0_49, %c5, %c0_50, %c0_51] : memref<1x8x16x24xf32, #tpu.memory_space<vmem>>, vector<1x1x16x24xf32>
    %53 = vector.shape_cast %52 : vector<1x1x16x24xf32> to vector<16x24xf32>
    %54 = vector.shape_cast %51 : vector<16x24xf32> to vector<1x1x16x24xf32>
    tpu.vector_store %arg5[%c0_49, %c5, %c0_50, %c0_51], %54 {strides = array<i32>} : memref<1x8x16x24xf32, #tpu.memory_space<vmem>>, vector<1x1x16x24xf32>,
    %c216 = arith.constant 216 : index
    %c0_52 = arith.constant 0 : index
    %55 = vector.load %arg7[%c216, %c0_52] : memref<286x24xf32, #tpu.memory_space<vmem>>, vector<16x24xf32>
    %c0_53 = arith.constant 0 : index
    %c6 = arith.constant 6 : index
    %c0_54 = arith.constant 0 : index
    %c0_55 = arith.constant 0 : index
    %56 = vector.load %arg5[%c0_53, %c6, %c0_54, %c0_55] : memref<1x8x16x24xf32, #tpu.memory_space<vmem>>, vector<1x1x16x24xf32>
    %57 = vector.shape_cast %56 : vector<1x1x16x24xf32> to vector<16x24xf32>
    %58 = vector.shape_cast %55 : vector<16x24xf32> to vector<1x1x16x24xf32>
    tpu.vector_store %arg5[%c0_53, %c6, %c0_54, %c0_55], %58 {strides = array<i32>} : memref<1x8x16x24xf32, #tpu.memory_space<vmem>>, vector<1x1x16x24xf32>,
    %c252 = arith.constant 252 : index
    %c0_56 = arith.constant 0 : index
    %59 = vector.load %arg7[%c252, %c0_56] : memref<286x24xf32, #tpu.memory_space<vmem>>, vector<16x24xf32>
    %c0_57 = arith.constant 0 : index
    %c7 = arith.constant 7 : index
    %c0_58 = arith.constant 0 : index
    %c0_59 = arith.constant 0 : index
    %60 = vector.load %arg5[%c0_57, %c7, %c0_58, %c0_59] : memref<1x8x16x24xf32, #tpu.memory_space<vmem>>, vector<1x1x16x24xf32>
    %61 = vector.shape_cast %60 : vector<1x1x16x24xf32> to vector<16x24xf32>
    %62 = vector.shape_cast %59 : vector<16x24xf32> to vector<1x1x16x24xf32>
    tpu.vector_store %arg5[%c0_57, %c7, %c0_58, %c0_59], %62 {strides = array<i32>} : memref<1x8x16x24xf32, #tpu.memory_space<vmem>>, vector<1x1x16x24xf32>,
    return
  }
  func.func @transform_0(%arg0: i32) -> (i32, i32, i32) {
    %c0_i32 = arith.constant 0 : i32
    %c0_i32_0 = arith.constant 0 : i32
    %c0_i32_1 = arith.constant 0 : i32
    return %arg0, %c0_i32, %c0_i32_0 : i32, i32, i32
  }
  func.func @transform_1(%arg0: i32) -> (i32, i32) {
    %c0_i32 = arith.constant 0 : i32
    %c0_i32_0 = arith.constant 0 : i32
    %c0_i32_1 = arith.constant 0 : i32
    return %c0_i32, %c0_i32_0 : i32, i32
  }
  func.func @transform_2(%arg0: i32) -> (i32, i32) {
    %c0_i32 = arith.constant 0 : i32
    %c0_i32_0 = arith.constant 0 : i32
    %c0_i32_1 = arith.constant 0 : i32
    return %c0_i32, %c0_i32_0 : i32, i32
  }
  func.func @transform_3(%arg0: i32) -> (i32, i32) {
    %c0_i32 = arith.constant 0 : i32
    %c0_i32_0 = arith.constant 0 : i32
    %c0_i32_1 = arith.constant 0 : i32
    return %c0_i32, %c0_i32_0 : i32, i32
  }
  func.func @transform_4(%arg0: i32) -> (i32, i32, i32, i32) {
    %c0_i32 = arith.constant 0 : i32
    %c0_i32_0 = arith.constant 0 : i32
    %c0_i32_1 = arith.constant 0 : i32
    %c0_i32_2 = arith.constant 0 : i32
    return %arg0, %c0_i32, %c0_i32_0, %c0_i32_1 : i32, i32, i32, i32
  }
}

module attributes {stable_mosaic.version = 11 : i64} {
  func.func @_block_s2_kernel(%arg0: i32, %arg1: memref<1x100x24xf32, #tpu.memory_space<vmem>>, %arg2: memref<100x1xf32, #tpu.memory_space<vmem>>, %arg3: memref<24x24xf32, #tpu.memory_space<vmem>>, %arg4: memref<1x24xf32, #tpu.memory_space<vmem>>, %arg5: memref<9x1x24xf32, #tpu.memory_space<vmem>>, %arg6: memref<1x24xf32, #tpu.memory_space<vmem>>, %arg7: memref<24x24xf32, #tpu.memory_space<vmem>>, %arg8: memref<1x24xf32, #tpu.memory_space<vmem>>, %arg9: memref<9x1x24xf32, #tpu.memory_space<vmem>>, %arg10: memref<1x24xf32, #tpu.memory_space<vmem>>, %arg11: memref<24x24xf32, #tpu.memory_space<vmem>>, %arg12: memref<1x24xf32, #tpu.memory_space<vmem>>, %arg13: memref<1x4x8x24xf32, #tpu.memory_space<vmem>>, %arg14: memref<1x4x8x24xf32, #tpu.memory_space<vmem>>, %arg15: memref<100x24xf32, #tpu.memory_space<vmem>>, %arg16: memref<78x24xf32, #tpu.memory_space<vmem>>, %arg17: memref<78x24xf32, #tpu.memory_space<vmem>>) attributes {dimension_semantics = [#tpu.dimension_semantics<parallel>], iteration_bounds = array<i64: 2>, scalar_prefetch = 0 : i64, scratch_operands = 3 : i64, tpu.core_type = #tpu.core_type<tc>, window_params = [{transform_indices = @transform_0, window_bounds = array<i64: 1, 100, 24>}, {pipeline_mode = #tpu.pipeline_mode<synchronous>, transform_indices = @transform_1, window_bounds = array<i64: 100, 1>}, {pipeline_mode = #tpu.pipeline_mode<synchronous>, transform_indices = @transform_2, window_bounds = array<i64: 24, 24>}, {pipeline_mode = #tpu.pipeline_mode<synchronous>, transform_indices = @transform_3, window_bounds = array<i64: 1, 24>}, {pipeline_mode = #tpu.pipeline_mode<synchronous>, transform_indices = @transform_4, window_bounds = array<i64: 9, 1, 24>}, {pipeline_mode = #tpu.pipeline_mode<synchronous>, transform_indices = @transform_5, window_bounds = array<i64: 1, 24>}, {pipeline_mode = #tpu.pipeline_mode<synchronous>, transform_indices = @transform_6, window_bounds = array<i64: 24, 24>}, {pipeline_mode = #tpu.pipeline_mode<synchronous>, transform_indices = @transform_7, window_bounds = array<i64: 1, 24>}, {pipeline_mode = #tpu.pipeline_mode<synchronous>, transform_indices = @transform_8, window_bounds = array<i64: 9, 1, 24>}, {pipeline_mode = #tpu.pipeline_mode<synchronous>, transform_indices = @transform_9, window_bounds = array<i64: 1, 24>}, {pipeline_mode = #tpu.pipeline_mode<synchronous>, transform_indices = @transform_10, window_bounds = array<i64: 24, 24>}, {pipeline_mode = #tpu.pipeline_mode<synchronous>, transform_indices = @transform_11, window_bounds = array<i64: 1, 24>}, {transform_indices = @transform_12, window_bounds = array<i64: 1, 4, 8, 24>}, {transform_indices = @transform_13, window_bounds = array<i64: 1, 4, 8, 24>}]} {
    %c0 = arith.constant 0 : index
    %c0_0 = arith.constant 0 : index
    %c0_1 = arith.constant 0 : index
    %0 = vector.load %arg1[%c0, %c0_0, %c0_1] : memref<1x100x24xf32, #tpu.memory_space<vmem>>, vector<1x100x24xf32>
    %1 = vector.shape_cast %0 : vector<1x100x24xf32> to vector<100x24xf32>
    %c0_2 = arith.constant 0 : index
    %c0_3 = arith.constant 0 : index
    %2 = vector.load %arg3[%c0_2, %c0_3] : memref<24x24xf32, #tpu.memory_space<vmem>>, vector<24x24xf32>
    %cst = arith.constant dense<0.000000e+00> : vector<100x24xf32>
    %3 = tpu.matmul %1, %2, %cst {dimension_numbers = #tpu.dot_dimension_numbers<[1], [0], [0], [1], [0, 0, 1, 1], [], []>} : vector<100x24xf32>, vector<24x24xf32>, vector<100x24xf32> -> vector<100x24xf32>
    %c0_4 = arith.constant 0 : index
    %c0_5 = arith.constant 0 : index
    %4 = vector.load %arg4[%c0_4, %c0_5] : memref<1x24xf32, #tpu.memory_space<vmem>>, vector<1x24xf32>
    %5 = vector.broadcast %4 : vector<1x24xf32> to vector<100x24xf32>
    %6 = arith.addf %3, %5 : vector<100x24xf32>
    %cst_6 = arith.constant 0.000000e+00 : f32
    %7 = vector.broadcast %cst_6 : f32 to vector<100x24xf32>
    %8 = arith.maximumf %6, %7 : vector<100x24xf32>
    %c0_7 = arith.constant 0 : index
    %c0_8 = arith.constant 0 : index
    %9 = vector.load %arg2[%c0_7, %c0_8] : memref<100x1xf32, #tpu.memory_space<vmem>>, vector<100x1xf32>
    %10 = vector.broadcast %9 : vector<100x1xf32> to vector<100x24xf32>
    %11 = arith.mulf %8, %10 : vector<100x24xf32>
    %c0_9 = arith.constant 0 : index
    %c0_10 = arith.constant 0 : index
    %12 = vector.load %arg15[%c0_9, %c0_10] : memref<100x24xf32, #tpu.memory_space<vmem>>, vector<100x24xf32>
    tpu.vector_store %arg15[%c0_9, %c0_10], %11 {strides = array<i32>} : memref<100x24xf32, #tpu.memory_space<vmem>>, vector<100x24xf32>,
    %cst_11 = arith.constant 0.000000e+00 : f32
    %13 = vector.broadcast %cst_11 : f32 to vector<78x24xf32>
    %c0_12 = arith.constant 0 : index
    %c0_13 = arith.constant 0 : index
    %14 = vector.load %arg6[%c0_12, %c0_13] : memref<1x24xf32, #tpu.memory_space<vmem>>, vector<1x24xf32>
    %15 = vector.broadcast %14 : vector<1x24xf32> to vector<78x24xf32>
    %16 = arith.addf %13, %15 : vector<78x24xf32>
    %cst_14 = arith.constant 0.000000e+00 : f32
    %17 = vector.broadcast %cst_14 : f32 to vector<78x24xf32>
    %c0_15 = arith.constant 0 : index
    %c0_16 = arith.constant 0 : index
    %18 = vector.load %arg10[%c0_15, %c0_16] : memref<1x24xf32, #tpu.memory_space<vmem>>, vector<1x24xf32>
    %19 = vector.broadcast %18 : vector<1x24xf32> to vector<78x24xf32>
    %20 = arith.addf %17, %19 : vector<78x24xf32>
    %c0_17 = arith.constant 0 : index
    %c0_18 = arith.constant 0 : index
    %21 = vector.load %arg15[%c0_17, %c0_18] : memref<100x24xf32, #tpu.memory_space<vmem>>, vector<78x24xf32>
    %c0_19 = arith.constant 0 : index
    %c0_20 = arith.constant 0 : index
    %c0_21 = arith.constant 0 : index
    %22 = vector.load %arg5[%c0_19, %c0_20, %c0_21] : memref<9x1x24xf32, #tpu.memory_space<vmem>>, vector<1x1x24xf32>
    %23 = vector.shape_cast %22 : vector<1x1x24xf32> to vector<1x24xf32>
    %24 = vector.broadcast %23 : vector<1x24xf32> to vector<78x24xf32>
    %25 = arith.mulf %21, %24 : vector<78x24xf32>
    %26 = arith.addf %16, %25 : vector<78x24xf32>
    %c0_22 = arith.constant 0 : index
    %c0_23 = arith.constant 0 : index
    %c0_24 = arith.constant 0 : index
    %27 = vector.load %arg1[%c0_22, %c0_23, %c0_24] : memref<1x100x24xf32, #tpu.memory_space<vmem>>, vector<1x78x24xf32>
    %28 = vector.shape_cast %27 : vector<1x78x24xf32> to vector<78x24xf32>
    %c0_25 = arith.constant 0 : index
    %c0_26 = arith.constant 0 : index
    %c0_27 = arith.constant 0 : index
    %29 = vector.load %arg9[%c0_25, %c0_26, %c0_27] : memref<9x1x24xf32, #tpu.memory_space<vmem>>, vector<1x1x24xf32>
    %30 = vector.shape_cast %29 : vector<1x1x24xf32> to vector<1x24xf32>
    %31 = vector.broadcast %30 : vector<1x24xf32> to vector<78x24xf32>
    %32 = arith.mulf %28, %31 : vector<78x24xf32>
    %33 = arith.addf %20, %32 : vector<78x24xf32>
    %c1 = arith.constant 1 : index
    %c0_28 = arith.constant 0 : index
    %34 = vector.load %arg15[%c1, %c0_28] : memref<100x24xf32, #tpu.memory_space<vmem>>, vector<78x24xf32>
    %c1_29 = arith.constant 1 : index
    %c0_30 = arith.constant 0 : index
    %c0_31 = arith.constant 0 : index
    %35 = vector.load %arg5[%c1_29, %c0_30, %c0_31] : memref<9x1x24xf32, #tpu.memory_space<vmem>>, vector<1x1x24xf32>
    %36 = vector.shape_cast %35 : vector<1x1x24xf32> to vector<1x24xf32>
    %37 = vector.broadcast %36 : vector<1x24xf32> to vector<78x24xf32>
    %38 = arith.mulf %34, %37 : vector<78x24xf32>
    %39 = arith.addf %26, %38 : vector<78x24xf32>
    %c0_32 = arith.constant 0 : index
    %c1_33 = arith.constant 1 : index
    %c0_34 = arith.constant 0 : index
    %40 = vector.load %arg1[%c0_32, %c1_33, %c0_34] : memref<1x100x24xf32, #tpu.memory_space<vmem>>, vector<1x78x24xf32>
    %41 = vector.shape_cast %40 : vector<1x78x24xf32> to vector<78x24xf32>
    %c1_35 = arith.constant 1 : index
    %c0_36 = arith.constant 0 : index
    %c0_37 = arith.constant 0 : index
    %42 = vector.load %arg9[%c1_35, %c0_36, %c0_37] : memref<9x1x24xf32, #tpu.memory_space<vmem>>, vector<1x1x24xf32>
    %43 = vector.shape_cast %42 : vector<1x1x24xf32> to vector<1x24xf32>
    %44 = vector.broadcast %43 : vector<1x24xf32> to vector<78x24xf32>
    %45 = arith.mulf %41, %44 : vector<78x24xf32>
    %46 = arith.addf %33, %45 : vector<78x24xf32>
    %c2 = arith.constant 2 : index
    %c0_38 = arith.constant 0 : index
    %47 = vector.load %arg15[%c2, %c0_38] : memref<100x24xf32, #tpu.memory_space<vmem>>, vector<78x24xf32>
    %c2_39 = arith.constant 2 : index
    %c0_40 = arith.constant 0 : index
    %c0_41 = arith.constant 0 : index
    %48 = vector.load %arg5[%c2_39, %c0_40, %c0_41] : memref<9x1x24xf32, #tpu.memory_space<vmem>>, vector<1x1x24xf32>
    %49 = vector.shape_cast %48 : vector<1x1x24xf32> to vector<1x24xf32>
    %50 = vector.broadcast %49 : vector<1x24xf32> to vector<78x24xf32>
    %51 = arith.mulf %47, %50 : vector<78x24xf32>
    %52 = arith.addf %39, %51 : vector<78x24xf32>
    %c0_42 = arith.constant 0 : index
    %c2_43 = arith.constant 2 : index
    %c0_44 = arith.constant 0 : index
    %53 = vector.load %arg1[%c0_42, %c2_43, %c0_44] : memref<1x100x24xf32, #tpu.memory_space<vmem>>, vector<1x78x24xf32>
    %54 = vector.shape_cast %53 : vector<1x78x24xf32> to vector<78x24xf32>
    %c2_45 = arith.constant 2 : index
    %c0_46 = arith.constant 0 : index
    %c0_47 = arith.constant 0 : index
    %55 = vector.load %arg9[%c2_45, %c0_46, %c0_47] : memref<9x1x24xf32, #tpu.memory_space<vmem>>, vector<1x1x24xf32>
    %56 = vector.shape_cast %55 : vector<1x1x24xf32> to vector<1x24xf32>
    %57 = vector.broadcast %56 : vector<1x24xf32> to vector<78x24xf32>
    %58 = arith.mulf %54, %57 : vector<78x24xf32>
    %59 = arith.addf %46, %58 : vector<78x24xf32>
    %c10 = arith.constant 10 : index
    %c0_48 = arith.constant 0 : index
    %60 = vector.load %arg15[%c10, %c0_48] : memref<100x24xf32, #tpu.memory_space<vmem>>, vector<78x24xf32>
    %c3 = arith.constant 3 : index
    %c0_49 = arith.constant 0 : index
    %c0_50 = arith.constant 0 : index
    %61 = vector.load %arg5[%c3, %c0_49, %c0_50] : memref<9x1x24xf32, #tpu.memory_space<vmem>>, vector<1x1x24xf32>
    %62 = vector.shape_cast %61 : vector<1x1x24xf32> to vector<1x24xf32>
    %63 = vector.broadcast %62 : vector<1x24xf32> to vector<78x24xf32>
    %64 = arith.mulf %60, %63 : vector<78x24xf32>
    %65 = arith.addf %52, %64 : vector<78x24xf32>
    %c0_51 = arith.constant 0 : index
    %c10_52 = arith.constant 10 : index
    %c0_53 = arith.constant 0 : index
    %66 = vector.load %arg1[%c0_51, %c10_52, %c0_53] : memref<1x100x24xf32, #tpu.memory_space<vmem>>, vector<1x78x24xf32>
    %67 = vector.shape_cast %66 : vector<1x78x24xf32> to vector<78x24xf32>
    %c3_54 = arith.constant 3 : index
    %c0_55 = arith.constant 0 : index
    %c0_56 = arith.constant 0 : index
    %68 = vector.load %arg9[%c3_54, %c0_55, %c0_56] : memref<9x1x24xf32, #tpu.memory_space<vmem>>, vector<1x1x24xf32>
    %69 = vector.shape_cast %68 : vector<1x1x24xf32> to vector<1x24xf32>
    %70 = vector.broadcast %69 : vector<1x24xf32> to vector<78x24xf32>
    %71 = arith.mulf %67, %70 : vector<78x24xf32>
    %72 = arith.addf %59, %71 : vector<78x24xf32>
    %c11 = arith.constant 11 : index
    %c0_57 = arith.constant 0 : index
    %73 = vector.load %arg15[%c11, %c0_57] : memref<100x24xf32, #tpu.memory_space<vmem>>, vector<78x24xf32>
    %c4 = arith.constant 4 : index
    %c0_58 = arith.constant 0 : index
    %c0_59 = arith.constant 0 : index
    %74 = vector.load %arg5[%c4, %c0_58, %c0_59] : memref<9x1x24xf32, #tpu.memory_space<vmem>>, vector<1x1x24xf32>
    %75 = vector.shape_cast %74 : vector<1x1x24xf32> to vector<1x24xf32>
    %76 = vector.broadcast %75 : vector<1x24xf32> to vector<78x24xf32>
    %77 = arith.mulf %73, %76 : vector<78x24xf32>
    %78 = arith.addf %65, %77 : vector<78x24xf32>
    %c0_60 = arith.constant 0 : index
    %c11_61 = arith.constant 11 : index
    %c0_62 = arith.constant 0 : index
    %79 = vector.load %arg1[%c0_60, %c11_61, %c0_62] : memref<1x100x24xf32, #tpu.memory_space<vmem>>, vector<1x78x24xf32>
    %80 = vector.shape_cast %79 : vector<1x78x24xf32> to vector<78x24xf32>
    %c4_63 = arith.constant 4 : index
    %c0_64 = arith.constant 0 : index
    %c0_65 = arith.constant 0 : index
    %81 = vector.load %arg9[%c4_63, %c0_64, %c0_65] : memref<9x1x24xf32, #tpu.memory_space<vmem>>, vector<1x1x24xf32>
    %82 = vector.shape_cast %81 : vector<1x1x24xf32> to vector<1x24xf32>
    %83 = vector.broadcast %82 : vector<1x24xf32> to vector<78x24xf32>
    %84 = arith.mulf %80, %83 : vector<78x24xf32>
    %85 = arith.addf %72, %84 : vector<78x24xf32>
    %c12 = arith.constant 12 : index
    %c0_66 = arith.constant 0 : index
    %86 = vector.load %arg15[%c12, %c0_66] : memref<100x24xf32, #tpu.memory_space<vmem>>, vector<78x24xf32>
    %c5 = arith.constant 5 : index
    %c0_67 = arith.constant 0 : index
    %c0_68 = arith.constant 0 : index
    %87 = vector.load %arg5[%c5, %c0_67, %c0_68] : memref<9x1x24xf32, #tpu.memory_space<vmem>>, vector<1x1x24xf32>
    %88 = vector.shape_cast %87 : vector<1x1x24xf32> to vector<1x24xf32>
    %89 = vector.broadcast %88 : vector<1x24xf32> to vector<78x24xf32>
    %90 = arith.mulf %86, %89 : vector<78x24xf32>
    %91 = arith.addf %78, %90 : vector<78x24xf32>
    %c0_69 = arith.constant 0 : index
    %c12_70 = arith.constant 12 : index
    %c0_71 = arith.constant 0 : index
    %92 = vector.load %arg1[%c0_69, %c12_70, %c0_71] : memref<1x100x24xf32, #tpu.memory_space<vmem>>, vector<1x78x24xf32>
    %93 = vector.shape_cast %92 : vector<1x78x24xf32> to vector<78x24xf32>
    %c5_72 = arith.constant 5 : index
    %c0_73 = arith.constant 0 : index
    %c0_74 = arith.constant 0 : index
    %94 = vector.load %arg9[%c5_72, %c0_73, %c0_74] : memref<9x1x24xf32, #tpu.memory_space<vmem>>, vector<1x1x24xf32>
    %95 = vector.shape_cast %94 : vector<1x1x24xf32> to vector<1x24xf32>
    %96 = vector.broadcast %95 : vector<1x24xf32> to vector<78x24xf32>
    %97 = arith.mulf %93, %96 : vector<78x24xf32>
    %98 = arith.addf %85, %97 : vector<78x24xf32>
    %c20 = arith.constant 20 : index
    %c0_75 = arith.constant 0 : index
    %99 = vector.load %arg15[%c20, %c0_75] : memref<100x24xf32, #tpu.memory_space<vmem>>, vector<78x24xf32>
    %c6 = arith.constant 6 : index
    %c0_76 = arith.constant 0 : index
    %c0_77 = arith.constant 0 : index
    %100 = vector.load %arg5[%c6, %c0_76, %c0_77] : memref<9x1x24xf32, #tpu.memory_space<vmem>>, vector<1x1x24xf32>
    %101 = vector.shape_cast %100 : vector<1x1x24xf32> to vector<1x24xf32>
    %102 = vector.broadcast %101 : vector<1x24xf32> to vector<78x24xf32>
    %103 = arith.mulf %99, %102 : vector<78x24xf32>
    %104 = arith.addf %91, %103 : vector<78x24xf32>
    %c0_78 = arith.constant 0 : index
    %c20_79 = arith.constant 20 : index
    %c0_80 = arith.constant 0 : index
    %105 = vector.load %arg1[%c0_78, %c20_79, %c0_80] : memref<1x100x24xf32, #tpu.memory_space<vmem>>, vector<1x78x24xf32>
    %106 = vector.shape_cast %105 : vector<1x78x24xf32> to vector<78x24xf32>
    %c6_81 = arith.constant 6 : index
    %c0_82 = arith.constant 0 : index
    %c0_83 = arith.constant 0 : index
    %107 = vector.load %arg9[%c6_81, %c0_82, %c0_83] : memref<9x1x24xf32, #tpu.memory_space<vmem>>, vector<1x1x24xf32>
    %108 = vector.shape_cast %107 : vector<1x1x24xf32> to vector<1x24xf32>
    %109 = vector.broadcast %108 : vector<1x24xf32> to vector<78x24xf32>
    %110 = arith.mulf %106, %109 : vector<78x24xf32>
    %111 = arith.addf %98, %110 : vector<78x24xf32>
    %c21 = arith.constant 21 : index
    %c0_84 = arith.constant 0 : index
    %112 = vector.load %arg15[%c21, %c0_84] : memref<100x24xf32, #tpu.memory_space<vmem>>, vector<78x24xf32>
    %c7 = arith.constant 7 : index
    %c0_85 = arith.constant 0 : index
    %c0_86 = arith.constant 0 : index
    %113 = vector.load %arg5[%c7, %c0_85, %c0_86] : memref<9x1x24xf32, #tpu.memory_space<vmem>>, vector<1x1x24xf32>
    %114 = vector.shape_cast %113 : vector<1x1x24xf32> to vector<1x24xf32>
    %115 = vector.broadcast %114 : vector<1x24xf32> to vector<78x24xf32>
    %116 = arith.mulf %112, %115 : vector<78x24xf32>
    %117 = arith.addf %104, %116 : vector<78x24xf32>
    %c0_87 = arith.constant 0 : index
    %c21_88 = arith.constant 21 : index
    %c0_89 = arith.constant 0 : index
    %118 = vector.load %arg1[%c0_87, %c21_88, %c0_89] : memref<1x100x24xf32, #tpu.memory_space<vmem>>, vector<1x78x24xf32>
    %119 = vector.shape_cast %118 : vector<1x78x24xf32> to vector<78x24xf32>
    %c7_90 = arith.constant 7 : index
    %c0_91 = arith.constant 0 : index
    %c0_92 = arith.constant 0 : index
    %120 = vector.load %arg9[%c7_90, %c0_91, %c0_92] : memref<9x1x24xf32, #tpu.memory_space<vmem>>, vector<1x1x24xf32>
    %121 = vector.shape_cast %120 : vector<1x1x24xf32> to vector<1x24xf32>
    %122 = vector.broadcast %121 : vector<1x24xf32> to vector<78x24xf32>
    %123 = arith.mulf %119, %122 : vector<78x24xf32>
    %124 = arith.addf %111, %123 : vector<78x24xf32>
    %c22 = arith.constant 22 : index
    %c0_93 = arith.constant 0 : index
    %125 = vector.load %arg15[%c22, %c0_93] : memref<100x24xf32, #tpu.memory_space<vmem>>, vector<78x24xf32>
    %c8 = arith.constant 8 : index
    %c0_94 = arith.constant 0 : index
    %c0_95 = arith.constant 0 : index
    %126 = vector.load %arg5[%c8, %c0_94, %c0_95] : memref<9x1x24xf32, #tpu.memory_space<vmem>>, vector<1x1x24xf32>
    %127 = vector.shape_cast %126 : vector<1x1x24xf32> to vector<1x24xf32>
    %128 = vector.broadcast %127 : vector<1x24xf32> to vector<78x24xf32>
    %129 = arith.mulf %125, %128 : vector<78x24xf32>
    %130 = arith.addf %117, %129 : vector<78x24xf32>
    %c0_96 = arith.constant 0 : index
    %c22_97 = arith.constant 22 : index
    %c0_98 = arith.constant 0 : index
    %131 = vector.load %arg1[%c0_96, %c22_97, %c0_98] : memref<1x100x24xf32, #tpu.memory_space<vmem>>, vector<1x78x24xf32>
    %132 = vector.shape_cast %131 : vector<1x78x24xf32> to vector<78x24xf32>
    %c8_99 = arith.constant 8 : index
    %c0_100 = arith.constant 0 : index
    %c0_101 = arith.constant 0 : index
    %133 = vector.load %arg9[%c8_99, %c0_100, %c0_101] : memref<9x1x24xf32, #tpu.memory_space<vmem>>, vector<1x1x24xf32>
    %134 = vector.shape_cast %133 : vector<1x1x24xf32> to vector<1x24xf32>
    %135 = vector.broadcast %134 : vector<1x24xf32> to vector<78x24xf32>
    %136 = arith.mulf %132, %135 : vector<78x24xf32>
    %137 = arith.addf %124, %136 : vector<78x24xf32>
    %c0_102 = arith.constant 0 : index
    %c0_103 = arith.constant 0 : index
    %138 = vector.load %arg7[%c0_102, %c0_103] : memref<24x24xf32, #tpu.memory_space<vmem>>, vector<24x24xf32>
    %cst_104 = arith.constant dense<0.000000e+00> : vector<78x24xf32>
    %139 = tpu.matmul %130, %138, %cst_104 {dimension_numbers = #tpu.dot_dimension_numbers<[1], [0], [0], [1], [0, 0, 1, 1], [], []>} : vector<78x24xf32>, vector<24x24xf32>, vector<78x24xf32> -> vector<78x24xf32>
    %c0_105 = arith.constant 0 : index
    %c0_106 = arith.constant 0 : index
    %140 = vector.load %arg8[%c0_105, %c0_106] : memref<1x24xf32, #tpu.memory_space<vmem>>, vector<1x24xf32>
    %141 = vector.broadcast %140 : vector<1x24xf32> to vector<78x24xf32>
    %142 = arith.addf %139, %141 : vector<78x24xf32>
    %cst_107 = arith.constant 0.000000e+00 : f32
    %143 = vector.broadcast %cst_107 : f32 to vector<78x24xf32>
    %144 = arith.maximumf %142, %143 : vector<78x24xf32>
    %c0_108 = arith.constant 0 : index
    %c0_109 = arith.constant 0 : index
    %145 = vector.load %arg16[%c0_108, %c0_109] : memref<78x24xf32, #tpu.memory_space<vmem>>, vector<78x24xf32>
    tpu.vector_store %arg16[%c0_108, %c0_109], %144 {strides = array<i32>} : memref<78x24xf32, #tpu.memory_space<vmem>>, vector<78x24xf32>,
    %c0_110 = arith.constant 0 : index
    %c0_111 = arith.constant 0 : index
    %146 = vector.load %arg11[%c0_110, %c0_111] : memref<24x24xf32, #tpu.memory_space<vmem>>, vector<24x24xf32>
    %cst_112 = arith.constant dense<0.000000e+00> : vector<78x24xf32>
    %147 = tpu.matmul %137, %146, %cst_112 {dimension_numbers = #tpu.dot_dimension_numbers<[1], [0], [0], [1], [0, 0, 1, 1], [], []>} : vector<78x24xf32>, vector<24x24xf32>, vector<78x24xf32> -> vector<78x24xf32>
    %c0_113 = arith.constant 0 : index
    %c0_114 = arith.constant 0 : index
    %148 = vector.load %arg12[%c0_113, %c0_114] : memref<1x24xf32, #tpu.memory_space<vmem>>, vector<1x24xf32>
    %149 = vector.broadcast %148 : vector<1x24xf32> to vector<78x24xf32>
    %150 = arith.addf %147, %149 : vector<78x24xf32>
    %cst_115 = arith.constant 0.000000e+00 : f32
    %151 = vector.broadcast %cst_115 : f32 to vector<78x24xf32>
    %152 = arith.maximumf %150, %151 : vector<78x24xf32>
    %c0_116 = arith.constant 0 : index
    %c0_117 = arith.constant 0 : index
    %153 = vector.load %arg17[%c0_116, %c0_117] : memref<78x24xf32, #tpu.memory_space<vmem>>, vector<78x24xf32>
    tpu.vector_store %arg17[%c0_116, %c0_117], %152 {strides = array<i32>} : memref<78x24xf32, #tpu.memory_space<vmem>>, vector<78x24xf32>,
    %c0_118 = arith.constant 0 : index
    %c0_119 = arith.constant 0 : index
    %154 = vector.load %arg16[%c0_118, %c0_119] : memref<78x24xf32, #tpu.memory_space<vmem>>, vector<8x24xf32>
    %c0_120 = arith.constant 0 : index
    %c0_121 = arith.constant 0 : index
    %c0_122 = arith.constant 0 : index
    %c0_123 = arith.constant 0 : index
    %155 = vector.load %arg13[%c0_120, %c0_121, %c0_122, %c0_123] : memref<1x4x8x24xf32, #tpu.memory_space<vmem>>, vector<1x1x8x24xf32>
    %156 = vector.shape_cast %155 : vector<1x1x8x24xf32> to vector<8x24xf32>
    %157 = vector.shape_cast %154 : vector<8x24xf32> to vector<1x1x8x24xf32>
    tpu.vector_store %arg13[%c0_120, %c0_121, %c0_122, %c0_123], %157 {strides = array<i32>} : memref<1x4x8x24xf32, #tpu.memory_space<vmem>>, vector<1x1x8x24xf32>,
    %c0_124 = arith.constant 0 : index
    %c0_125 = arith.constant 0 : index
    %158 = vector.load %arg17[%c0_124, %c0_125] : memref<78x24xf32, #tpu.memory_space<vmem>>, vector<8x24xf32>
    %c0_126 = arith.constant 0 : index
    %c0_127 = arith.constant 0 : index
    %c0_128 = arith.constant 0 : index
    %c0_129 = arith.constant 0 : index
    %159 = vector.load %arg14[%c0_126, %c0_127, %c0_128, %c0_129] : memref<1x4x8x24xf32, #tpu.memory_space<vmem>>, vector<1x1x8x24xf32>
    %160 = vector.shape_cast %159 : vector<1x1x8x24xf32> to vector<8x24xf32>
    %161 = vector.shape_cast %158 : vector<8x24xf32> to vector<1x1x8x24xf32>
    tpu.vector_store %arg14[%c0_126, %c0_127, %c0_128, %c0_129], %161 {strides = array<i32>} : memref<1x4x8x24xf32, #tpu.memory_space<vmem>>, vector<1x1x8x24xf32>,
    %c20_130 = arith.constant 20 : index
    %c0_131 = arith.constant 0 : index
    %162 = vector.load %arg16[%c20_130, %c0_131] : memref<78x24xf32, #tpu.memory_space<vmem>>, vector<8x24xf32>
    %c0_132 = arith.constant 0 : index
    %c1_133 = arith.constant 1 : index
    %c0_134 = arith.constant 0 : index
    %c0_135 = arith.constant 0 : index
    %163 = vector.load %arg13[%c0_132, %c1_133, %c0_134, %c0_135] : memref<1x4x8x24xf32, #tpu.memory_space<vmem>>, vector<1x1x8x24xf32>
    %164 = vector.shape_cast %163 : vector<1x1x8x24xf32> to vector<8x24xf32>
    %165 = vector.shape_cast %162 : vector<8x24xf32> to vector<1x1x8x24xf32>
    tpu.vector_store %arg13[%c0_132, %c1_133, %c0_134, %c0_135], %165 {strides = array<i32>} : memref<1x4x8x24xf32, #tpu.memory_space<vmem>>, vector<1x1x8x24xf32>,
    %c20_136 = arith.constant 20 : index
    %c0_137 = arith.constant 0 : index
    %166 = vector.load %arg17[%c20_136, %c0_137] : memref<78x24xf32, #tpu.memory_space<vmem>>, vector<8x24xf32>
    %c0_138 = arith.constant 0 : index
    %c1_139 = arith.constant 1 : index
    %c0_140 = arith.constant 0 : index
    %c0_141 = arith.constant 0 : index
    %167 = vector.load %arg14[%c0_138, %c1_139, %c0_140, %c0_141] : memref<1x4x8x24xf32, #tpu.memory_space<vmem>>, vector<1x1x8x24xf32>
    %168 = vector.shape_cast %167 : vector<1x1x8x24xf32> to vector<8x24xf32>
    %169 = vector.shape_cast %166 : vector<8x24xf32> to vector<1x1x8x24xf32>
    tpu.vector_store %arg14[%c0_138, %c1_139, %c0_140, %c0_141], %169 {strides = array<i32>} : memref<1x4x8x24xf32, #tpu.memory_space<vmem>>, vector<1x1x8x24xf32>,
    %c40 = arith.constant 40 : index
    %c0_142 = arith.constant 0 : index
    %170 = vector.load %arg16[%c40, %c0_142] : memref<78x24xf32, #tpu.memory_space<vmem>>, vector<8x24xf32>
    %c0_143 = arith.constant 0 : index
    %c2_144 = arith.constant 2 : index
    %c0_145 = arith.constant 0 : index
    %c0_146 = arith.constant 0 : index
    %171 = vector.load %arg13[%c0_143, %c2_144, %c0_145, %c0_146] : memref<1x4x8x24xf32, #tpu.memory_space<vmem>>, vector<1x1x8x24xf32>
    %172 = vector.shape_cast %171 : vector<1x1x8x24xf32> to vector<8x24xf32>
    %173 = vector.shape_cast %170 : vector<8x24xf32> to vector<1x1x8x24xf32>
    tpu.vector_store %arg13[%c0_143, %c2_144, %c0_145, %c0_146], %173 {strides = array<i32>} : memref<1x4x8x24xf32, #tpu.memory_space<vmem>>, vector<1x1x8x24xf32>,
    %c40_147 = arith.constant 40 : index
    %c0_148 = arith.constant 0 : index
    %174 = vector.load %arg17[%c40_147, %c0_148] : memref<78x24xf32, #tpu.memory_space<vmem>>, vector<8x24xf32>
    %c0_149 = arith.constant 0 : index
    %c2_150 = arith.constant 2 : index
    %c0_151 = arith.constant 0 : index
    %c0_152 = arith.constant 0 : index
    %175 = vector.load %arg14[%c0_149, %c2_150, %c0_151, %c0_152] : memref<1x4x8x24xf32, #tpu.memory_space<vmem>>, vector<1x1x8x24xf32>
    %176 = vector.shape_cast %175 : vector<1x1x8x24xf32> to vector<8x24xf32>
    %177 = vector.shape_cast %174 : vector<8x24xf32> to vector<1x1x8x24xf32>
    tpu.vector_store %arg14[%c0_149, %c2_150, %c0_151, %c0_152], %177 {strides = array<i32>} : memref<1x4x8x24xf32, #tpu.memory_space<vmem>>, vector<1x1x8x24xf32>,
    %c60 = arith.constant 60 : index
    %c0_153 = arith.constant 0 : index
    %178 = vector.load %arg16[%c60, %c0_153] : memref<78x24xf32, #tpu.memory_space<vmem>>, vector<8x24xf32>
    %c0_154 = arith.constant 0 : index
    %c3_155 = arith.constant 3 : index
    %c0_156 = arith.constant 0 : index
    %c0_157 = arith.constant 0 : index
    %179 = vector.load %arg13[%c0_154, %c3_155, %c0_156, %c0_157] : memref<1x4x8x24xf32, #tpu.memory_space<vmem>>, vector<1x1x8x24xf32>
    %180 = vector.shape_cast %179 : vector<1x1x8x24xf32> to vector<8x24xf32>
    %181 = vector.shape_cast %178 : vector<8x24xf32> to vector<1x1x8x24xf32>
    tpu.vector_store %arg13[%c0_154, %c3_155, %c0_156, %c0_157], %181 {strides = array<i32>} : memref<1x4x8x24xf32, #tpu.memory_space<vmem>>, vector<1x1x8x24xf32>,
    %c60_158 = arith.constant 60 : index
    %c0_159 = arith.constant 0 : index
    %182 = vector.load %arg17[%c60_158, %c0_159] : memref<78x24xf32, #tpu.memory_space<vmem>>, vector<8x24xf32>
    %c0_160 = arith.constant 0 : index
    %c3_161 = arith.constant 3 : index
    %c0_162 = arith.constant 0 : index
    %c0_163 = arith.constant 0 : index
    %183 = vector.load %arg14[%c0_160, %c3_161, %c0_162, %c0_163] : memref<1x4x8x24xf32, #tpu.memory_space<vmem>>, vector<1x1x8x24xf32>
    %184 = vector.shape_cast %183 : vector<1x1x8x24xf32> to vector<8x24xf32>
    %185 = vector.shape_cast %182 : vector<8x24xf32> to vector<1x1x8x24xf32>
    tpu.vector_store %arg14[%c0_160, %c3_161, %c0_162, %c0_163], %185 {strides = array<i32>} : memref<1x4x8x24xf32, #tpu.memory_space<vmem>>, vector<1x1x8x24xf32>,
    return
  }
  func.func @transform_0(%arg0: i32) -> (i32, i32, i32) {
    %c0_i32 = arith.constant 0 : i32
    %c0_i32_0 = arith.constant 0 : i32
    %c0_i32_1 = arith.constant 0 : i32
    return %arg0, %c0_i32, %c0_i32_0 : i32, i32, i32
  }
  func.func @transform_1(%arg0: i32) -> (i32, i32) {
    %c0_i32 = arith.constant 0 : i32
    %c0_i32_0 = arith.constant 0 : i32
    %c0_i32_1 = arith.constant 0 : i32
    return %c0_i32, %c0_i32_0 : i32, i32
  }
  func.func @transform_2(%arg0: i32) -> (i32, i32) {
    %c0_i32 = arith.constant 0 : i32
    %c0_i32_0 = arith.constant 0 : i32
    %c0_i32_1 = arith.constant 0 : i32
    return %c0_i32, %c0_i32_0 : i32, i32
  }
  func.func @transform_3(%arg0: i32) -> (i32, i32) {
    %c0_i32 = arith.constant 0 : i32
    %c0_i32_0 = arith.constant 0 : i32
    %c0_i32_1 = arith.constant 0 : i32
    return %c0_i32, %c0_i32_0 : i32, i32
  }
  func.func @transform_4(%arg0: i32) -> (i32, i32, i32) {
    %c0_i32 = arith.constant 0 : i32
    %c0_i32_0 = arith.constant 0 : i32
    %c0_i32_1 = arith.constant 0 : i32
    %c0_i32_2 = arith.constant 0 : i32
    return %c0_i32, %c0_i32_0, %c0_i32_1 : i32, i32, i32
  }
  func.func @transform_5(%arg0: i32) -> (i32, i32) {
    %c0_i32 = arith.constant 0 : i32
    %c0_i32_0 = arith.constant 0 : i32
    %c0_i32_1 = arith.constant 0 : i32
    return %c0_i32, %c0_i32_0 : i32, i32
  }
  func.func @transform_6(%arg0: i32) -> (i32, i32) {
    %c0_i32 = arith.constant 0 : i32
    %c0_i32_0 = arith.constant 0 : i32
    %c0_i32_1 = arith.constant 0 : i32
    return %c0_i32, %c0_i32_0 : i32, i32
  }
  func.func @transform_7(%arg0: i32) -> (i32, i32) {
    %c0_i32 = arith.constant 0 : i32
    %c0_i32_0 = arith.constant 0 : i32
    %c0_i32_1 = arith.constant 0 : i32
    return %c0_i32, %c0_i32_0 : i32, i32
  }
  func.func @transform_8(%arg0: i32) -> (i32, i32, i32) {
    %c0_i32 = arith.constant 0 : i32
    %c0_i32_0 = arith.constant 0 : i32
    %c0_i32_1 = arith.constant 0 : i32
    %c0_i32_2 = arith.constant 0 : i32
    return %c0_i32, %c0_i32_0, %c0_i32_1 : i32, i32, i32
  }
  func.func @transform_9(%arg0: i32) -> (i32, i32) {
    %c0_i32 = arith.constant 0 : i32
    %c0_i32_0 = arith.constant 0 : i32
    %c0_i32_1 = arith.constant 0 : i32
    return %c0_i32, %c0_i32_0 : i32, i32
  }
  func.func @transform_10(%arg0: i32) -> (i32, i32) {
    %c0_i32 = arith.constant 0 : i32
    %c0_i32_0 = arith.constant 0 : i32
    %c0_i32_1 = arith.constant 0 : i32
    return %c0_i32, %c0_i32_0 : i32, i32
  }
  func.func @transform_11(%arg0: i32) -> (i32, i32) {
    %c0_i32 = arith.constant 0 : i32
    %c0_i32_0 = arith.constant 0 : i32
    %c0_i32_1 = arith.constant 0 : i32
    return %c0_i32, %c0_i32_0 : i32, i32
  }
  func.func @transform_12(%arg0: i32) -> (i32, i32, i32, i32) {
    %c0_i32 = arith.constant 0 : i32
    %c0_i32_0 = arith.constant 0 : i32
    %c0_i32_1 = arith.constant 0 : i32
    %c0_i32_2 = arith.constant 0 : i32
    return %arg0, %c0_i32, %c0_i32_0, %c0_i32_1 : i32, i32, i32, i32
  }
  func.func @transform_13(%arg0: i32) -> (i32, i32, i32, i32) {
    %c0_i32 = arith.constant 0 : i32
    %c0_i32_0 = arith.constant 0 : i32
    %c0_i32_1 = arith.constant 0 : i32
    %c0_i32_2 = arith.constant 0 : i32
    return %arg0, %c0_i32, %c0_i32_0, %c0_i32_1 : i32, i32, i32, i32
  }
}

module attributes {stable_mosaic.version = 11 : i64} {
  func.func @_block_s1_kernel(%arg0: i32, %arg1: memref<1x36x24xf32, #tpu.memory_space<vmem>>, %arg2: memref<36x1xf32, #tpu.memory_space<vmem>>, %arg3: memref<24x24xf32, #tpu.memory_space<vmem>>, %arg4: memref<1x24xf32, #tpu.memory_space<vmem>>, %arg5: memref<9x1x24xf32, #tpu.memory_space<vmem>>, %arg6: memref<1x24xf32, #tpu.memory_space<vmem>>, %arg7: memref<24x24xf32, #tpu.memory_space<vmem>>, %arg8: memref<1x24xf32, #tpu.memory_space<vmem>>, %arg9: memref<1x4x4x24xf32, #tpu.memory_space<vmem>>, %arg10: memref<36x24xf32, #tpu.memory_space<vmem>>, %arg11: memref<22x24xf32, #tpu.memory_space<vmem>>) attributes {dimension_semantics = [#tpu.dimension_semantics<parallel>], iteration_bounds = array<i64: 2>, scalar_prefetch = 0 : i64, scratch_operands = 2 : i64, tpu.core_type = #tpu.core_type<tc>, window_params = [{transform_indices = @transform_0, window_bounds = array<i64: 1, 36, 24>}, {pipeline_mode = #tpu.pipeline_mode<synchronous>, transform_indices = @transform_1, window_bounds = array<i64: 36, 1>}, {pipeline_mode = #tpu.pipeline_mode<synchronous>, transform_indices = @transform_2, window_bounds = array<i64: 24, 24>}, {pipeline_mode = #tpu.pipeline_mode<synchronous>, transform_indices = @transform_3, window_bounds = array<i64: 1, 24>}, {pipeline_mode = #tpu.pipeline_mode<synchronous>, transform_indices = @transform_4, window_bounds = array<i64: 9, 1, 24>}, {pipeline_mode = #tpu.pipeline_mode<synchronous>, transform_indices = @transform_5, window_bounds = array<i64: 1, 24>}, {pipeline_mode = #tpu.pipeline_mode<synchronous>, transform_indices = @transform_6, window_bounds = array<i64: 24, 24>}, {pipeline_mode = #tpu.pipeline_mode<synchronous>, transform_indices = @transform_7, window_bounds = array<i64: 1, 24>}, {transform_indices = @transform_8, window_bounds = array<i64: 1, 4, 4, 24>}]} {
    %c0 = arith.constant 0 : index
    %c0_0 = arith.constant 0 : index
    %c0_1 = arith.constant 0 : index
    %0 = vector.load %arg1[%c0, %c0_0, %c0_1] : memref<1x36x24xf32, #tpu.memory_space<vmem>>, vector<1x36x24xf32>
    %1 = vector.shape_cast %0 : vector<1x36x24xf32> to vector<36x24xf32>
    %c0_2 = arith.constant 0 : index
    %c0_3 = arith.constant 0 : index
    %2 = vector.load %arg3[%c0_2, %c0_3] : memref<24x24xf32, #tpu.memory_space<vmem>>, vector<24x24xf32>
    %cst = arith.constant dense<0.000000e+00> : vector<36x24xf32>
    %3 = tpu.matmul %1, %2, %cst {dimension_numbers = #tpu.dot_dimension_numbers<[1], [0], [0], [1], [0, 0, 1, 1], [], []>} : vector<36x24xf32>, vector<24x24xf32>, vector<36x24xf32> -> vector<36x24xf32>
    %c0_4 = arith.constant 0 : index
    %c0_5 = arith.constant 0 : index
    %4 = vector.load %arg4[%c0_4, %c0_5] : memref<1x24xf32, #tpu.memory_space<vmem>>, vector<1x24xf32>
    %5 = vector.broadcast %4 : vector<1x24xf32> to vector<36x24xf32>
    %6 = arith.addf %3, %5 : vector<36x24xf32>
    %cst_6 = arith.constant 0.000000e+00 : f32
    %7 = vector.broadcast %cst_6 : f32 to vector<36x24xf32>
    %8 = arith.maximumf %6, %7 : vector<36x24xf32>
    %c0_7 = arith.constant 0 : index
    %c0_8 = arith.constant 0 : index
    %9 = vector.load %arg2[%c0_7, %c0_8] : memref<36x1xf32, #tpu.memory_space<vmem>>, vector<36x1xf32>
    %10 = vector.broadcast %9 : vector<36x1xf32> to vector<36x24xf32>
    %11 = arith.mulf %8, %10 : vector<36x24xf32>
    %c0_9 = arith.constant 0 : index
    %c0_10 = arith.constant 0 : index
    %12 = vector.load %arg10[%c0_9, %c0_10] : memref<36x24xf32, #tpu.memory_space<vmem>>, vector<36x24xf32>
    tpu.vector_store %arg10[%c0_9, %c0_10], %11 {strides = array<i32>} : memref<36x24xf32, #tpu.memory_space<vmem>>, vector<36x24xf32>,
    %cst_11 = arith.constant 0.000000e+00 : f32
    %13 = vector.broadcast %cst_11 : f32 to vector<22x24xf32>
    %c0_12 = arith.constant 0 : index
    %c0_13 = arith.constant 0 : index
    %14 = vector.load %arg6[%c0_12, %c0_13] : memref<1x24xf32, #tpu.memory_space<vmem>>, vector<1x24xf32>
    %15 = vector.broadcast %14 : vector<1x24xf32> to vector<22x24xf32>
    %16 = arith.addf %13, %15 : vector<22x24xf32>
    %c0_14 = arith.constant 0 : index
    %c0_15 = arith.constant 0 : index
    %17 = vector.load %arg10[%c0_14, %c0_15] : memref<36x24xf32, #tpu.memory_space<vmem>>, vector<22x24xf32>
    %c0_16 = arith.constant 0 : index
    %c0_17 = arith.constant 0 : index
    %c0_18 = arith.constant 0 : index
    %18 = vector.load %arg5[%c0_16, %c0_17, %c0_18] : memref<9x1x24xf32, #tpu.memory_space<vmem>>, vector<1x1x24xf32>
    %19 = vector.shape_cast %18 : vector<1x1x24xf32> to vector<1x24xf32>
    %20 = vector.broadcast %19 : vector<1x24xf32> to vector<22x24xf32>
    %21 = arith.mulf %17, %20 : vector<22x24xf32>
    %22 = arith.addf %16, %21 : vector<22x24xf32>
    %c1 = arith.constant 1 : index
    %c0_19 = arith.constant 0 : index
    %23 = vector.load %arg10[%c1, %c0_19] : memref<36x24xf32, #tpu.memory_space<vmem>>, vector<22x24xf32>
    %c1_20 = arith.constant 1 : index
    %c0_21 = arith.constant 0 : index
    %c0_22 = arith.constant 0 : index
    %24 = vector.load %arg5[%c1_20, %c0_21, %c0_22] : memref<9x1x24xf32, #tpu.memory_space<vmem>>, vector<1x1x24xf32>
    %25 = vector.shape_cast %24 : vector<1x1x24xf32> to vector<1x24xf32>
    %26 = vector.broadcast %25 : vector<1x24xf32> to vector<22x24xf32>
    %27 = arith.mulf %23, %26 : vector<22x24xf32>
    %28 = arith.addf %22, %27 : vector<22x24xf32>
    %c2 = arith.constant 2 : index
    %c0_23 = arith.constant 0 : index
    %29 = vector.load %arg10[%c2, %c0_23] : memref<36x24xf32, #tpu.memory_space<vmem>>, vector<22x24xf32>
    %c2_24 = arith.constant 2 : index
    %c0_25 = arith.constant 0 : index
    %c0_26 = arith.constant 0 : index
    %30 = vector.load %arg5[%c2_24, %c0_25, %c0_26] : memref<9x1x24xf32, #tpu.memory_space<vmem>>, vector<1x1x24xf32>
    %31 = vector.shape_cast %30 : vector<1x1x24xf32> to vector<1x24xf32>
    %32 = vector.broadcast %31 : vector<1x24xf32> to vector<22x24xf32>
    %33 = arith.mulf %29, %32 : vector<22x24xf32>
    %34 = arith.addf %28, %33 : vector<22x24xf32>
    %c6 = arith.constant 6 : index
    %c0_27 = arith.constant 0 : index
    %35 = vector.load %arg10[%c6, %c0_27] : memref<36x24xf32, #tpu.memory_space<vmem>>, vector<22x24xf32>
    %c3 = arith.constant 3 : index
    %c0_28 = arith.constant 0 : index
    %c0_29 = arith.constant 0 : index
    %36 = vector.load %arg5[%c3, %c0_28, %c0_29] : memref<9x1x24xf32, #tpu.memory_space<vmem>>, vector<1x1x24xf32>
    %37 = vector.shape_cast %36 : vector<1x1x24xf32> to vector<1x24xf32>
    %38 = vector.broadcast %37 : vector<1x24xf32> to vector<22x24xf32>
    %39 = arith.mulf %35, %38 : vector<22x24xf32>
    %40 = arith.addf %34, %39 : vector<22x24xf32>
    %c7 = arith.constant 7 : index
    %c0_30 = arith.constant 0 : index
    %41 = vector.load %arg10[%c7, %c0_30] : memref<36x24xf32, #tpu.memory_space<vmem>>, vector<22x24xf32>
    %c4 = arith.constant 4 : index
    %c0_31 = arith.constant 0 : index
    %c0_32 = arith.constant 0 : index
    %42 = vector.load %arg5[%c4, %c0_31, %c0_32] : memref<9x1x24xf32, #tpu.memory_space<vmem>>, vector<1x1x24xf32>
    %43 = vector.shape_cast %42 : vector<1x1x24xf32> to vector<1x24xf32>
    %44 = vector.broadcast %43 : vector<1x24xf32> to vector<22x24xf32>
    %45 = arith.mulf %41, %44 : vector<22x24xf32>
    %46 = arith.addf %40, %45 : vector<22x24xf32>
    %c8 = arith.constant 8 : index
    %c0_33 = arith.constant 0 : index
    %47 = vector.load %arg10[%c8, %c0_33] : memref<36x24xf32, #tpu.memory_space<vmem>>, vector<22x24xf32>
    %c5 = arith.constant 5 : index
    %c0_34 = arith.constant 0 : index
    %c0_35 = arith.constant 0 : index
    %48 = vector.load %arg5[%c5, %c0_34, %c0_35] : memref<9x1x24xf32, #tpu.memory_space<vmem>>, vector<1x1x24xf32>
    %49 = vector.shape_cast %48 : vector<1x1x24xf32> to vector<1x24xf32>
    %50 = vector.broadcast %49 : vector<1x24xf32> to vector<22x24xf32>
    %51 = arith.mulf %47, %50 : vector<22x24xf32>
    %52 = arith.addf %46, %51 : vector<22x24xf32>
    %c12 = arith.constant 12 : index
    %c0_36 = arith.constant 0 : index
    %53 = vector.load %arg10[%c12, %c0_36] : memref<36x24xf32, #tpu.memory_space<vmem>>, vector<22x24xf32>
    %c6_37 = arith.constant 6 : index
    %c0_38 = arith.constant 0 : index
    %c0_39 = arith.constant 0 : index
    %54 = vector.load %arg5[%c6_37, %c0_38, %c0_39] : memref<9x1x24xf32, #tpu.memory_space<vmem>>, vector<1x1x24xf32>
    %55 = vector.shape_cast %54 : vector<1x1x24xf32> to vector<1x24xf32>
    %56 = vector.broadcast %55 : vector<1x24xf32> to vector<22x24xf32>
    %57 = arith.mulf %53, %56 : vector<22x24xf32>
    %58 = arith.addf %52, %57 : vector<22x24xf32>
    %c13 = arith.constant 13 : index
    %c0_40 = arith.constant 0 : index
    %59 = vector.load %arg10[%c13, %c0_40] : memref<36x24xf32, #tpu.memory_space<vmem>>, vector<22x24xf32>
    %c7_41 = arith.constant 7 : index
    %c0_42 = arith.constant 0 : index
    %c0_43 = arith.constant 0 : index
    %60 = vector.load %arg5[%c7_41, %c0_42, %c0_43] : memref<9x1x24xf32, #tpu.memory_space<vmem>>, vector<1x1x24xf32>
    %61 = vector.shape_cast %60 : vector<1x1x24xf32> to vector<1x24xf32>
    %62 = vector.broadcast %61 : vector<1x24xf32> to vector<22x24xf32>
    %63 = arith.mulf %59, %62 : vector<22x24xf32>
    %64 = arith.addf %58, %63 : vector<22x24xf32>
    %c14 = arith.constant 14 : index
    %c0_44 = arith.constant 0 : index
    %65 = vector.load %arg10[%c14, %c0_44] : memref<36x24xf32, #tpu.memory_space<vmem>>, vector<22x24xf32>
    %c8_45 = arith.constant 8 : index
    %c0_46 = arith.constant 0 : index
    %c0_47 = arith.constant 0 : index
    %66 = vector.load %arg5[%c8_45, %c0_46, %c0_47] : memref<9x1x24xf32, #tpu.memory_space<vmem>>, vector<1x1x24xf32>
    %67 = vector.shape_cast %66 : vector<1x1x24xf32> to vector<1x24xf32>
    %68 = vector.broadcast %67 : vector<1x24xf32> to vector<22x24xf32>
    %69 = arith.mulf %65, %68 : vector<22x24xf32>
    %70 = arith.addf %64, %69 : vector<22x24xf32>
    %c0_48 = arith.constant 0 : index
    %c0_49 = arith.constant 0 : index
    %71 = vector.load %arg7[%c0_48, %c0_49] : memref<24x24xf32, #tpu.memory_space<vmem>>, vector<24x24xf32>
    %cst_50 = arith.constant dense<0.000000e+00> : vector<22x24xf32>
    %72 = tpu.matmul %70, %71, %cst_50 {dimension_numbers = #tpu.dot_dimension_numbers<[1], [0], [0], [1], [0, 0, 1, 1], [], []>} : vector<22x24xf32>, vector<24x24xf32>, vector<22x24xf32> -> vector<22x24xf32>
    %c0_51 = arith.constant 0 : index
    %c0_52 = arith.constant 0 : index
    %73 = vector.load %arg8[%c0_51, %c0_52] : memref<1x24xf32, #tpu.memory_space<vmem>>, vector<1x24xf32>
    %74 = vector.broadcast %73 : vector<1x24xf32> to vector<22x24xf32>
    %75 = arith.addf %72, %74 : vector<22x24xf32>
    %cst_53 = arith.constant 0.000000e+00 : f32
    %76 = vector.broadcast %cst_53 : f32 to vector<22x24xf32>
    %77 = arith.maximumf %75, %76 : vector<22x24xf32>
    %c0_54 = arith.constant 0 : index
    %c0_55 = arith.constant 0 : index
    %78 = vector.load %arg11[%c0_54, %c0_55] : memref<22x24xf32, #tpu.memory_space<vmem>>, vector<22x24xf32>
    tpu.vector_store %arg11[%c0_54, %c0_55], %77 {strides = array<i32>} : memref<22x24xf32, #tpu.memory_space<vmem>>, vector<22x24xf32>,
    %c0_56 = arith.constant 0 : index
    %c0_57 = arith.constant 0 : index
    %79 = vector.load %arg11[%c0_56, %c0_57] : memref<22x24xf32, #tpu.memory_space<vmem>>, vector<4x24xf32>
    %c0_58 = arith.constant 0 : index
    %c0_59 = arith.constant 0 : index
    %c0_60 = arith.constant 0 : index
    %c0_61 = arith.constant 0 : index
    %80 = vector.load %arg9[%c0_58, %c0_59, %c0_60, %c0_61] : memref<1x4x4x24xf32, #tpu.memory_space<vmem>>, vector<1x1x4x24xf32>
    %81 = vector.shape_cast %80 : vector<1x1x4x24xf32> to vector<4x24xf32>
    %82 = vector.shape_cast %79 : vector<4x24xf32> to vector<1x1x4x24xf32>
    tpu.vector_store %arg9[%c0_58, %c0_59, %c0_60, %c0_61], %82 {strides = array<i32>} : memref<1x4x4x24xf32, #tpu.memory_space<vmem>>, vector<1x1x4x24xf32>,
    %c6_62 = arith.constant 6 : index
    %c0_63 = arith.constant 0 : index
    %83 = vector.load %arg11[%c6_62, %c0_63] : memref<22x24xf32, #tpu.memory_space<vmem>>, vector<4x24xf32>
    %c0_64 = arith.constant 0 : index
    %c1_65 = arith.constant 1 : index
    %c0_66 = arith.constant 0 : index
    %c0_67 = arith.constant 0 : index
    %84 = vector.load %arg9[%c0_64, %c1_65, %c0_66, %c0_67] : memref<1x4x4x24xf32, #tpu.memory_space<vmem>>, vector<1x1x4x24xf32>
    %85 = vector.shape_cast %84 : vector<1x1x4x24xf32> to vector<4x24xf32>
    %86 = vector.shape_cast %83 : vector<4x24xf32> to vector<1x1x4x24xf32>
    tpu.vector_store %arg9[%c0_64, %c1_65, %c0_66, %c0_67], %86 {strides = array<i32>} : memref<1x4x4x24xf32, #tpu.memory_space<vmem>>, vector<1x1x4x24xf32>,
    %c12_68 = arith.constant 12 : index
    %c0_69 = arith.constant 0 : index
    %87 = vector.load %arg11[%c12_68, %c0_69] : memref<22x24xf32, #tpu.memory_space<vmem>>, vector<4x24xf32>
    %c0_70 = arith.constant 0 : index
    %c2_71 = arith.constant 2 : index
    %c0_72 = arith.constant 0 : index
    %c0_73 = arith.constant 0 : index
    %88 = vector.load %arg9[%c0_70, %c2_71, %c0_72, %c0_73] : memref<1x4x4x24xf32, #tpu.memory_space<vmem>>, vector<1x1x4x24xf32>
    %89 = vector.shape_cast %88 : vector<1x1x4x24xf32> to vector<4x24xf32>
    %90 = vector.shape_cast %87 : vector<4x24xf32> to vector<1x1x4x24xf32>
    tpu.vector_store %arg9[%c0_70, %c2_71, %c0_72, %c0_73], %90 {strides = array<i32>} : memref<1x4x4x24xf32, #tpu.memory_space<vmem>>, vector<1x1x4x24xf32>,
    %c18 = arith.constant 18 : index
    %c0_74 = arith.constant 0 : index
    %91 = vector.load %arg11[%c18, %c0_74] : memref<22x24xf32, #tpu.memory_space<vmem>>, vector<4x24xf32>
    %c0_75 = arith.constant 0 : index
    %c3_76 = arith.constant 3 : index
    %c0_77 = arith.constant 0 : index
    %c0_78 = arith.constant 0 : index
    %92 = vector.load %arg9[%c0_75, %c3_76, %c0_77, %c0_78] : memref<1x4x4x24xf32, #tpu.memory_space<vmem>>, vector<1x1x4x24xf32>
    %93 = vector.shape_cast %92 : vector<1x1x4x24xf32> to vector<4x24xf32>
    %94 = vector.shape_cast %91 : vector<4x24xf32> to vector<1x1x4x24xf32>
    tpu.vector_store %arg9[%c0_75, %c3_76, %c0_77, %c0_78], %94 {strides = array<i32>} : memref<1x4x4x24xf32, #tpu.memory_space<vmem>>, vector<1x1x4x24xf32>,
    return
  }
  func.func @transform_0(%arg0: i32) -> (i32, i32, i32) {
    %c0_i32 = arith.constant 0 : i32
    %c0_i32_0 = arith.constant 0 : i32
    %c0_i32_1 = arith.constant 0 : i32
    return %arg0, %c0_i32, %c0_i32_0 : i32, i32, i32
  }
  func.func @transform_1(%arg0: i32) -> (i32, i32) {
    %c0_i32 = arith.constant 0 : i32
    %c0_i32_0 = arith.constant 0 : i32
    %c0_i32_1 = arith.constant 0 : i32
    return %c0_i32, %c0_i32_0 : i32, i32
  }
  func.func @transform_2(%arg0: i32) -> (i32, i32) {
    %c0_i32 = arith.constant 0 : i32
    %c0_i32_0 = arith.constant 0 : i32
    %c0_i32_1 = arith.constant 0 : i32
    return %c0_i32, %c0_i32_0 : i32, i32
  }
  func.func @transform_3(%arg0: i32) -> (i32, i32) {
    %c0_i32 = arith.constant 0 : i32
    %c0_i32_0 = arith.constant 0 : i32
    %c0_i32_1 = arith.constant 0 : i32
    return %c0_i32, %c0_i32_0 : i32, i32
  }
  func.func @transform_4(%arg0: i32) -> (i32, i32, i32) {
    %c0_i32 = arith.constant 0 : i32
    %c0_i32_0 = arith.constant 0 : i32
    %c0_i32_1 = arith.constant 0 : i32
    %c0_i32_2 = arith.constant 0 : i32
    return %c0_i32, %c0_i32_0, %c0_i32_1 : i32, i32, i32
  }
  func.func @transform_5(%arg0: i32) -> (i32, i32) {
    %c0_i32 = arith.constant 0 : i32
    %c0_i32_0 = arith.constant 0 : i32
    %c0_i32_1 = arith.constant 0 : i32
    return %c0_i32, %c0_i32_0 : i32, i32
  }
  func.func @transform_6(%arg0: i32) -> (i32, i32) {
    %c0_i32 = arith.constant 0 : i32
    %c0_i32_0 = arith.constant 0 : i32
    %c0_i32_1 = arith.constant 0 : i32
    return %c0_i32, %c0_i32_0 : i32, i32
  }
  func.func @transform_7(%arg0: i32) -> (i32, i32) {
    %c0_i32 = arith.constant 0 : i32
    %c0_i32_0 = arith.constant 0 : i32
    %c0_i32_1 = arith.constant 0 : i32
    return %c0_i32, %c0_i32_0 : i32, i32
  }
  func.func @transform_8(%arg0: i32) -> (i32, i32, i32, i32) {
    %c0_i32 = arith.constant 0 : i32
    %c0_i32_0 = arith.constant 0 : i32
    %c0_i32_1 = arith.constant 0 : i32
    %c0_i32_2 = arith.constant 0 : i32
    return %arg0, %c0_i32, %c0_i32_0, %c0_i32_1 : i32, i32, i32, i32
  }
}

module attributes {stable_mosaic.version = 11 : i64} {
  func.func @_block_s2_kernel(%arg0: i32, %arg1: memref<1x36x48xf32, #tpu.memory_space<vmem>>, %arg2: memref<36x1xf32, #tpu.memory_space<vmem>>, %arg3: memref<48x48xf32, #tpu.memory_space<vmem>>, %arg4: memref<1x48xf32, #tpu.memory_space<vmem>>, %arg5: memref<9x1x48xf32, #tpu.memory_space<vmem>>, %arg6: memref<1x48xf32, #tpu.memory_space<vmem>>, %arg7: memref<48x48xf32, #tpu.memory_space<vmem>>, %arg8: memref<1x48xf32, #tpu.memory_space<vmem>>, %arg9: memref<9x1x48xf32, #tpu.memory_space<vmem>>, %arg10: memref<1x48xf32, #tpu.memory_space<vmem>>, %arg11: memref<48x48xf32, #tpu.memory_space<vmem>>, %arg12: memref<1x48xf32, #tpu.memory_space<vmem>>, %arg13: memref<1x2x4x48xf32, #tpu.memory_space<vmem>>, %arg14: memref<1x2x4x48xf32, #tpu.memory_space<vmem>>, %arg15: memref<36x48xf32, #tpu.memory_space<vmem>>, %arg16: memref<22x48xf32, #tpu.memory_space<vmem>>, %arg17: memref<22x48xf32, #tpu.memory_space<vmem>>) attributes {dimension_semantics = [#tpu.dimension_semantics<parallel>], iteration_bounds = array<i64: 2>, scalar_prefetch = 0 : i64, scratch_operands = 3 : i64, tpu.core_type = #tpu.core_type<tc>, window_params = [{transform_indices = @transform_0, window_bounds = array<i64: 1, 36, 48>}, {pipeline_mode = #tpu.pipeline_mode<synchronous>, transform_indices = @transform_1, window_bounds = array<i64: 36, 1>}, {pipeline_mode = #tpu.pipeline_mode<synchronous>, transform_indices = @transform_2, window_bounds = array<i64: 48, 48>}, {pipeline_mode = #tpu.pipeline_mode<synchronous>, transform_indices = @transform_3, window_bounds = array<i64: 1, 48>}, {pipeline_mode = #tpu.pipeline_mode<synchronous>, transform_indices = @transform_4, window_bounds = array<i64: 9, 1, 48>}, {pipeline_mode = #tpu.pipeline_mode<synchronous>, transform_indices = @transform_5, window_bounds = array<i64: 1, 48>}, {pipeline_mode = #tpu.pipeline_mode<synchronous>, transform_indices = @transform_6, window_bounds = array<i64: 48, 48>}, {pipeline_mode = #tpu.pipeline_mode<synchronous>, transform_indices = @transform_7, window_bounds = array<i64: 1, 48>}, {pipeline_mode = #tpu.pipeline_mode<synchronous>, transform_indices = @transform_8, window_bounds = array<i64: 9, 1, 48>}, {pipeline_mode = #tpu.pipeline_mode<synchronous>, transform_indices = @transform_9, window_bounds = array<i64: 1, 48>}, {pipeline_mode = #tpu.pipeline_mode<synchronous>, transform_indices = @transform_10, window_bounds = array<i64: 48, 48>}, {pipeline_mode = #tpu.pipeline_mode<synchronous>, transform_indices = @transform_11, window_bounds = array<i64: 1, 48>}, {transform_indices = @transform_12, window_bounds = array<i64: 1, 2, 4, 48>}, {transform_indices = @transform_13, window_bounds = array<i64: 1, 2, 4, 48>}]} {
    %c0 = arith.constant 0 : index
    %c0_0 = arith.constant 0 : index
    %c0_1 = arith.constant 0 : index
    %0 = vector.load %arg1[%c0, %c0_0, %c0_1] : memref<1x36x48xf32, #tpu.memory_space<vmem>>, vector<1x36x48xf32>
    %1 = vector.shape_cast %0 : vector<1x36x48xf32> to vector<36x48xf32>
    %c0_2 = arith.constant 0 : index
    %c0_3 = arith.constant 0 : index
    %2 = vector.load %arg3[%c0_2, %c0_3] : memref<48x48xf32, #tpu.memory_space<vmem>>, vector<48x48xf32>
    %cst = arith.constant dense<0.000000e+00> : vector<36x48xf32>
    %3 = tpu.matmul %1, %2, %cst {dimension_numbers = #tpu.dot_dimension_numbers<[1], [0], [0], [1], [0, 0, 1, 1], [], []>} : vector<36x48xf32>, vector<48x48xf32>, vector<36x48xf32> -> vector<36x48xf32>
    %c0_4 = arith.constant 0 : index
    %c0_5 = arith.constant 0 : index
    %4 = vector.load %arg4[%c0_4, %c0_5] : memref<1x48xf32, #tpu.memory_space<vmem>>, vector<1x48xf32>
    %5 = vector.broadcast %4 : vector<1x48xf32> to vector<36x48xf32>
    %6 = arith.addf %3, %5 : vector<36x48xf32>
    %cst_6 = arith.constant 0.000000e+00 : f32
    %7 = vector.broadcast %cst_6 : f32 to vector<36x48xf32>
    %8 = arith.maximumf %6, %7 : vector<36x48xf32>
    %c0_7 = arith.constant 0 : index
    %c0_8 = arith.constant 0 : index
    %9 = vector.load %arg2[%c0_7, %c0_8] : memref<36x1xf32, #tpu.memory_space<vmem>>, vector<36x1xf32>
    %10 = vector.broadcast %9 : vector<36x1xf32> to vector<36x48xf32>
    %11 = arith.mulf %8, %10 : vector<36x48xf32>
    %c0_9 = arith.constant 0 : index
    %c0_10 = arith.constant 0 : index
    %12 = vector.load %arg15[%c0_9, %c0_10] : memref<36x48xf32, #tpu.memory_space<vmem>>, vector<36x48xf32>
    tpu.vector_store %arg15[%c0_9, %c0_10], %11 {strides = array<i32>} : memref<36x48xf32, #tpu.memory_space<vmem>>, vector<36x48xf32>,
    %cst_11 = arith.constant 0.000000e+00 : f32
    %13 = vector.broadcast %cst_11 : f32 to vector<22x48xf32>
    %c0_12 = arith.constant 0 : index
    %c0_13 = arith.constant 0 : index
    %14 = vector.load %arg6[%c0_12, %c0_13] : memref<1x48xf32, #tpu.memory_space<vmem>>, vector<1x48xf32>
    %15 = vector.broadcast %14 : vector<1x48xf32> to vector<22x48xf32>
    %16 = arith.addf %13, %15 : vector<22x48xf32>
    %cst_14 = arith.constant 0.000000e+00 : f32
    %17 = vector.broadcast %cst_14 : f32 to vector<22x48xf32>
    %c0_15 = arith.constant 0 : index
    %c0_16 = arith.constant 0 : index
    %18 = vector.load %arg10[%c0_15, %c0_16] : memref<1x48xf32, #tpu.memory_space<vmem>>, vector<1x48xf32>
    %19 = vector.broadcast %18 : vector<1x48xf32> to vector<22x48xf32>
    %20 = arith.addf %17, %19 : vector<22x48xf32>
    %c0_17 = arith.constant 0 : index
    %c0_18 = arith.constant 0 : index
    %21 = vector.load %arg15[%c0_17, %c0_18] : memref<36x48xf32, #tpu.memory_space<vmem>>, vector<22x48xf32>
    %c0_19 = arith.constant 0 : index
    %c0_20 = arith.constant 0 : index
    %c0_21 = arith.constant 0 : index
    %22 = vector.load %arg5[%c0_19, %c0_20, %c0_21] : memref<9x1x48xf32, #tpu.memory_space<vmem>>, vector<1x1x48xf32>
    %23 = vector.shape_cast %22 : vector<1x1x48xf32> to vector<1x48xf32>
    %24 = vector.broadcast %23 : vector<1x48xf32> to vector<22x48xf32>
    %25 = arith.mulf %21, %24 : vector<22x48xf32>
    %26 = arith.addf %16, %25 : vector<22x48xf32>
    %c0_22 = arith.constant 0 : index
    %c0_23 = arith.constant 0 : index
    %c0_24 = arith.constant 0 : index
    %27 = vector.load %arg1[%c0_22, %c0_23, %c0_24] : memref<1x36x48xf32, #tpu.memory_space<vmem>>, vector<1x22x48xf32>
    %28 = vector.shape_cast %27 : vector<1x22x48xf32> to vector<22x48xf32>
    %c0_25 = arith.constant 0 : index
    %c0_26 = arith.constant 0 : index
    %c0_27 = arith.constant 0 : index
    %29 = vector.load %arg9[%c0_25, %c0_26, %c0_27] : memref<9x1x48xf32, #tpu.memory_space<vmem>>, vector<1x1x48xf32>
    %30 = vector.shape_cast %29 : vector<1x1x48xf32> to vector<1x48xf32>
    %31 = vector.broadcast %30 : vector<1x48xf32> to vector<22x48xf32>
    %32 = arith.mulf %28, %31 : vector<22x48xf32>
    %33 = arith.addf %20, %32 : vector<22x48xf32>
    %c1 = arith.constant 1 : index
    %c0_28 = arith.constant 0 : index
    %34 = vector.load %arg15[%c1, %c0_28] : memref<36x48xf32, #tpu.memory_space<vmem>>, vector<22x48xf32>
    %c1_29 = arith.constant 1 : index
    %c0_30 = arith.constant 0 : index
    %c0_31 = arith.constant 0 : index
    %35 = vector.load %arg5[%c1_29, %c0_30, %c0_31] : memref<9x1x48xf32, #tpu.memory_space<vmem>>, vector<1x1x48xf32>
    %36 = vector.shape_cast %35 : vector<1x1x48xf32> to vector<1x48xf32>
    %37 = vector.broadcast %36 : vector<1x48xf32> to vector<22x48xf32>
    %38 = arith.mulf %34, %37 : vector<22x48xf32>
    %39 = arith.addf %26, %38 : vector<22x48xf32>
    %c0_32 = arith.constant 0 : index
    %c1_33 = arith.constant 1 : index
    %c0_34 = arith.constant 0 : index
    %40 = vector.load %arg1[%c0_32, %c1_33, %c0_34] : memref<1x36x48xf32, #tpu.memory_space<vmem>>, vector<1x22x48xf32>
    %41 = vector.shape_cast %40 : vector<1x22x48xf32> to vector<22x48xf32>
    %c1_35 = arith.constant 1 : index
    %c0_36 = arith.constant 0 : index
    %c0_37 = arith.constant 0 : index
    %42 = vector.load %arg9[%c1_35, %c0_36, %c0_37] : memref<9x1x48xf32, #tpu.memory_space<vmem>>, vector<1x1x48xf32>
    %43 = vector.shape_cast %42 : vector<1x1x48xf32> to vector<1x48xf32>
    %44 = vector.broadcast %43 : vector<1x48xf32> to vector<22x48xf32>
    %45 = arith.mulf %41, %44 : vector<22x48xf32>
    %46 = arith.addf %33, %45 : vector<22x48xf32>
    %c2 = arith.constant 2 : index
    %c0_38 = arith.constant 0 : index
    %47 = vector.load %arg15[%c2, %c0_38] : memref<36x48xf32, #tpu.memory_space<vmem>>, vector<22x48xf32>
    %c2_39 = arith.constant 2 : index
    %c0_40 = arith.constant 0 : index
    %c0_41 = arith.constant 0 : index
    %48 = vector.load %arg5[%c2_39, %c0_40, %c0_41] : memref<9x1x48xf32, #tpu.memory_space<vmem>>, vector<1x1x48xf32>
    %49 = vector.shape_cast %48 : vector<1x1x48xf32> to vector<1x48xf32>
    %50 = vector.broadcast %49 : vector<1x48xf32> to vector<22x48xf32>
    %51 = arith.mulf %47, %50 : vector<22x48xf32>
    %52 = arith.addf %39, %51 : vector<22x48xf32>
    %c0_42 = arith.constant 0 : index
    %c2_43 = arith.constant 2 : index
    %c0_44 = arith.constant 0 : index
    %53 = vector.load %arg1[%c0_42, %c2_43, %c0_44] : memref<1x36x48xf32, #tpu.memory_space<vmem>>, vector<1x22x48xf32>
    %54 = vector.shape_cast %53 : vector<1x22x48xf32> to vector<22x48xf32>
    %c2_45 = arith.constant 2 : index
    %c0_46 = arith.constant 0 : index
    %c0_47 = arith.constant 0 : index
    %55 = vector.load %arg9[%c2_45, %c0_46, %c0_47] : memref<9x1x48xf32, #tpu.memory_space<vmem>>, vector<1x1x48xf32>
    %56 = vector.shape_cast %55 : vector<1x1x48xf32> to vector<1x48xf32>
    %57 = vector.broadcast %56 : vector<1x48xf32> to vector<22x48xf32>
    %58 = arith.mulf %54, %57 : vector<22x48xf32>
    %59 = arith.addf %46, %58 : vector<22x48xf32>
    %c6 = arith.constant 6 : index
    %c0_48 = arith.constant 0 : index
    %60 = vector.load %arg15[%c6, %c0_48] : memref<36x48xf32, #tpu.memory_space<vmem>>, vector<22x48xf32>
    %c3 = arith.constant 3 : index
    %c0_49 = arith.constant 0 : index
    %c0_50 = arith.constant 0 : index
    %61 = vector.load %arg5[%c3, %c0_49, %c0_50] : memref<9x1x48xf32, #tpu.memory_space<vmem>>, vector<1x1x48xf32>
    %62 = vector.shape_cast %61 : vector<1x1x48xf32> to vector<1x48xf32>
    %63 = vector.broadcast %62 : vector<1x48xf32> to vector<22x48xf32>
    %64 = arith.mulf %60, %63 : vector<22x48xf32>
    %65 = arith.addf %52, %64 : vector<22x48xf32>
    %c0_51 = arith.constant 0 : index
    %c6_52 = arith.constant 6 : index
    %c0_53 = arith.constant 0 : index
    %66 = vector.load %arg1[%c0_51, %c6_52, %c0_53] : memref<1x36x48xf32, #tpu.memory_space<vmem>>, vector<1x22x48xf32>
    %67 = vector.shape_cast %66 : vector<1x22x48xf32> to vector<22x48xf32>
    %c3_54 = arith.constant 3 : index
    %c0_55 = arith.constant 0 : index
    %c0_56 = arith.constant 0 : index
    %68 = vector.load %arg9[%c3_54, %c0_55, %c0_56] : memref<9x1x48xf32, #tpu.memory_space<vmem>>, vector<1x1x48xf32>
    %69 = vector.shape_cast %68 : vector<1x1x48xf32> to vector<1x48xf32>
    %70 = vector.broadcast %69 : vector<1x48xf32> to vector<22x48xf32>
    %71 = arith.mulf %67, %70 : vector<22x48xf32>
    %72 = arith.addf %59, %71 : vector<22x48xf32>
    %c7 = arith.constant 7 : index
    %c0_57 = arith.constant 0 : index
    %73 = vector.load %arg15[%c7, %c0_57] : memref<36x48xf32, #tpu.memory_space<vmem>>, vector<22x48xf32>
    %c4 = arith.constant 4 : index
    %c0_58 = arith.constant 0 : index
    %c0_59 = arith.constant 0 : index
    %74 = vector.load %arg5[%c4, %c0_58, %c0_59] : memref<9x1x48xf32, #tpu.memory_space<vmem>>, vector<1x1x48xf32>
    %75 = vector.shape_cast %74 : vector<1x1x48xf32> to vector<1x48xf32>
    %76 = vector.broadcast %75 : vector<1x48xf32> to vector<22x48xf32>
    %77 = arith.mulf %73, %76 : vector<22x48xf32>
    %78 = arith.addf %65, %77 : vector<22x48xf32>
    %c0_60 = arith.constant 0 : index
    %c7_61 = arith.constant 7 : index
    %c0_62 = arith.constant 0 : index
    %79 = vector.load %arg1[%c0_60, %c7_61, %c0_62] : memref<1x36x48xf32, #tpu.memory_space<vmem>>, vector<1x22x48xf32>
    %80 = vector.shape_cast %79 : vector<1x22x48xf32> to vector<22x48xf32>
    %c4_63 = arith.constant 4 : index
    %c0_64 = arith.constant 0 : index
    %c0_65 = arith.constant 0 : index
    %81 = vector.load %arg9[%c4_63, %c0_64, %c0_65] : memref<9x1x48xf32, #tpu.memory_space<vmem>>, vector<1x1x48xf32>
    %82 = vector.shape_cast %81 : vector<1x1x48xf32> to vector<1x48xf32>
    %83 = vector.broadcast %82 : vector<1x48xf32> to vector<22x48xf32>
    %84 = arith.mulf %80, %83 : vector<22x48xf32>
    %85 = arith.addf %72, %84 : vector<22x48xf32>
    %c8 = arith.constant 8 : index
    %c0_66 = arith.constant 0 : index
    %86 = vector.load %arg15[%c8, %c0_66] : memref<36x48xf32, #tpu.memory_space<vmem>>, vector<22x48xf32>
    %c5 = arith.constant 5 : index
    %c0_67 = arith.constant 0 : index
    %c0_68 = arith.constant 0 : index
    %87 = vector.load %arg5[%c5, %c0_67, %c0_68] : memref<9x1x48xf32, #tpu.memory_space<vmem>>, vector<1x1x48xf32>
    %88 = vector.shape_cast %87 : vector<1x1x48xf32> to vector<1x48xf32>
    %89 = vector.broadcast %88 : vector<1x48xf32> to vector<22x48xf32>
    %90 = arith.mulf %86, %89 : vector<22x48xf32>
    %91 = arith.addf %78, %90 : vector<22x48xf32>
    %c0_69 = arith.constant 0 : index
    %c8_70 = arith.constant 8 : index
    %c0_71 = arith.constant 0 : index
    %92 = vector.load %arg1[%c0_69, %c8_70, %c0_71] : memref<1x36x48xf32, #tpu.memory_space<vmem>>, vector<1x22x48xf32>
    %93 = vector.shape_cast %92 : vector<1x22x48xf32> to vector<22x48xf32>
    %c5_72 = arith.constant 5 : index
    %c0_73 = arith.constant 0 : index
    %c0_74 = arith.constant 0 : index
    %94 = vector.load %arg9[%c5_72, %c0_73, %c0_74] : memref<9x1x48xf32, #tpu.memory_space<vmem>>, vector<1x1x48xf32>
    %95 = vector.shape_cast %94 : vector<1x1x48xf32> to vector<1x48xf32>
    %96 = vector.broadcast %95 : vector<1x48xf32> to vector<22x48xf32>
    %97 = arith.mulf %93, %96 : vector<22x48xf32>
    %98 = arith.addf %85, %97 : vector<22x48xf32>
    %c12 = arith.constant 12 : index
    %c0_75 = arith.constant 0 : index
    %99 = vector.load %arg15[%c12, %c0_75] : memref<36x48xf32, #tpu.memory_space<vmem>>, vector<22x48xf32>
    %c6_76 = arith.constant 6 : index
    %c0_77 = arith.constant 0 : index
    %c0_78 = arith.constant 0 : index
    %100 = vector.load %arg5[%c6_76, %c0_77, %c0_78] : memref<9x1x48xf32, #tpu.memory_space<vmem>>, vector<1x1x48xf32>
    %101 = vector.shape_cast %100 : vector<1x1x48xf32> to vector<1x48xf32>
    %102 = vector.broadcast %101 : vector<1x48xf32> to vector<22x48xf32>
    %103 = arith.mulf %99, %102 : vector<22x48xf32>
    %104 = arith.addf %91, %103 : vector<22x48xf32>
    %c0_79 = arith.constant 0 : index
    %c12_80 = arith.constant 12 : index
    %c0_81 = arith.constant 0 : index
    %105 = vector.load %arg1[%c0_79, %c12_80, %c0_81] : memref<1x36x48xf32, #tpu.memory_space<vmem>>, vector<1x22x48xf32>
    %106 = vector.shape_cast %105 : vector<1x22x48xf32> to vector<22x48xf32>
    %c6_82 = arith.constant 6 : index
    %c0_83 = arith.constant 0 : index
    %c0_84 = arith.constant 0 : index
    %107 = vector.load %arg9[%c6_82, %c0_83, %c0_84] : memref<9x1x48xf32, #tpu.memory_space<vmem>>, vector<1x1x48xf32>
    %108 = vector.shape_cast %107 : vector<1x1x48xf32> to vector<1x48xf32>
    %109 = vector.broadcast %108 : vector<1x48xf32> to vector<22x48xf32>
    %110 = arith.mulf %106, %109 : vector<22x48xf32>
    %111 = arith.addf %98, %110 : vector<22x48xf32>
    %c13 = arith.constant 13 : index
    %c0_85 = arith.constant 0 : index
    %112 = vector.load %arg15[%c13, %c0_85] : memref<36x48xf32, #tpu.memory_space<vmem>>, vector<22x48xf32>
    %c7_86 = arith.constant 7 : index
    %c0_87 = arith.constant 0 : index
    %c0_88 = arith.constant 0 : index
    %113 = vector.load %arg5[%c7_86, %c0_87, %c0_88] : memref<9x1x48xf32, #tpu.memory_space<vmem>>, vector<1x1x48xf32>
    %114 = vector.shape_cast %113 : vector<1x1x48xf32> to vector<1x48xf32>
    %115 = vector.broadcast %114 : vector<1x48xf32> to vector<22x48xf32>
    %116 = arith.mulf %112, %115 : vector<22x48xf32>
    %117 = arith.addf %104, %116 : vector<22x48xf32>
    %c0_89 = arith.constant 0 : index
    %c13_90 = arith.constant 13 : index
    %c0_91 = arith.constant 0 : index
    %118 = vector.load %arg1[%c0_89, %c13_90, %c0_91] : memref<1x36x48xf32, #tpu.memory_space<vmem>>, vector<1x22x48xf32>
    %119 = vector.shape_cast %118 : vector<1x22x48xf32> to vector<22x48xf32>
    %c7_92 = arith.constant 7 : index
    %c0_93 = arith.constant 0 : index
    %c0_94 = arith.constant 0 : index
    %120 = vector.load %arg9[%c7_92, %c0_93, %c0_94] : memref<9x1x48xf32, #tpu.memory_space<vmem>>, vector<1x1x48xf32>
    %121 = vector.shape_cast %120 : vector<1x1x48xf32> to vector<1x48xf32>
    %122 = vector.broadcast %121 : vector<1x48xf32> to vector<22x48xf32>
    %123 = arith.mulf %119, %122 : vector<22x48xf32>
    %124 = arith.addf %111, %123 : vector<22x48xf32>
    %c14 = arith.constant 14 : index
    %c0_95 = arith.constant 0 : index
    %125 = vector.load %arg15[%c14, %c0_95] : memref<36x48xf32, #tpu.memory_space<vmem>>, vector<22x48xf32>
    %c8_96 = arith.constant 8 : index
    %c0_97 = arith.constant 0 : index
    %c0_98 = arith.constant 0 : index
    %126 = vector.load %arg5[%c8_96, %c0_97, %c0_98] : memref<9x1x48xf32, #tpu.memory_space<vmem>>, vector<1x1x48xf32>
    %127 = vector.shape_cast %126 : vector<1x1x48xf32> to vector<1x48xf32>
    %128 = vector.broadcast %127 : vector<1x48xf32> to vector<22x48xf32>
    %129 = arith.mulf %125, %128 : vector<22x48xf32>
    %130 = arith.addf %117, %129 : vector<22x48xf32>
    %c0_99 = arith.constant 0 : index
    %c14_100 = arith.constant 14 : index
    %c0_101 = arith.constant 0 : index
    %131 = vector.load %arg1[%c0_99, %c14_100, %c0_101] : memref<1x36x48xf32, #tpu.memory_space<vmem>>, vector<1x22x48xf32>
    %132 = vector.shape_cast %131 : vector<1x22x48xf32> to vector<22x48xf32>
    %c8_102 = arith.constant 8 : index
    %c0_103 = arith.constant 0 : index
    %c0_104 = arith.constant 0 : index
    %133 = vector.load %arg9[%c8_102, %c0_103, %c0_104] : memref<9x1x48xf32, #tpu.memory_space<vmem>>, vector<1x1x48xf32>
    %134 = vector.shape_cast %133 : vector<1x1x48xf32> to vector<1x48xf32>
    %135 = vector.broadcast %134 : vector<1x48xf32> to vector<22x48xf32>
    %136 = arith.mulf %132, %135 : vector<22x48xf32>
    %137 = arith.addf %124, %136 : vector<22x48xf32>
    %c0_105 = arith.constant 0 : index
    %c0_106 = arith.constant 0 : index
    %138 = vector.load %arg7[%c0_105, %c0_106] : memref<48x48xf32, #tpu.memory_space<vmem>>, vector<48x48xf32>
    %cst_107 = arith.constant dense<0.000000e+00> : vector<22x48xf32>
    %139 = tpu.matmul %130, %138, %cst_107 {dimension_numbers = #tpu.dot_dimension_numbers<[1], [0], [0], [1], [0, 0, 1, 1], [], []>} : vector<22x48xf32>, vector<48x48xf32>, vector<22x48xf32> -> vector<22x48xf32>
    %c0_108 = arith.constant 0 : index
    %c0_109 = arith.constant 0 : index
    %140 = vector.load %arg8[%c0_108, %c0_109] : memref<1x48xf32, #tpu.memory_space<vmem>>, vector<1x48xf32>
    %141 = vector.broadcast %140 : vector<1x48xf32> to vector<22x48xf32>
    %142 = arith.addf %139, %141 : vector<22x48xf32>
    %cst_110 = arith.constant 0.000000e+00 : f32
    %143 = vector.broadcast %cst_110 : f32 to vector<22x48xf32>
    %144 = arith.maximumf %142, %143 : vector<22x48xf32>
    %c0_111 = arith.constant 0 : index
    %c0_112 = arith.constant 0 : index
    %145 = vector.load %arg16[%c0_111, %c0_112] : memref<22x48xf32, #tpu.memory_space<vmem>>, vector<22x48xf32>
    tpu.vector_store %arg16[%c0_111, %c0_112], %144 {strides = array<i32>} : memref<22x48xf32, #tpu.memory_space<vmem>>, vector<22x48xf32>,
    %c0_113 = arith.constant 0 : index
    %c0_114 = arith.constant 0 : index
    %146 = vector.load %arg11[%c0_113, %c0_114] : memref<48x48xf32, #tpu.memory_space<vmem>>, vector<48x48xf32>
    %cst_115 = arith.constant dense<0.000000e+00> : vector<22x48xf32>
    %147 = tpu.matmul %137, %146, %cst_115 {dimension_numbers = #tpu.dot_dimension_numbers<[1], [0], [0], [1], [0, 0, 1, 1], [], []>} : vector<22x48xf32>, vector<48x48xf32>, vector<22x48xf32> -> vector<22x48xf32>
    %c0_116 = arith.constant 0 : index
    %c0_117 = arith.constant 0 : index
    %148 = vector.load %arg12[%c0_116, %c0_117] : memref<1x48xf32, #tpu.memory_space<vmem>>, vector<1x48xf32>
    %149 = vector.broadcast %148 : vector<1x48xf32> to vector<22x48xf32>
    %150 = arith.addf %147, %149 : vector<22x48xf32>
    %cst_118 = arith.constant 0.000000e+00 : f32
    %151 = vector.broadcast %cst_118 : f32 to vector<22x48xf32>
    %152 = arith.maximumf %150, %151 : vector<22x48xf32>
    %c0_119 = arith.constant 0 : index
    %c0_120 = arith.constant 0 : index
    %153 = vector.load %arg17[%c0_119, %c0_120] : memref<22x48xf32, #tpu.memory_space<vmem>>, vector<22x48xf32>
    tpu.vector_store %arg17[%c0_119, %c0_120], %152 {strides = array<i32>} : memref<22x48xf32, #tpu.memory_space<vmem>>, vector<22x48xf32>,
    %c0_121 = arith.constant 0 : index
    %c0_122 = arith.constant 0 : index
    %154 = vector.load %arg16[%c0_121, %c0_122] : memref<22x48xf32, #tpu.memory_space<vmem>>, vector<4x48xf32>
    %c0_123 = arith.constant 0 : index
    %c0_124 = arith.constant 0 : index
    %c0_125 = arith.constant 0 : index
    %c0_126 = arith.constant 0 : index
    %155 = vector.load %arg13[%c0_123, %c0_124, %c0_125, %c0_126] : memref<1x2x4x48xf32, #tpu.memory_space<vmem>>, vector<1x1x4x48xf32>
    %156 = vector.shape_cast %155 : vector<1x1x4x48xf32> to vector<4x48xf32>
    %157 = vector.shape_cast %154 : vector<4x48xf32> to vector<1x1x4x48xf32>
    tpu.vector_store %arg13[%c0_123, %c0_124, %c0_125, %c0_126], %157 {strides = array<i32>} : memref<1x2x4x48xf32, #tpu.memory_space<vmem>>, vector<1x1x4x48xf32>,
    %c0_127 = arith.constant 0 : index
    %c0_128 = arith.constant 0 : index
    %158 = vector.load %arg17[%c0_127, %c0_128] : memref<22x48xf32, #tpu.memory_space<vmem>>, vector<4x48xf32>
    %c0_129 = arith.constant 0 : index
    %c0_130 = arith.constant 0 : index
    %c0_131 = arith.constant 0 : index
    %c0_132 = arith.constant 0 : index
    %159 = vector.load %arg14[%c0_129, %c0_130, %c0_131, %c0_132] : memref<1x2x4x48xf32, #tpu.memory_space<vmem>>, vector<1x1x4x48xf32>
    %160 = vector.shape_cast %159 : vector<1x1x4x48xf32> to vector<4x48xf32>
    %161 = vector.shape_cast %158 : vector<4x48xf32> to vector<1x1x4x48xf32>
    tpu.vector_store %arg14[%c0_129, %c0_130, %c0_131, %c0_132], %161 {strides = array<i32>} : memref<1x2x4x48xf32, #tpu.memory_space<vmem>>, vector<1x1x4x48xf32>,
    %c12_133 = arith.constant 12 : index
    %c0_134 = arith.constant 0 : index
    %162 = vector.load %arg16[%c12_133, %c0_134] : memref<22x48xf32, #tpu.memory_space<vmem>>, vector<4x48xf32>
    %c0_135 = arith.constant 0 : index
    %c1_136 = arith.constant 1 : index
    %c0_137 = arith.constant 0 : index
    %c0_138 = arith.constant 0 : index
    %163 = vector.load %arg13[%c0_135, %c1_136, %c0_137, %c0_138] : memref<1x2x4x48xf32, #tpu.memory_space<vmem>>, vector<1x1x4x48xf32>
    %164 = vector.shape_cast %163 : vector<1x1x4x48xf32> to vector<4x48xf32>
    %165 = vector.shape_cast %162 : vector<4x48xf32> to vector<1x1x4x48xf32>
    tpu.vector_store %arg13[%c0_135, %c1_136, %c0_137, %c0_138], %165 {strides = array<i32>} : memref<1x2x4x48xf32, #tpu.memory_space<vmem>>, vector<1x1x4x48xf32>,
    %c12_139 = arith.constant 12 : index
    %c0_140 = arith.constant 0 : index
    %166 = vector.load %arg17[%c12_139, %c0_140] : memref<22x48xf32, #tpu.memory_space<vmem>>, vector<4x48xf32>
    %c0_141 = arith.constant 0 : index
    %c1_142 = arith.constant 1 : index
    %c0_143 = arith.constant 0 : index
    %c0_144 = arith.constant 0 : index
    %167 = vector.load %arg14[%c0_141, %c1_142, %c0_143, %c0_144] : memref<1x2x4x48xf32, #tpu.memory_space<vmem>>, vector<1x1x4x48xf32>
    %168 = vector.shape_cast %167 : vector<1x1x4x48xf32> to vector<4x48xf32>
    %169 = vector.shape_cast %166 : vector<4x48xf32> to vector<1x1x4x48xf32>
    tpu.vector_store %arg14[%c0_141, %c1_142, %c0_143, %c0_144], %169 {strides = array<i32>} : memref<1x2x4x48xf32, #tpu.memory_space<vmem>>, vector<1x1x4x48xf32>,
    return
  }
  func.func @transform_0(%arg0: i32) -> (i32, i32, i32) {
    %c0_i32 = arith.constant 0 : i32
    %c0_i32_0 = arith.constant 0 : i32
    %c0_i32_1 = arith.constant 0 : i32
    return %arg0, %c0_i32, %c0_i32_0 : i32, i32, i32
  }
  func.func @transform_1(%arg0: i32) -> (i32, i32) {
    %c0_i32 = arith.constant 0 : i32
    %c0_i32_0 = arith.constant 0 : i32
    %c0_i32_1 = arith.constant 0 : i32
    return %c0_i32, %c0_i32_0 : i32, i32
  }
  func.func @transform_2(%arg0: i32) -> (i32, i32) {
    %c0_i32 = arith.constant 0 : i32
    %c0_i32_0 = arith.constant 0 : i32
    %c0_i32_1 = arith.constant 0 : i32
    return %c0_i32, %c0_i32_0 : i32, i32
  }
  func.func @transform_3(%arg0: i32) -> (i32, i32) {
    %c0_i32 = arith.constant 0 : i32
    %c0_i32_0 = arith.constant 0 : i32
    %c0_i32_1 = arith.constant 0 : i32
    return %c0_i32, %c0_i32_0 : i32, i32
  }
  func.func @transform_4(%arg0: i32) -> (i32, i32, i32) {
    %c0_i32 = arith.constant 0 : i32
    %c0_i32_0 = arith.constant 0 : i32
    %c0_i32_1 = arith.constant 0 : i32
    %c0_i32_2 = arith.constant 0 : i32
    return %c0_i32, %c0_i32_0, %c0_i32_1 : i32, i32, i32
  }
  func.func @transform_5(%arg0: i32) -> (i32, i32) {
    %c0_i32 = arith.constant 0 : i32
    %c0_i32_0 = arith.constant 0 : i32
    %c0_i32_1 = arith.constant 0 : i32
    return %c0_i32, %c0_i32_0 : i32, i32
  }
  func.func @transform_6(%arg0: i32) -> (i32, i32) {
    %c0_i32 = arith.constant 0 : i32
    %c0_i32_0 = arith.constant 0 : i32
    %c0_i32_1 = arith.constant 0 : i32
    return %c0_i32, %c0_i32_0 : i32, i32
  }
  func.func @transform_7(%arg0: i32) -> (i32, i32) {
    %c0_i32 = arith.constant 0 : i32
    %c0_i32_0 = arith.constant 0 : i32
    %c0_i32_1 = arith.constant 0 : i32
    return %c0_i32, %c0_i32_0 : i32, i32
  }
  func.func @transform_8(%arg0: i32) -> (i32, i32, i32) {
    %c0_i32 = arith.constant 0 : i32
    %c0_i32_0 = arith.constant 0 : i32
    %c0_i32_1 = arith.constant 0 : i32
    %c0_i32_2 = arith.constant 0 : i32
    return %c0_i32, %c0_i32_0, %c0_i32_1 : i32, i32, i32
  }
  func.func @transform_9(%arg0: i32) -> (i32, i32) {
    %c0_i32 = arith.constant 0 : i32
    %c0_i32_0 = arith.constant 0 : i32
    %c0_i32_1 = arith.constant 0 : i32
    return %c0_i32, %c0_i32_0 : i32, i32
  }
  func.func @transform_10(%arg0: i32) -> (i32, i32) {
    %c0_i32 = arith.constant 0 : i32
    %c0_i32_0 = arith.constant 0 : i32
    %c0_i32_1 = arith.constant 0 : i32
    return %c0_i32, %c0_i32_0 : i32, i32
  }
  func.func @transform_11(%arg0: i32) -> (i32, i32) {
    %c0_i32 = arith.constant 0 : i32
    %c0_i32_0 = arith.constant 0 : i32
    %c0_i32_1 = arith.constant 0 : i32
    return %c0_i32, %c0_i32_0 : i32, i32
  }
  func.func @transform_12(%arg0: i32) -> (i32, i32, i32, i32) {
    %c0_i32 = arith.constant 0 : i32
    %c0_i32_0 = arith.constant 0 : i32
    %c0_i32_1 = arith.constant 0 : i32
    %c0_i32_2 = arith.constant 0 : i32
    return %arg0, %c0_i32, %c0_i32_0, %c0_i32_1 : i32, i32, i32, i32
  }
  func.func @transform_13(%arg0: i32) -> (i32, i32, i32, i32) {
    %c0_i32 = arith.constant 0 : i32
    %c0_i32_0 = arith.constant 0 : i32
    %c0_i32_1 = arith.constant 0 : i32
    %c0_i32_2 = arith.constant 0 : i32
    return %arg0, %c0_i32, %c0_i32_0, %c0_i32_1 : i32, i32, i32, i32
  }
}

module attributes {stable_mosaic.version = 11 : i64} {
  func.func @_block_s1_kernel(%arg0: i32, %arg1: memref<1x16x48xf32, #tpu.memory_space<vmem>>, %arg2: memref<16x1xf32, #tpu.memory_space<vmem>>, %arg3: memref<48x48xf32, #tpu.memory_space<vmem>>, %arg4: memref<1x48xf32, #tpu.memory_space<vmem>>, %arg5: memref<9x1x48xf32, #tpu.memory_space<vmem>>, %arg6: memref<1x48xf32, #tpu.memory_space<vmem>>, %arg7: memref<48x48xf32, #tpu.memory_space<vmem>>, %arg8: memref<1x48xf32, #tpu.memory_space<vmem>>, %arg9: memref<1x2x2x48xf32, #tpu.memory_space<vmem>>, %arg10: memref<16x48xf32, #tpu.memory_space<vmem>>, %arg11: memref<6x48xf32, #tpu.memory_space<vmem>>) attributes {dimension_semantics = [#tpu.dimension_semantics<parallel>], iteration_bounds = array<i64: 2>, scalar_prefetch = 0 : i64, scratch_operands = 2 : i64, tpu.core_type = #tpu.core_type<tc>, window_params = [{transform_indices = @transform_0, window_bounds = array<i64: 1, 16, 48>}, {pipeline_mode = #tpu.pipeline_mode<synchronous>, transform_indices = @transform_1, window_bounds = array<i64: 16, 1>}, {pipeline_mode = #tpu.pipeline_mode<synchronous>, transform_indices = @transform_2, window_bounds = array<i64: 48, 48>}, {pipeline_mode = #tpu.pipeline_mode<synchronous>, transform_indices = @transform_3, window_bounds = array<i64: 1, 48>}, {pipeline_mode = #tpu.pipeline_mode<synchronous>, transform_indices = @transform_4, window_bounds = array<i64: 9, 1, 48>}, {pipeline_mode = #tpu.pipeline_mode<synchronous>, transform_indices = @transform_5, window_bounds = array<i64: 1, 48>}, {pipeline_mode = #tpu.pipeline_mode<synchronous>, transform_indices = @transform_6, window_bounds = array<i64: 48, 48>}, {pipeline_mode = #tpu.pipeline_mode<synchronous>, transform_indices = @transform_7, window_bounds = array<i64: 1, 48>}, {transform_indices = @transform_8, window_bounds = array<i64: 1, 2, 2, 48>}]} {
    %c0 = arith.constant 0 : index
    %c0_0 = arith.constant 0 : index
    %c0_1 = arith.constant 0 : index
    %0 = vector.load %arg1[%c0, %c0_0, %c0_1] : memref<1x16x48xf32, #tpu.memory_space<vmem>>, vector<1x16x48xf32>
    %1 = vector.shape_cast %0 : vector<1x16x48xf32> to vector<16x48xf32>
    %c0_2 = arith.constant 0 : index
    %c0_3 = arith.constant 0 : index
    %2 = vector.load %arg3[%c0_2, %c0_3] : memref<48x48xf32, #tpu.memory_space<vmem>>, vector<48x48xf32>
    %cst = arith.constant dense<0.000000e+00> : vector<16x48xf32>
    %3 = tpu.matmul %1, %2, %cst {dimension_numbers = #tpu.dot_dimension_numbers<[1], [0], [0], [1], [0, 0, 1, 1], [], []>} : vector<16x48xf32>, vector<48x48xf32>, vector<16x48xf32> -> vector<16x48xf32>
    %c0_4 = arith.constant 0 : index
    %c0_5 = arith.constant 0 : index
    %4 = vector.load %arg4[%c0_4, %c0_5] : memref<1x48xf32, #tpu.memory_space<vmem>>, vector<1x48xf32>
    %5 = vector.broadcast %4 : vector<1x48xf32> to vector<16x48xf32>
    %6 = arith.addf %3, %5 : vector<16x48xf32>
    %cst_6 = arith.constant 0.000000e+00 : f32
    %7 = vector.broadcast %cst_6 : f32 to vector<16x48xf32>
    %8 = arith.maximumf %6, %7 : vector<16x48xf32>
    %c0_7 = arith.constant 0 : index
    %c0_8 = arith.constant 0 : index
    %9 = vector.load %arg2[%c0_7, %c0_8] : memref<16x1xf32, #tpu.memory_space<vmem>>, vector<16x1xf32>
    %10 = vector.broadcast %9 : vector<16x1xf32> to vector<16x48xf32>
    %11 = arith.mulf %8, %10 : vector<16x48xf32>
    %c0_9 = arith.constant 0 : index
    %c0_10 = arith.constant 0 : index
    %12 = vector.load %arg10[%c0_9, %c0_10] : memref<16x48xf32, #tpu.memory_space<vmem>>, vector<16x48xf32>
    tpu.vector_store %arg10[%c0_9, %c0_10], %11 {strides = array<i32>} : memref<16x48xf32, #tpu.memory_space<vmem>>, vector<16x48xf32>,
    %cst_11 = arith.constant 0.000000e+00 : f32
    %13 = vector.broadcast %cst_11 : f32 to vector<6x48xf32>
    %c0_12 = arith.constant 0 : index
    %c0_13 = arith.constant 0 : index
    %14 = vector.load %arg6[%c0_12, %c0_13] : memref<1x48xf32, #tpu.memory_space<vmem>>, vector<1x48xf32>
    %15 = vector.broadcast %14 : vector<1x48xf32> to vector<6x48xf32>
    %16 = arith.addf %13, %15 : vector<6x48xf32>
    %c0_14 = arith.constant 0 : index
    %c0_15 = arith.constant 0 : index
    %17 = vector.load %arg10[%c0_14, %c0_15] : memref<16x48xf32, #tpu.memory_space<vmem>>, vector<6x48xf32>
    %c0_16 = arith.constant 0 : index
    %c0_17 = arith.constant 0 : index
    %c0_18 = arith.constant 0 : index
    %18 = vector.load %arg5[%c0_16, %c0_17, %c0_18] : memref<9x1x48xf32, #tpu.memory_space<vmem>>, vector<1x1x48xf32>
    %19 = vector.shape_cast %18 : vector<1x1x48xf32> to vector<1x48xf32>
    %20 = vector.broadcast %19 : vector<1x48xf32> to vector<6x48xf32>
    %21 = arith.mulf %17, %20 : vector<6x48xf32>
    %22 = arith.addf %16, %21 : vector<6x48xf32>
    %c1 = arith.constant 1 : index
    %c0_19 = arith.constant 0 : index
    %23 = vector.load %arg10[%c1, %c0_19] : memref<16x48xf32, #tpu.memory_space<vmem>>, vector<6x48xf32>
    %c1_20 = arith.constant 1 : index
    %c0_21 = arith.constant 0 : index
    %c0_22 = arith.constant 0 : index
    %24 = vector.load %arg5[%c1_20, %c0_21, %c0_22] : memref<9x1x48xf32, #tpu.memory_space<vmem>>, vector<1x1x48xf32>
    %25 = vector.shape_cast %24 : vector<1x1x48xf32> to vector<1x48xf32>
    %26 = vector.broadcast %25 : vector<1x48xf32> to vector<6x48xf32>
    %27 = arith.mulf %23, %26 : vector<6x48xf32>
    %28 = arith.addf %22, %27 : vector<6x48xf32>
    %c2 = arith.constant 2 : index
    %c0_23 = arith.constant 0 : index
    %29 = vector.load %arg10[%c2, %c0_23] : memref<16x48xf32, #tpu.memory_space<vmem>>, vector<6x48xf32>
    %c2_24 = arith.constant 2 : index
    %c0_25 = arith.constant 0 : index
    %c0_26 = arith.constant 0 : index
    %30 = vector.load %arg5[%c2_24, %c0_25, %c0_26] : memref<9x1x48xf32, #tpu.memory_space<vmem>>, vector<1x1x48xf32>
    %31 = vector.shape_cast %30 : vector<1x1x48xf32> to vector<1x48xf32>
    %32 = vector.broadcast %31 : vector<1x48xf32> to vector<6x48xf32>
    %33 = arith.mulf %29, %32 : vector<6x48xf32>
    %34 = arith.addf %28, %33 : vector<6x48xf32>
    %c4 = arith.constant 4 : index
    %c0_27 = arith.constant 0 : index
    %35 = vector.load %arg10[%c4, %c0_27] : memref<16x48xf32, #tpu.memory_space<vmem>>, vector<6x48xf32>
    %c3 = arith.constant 3 : index
    %c0_28 = arith.constant 0 : index
    %c0_29 = arith.constant 0 : index
    %36 = vector.load %arg5[%c3, %c0_28, %c0_29] : memref<9x1x48xf32, #tpu.memory_space<vmem>>, vector<1x1x48xf32>
    %37 = vector.shape_cast %36 : vector<1x1x48xf32> to vector<1x48xf32>
    %38 = vector.broadcast %37 : vector<1x48xf32> to vector<6x48xf32>
    %39 = arith.mulf %35, %38 : vector<6x48xf32>
    %40 = arith.addf %34, %39 : vector<6x48xf32>
    %c5 = arith.constant 5 : index
    %c0_30 = arith.constant 0 : index
    %41 = vector.load %arg10[%c5, %c0_30] : memref<16x48xf32, #tpu.memory_space<vmem>>, vector<6x48xf32>
    %c4_31 = arith.constant 4 : index
    %c0_32 = arith.constant 0 : index
    %c0_33 = arith.constant 0 : index
    %42 = vector.load %arg5[%c4_31, %c0_32, %c0_33] : memref<9x1x48xf32, #tpu.memory_space<vmem>>, vector<1x1x48xf32>
    %43 = vector.shape_cast %42 : vector<1x1x48xf32> to vector<1x48xf32>
    %44 = vector.broadcast %43 : vector<1x48xf32> to vector<6x48xf32>
    %45 = arith.mulf %41, %44 : vector<6x48xf32>
    %46 = arith.addf %40, %45 : vector<6x48xf32>
    %c6 = arith.constant 6 : index
    %c0_34 = arith.constant 0 : index
    %47 = vector.load %arg10[%c6, %c0_34] : memref<16x48xf32, #tpu.memory_space<vmem>>, vector<6x48xf32>
    %c5_35 = arith.constant 5 : index
    %c0_36 = arith.constant 0 : index
    %c0_37 = arith.constant 0 : index
    %48 = vector.load %arg5[%c5_35, %c0_36, %c0_37] : memref<9x1x48xf32, #tpu.memory_space<vmem>>, vector<1x1x48xf32>
    %49 = vector.shape_cast %48 : vector<1x1x48xf32> to vector<1x48xf32>
    %50 = vector.broadcast %49 : vector<1x48xf32> to vector<6x48xf32>
    %51 = arith.mulf %47, %50 : vector<6x48xf32>
    %52 = arith.addf %46, %51 : vector<6x48xf32>
    %c8 = arith.constant 8 : index
    %c0_38 = arith.constant 0 : index
    %53 = vector.load %arg10[%c8, %c0_38] : memref<16x48xf32, #tpu.memory_space<vmem>>, vector<6x48xf32>
    %c6_39 = arith.constant 6 : index
    %c0_40 = arith.constant 0 : index
    %c0_41 = arith.constant 0 : index
    %54 = vector.load %arg5[%c6_39, %c0_40, %c0_41] : memref<9x1x48xf32, #tpu.memory_space<vmem>>, vector<1x1x48xf32>
    %55 = vector.shape_cast %54 : vector<1x1x48xf32> to vector<1x48xf32>
    %56 = vector.broadcast %55 : vector<1x48xf32> to vector<6x48xf32>
    %57 = arith.mulf %53, %56 : vector<6x48xf32>
    %58 = arith.addf %52, %57 : vector<6x48xf32>
    %c9 = arith.constant 9 : index
    %c0_42 = arith.constant 0 : index
    %59 = vector.load %arg10[%c9, %c0_42] : memref<16x48xf32, #tpu.memory_space<vmem>>, vector<6x48xf32>
    %c7 = arith.constant 7 : index
    %c0_43 = arith.constant 0 : index
    %c0_44 = arith.constant 0 : index
    %60 = vector.load %arg5[%c7, %c0_43, %c0_44] : memref<9x1x48xf32, #tpu.memory_space<vmem>>, vector<1x1x48xf32>
    %61 = vector.shape_cast %60 : vector<1x1x48xf32> to vector<1x48xf32>
    %62 = vector.broadcast %61 : vector<1x48xf32> to vector<6x48xf32>
    %63 = arith.mulf %59, %62 : vector<6x48xf32>
    %64 = arith.addf %58, %63 : vector<6x48xf32>
    %c10 = arith.constant 10 : index
    %c0_45 = arith.constant 0 : index
    %65 = vector.load %arg10[%c10, %c0_45] : memref<16x48xf32, #tpu.memory_space<vmem>>, vector<6x48xf32>
    %c8_46 = arith.constant 8 : index
    %c0_47 = arith.constant 0 : index
    %c0_48 = arith.constant 0 : index
    %66 = vector.load %arg5[%c8_46, %c0_47, %c0_48] : memref<9x1x48xf32, #tpu.memory_space<vmem>>, vector<1x1x48xf32>
    %67 = vector.shape_cast %66 : vector<1x1x48xf32> to vector<1x48xf32>
    %68 = vector.broadcast %67 : vector<1x48xf32> to vector<6x48xf32>
    %69 = arith.mulf %65, %68 : vector<6x48xf32>
    %70 = arith.addf %64, %69 : vector<6x48xf32>
    %c0_49 = arith.constant 0 : index
    %c0_50 = arith.constant 0 : index
    %71 = vector.load %arg7[%c0_49, %c0_50] : memref<48x48xf32, #tpu.memory_space<vmem>>, vector<48x48xf32>
    %cst_51 = arith.constant dense<0.000000e+00> : vector<6x48xf32>
    %72 = tpu.matmul %70, %71, %cst_51 {dimension_numbers = #tpu.dot_dimension_numbers<[1], [0], [0], [1], [0, 0, 1, 1], [], []>} : vector<6x48xf32>, vector<48x48xf32>, vector<6x48xf32> -> vector<6x48xf32>
    %c0_52 = arith.constant 0 : index
    %c0_53 = arith.constant 0 : index
    %73 = vector.load %arg8[%c0_52, %c0_53] : memref<1x48xf32, #tpu.memory_space<vmem>>, vector<1x48xf32>
    %74 = vector.broadcast %73 : vector<1x48xf32> to vector<6x48xf32>
    %75 = arith.addf %72, %74 : vector<6x48xf32>
    %cst_54 = arith.constant 0.000000e+00 : f32
    %76 = vector.broadcast %cst_54 : f32 to vector<6x48xf32>
    %77 = arith.maximumf %75, %76 : vector<6x48xf32>
    %c0_55 = arith.constant 0 : index
    %c0_56 = arith.constant 0 : index
    %78 = vector.load %arg11[%c0_55, %c0_56] : memref<6x48xf32, #tpu.memory_space<vmem>>, vector<6x48xf32>
    tpu.vector_store %arg11[%c0_55, %c0_56], %77 {strides = array<i32>} : memref<6x48xf32, #tpu.memory_space<vmem>>, vector<6x48xf32>,
    %c0_57 = arith.constant 0 : index
    %c0_58 = arith.constant 0 : index
    %79 = vector.load %arg11[%c0_57, %c0_58] : memref<6x48xf32, #tpu.memory_space<vmem>>, vector<2x48xf32>
    %c0_59 = arith.constant 0 : index
    %c0_60 = arith.constant 0 : index
    %c0_61 = arith.constant 0 : index
    %c0_62 = arith.constant 0 : index
    %80 = vector.load %arg9[%c0_59, %c0_60, %c0_61, %c0_62] : memref<1x2x2x48xf32, #tpu.memory_space<vmem>>, vector<1x1x2x48xf32>
    %81 = vector.shape_cast %80 : vector<1x1x2x48xf32> to vector<2x48xf32>
    %82 = vector.shape_cast %79 : vector<2x48xf32> to vector<1x1x2x48xf32>
    tpu.vector_store %arg9[%c0_59, %c0_60, %c0_61, %c0_62], %82 {strides = array<i32>} : memref<1x2x2x48xf32, #tpu.memory_space<vmem>>, vector<1x1x2x48xf32>,
    %c4_63 = arith.constant 4 : index
    %c0_64 = arith.constant 0 : index
    %83 = vector.load %arg11[%c4_63, %c0_64] : memref<6x48xf32, #tpu.memory_space<vmem>>, vector<2x48xf32>
    %c0_65 = arith.constant 0 : index
    %c1_66 = arith.constant 1 : index
    %c0_67 = arith.constant 0 : index
    %c0_68 = arith.constant 0 : index
    %84 = vector.load %arg9[%c0_65, %c1_66, %c0_67, %c0_68] : memref<1x2x2x48xf32, #tpu.memory_space<vmem>>, vector<1x1x2x48xf32>
    %85 = vector.shape_cast %84 : vector<1x1x2x48xf32> to vector<2x48xf32>
    %86 = vector.shape_cast %83 : vector<2x48xf32> to vector<1x1x2x48xf32>
    tpu.vector_store %arg9[%c0_65, %c1_66, %c0_67, %c0_68], %86 {strides = array<i32>} : memref<1x2x2x48xf32, #tpu.memory_space<vmem>>, vector<1x1x2x48xf32>,
    return
  }
  func.func @transform_0(%arg0: i32) -> (i32, i32, i32) {
    %c0_i32 = arith.constant 0 : i32
    %c0_i32_0 = arith.constant 0 : i32
    %c0_i32_1 = arith.constant 0 : i32
    return %arg0, %c0_i32, %c0_i32_0 : i32, i32, i32
  }
  func.func @transform_1(%arg0: i32) -> (i32, i32) {
    %c0_i32 = arith.constant 0 : i32
    %c0_i32_0 = arith.constant 0 : i32
    %c0_i32_1 = arith.constant 0 : i32
    return %c0_i32, %c0_i32_0 : i32, i32
  }
  func.func @transform_2(%arg0: i32) -> (i32, i32) {
    %c0_i32 = arith.constant 0 : i32
    %c0_i32_0 = arith.constant 0 : i32
    %c0_i32_1 = arith.constant 0 : i32
    return %c0_i32, %c0_i32_0 : i32, i32
  }
  func.func @transform_3(%arg0: i32) -> (i32, i32) {
    %c0_i32 = arith.constant 0 : i32
    %c0_i32_0 = arith.constant 0 : i32
    %c0_i32_1 = arith.constant 0 : i32
    return %c0_i32, %c0_i32_0 : i32, i32
  }
  func.func @transform_4(%arg0: i32) -> (i32, i32, i32) {
    %c0_i32 = arith.constant 0 : i32
    %c0_i32_0 = arith.constant 0 : i32
    %c0_i32_1 = arith.constant 0 : i32
    %c0_i32_2 = arith.constant 0 : i32
    return %c0_i32, %c0_i32_0, %c0_i32_1 : i32, i32, i32
  }
  func.func @transform_5(%arg0: i32) -> (i32, i32) {
    %c0_i32 = arith.constant 0 : i32
    %c0_i32_0 = arith.constant 0 : i32
    %c0_i32_1 = arith.constant 0 : i32
    return %c0_i32, %c0_i32_0 : i32, i32
  }
  func.func @transform_6(%arg0: i32) -> (i32, i32) {
    %c0_i32 = arith.constant 0 : i32
    %c0_i32_0 = arith.constant 0 : i32
    %c0_i32_1 = arith.constant 0 : i32
    return %c0_i32, %c0_i32_0 : i32, i32
  }
  func.func @transform_7(%arg0: i32) -> (i32, i32) {
    %c0_i32 = arith.constant 0 : i32
    %c0_i32_0 = arith.constant 0 : i32
    %c0_i32_1 = arith.constant 0 : i32
    return %c0_i32, %c0_i32_0 : i32, i32
  }
  func.func @transform_8(%arg0: i32) -> (i32, i32, i32, i32) {
    %c0_i32 = arith.constant 0 : i32
    %c0_i32_0 = arith.constant 0 : i32
    %c0_i32_1 = arith.constant 0 : i32
    %c0_i32_2 = arith.constant 0 : i32
    return %arg0, %c0_i32, %c0_i32_0, %c0_i32_1 : i32, i32, i32, i32
  }
}

module attributes {stable_mosaic.version = 11 : i64} {
  func.func @_block_s2_kernel(%arg0: i32, %arg1: memref<1x16x96xf32, #tpu.memory_space<vmem>>, %arg2: memref<16x1xf32, #tpu.memory_space<vmem>>, %arg3: memref<96x96xf32, #tpu.memory_space<vmem>>, %arg4: memref<1x96xf32, #tpu.memory_space<vmem>>, %arg5: memref<9x1x96xf32, #tpu.memory_space<vmem>>, %arg6: memref<1x96xf32, #tpu.memory_space<vmem>>, %arg7: memref<96x96xf32, #tpu.memory_space<vmem>>, %arg8: memref<1x96xf32, #tpu.memory_space<vmem>>, %arg9: memref<9x1x96xf32, #tpu.memory_space<vmem>>, %arg10: memref<1x96xf32, #tpu.memory_space<vmem>>, %arg11: memref<96x96xf32, #tpu.memory_space<vmem>>, %arg12: memref<1x96xf32, #tpu.memory_space<vmem>>, %arg13: memref<1x1x2x96xf32, #tpu.memory_space<vmem>>, %arg14: memref<1x1x2x96xf32, #tpu.memory_space<vmem>>, %arg15: memref<16x96xf32, #tpu.memory_space<vmem>>, %arg16: memref<6x96xf32, #tpu.memory_space<vmem>>, %arg17: memref<6x96xf32, #tpu.memory_space<vmem>>) attributes {dimension_semantics = [#tpu.dimension_semantics<parallel>], iteration_bounds = array<i64: 2>, scalar_prefetch = 0 : i64, scratch_operands = 3 : i64, tpu.core_type = #tpu.core_type<tc>, window_params = [{transform_indices = @transform_0, window_bounds = array<i64: 1, 16, 96>}, {pipeline_mode = #tpu.pipeline_mode<synchronous>, transform_indices = @transform_1, window_bounds = array<i64: 16, 1>}, {pipeline_mode = #tpu.pipeline_mode<synchronous>, transform_indices = @transform_2, window_bounds = array<i64: 96, 96>}, {pipeline_mode = #tpu.pipeline_mode<synchronous>, transform_indices = @transform_3, window_bounds = array<i64: 1, 96>}, {pipeline_mode = #tpu.pipeline_mode<synchronous>, transform_indices = @transform_4, window_bounds = array<i64: 9, 1, 96>}, {pipeline_mode = #tpu.pipeline_mode<synchronous>, transform_indices = @transform_5, window_bounds = array<i64: 1, 96>}, {pipeline_mode = #tpu.pipeline_mode<synchronous>, transform_indices = @transform_6, window_bounds = array<i64: 96, 96>}, {pipeline_mode = #tpu.pipeline_mode<synchronous>, transform_indices = @transform_7, window_bounds = array<i64: 1, 96>}, {pipeline_mode = #tpu.pipeline_mode<synchronous>, transform_indices = @transform_8, window_bounds = array<i64: 9, 1, 96>}, {pipeline_mode = #tpu.pipeline_mode<synchronous>, transform_indices = @transform_9, window_bounds = array<i64: 1, 96>}, {pipeline_mode = #tpu.pipeline_mode<synchronous>, transform_indices = @transform_10, window_bounds = array<i64: 96, 96>}, {pipeline_mode = #tpu.pipeline_mode<synchronous>, transform_indices = @transform_11, window_bounds = array<i64: 1, 96>}, {transform_indices = @transform_12, window_bounds = array<i64: 1, 1, 2, 96>}, {transform_indices = @transform_13, window_bounds = array<i64: 1, 1, 2, 96>}]} {
    %c0 = arith.constant 0 : index
    %c0_0 = arith.constant 0 : index
    %c0_1 = arith.constant 0 : index
    %0 = vector.load %arg1[%c0, %c0_0, %c0_1] : memref<1x16x96xf32, #tpu.memory_space<vmem>>, vector<1x16x96xf32>
    %1 = vector.shape_cast %0 : vector<1x16x96xf32> to vector<16x96xf32>
    %c0_2 = arith.constant 0 : index
    %c0_3 = arith.constant 0 : index
    %2 = vector.load %arg3[%c0_2, %c0_3] : memref<96x96xf32, #tpu.memory_space<vmem>>, vector<96x96xf32>
    %cst = arith.constant dense<0.000000e+00> : vector<16x96xf32>
    %3 = tpu.matmul %1, %2, %cst {dimension_numbers = #tpu.dot_dimension_numbers<[1], [0], [0], [1], [0, 0, 1, 1], [], []>} : vector<16x96xf32>, vector<96x96xf32>, vector<16x96xf32> -> vector<16x96xf32>
    %c0_4 = arith.constant 0 : index
    %c0_5 = arith.constant 0 : index
    %4 = vector.load %arg4[%c0_4, %c0_5] : memref<1x96xf32, #tpu.memory_space<vmem>>, vector<1x96xf32>
    %5 = vector.broadcast %4 : vector<1x96xf32> to vector<16x96xf32>
    %6 = arith.addf %3, %5 : vector<16x96xf32>
    %cst_6 = arith.constant 0.000000e+00 : f32
    %7 = vector.broadcast %cst_6 : f32 to vector<16x96xf32>
    %8 = arith.maximumf %6, %7 : vector<16x96xf32>
    %c0_7 = arith.constant 0 : index
    %c0_8 = arith.constant 0 : index
    %9 = vector.load %arg2[%c0_7, %c0_8] : memref<16x1xf32, #tpu.memory_space<vmem>>, vector<16x1xf32>
    %10 = vector.broadcast %9 : vector<16x1xf32> to vector<16x96xf32>
    %11 = arith.mulf %8, %10 : vector<16x96xf32>
    %c0_9 = arith.constant 0 : index
    %c0_10 = arith.constant 0 : index
    %12 = vector.load %arg15[%c0_9, %c0_10] : memref<16x96xf32, #tpu.memory_space<vmem>>, vector<16x96xf32>
    tpu.vector_store %arg15[%c0_9, %c0_10], %11 {strides = array<i32>} : memref<16x96xf32, #tpu.memory_space<vmem>>, vector<16x96xf32>,
    %cst_11 = arith.constant 0.000000e+00 : f32
    %13 = vector.broadcast %cst_11 : f32 to vector<6x96xf32>
    %c0_12 = arith.constant 0 : index
    %c0_13 = arith.constant 0 : index
    %14 = vector.load %arg6[%c0_12, %c0_13] : memref<1x96xf32, #tpu.memory_space<vmem>>, vector<1x96xf32>
    %15 = vector.broadcast %14 : vector<1x96xf32> to vector<6x96xf32>
    %16 = arith.addf %13, %15 : vector<6x96xf32>
    %cst_14 = arith.constant 0.000000e+00 : f32
    %17 = vector.broadcast %cst_14 : f32 to vector<6x96xf32>
    %c0_15 = arith.constant 0 : index
    %c0_16 = arith.constant 0 : index
    %18 = vector.load %arg10[%c0_15, %c0_16] : memref<1x96xf32, #tpu.memory_space<vmem>>, vector<1x96xf32>
    %19 = vector.broadcast %18 : vector<1x96xf32> to vector<6x96xf32>
    %20 = arith.addf %17, %19 : vector<6x96xf32>
    %c0_17 = arith.constant 0 : index
    %c0_18 = arith.constant 0 : index
    %21 = vector.load %arg15[%c0_17, %c0_18] : memref<16x96xf32, #tpu.memory_space<vmem>>, vector<6x96xf32>
    %c0_19 = arith.constant 0 : index
    %c0_20 = arith.constant 0 : index
    %c0_21 = arith.constant 0 : index
    %22 = vector.load %arg5[%c0_19, %c0_20, %c0_21] : memref<9x1x96xf32, #tpu.memory_space<vmem>>, vector<1x1x96xf32>
    %23 = vector.shape_cast %22 : vector<1x1x96xf32> to vector<1x96xf32>
    %24 = vector.broadcast %23 : vector<1x96xf32> to vector<6x96xf32>
    %25 = arith.mulf %21, %24 : vector<6x96xf32>
    %26 = arith.addf %16, %25 : vector<6x96xf32>
    %c0_22 = arith.constant 0 : index
    %c0_23 = arith.constant 0 : index
    %c0_24 = arith.constant 0 : index
    %27 = vector.load %arg1[%c0_22, %c0_23, %c0_24] : memref<1x16x96xf32, #tpu.memory_space<vmem>>, vector<1x6x96xf32>
    %28 = vector.shape_cast %27 : vector<1x6x96xf32> to vector<6x96xf32>
    %c0_25 = arith.constant 0 : index
    %c0_26 = arith.constant 0 : index
    %c0_27 = arith.constant 0 : index
    %29 = vector.load %arg9[%c0_25, %c0_26, %c0_27] : memref<9x1x96xf32, #tpu.memory_space<vmem>>, vector<1x1x96xf32>
    %30 = vector.shape_cast %29 : vector<1x1x96xf32> to vector<1x96xf32>
    %31 = vector.broadcast %30 : vector<1x96xf32> to vector<6x96xf32>
    %32 = arith.mulf %28, %31 : vector<6x96xf32>
    %33 = arith.addf %20, %32 : vector<6x96xf32>
    %c1 = arith.constant 1 : index
    %c0_28 = arith.constant 0 : index
    %34 = vector.load %arg15[%c1, %c0_28] : memref<16x96xf32, #tpu.memory_space<vmem>>, vector<6x96xf32>
    %c1_29 = arith.constant 1 : index
    %c0_30 = arith.constant 0 : index
    %c0_31 = arith.constant 0 : index
    %35 = vector.load %arg5[%c1_29, %c0_30, %c0_31] : memref<9x1x96xf32, #tpu.memory_space<vmem>>, vector<1x1x96xf32>
    %36 = vector.shape_cast %35 : vector<1x1x96xf32> to vector<1x96xf32>
    %37 = vector.broadcast %36 : vector<1x96xf32> to vector<6x96xf32>
    %38 = arith.mulf %34, %37 : vector<6x96xf32>
    %39 = arith.addf %26, %38 : vector<6x96xf32>
    %c0_32 = arith.constant 0 : index
    %c1_33 = arith.constant 1 : index
    %c0_34 = arith.constant 0 : index
    %40 = vector.load %arg1[%c0_32, %c1_33, %c0_34] : memref<1x16x96xf32, #tpu.memory_space<vmem>>, vector<1x6x96xf32>
    %41 = vector.shape_cast %40 : vector<1x6x96xf32> to vector<6x96xf32>
    %c1_35 = arith.constant 1 : index
    %c0_36 = arith.constant 0 : index
    %c0_37 = arith.constant 0 : index
    %42 = vector.load %arg9[%c1_35, %c0_36, %c0_37] : memref<9x1x96xf32, #tpu.memory_space<vmem>>, vector<1x1x96xf32>
    %43 = vector.shape_cast %42 : vector<1x1x96xf32> to vector<1x96xf32>
    %44 = vector.broadcast %43 : vector<1x96xf32> to vector<6x96xf32>
    %45 = arith.mulf %41, %44 : vector<6x96xf32>
    %46 = arith.addf %33, %45 : vector<6x96xf32>
    %c2 = arith.constant 2 : index
    %c0_38 = arith.constant 0 : index
    %47 = vector.load %arg15[%c2, %c0_38] : memref<16x96xf32, #tpu.memory_space<vmem>>, vector<6x96xf32>
    %c2_39 = arith.constant 2 : index
    %c0_40 = arith.constant 0 : index
    %c0_41 = arith.constant 0 : index
    %48 = vector.load %arg5[%c2_39, %c0_40, %c0_41] : memref<9x1x96xf32, #tpu.memory_space<vmem>>, vector<1x1x96xf32>
    %49 = vector.shape_cast %48 : vector<1x1x96xf32> to vector<1x96xf32>
    %50 = vector.broadcast %49 : vector<1x96xf32> to vector<6x96xf32>
    %51 = arith.mulf %47, %50 : vector<6x96xf32>
    %52 = arith.addf %39, %51 : vector<6x96xf32>
    %c0_42 = arith.constant 0 : index
    %c2_43 = arith.constant 2 : index
    %c0_44 = arith.constant 0 : index
    %53 = vector.load %arg1[%c0_42, %c2_43, %c0_44] : memref<1x16x96xf32, #tpu.memory_space<vmem>>, vector<1x6x96xf32>
    %54 = vector.shape_cast %53 : vector<1x6x96xf32> to vector<6x96xf32>
    %c2_45 = arith.constant 2 : index
    %c0_46 = arith.constant 0 : index
    %c0_47 = arith.constant 0 : index
    %55 = vector.load %arg9[%c2_45, %c0_46, %c0_47] : memref<9x1x96xf32, #tpu.memory_space<vmem>>, vector<1x1x96xf32>
    %56 = vector.shape_cast %55 : vector<1x1x96xf32> to vector<1x96xf32>
    %57 = vector.broadcast %56 : vector<1x96xf32> to vector<6x96xf32>
    %58 = arith.mulf %54, %57 : vector<6x96xf32>
    %59 = arith.addf %46, %58 : vector<6x96xf32>
    %c4 = arith.constant 4 : index
    %c0_48 = arith.constant 0 : index
    %60 = vector.load %arg15[%c4, %c0_48] : memref<16x96xf32, #tpu.memory_space<vmem>>, vector<6x96xf32>
    %c3 = arith.constant 3 : index
    %c0_49 = arith.constant 0 : index
    %c0_50 = arith.constant 0 : index
    %61 = vector.load %arg5[%c3, %c0_49, %c0_50] : memref<9x1x96xf32, #tpu.memory_space<vmem>>, vector<1x1x96xf32>
    %62 = vector.shape_cast %61 : vector<1x1x96xf32> to vector<1x96xf32>
    %63 = vector.broadcast %62 : vector<1x96xf32> to vector<6x96xf32>
    %64 = arith.mulf %60, %63 : vector<6x96xf32>
    %65 = arith.addf %52, %64 : vector<6x96xf32>
    %c0_51 = arith.constant 0 : index
    %c4_52 = arith.constant 4 : index
    %c0_53 = arith.constant 0 : index
    %66 = vector.load %arg1[%c0_51, %c4_52, %c0_53] : memref<1x16x96xf32, #tpu.memory_space<vmem>>, vector<1x6x96xf32>
    %67 = vector.shape_cast %66 : vector<1x6x96xf32> to vector<6x96xf32>
    %c3_54 = arith.constant 3 : index
    %c0_55 = arith.constant 0 : index
    %c0_56 = arith.constant 0 : index
    %68 = vector.load %arg9[%c3_54, %c0_55, %c0_56] : memref<9x1x96xf32, #tpu.memory_space<vmem>>, vector<1x1x96xf32>
    %69 = vector.shape_cast %68 : vector<1x1x96xf32> to vector<1x96xf32>
    %70 = vector.broadcast %69 : vector<1x96xf32> to vector<6x96xf32>
    %71 = arith.mulf %67, %70 : vector<6x96xf32>
    %72 = arith.addf %59, %71 : vector<6x96xf32>
    %c5 = arith.constant 5 : index
    %c0_57 = arith.constant 0 : index
    %73 = vector.load %arg15[%c5, %c0_57] : memref<16x96xf32, #tpu.memory_space<vmem>>, vector<6x96xf32>
    %c4_58 = arith.constant 4 : index
    %c0_59 = arith.constant 0 : index
    %c0_60 = arith.constant 0 : index
    %74 = vector.load %arg5[%c4_58, %c0_59, %c0_60] : memref<9x1x96xf32, #tpu.memory_space<vmem>>, vector<1x1x96xf32>
    %75 = vector.shape_cast %74 : vector<1x1x96xf32> to vector<1x96xf32>
    %76 = vector.broadcast %75 : vector<1x96xf32> to vector<6x96xf32>
    %77 = arith.mulf %73, %76 : vector<6x96xf32>
    %78 = arith.addf %65, %77 : vector<6x96xf32>
    %c0_61 = arith.constant 0 : index
    %c5_62 = arith.constant 5 : index
    %c0_63 = arith.constant 0 : index
    %79 = vector.load %arg1[%c0_61, %c5_62, %c0_63] : memref<1x16x96xf32, #tpu.memory_space<vmem>>, vector<1x6x96xf32>
    %80 = vector.shape_cast %79 : vector<1x6x96xf32> to vector<6x96xf32>
    %c4_64 = arith.constant 4 : index
    %c0_65 = arith.constant 0 : index
    %c0_66 = arith.constant 0 : index
    %81 = vector.load %arg9[%c4_64, %c0_65, %c0_66] : memref<9x1x96xf32, #tpu.memory_space<vmem>>, vector<1x1x96xf32>
    %82 = vector.shape_cast %81 : vector<1x1x96xf32> to vector<1x96xf32>
    %83 = vector.broadcast %82 : vector<1x96xf32> to vector<6x96xf32>
    %84 = arith.mulf %80, %83 : vector<6x96xf32>
    %85 = arith.addf %72, %84 : vector<6x96xf32>
    %c6 = arith.constant 6 : index
    %c0_67 = arith.constant 0 : index
    %86 = vector.load %arg15[%c6, %c0_67] : memref<16x96xf32, #tpu.memory_space<vmem>>, vector<6x96xf32>
    %c5_68 = arith.constant 5 : index
    %c0_69 = arith.constant 0 : index
    %c0_70 = arith.constant 0 : index
    %87 = vector.load %arg5[%c5_68, %c0_69, %c0_70] : memref<9x1x96xf32, #tpu.memory_space<vmem>>, vector<1x1x96xf32>
    %88 = vector.shape_cast %87 : vector<1x1x96xf32> to vector<1x96xf32>
    %89 = vector.broadcast %88 : vector<1x96xf32> to vector<6x96xf32>
    %90 = arith.mulf %86, %89 : vector<6x96xf32>
    %91 = arith.addf %78, %90 : vector<6x96xf32>
    %c0_71 = arith.constant 0 : index
    %c6_72 = arith.constant 6 : index
    %c0_73 = arith.constant 0 : index
    %92 = vector.load %arg1[%c0_71, %c6_72, %c0_73] : memref<1x16x96xf32, #tpu.memory_space<vmem>>, vector<1x6x96xf32>
    %93 = vector.shape_cast %92 : vector<1x6x96xf32> to vector<6x96xf32>
    %c5_74 = arith.constant 5 : index
    %c0_75 = arith.constant 0 : index
    %c0_76 = arith.constant 0 : index
    %94 = vector.load %arg9[%c5_74, %c0_75, %c0_76] : memref<9x1x96xf32, #tpu.memory_space<vmem>>, vector<1x1x96xf32>
    %95 = vector.shape_cast %94 : vector<1x1x96xf32> to vector<1x96xf32>
    %96 = vector.broadcast %95 : vector<1x96xf32> to vector<6x96xf32>
    %97 = arith.mulf %93, %96 : vector<6x96xf32>
    %98 = arith.addf %85, %97 : vector<6x96xf32>
    %c8 = arith.constant 8 : index
    %c0_77 = arith.constant 0 : index
    %99 = vector.load %arg15[%c8, %c0_77] : memref<16x96xf32, #tpu.memory_space<vmem>>, vector<6x96xf32>
    %c6_78 = arith.constant 6 : index
    %c0_79 = arith.constant 0 : index
    %c0_80 = arith.constant 0 : index
    %100 = vector.load %arg5[%c6_78, %c0_79, %c0_80] : memref<9x1x96xf32, #tpu.memory_space<vmem>>, vector<1x1x96xf32>
    %101 = vector.shape_cast %100 : vector<1x1x96xf32> to vector<1x96xf32>
    %102 = vector.broadcast %101 : vector<1x96xf32> to vector<6x96xf32>
    %103 = arith.mulf %99, %102 : vector<6x96xf32>
    %104 = arith.addf %91, %103 : vector<6x96xf32>
    %c0_81 = arith.constant 0 : index
    %c8_82 = arith.constant 8 : index
    %c0_83 = arith.constant 0 : index
    %105 = vector.load %arg1[%c0_81, %c8_82, %c0_83] : memref<1x16x96xf32, #tpu.memory_space<vmem>>, vector<1x6x96xf32>
    %106 = vector.shape_cast %105 : vector<1x6x96xf32> to vector<6x96xf32>
    %c6_84 = arith.constant 6 : index
    %c0_85 = arith.constant 0 : index
    %c0_86 = arith.constant 0 : index
    %107 = vector.load %arg9[%c6_84, %c0_85, %c0_86] : memref<9x1x96xf32, #tpu.memory_space<vmem>>, vector<1x1x96xf32>
    %108 = vector.shape_cast %107 : vector<1x1x96xf32> to vector<1x96xf32>
    %109 = vector.broadcast %108 : vector<1x96xf32> to vector<6x96xf32>
    %110 = arith.mulf %106, %109 : vector<6x96xf32>
    %111 = arith.addf %98, %110 : vector<6x96xf32>
    %c9 = arith.constant 9 : index
    %c0_87 = arith.constant 0 : index
    %112 = vector.load %arg15[%c9, %c0_87] : memref<16x96xf32, #tpu.memory_space<vmem>>, vector<6x96xf32>
    %c7 = arith.constant 7 : index
    %c0_88 = arith.constant 0 : index
    %c0_89 = arith.constant 0 : index
    %113 = vector.load %arg5[%c7, %c0_88, %c0_89] : memref<9x1x96xf32, #tpu.memory_space<vmem>>, vector<1x1x96xf32>
    %114 = vector.shape_cast %113 : vector<1x1x96xf32> to vector<1x96xf32>
    %115 = vector.broadcast %114 : vector<1x96xf32> to vector<6x96xf32>
    %116 = arith.mulf %112, %115 : vector<6x96xf32>
    %117 = arith.addf %104, %116 : vector<6x96xf32>
    %c0_90 = arith.constant 0 : index
    %c9_91 = arith.constant 9 : index
    %c0_92 = arith.constant 0 : index
    %118 = vector.load %arg1[%c0_90, %c9_91, %c0_92] : memref<1x16x96xf32, #tpu.memory_space<vmem>>, vector<1x6x96xf32>
    %119 = vector.shape_cast %118 : vector<1x6x96xf32> to vector<6x96xf32>
    %c7_93 = arith.constant 7 : index
    %c0_94 = arith.constant 0 : index
    %c0_95 = arith.constant 0 : index
    %120 = vector.load %arg9[%c7_93, %c0_94, %c0_95] : memref<9x1x96xf32, #tpu.memory_space<vmem>>, vector<1x1x96xf32>
    %121 = vector.shape_cast %120 : vector<1x1x96xf32> to vector<1x96xf32>
    %122 = vector.broadcast %121 : vector<1x96xf32> to vector<6x96xf32>
    %123 = arith.mulf %119, %122 : vector<6x96xf32>
    %124 = arith.addf %111, %123 : vector<6x96xf32>
    %c10 = arith.constant 10 : index
    %c0_96 = arith.constant 0 : index
    %125 = vector.load %arg15[%c10, %c0_96] : memref<16x96xf32, #tpu.memory_space<vmem>>, vector<6x96xf32>
    %c8_97 = arith.constant 8 : index
    %c0_98 = arith.constant 0 : index
    %c0_99 = arith.constant 0 : index
    %126 = vector.load %arg5[%c8_97, %c0_98, %c0_99] : memref<9x1x96xf32, #tpu.memory_space<vmem>>, vector<1x1x96xf32>
    %127 = vector.shape_cast %126 : vector<1x1x96xf32> to vector<1x96xf32>
    %128 = vector.broadcast %127 : vector<1x96xf32> to vector<6x96xf32>
    %129 = arith.mulf %125, %128 : vector<6x96xf32>
    %130 = arith.addf %117, %129 : vector<6x96xf32>
    %c0_100 = arith.constant 0 : index
    %c10_101 = arith.constant 10 : index
    %c0_102 = arith.constant 0 : index
    %131 = vector.load %arg1[%c0_100, %c10_101, %c0_102] : memref<1x16x96xf32, #tpu.memory_space<vmem>>, vector<1x6x96xf32>
    %132 = vector.shape_cast %131 : vector<1x6x96xf32> to vector<6x96xf32>
    %c8_103 = arith.constant 8 : index
    %c0_104 = arith.constant 0 : index
    %c0_105 = arith.constant 0 : index
    %133 = vector.load %arg9[%c8_103, %c0_104, %c0_105] : memref<9x1x96xf32, #tpu.memory_space<vmem>>, vector<1x1x96xf32>
    %134 = vector.shape_cast %133 : vector<1x1x96xf32> to vector<1x96xf32>
    %135 = vector.broadcast %134 : vector<1x96xf32> to vector<6x96xf32>
    %136 = arith.mulf %132, %135 : vector<6x96xf32>
    %137 = arith.addf %124, %136 : vector<6x96xf32>
    %c0_106 = arith.constant 0 : index
    %c0_107 = arith.constant 0 : index
    %138 = vector.load %arg7[%c0_106, %c0_107] : memref<96x96xf32, #tpu.memory_space<vmem>>, vector<96x96xf32>
    %cst_108 = arith.constant dense<0.000000e+00> : vector<6x96xf32>
    %139 = tpu.matmul %130, %138, %cst_108 {dimension_numbers = #tpu.dot_dimension_numbers<[1], [0], [0], [1], [0, 0, 1, 1], [], []>} : vector<6x96xf32>, vector<96x96xf32>, vector<6x96xf32> -> vector<6x96xf32>
    %c0_109 = arith.constant 0 : index
    %c0_110 = arith.constant 0 : index
    %140 = vector.load %arg8[%c0_109, %c0_110] : memref<1x96xf32, #tpu.memory_space<vmem>>, vector<1x96xf32>
    %141 = vector.broadcast %140 : vector<1x96xf32> to vector<6x96xf32>
    %142 = arith.addf %139, %141 : vector<6x96xf32>
    %cst_111 = arith.constant 0.000000e+00 : f32
    %143 = vector.broadcast %cst_111 : f32 to vector<6x96xf32>
    %144 = arith.maximumf %142, %143 : vector<6x96xf32>
    %c0_112 = arith.constant 0 : index
    %c0_113 = arith.constant 0 : index
    %145 = vector.load %arg16[%c0_112, %c0_113] : memref<6x96xf32, #tpu.memory_space<vmem>>, vector<6x96xf32>
    tpu.vector_store %arg16[%c0_112, %c0_113], %144 {strides = array<i32>} : memref<6x96xf32, #tpu.memory_space<vmem>>, vector<6x96xf32>,
    %c0_114 = arith.constant 0 : index
    %c0_115 = arith.constant 0 : index
    %146 = vector.load %arg11[%c0_114, %c0_115] : memref<96x96xf32, #tpu.memory_space<vmem>>, vector<96x96xf32>
    %cst_116 = arith.constant dense<0.000000e+00> : vector<6x96xf32>
    %147 = tpu.matmul %137, %146, %cst_116 {dimension_numbers = #tpu.dot_dimension_numbers<[1], [0], [0], [1], [0, 0, 1, 1], [], []>} : vector<6x96xf32>, vector<96x96xf32>, vector<6x96xf32> -> vector<6x96xf32>
    %c0_117 = arith.constant 0 : index
    %c0_118 = arith.constant 0 : index
    %148 = vector.load %arg12[%c0_117, %c0_118] : memref<1x96xf32, #tpu.memory_space<vmem>>, vector<1x96xf32>
    %149 = vector.broadcast %148 : vector<1x96xf32> to vector<6x96xf32>
    %150 = arith.addf %147, %149 : vector<6x96xf32>
    %cst_119 = arith.constant 0.000000e+00 : f32
    %151 = vector.broadcast %cst_119 : f32 to vector<6x96xf32>
    %152 = arith.maximumf %150, %151 : vector<6x96xf32>
    %c0_120 = arith.constant 0 : index
    %c0_121 = arith.constant 0 : index
    %153 = vector.load %arg17[%c0_120, %c0_121] : memref<6x96xf32, #tpu.memory_space<vmem>>, vector<6x96xf32>
    tpu.vector_store %arg17[%c0_120, %c0_121], %152 {strides = array<i32>} : memref<6x96xf32, #tpu.memory_space<vmem>>, vector<6x96xf32>,
    %c0_122 = arith.constant 0 : index
    %c0_123 = arith.constant 0 : index
    %154 = vector.load %arg16[%c0_122, %c0_123] : memref<6x96xf32, #tpu.memory_space<vmem>>, vector<2x96xf32>
    %c0_124 = arith.constant 0 : index
    %c0_125 = arith.constant 0 : index
    %c0_126 = arith.constant 0 : index
    %c0_127 = arith.constant 0 : index
    %155 = vector.load %arg13[%c0_124, %c0_125, %c0_126, %c0_127] : memref<1x1x2x96xf32, #tpu.memory_space<vmem>>, vector<1x1x2x96xf32>
    %156 = vector.shape_cast %155 : vector<1x1x2x96xf32> to vector<2x96xf32>
    %157 = vector.shape_cast %154 : vector<2x96xf32> to vector<1x1x2x96xf32>
    tpu.vector_store %arg13[%c0_124, %c0_125, %c0_126, %c0_127], %157 {strides = array<i32>} : memref<1x1x2x96xf32, #tpu.memory_space<vmem>>, vector<1x1x2x96xf32>,
    %c0_128 = arith.constant 0 : index
    %c0_129 = arith.constant 0 : index
    %158 = vector.load %arg17[%c0_128, %c0_129] : memref<6x96xf32, #tpu.memory_space<vmem>>, vector<2x96xf32>
    %c0_130 = arith.constant 0 : index
    %c0_131 = arith.constant 0 : index
    %c0_132 = arith.constant 0 : index
    %c0_133 = arith.constant 0 : index
    %159 = vector.load %arg14[%c0_130, %c0_131, %c0_132, %c0_133] : memref<1x1x2x96xf32, #tpu.memory_space<vmem>>, vector<1x1x2x96xf32>
    %160 = vector.shape_cast %159 : vector<1x1x2x96xf32> to vector<2x96xf32>
    %161 = vector.shape_cast %158 : vector<2x96xf32> to vector<1x1x2x96xf32>
    tpu.vector_store %arg14[%c0_130, %c0_131, %c0_132, %c0_133], %161 {strides = array<i32>} : memref<1x1x2x96xf32, #tpu.memory_space<vmem>>, vector<1x1x2x96xf32>,
    return
  }
  func.func @transform_0(%arg0: i32) -> (i32, i32, i32) {
    %c0_i32 = arith.constant 0 : i32
    %c0_i32_0 = arith.constant 0 : i32
    %c0_i32_1 = arith.constant 0 : i32
    return %arg0, %c0_i32, %c0_i32_0 : i32, i32, i32
  }
  func.func @transform_1(%arg0: i32) -> (i32, i32) {
    %c0_i32 = arith.constant 0 : i32
    %c0_i32_0 = arith.constant 0 : i32
    %c0_i32_1 = arith.constant 0 : i32
    return %c0_i32, %c0_i32_0 : i32, i32
  }
  func.func @transform_2(%arg0: i32) -> (i32, i32) {
    %c0_i32 = arith.constant 0 : i32
    %c0_i32_0 = arith.constant 0 : i32
    %c0_i32_1 = arith.constant 0 : i32
    return %c0_i32, %c0_i32_0 : i32, i32
  }
  func.func @transform_3(%arg0: i32) -> (i32, i32) {
    %c0_i32 = arith.constant 0 : i32
    %c0_i32_0 = arith.constant 0 : i32
    %c0_i32_1 = arith.constant 0 : i32
    return %c0_i32, %c0_i32_0 : i32, i32
  }
  func.func @transform_4(%arg0: i32) -> (i32, i32, i32) {
    %c0_i32 = arith.constant 0 : i32
    %c0_i32_0 = arith.constant 0 : i32
    %c0_i32_1 = arith.constant 0 : i32
    %c0_i32_2 = arith.constant 0 : i32
    return %c0_i32, %c0_i32_0, %c0_i32_1 : i32, i32, i32
  }
  func.func @transform_5(%arg0: i32) -> (i32, i32) {
    %c0_i32 = arith.constant 0 : i32
    %c0_i32_0 = arith.constant 0 : i32
    %c0_i32_1 = arith.constant 0 : i32
    return %c0_i32, %c0_i32_0 : i32, i32
  }
  func.func @transform_6(%arg0: i32) -> (i32, i32) {
    %c0_i32 = arith.constant 0 : i32
    %c0_i32_0 = arith.constant 0 : i32
    %c0_i32_1 = arith.constant 0 : i32
    return %c0_i32, %c0_i32_0 : i32, i32
  }
  func.func @transform_7(%arg0: i32) -> (i32, i32) {
    %c0_i32 = arith.constant 0 : i32
    %c0_i32_0 = arith.constant 0 : i32
    %c0_i32_1 = arith.constant 0 : i32
    return %c0_i32, %c0_i32_0 : i32, i32
  }
  func.func @transform_8(%arg0: i32) -> (i32, i32, i32) {
    %c0_i32 = arith.constant 0 : i32
    %c0_i32_0 = arith.constant 0 : i32
    %c0_i32_1 = arith.constant 0 : i32
    %c0_i32_2 = arith.constant 0 : i32
    return %c0_i32, %c0_i32_0, %c0_i32_1 : i32, i32, i32
  }
  func.func @transform_9(%arg0: i32) -> (i32, i32) {
    %c0_i32 = arith.constant 0 : i32
    %c0_i32_0 = arith.constant 0 : i32
    %c0_i32_1 = arith.constant 0 : i32
    return %c0_i32, %c0_i32_0 : i32, i32
  }
  func.func @transform_10(%arg0: i32) -> (i32, i32) {
    %c0_i32 = arith.constant 0 : i32
    %c0_i32_0 = arith.constant 0 : i32
    %c0_i32_1 = arith.constant 0 : i32
    return %c0_i32, %c0_i32_0 : i32, i32
  }
  func.func @transform_11(%arg0: i32) -> (i32, i32) {
    %c0_i32 = arith.constant 0 : i32
    %c0_i32_0 = arith.constant 0 : i32
    %c0_i32_1 = arith.constant 0 : i32
    return %c0_i32, %c0_i32_0 : i32, i32
  }
  func.func @transform_12(%arg0: i32) -> (i32, i32, i32, i32) {
    %c0_i32 = arith.constant 0 : i32
    %c0_i32_0 = arith.constant 0 : i32
    %c0_i32_1 = arith.constant 0 : i32
    %c0_i32_2 = arith.constant 0 : i32
    return %arg0, %c0_i32, %c0_i32_0, %c0_i32_1 : i32, i32, i32, i32
  }
  func.func @transform_13(%arg0: i32) -> (i32, i32, i32, i32) {
    %c0_i32 = arith.constant 0 : i32
    %c0_i32_0 = arith.constant 0 : i32
    %c0_i32_1 = arith.constant 0 : i32
    %c0_i32_2 = arith.constant 0 : i32
    return %arg0, %c0_i32, %c0_i32_0, %c0_i32_1 : i32, i32, i32, i32
  }
}

module attributes {stable_mosaic.version = 11 : i64} {
  func.func @_block_s1_kernel(%arg0: i32, %arg1: memref<1x9x96xf32, #tpu.memory_space<vmem>>, %arg2: memref<9x1xf32, #tpu.memory_space<vmem>>, %arg3: memref<96x96xf32, #tpu.memory_space<vmem>>, %arg4: memref<1x96xf32, #tpu.memory_space<vmem>>, %arg5: memref<9x1x96xf32, #tpu.memory_space<vmem>>, %arg6: memref<1x96xf32, #tpu.memory_space<vmem>>, %arg7: memref<96x96xf32, #tpu.memory_space<vmem>>, %arg8: memref<1x96xf32, #tpu.memory_space<vmem>>, %arg9: memref<1x1x1x96xf32, #tpu.memory_space<vmem>>, %arg10: memref<9x96xf32, #tpu.memory_space<vmem>>, %arg11: memref<1x96xf32, #tpu.memory_space<vmem>>) attributes {dimension_semantics = [#tpu.dimension_semantics<parallel>], iteration_bounds = array<i64: 2>, scalar_prefetch = 0 : i64, scratch_operands = 2 : i64, tpu.core_type = #tpu.core_type<tc>, window_params = [{transform_indices = @transform_0, window_bounds = array<i64: 1, 9, 96>}, {pipeline_mode = #tpu.pipeline_mode<synchronous>, transform_indices = @transform_1, window_bounds = array<i64: 9, 1>}, {pipeline_mode = #tpu.pipeline_mode<synchronous>, transform_indices = @transform_2, window_bounds = array<i64: 96, 96>}, {pipeline_mode = #tpu.pipeline_mode<synchronous>, transform_indices = @transform_3, window_bounds = array<i64: 1, 96>}, {pipeline_mode = #tpu.pipeline_mode<synchronous>, transform_indices = @transform_4, window_bounds = array<i64: 9, 1, 96>}, {pipeline_mode = #tpu.pipeline_mode<synchronous>, transform_indices = @transform_5, window_bounds = array<i64: 1, 96>}, {pipeline_mode = #tpu.pipeline_mode<synchronous>, transform_indices = @transform_6, window_bounds = array<i64: 96, 96>}, {pipeline_mode = #tpu.pipeline_mode<synchronous>, transform_indices = @transform_7, window_bounds = array<i64: 1, 96>}, {transform_indices = @transform_8, window_bounds = array<i64: 1, 1, 1, 96>}]} {
    %c0 = arith.constant 0 : index
    %c0_0 = arith.constant 0 : index
    %c0_1 = arith.constant 0 : index
    %0 = vector.load %arg1[%c0, %c0_0, %c0_1] : memref<1x9x96xf32, #tpu.memory_space<vmem>>, vector<1x9x96xf32>
    %1 = vector.shape_cast %0 : vector<1x9x96xf32> to vector<9x96xf32>
    %c0_2 = arith.constant 0 : index
    %c0_3 = arith.constant 0 : index
    %2 = vector.load %arg3[%c0_2, %c0_3] : memref<96x96xf32, #tpu.memory_space<vmem>>, vector<96x96xf32>
    %cst = arith.constant dense<0.000000e+00> : vector<9x96xf32>
    %3 = tpu.matmul %1, %2, %cst {dimension_numbers = #tpu.dot_dimension_numbers<[1], [0], [0], [1], [0, 0, 1, 1], [], []>} : vector<9x96xf32>, vector<96x96xf32>, vector<9x96xf32> -> vector<9x96xf32>
    %c0_4 = arith.constant 0 : index
    %c0_5 = arith.constant 0 : index
    %4 = vector.load %arg4[%c0_4, %c0_5] : memref<1x96xf32, #tpu.memory_space<vmem>>, vector<1x96xf32>
    %5 = vector.broadcast %4 : vector<1x96xf32> to vector<9x96xf32>
    %6 = arith.addf %3, %5 : vector<9x96xf32>
    %cst_6 = arith.constant 0.000000e+00 : f32
    %7 = vector.broadcast %cst_6 : f32 to vector<9x96xf32>
    %8 = arith.maximumf %6, %7 : vector<9x96xf32>
    %c0_7 = arith.constant 0 : index
    %c0_8 = arith.constant 0 : index
    %9 = vector.load %arg2[%c0_7, %c0_8] : memref<9x1xf32, #tpu.memory_space<vmem>>, vector<9x1xf32>
    %10 = vector.broadcast %9 : vector<9x1xf32> to vector<9x96xf32>
    %11 = arith.mulf %8, %10 : vector<9x96xf32>
    %c0_9 = arith.constant 0 : index
    %c0_10 = arith.constant 0 : index
    %12 = vector.load %arg10[%c0_9, %c0_10] : memref<9x96xf32, #tpu.memory_space<vmem>>, vector<9x96xf32>
    tpu.vector_store %arg10[%c0_9, %c0_10], %11 {strides = array<i32>} : memref<9x96xf32, #tpu.memory_space<vmem>>, vector<9x96xf32>,
    %cst_11 = arith.constant 0.000000e+00 : f32
    %13 = vector.broadcast %cst_11 : f32 to vector<1x96xf32>
    %c0_12 = arith.constant 0 : index
    %c0_13 = arith.constant 0 : index
    %14 = vector.load %arg6[%c0_12, %c0_13] : memref<1x96xf32, #tpu.memory_space<vmem>>, vector<1x96xf32>
    %15 = arith.addf %13, %14 : vector<1x96xf32>
    %c0_14 = arith.constant 0 : index
    %c0_15 = arith.constant 0 : index
    %16 = vector.load %arg10[%c0_14, %c0_15] : memref<9x96xf32, #tpu.memory_space<vmem>>, vector<1x96xf32>
    %c0_16 = arith.constant 0 : index
    %c0_17 = arith.constant 0 : index
    %c0_18 = arith.constant 0 : index
    %17 = vector.load %arg5[%c0_16, %c0_17, %c0_18] : memref<9x1x96xf32, #tpu.memory_space<vmem>>, vector<1x1x96xf32>
    %18 = vector.shape_cast %17 : vector<1x1x96xf32> to vector<1x96xf32>
    %19 = arith.mulf %16, %18 : vector<1x96xf32>
    %20 = arith.addf %15, %19 : vector<1x96xf32>
    %c1 = arith.constant 1 : index
    %c0_19 = arith.constant 0 : index
    %21 = vector.load %arg10[%c1, %c0_19] : memref<9x96xf32, #tpu.memory_space<vmem>>, vector<1x96xf32>
    %c1_20 = arith.constant 1 : index
    %c0_21 = arith.constant 0 : index
    %c0_22 = arith.constant 0 : index
    %22 = vector.load %arg5[%c1_20, %c0_21, %c0_22] : memref<9x1x96xf32, #tpu.memory_space<vmem>>, vector<1x1x96xf32>
    %23 = vector.shape_cast %22 : vector<1x1x96xf32> to vector<1x96xf32>
    %24 = arith.mulf %21, %23 : vector<1x96xf32>
    %25 = arith.addf %20, %24 : vector<1x96xf32>
    %c2 = arith.constant 2 : index
    %c0_23 = arith.constant 0 : index
    %26 = vector.load %arg10[%c2, %c0_23] : memref<9x96xf32, #tpu.memory_space<vmem>>, vector<1x96xf32>
    %c2_24 = arith.constant 2 : index
    %c0_25 = arith.constant 0 : index
    %c0_26 = arith.constant 0 : index
    %27 = vector.load %arg5[%c2_24, %c0_25, %c0_26] : memref<9x1x96xf32, #tpu.memory_space<vmem>>, vector<1x1x96xf32>
    %28 = vector.shape_cast %27 : vector<1x1x96xf32> to vector<1x96xf32>
    %29 = arith.mulf %26, %28 : vector<1x96xf32>
    %30 = arith.addf %25, %29 : vector<1x96xf32>
    %c3 = arith.constant 3 : index
    %c0_27 = arith.constant 0 : index
    %31 = vector.load %arg10[%c3, %c0_27] : memref<9x96xf32, #tpu.memory_space<vmem>>, vector<1x96xf32>
    %c3_28 = arith.constant 3 : index
    %c0_29 = arith.constant 0 : index
    %c0_30 = arith.constant 0 : index
    %32 = vector.load %arg5[%c3_28, %c0_29, %c0_30] : memref<9x1x96xf32, #tpu.memory_space<vmem>>, vector<1x1x96xf32>
    %33 = vector.shape_cast %32 : vector<1x1x96xf32> to vector<1x96xf32>
    %34 = arith.mulf %31, %33 : vector<1x96xf32>
    %35 = arith.addf %30, %34 : vector<1x96xf32>
    %c4 = arith.constant 4 : index
    %c0_31 = arith.constant 0 : index
    %36 = vector.load %arg10[%c4, %c0_31] : memref<9x96xf32, #tpu.memory_space<vmem>>, vector<1x96xf32>
    %c4_32 = arith.constant 4 : index
    %c0_33 = arith.constant 0 : index
    %c0_34 = arith.constant 0 : index
    %37 = vector.load %arg5[%c4_32, %c0_33, %c0_34] : memref<9x1x96xf32, #tpu.memory_space<vmem>>, vector<1x1x96xf32>
    %38 = vector.shape_cast %37 : vector<1x1x96xf32> to vector<1x96xf32>
    %39 = arith.mulf %36, %38 : vector<1x96xf32>
    %40 = arith.addf %35, %39 : vector<1x96xf32>
    %c5 = arith.constant 5 : index
    %c0_35 = arith.constant 0 : index
    %41 = vector.load %arg10[%c5, %c0_35] : memref<9x96xf32, #tpu.memory_space<vmem>>, vector<1x96xf32>
    %c5_36 = arith.constant 5 : index
    %c0_37 = arith.constant 0 : index
    %c0_38 = arith.constant 0 : index
    %42 = vector.load %arg5[%c5_36, %c0_37, %c0_38] : memref<9x1x96xf32, #tpu.memory_space<vmem>>, vector<1x1x96xf32>
    %43 = vector.shape_cast %42 : vector<1x1x96xf32> to vector<1x96xf32>
    %44 = arith.mulf %41, %43 : vector<1x96xf32>
    %45 = arith.addf %40, %44 : vector<1x96xf32>
    %c6 = arith.constant 6 : index
    %c0_39 = arith.constant 0 : index
    %46 = vector.load %arg10[%c6, %c0_39] : memref<9x96xf32, #tpu.memory_space<vmem>>, vector<1x96xf32>
    %c6_40 = arith.constant 6 : index
    %c0_41 = arith.constant 0 : index
    %c0_42 = arith.constant 0 : index
    %47 = vector.load %arg5[%c6_40, %c0_41, %c0_42] : memref<9x1x96xf32, #tpu.memory_space<vmem>>, vector<1x1x96xf32>
    %48 = vector.shape_cast %47 : vector<1x1x96xf32> to vector<1x96xf32>
    %49 = arith.mulf %46, %48 : vector<1x96xf32>
    %50 = arith.addf %45, %49 : vector<1x96xf32>
    %c7 = arith.constant 7 : index
    %c0_43 = arith.constant 0 : index
    %51 = vector.load %arg10[%c7, %c0_43] : memref<9x96xf32, #tpu.memory_space<vmem>>, vector<1x96xf32>
    %c7_44 = arith.constant 7 : index
    %c0_45 = arith.constant 0 : index
    %c0_46 = arith.constant 0 : index
    %52 = vector.load %arg5[%c7_44, %c0_45, %c0_46] : memref<9x1x96xf32, #tpu.memory_space<vmem>>, vector<1x1x96xf32>
    %53 = vector.shape_cast %52 : vector<1x1x96xf32> to vector<1x96xf32>
    %54 = arith.mulf %51, %53 : vector<1x96xf32>
    %55 = arith.addf %50, %54 : vector<1x96xf32>
    %c8 = arith.constant 8 : index
    %c0_47 = arith.constant 0 : index
    %56 = vector.load %arg10[%c8, %c0_47] : memref<9x96xf32, #tpu.memory_space<vmem>>, vector<1x96xf32>
    %c8_48 = arith.constant 8 : index
    %c0_49 = arith.constant 0 : index
    %c0_50 = arith.constant 0 : index
    %57 = vector.load %arg5[%c8_48, %c0_49, %c0_50] : memref<9x1x96xf32, #tpu.memory_space<vmem>>, vector<1x1x96xf32>
    %58 = vector.shape_cast %57 : vector<1x1x96xf32> to vector<1x96xf32>
    %59 = arith.mulf %56, %58 : vector<1x96xf32>
    %60 = arith.addf %55, %59 : vector<1x96xf32>
    %c0_51 = arith.constant 0 : index
    %c0_52 = arith.constant 0 : index
    %61 = vector.load %arg7[%c0_51, %c0_52] : memref<96x96xf32, #tpu.memory_space<vmem>>, vector<96x96xf32>
    %cst_53 = arith.constant dense<0.000000e+00> : vector<1x96xf32>
    %62 = tpu.matmul %60, %61, %cst_53 {dimension_numbers = #tpu.dot_dimension_numbers<[1], [0], [0], [1], [0, 0, 1, 1], [], []>} : vector<1x96xf32>, vector<96x96xf32>, vector<1x96xf32> -> vector<1x96xf32>
    %c0_54 = arith.constant 0 : index
    %c0_55 = arith.constant 0 : index
    %63 = vector.load %arg8[%c0_54, %c0_55] : memref<1x96xf32, #tpu.memory_space<vmem>>, vector<1x96xf32>
    %64 = arith.addf %62, %63 : vector<1x96xf32>
    %cst_56 = arith.constant 0.000000e+00 : f32
    %65 = vector.broadcast %cst_56 : f32 to vector<1x96xf32>
    %66 = arith.maximumf %64, %65 : vector<1x96xf32>
    %c0_57 = arith.constant 0 : index
    %c0_58 = arith.constant 0 : index
    %67 = vector.load %arg11[%c0_57, %c0_58] : memref<1x96xf32, #tpu.memory_space<vmem>>, vector<1x96xf32>
    tpu.vector_store %arg11[%c0_57, %c0_58], %66 {strides = array<i32>} : memref<1x96xf32, #tpu.memory_space<vmem>>, vector<1x96xf32>,
    %c0_59 = arith.constant 0 : index
    %c0_60 = arith.constant 0 : index
    %68 = vector.load %arg11[%c0_59, %c0_60] : memref<1x96xf32, #tpu.memory_space<vmem>>, vector<1x96xf32>
    %c0_61 = arith.constant 0 : index
    %c0_62 = arith.constant 0 : index
    %c0_63 = arith.constant 0 : index
    %c0_64 = arith.constant 0 : index
    %69 = vector.load %arg9[%c0_61, %c0_62, %c0_63, %c0_64] : memref<1x1x1x96xf32, #tpu.memory_space<vmem>>, vector<1x1x1x96xf32>
    %70 = vector.shape_cast %69 : vector<1x1x1x96xf32> to vector<1x96xf32>
    %71 = vector.shape_cast %68 : vector<1x96xf32> to vector<1x1x1x96xf32>
    tpu.vector_store %arg9[%c0_61, %c0_62, %c0_63, %c0_64], %71 {strides = array<i32>} : memref<1x1x1x96xf32, #tpu.memory_space<vmem>>, vector<1x1x1x96xf32>,
    return
  }
  func.func @transform_0(%arg0: i32) -> (i32, i32, i32) {
    %c0_i32 = arith.constant 0 : i32
    %c0_i32_0 = arith.constant 0 : i32
    %c0_i32_1 = arith.constant 0 : i32
    return %arg0, %c0_i32, %c0_i32_0 : i32, i32, i32
  }
  func.func @transform_1(%arg0: i32) -> (i32, i32) {
    %c0_i32 = arith.constant 0 : i32
    %c0_i32_0 = arith.constant 0 : i32
    %c0_i32_1 = arith.constant 0 : i32
    return %c0_i32, %c0_i32_0 : i32, i32
  }
  func.func @transform_2(%arg0: i32) -> (i32, i32) {
    %c0_i32 = arith.constant 0 : i32
    %c0_i32_0 = arith.constant 0 : i32
    %c0_i32_1 = arith.constant 0 : i32
    return %c0_i32, %c0_i32_0 : i32, i32
  }
  func.func @transform_3(%arg0: i32) -> (i32, i32) {
    %c0_i32 = arith.constant 0 : i32
    %c0_i32_0 = arith.constant 0 : i32
    %c0_i32_1 = arith.constant 0 : i32
    return %c0_i32, %c0_i32_0 : i32, i32
  }
  func.func @transform_4(%arg0: i32) -> (i32, i32, i32) {
    %c0_i32 = arith.constant 0 : i32
    %c0_i32_0 = arith.constant 0 : i32
    %c0_i32_1 = arith.constant 0 : i32
    %c0_i32_2 = arith.constant 0 : i32
    return %c0_i32, %c0_i32_0, %c0_i32_1 : i32, i32, i32
  }
  func.func @transform_5(%arg0: i32) -> (i32, i32) {
    %c0_i32 = arith.constant 0 : i32
    %c0_i32_0 = arith.constant 0 : i32
    %c0_i32_1 = arith.constant 0 : i32
    return %c0_i32, %c0_i32_0 : i32, i32
  }
  func.func @transform_6(%arg0: i32) -> (i32, i32) {
    %c0_i32 = arith.constant 0 : i32
    %c0_i32_0 = arith.constant 0 : i32
    %c0_i32_1 = arith.constant 0 : i32
    return %c0_i32, %c0_i32_0 : i32, i32
  }
  func.func @transform_7(%arg0: i32) -> (i32, i32) {
    %c0_i32 = arith.constant 0 : i32
    %c0_i32_0 = arith.constant 0 : i32
    %c0_i32_1 = arith.constant 0 : i32
    return %c0_i32, %c0_i32_0 : i32, i32
  }
  func.func @transform_8(%arg0: i32) -> (i32, i32, i32, i32) {
    %c0_i32 = arith.constant 0 : i32
    %c0_i32_0 = arith.constant 0 : i32
    %c0_i32_1 = arith.constant 0 : i32
    %c0_i32_2 = arith.constant 0 : i32
    return %arg0, %c0_i32, %c0_i32_0, %c0_i32_1 : i32, i32, i32, i32
  }
}

module attributes {stable_mosaic.version = 11 : i64} {
  func.func @_mm_bias_relu_kernel(%arg0: i32, %arg1: memref<2x192xf32, #tpu.memory_space<vmem>>, %arg2: memref<192x1024xf32, #tpu.memory_space<vmem>>, %arg3: memref<1x1024xf32, #tpu.memory_space<vmem>>, %arg4: memref<2x1024xf32, #tpu.memory_space<vmem>>) attributes {dimension_semantics = [#tpu.dimension_semantics<arbitrary>], iteration_bounds = array<i64: 1>, scalar_prefetch = 0 : i64, scratch_operands = 0 : i64, tpu.core_type = #tpu.core_type<tc>, window_params = [{pipeline_mode = #tpu.pipeline_mode<synchronous>, transform_indices = @transform_0, window_bounds = array<i64: 2, 192>}, {pipeline_mode = #tpu.pipeline_mode<synchronous>, transform_indices = @transform_1, window_bounds = array<i64: 192, 1024>}, {pipeline_mode = #tpu.pipeline_mode<synchronous>, transform_indices = @transform_2, window_bounds = array<i64: 1, 1024>}, {pipeline_mode = #tpu.pipeline_mode<synchronous>, transform_indices = @transform_3, window_bounds = array<i64: 2, 1024>}]} {
    %c0 = arith.constant 0 : index
    %c0_0 = arith.constant 0 : index
    %0 = vector.load %arg1[%c0, %c0_0] : memref<2x192xf32, #tpu.memory_space<vmem>>, vector<2x192xf32>
    %c0_1 = arith.constant 0 : index
    %c0_2 = arith.constant 0 : index
    %1 = vector.load %arg2[%c0_1, %c0_2] : memref<192x1024xf32, #tpu.memory_space<vmem>>, vector<192x1024xf32>
    %cst = arith.constant dense<0.000000e+00> : vector<2x1024xf32>
    %2 = tpu.matmul %0, %1, %cst {dimension_numbers = #tpu.dot_dimension_numbers<[1], [0], [0], [1], [0, 0, 1, 1], [], []>} : vector<2x192xf32>, vector<192x1024xf32>, vector<2x1024xf32> -> vector<2x1024xf32>
    %c0_3 = arith.constant 0 : index
    %c0_4 = arith.constant 0 : index
    %3 = vector.load %arg3[%c0_3, %c0_4] : memref<1x1024xf32, #tpu.memory_space<vmem>>, vector<1x1024xf32>
    %4 = vector.broadcast %3 : vector<1x1024xf32> to vector<2x1024xf32>
    %5 = arith.addf %2, %4 : vector<2x1024xf32>
    %cst_5 = arith.constant 0.000000e+00 : f32
    %6 = vector.broadcast %cst_5 : f32 to vector<2x1024xf32>
    %7 = arith.maximumf %5, %6 : vector<2x1024xf32>
    %c0_6 = arith.constant 0 : index
    %c0_7 = arith.constant 0 : index
    %8 = vector.load %arg4[%c0_6, %c0_7] : memref<2x1024xf32, #tpu.memory_space<vmem>>, vector<2x1024xf32>
    tpu.vector_store %arg4[%c0_6, %c0_7], %7 {strides = array<i32>} : memref<2x1024xf32, #tpu.memory_space<vmem>>, vector<2x1024xf32>,
    return
  }
  func.func @transform_0(%arg0: i32) -> (i32, i32) {
    %c0_i32 = arith.constant 0 : i32
    %c0_i32_0 = arith.constant 0 : i32
    %c0_i32_1 = arith.constant 0 : i32
    return %c0_i32, %c0_i32_0 : i32, i32
  }
  func.func @transform_1(%arg0: i32) -> (i32, i32) {
    %c0_i32 = arith.constant 0 : i32
    %c0_i32_0 = arith.constant 0 : i32
    %c0_i32_1 = arith.constant 0 : i32
    return %c0_i32, %c0_i32_0 : i32, i32
  }
  func.func @transform_2(%arg0: i32) -> (i32, i32) {
    %c0_i32 = arith.constant 0 : i32
    %c0_i32_0 = arith.constant 0 : i32
    %c0_i32_1 = arith.constant 0 : i32
    return %c0_i32, %c0_i32_0 : i32, i32
  }
  func.func @transform_3(%arg0: i32) -> (i32, i32) {
    %c0_i32 = arith.constant 0 : i32
    %c0_i32_0 = arith.constant 0 : i32
    %c0_i32_1 = arith.constant 0 : i32
    return %c0_i32, %c0_i32_0 : i32, i32
  }
}

</mosaic_0001>

<bundles_post_ra>
// kernel: shufflenet_v2_forward.18
= control target key start
LH: loop header
LB: loop body
LE: loop exit
PB: predicated region body
PF: predicated region fallthrough
CT: control target
= control target key end

     0   :  { %s1690_s15 = smov 0   ;;  %s2281_s0 = inlined_call_operand.vmem [shape: f32[2,324,27], index: 0, kind: input, shape index: {}]   ;;  %s2282_s1 = inlined_call_operand.vmem [shape: f32[324,1], index: 1, kind: input, shape index: {}]   ;;  %s2283_s2 = inlined_call_operand.vmem [shape: f32[27,24], index: 2, kind: input, shape index: {}]   ;;  %s2284_s3 = inlined_call_operand.vmem [shape: f32[1,24], index: 3, kind: input, shape index: {}]   ;;  %s2285_s4 = inlined_call_operand.vmem [shape: f32[2,8,16,24], index: 4, kind: output, shape index: {}]  }
   0x1 LB: > { %s1563_s16 = sadd.s32 4294967295, %s1662_s15   ;;  %p1567_p0 = scmp.ge.s32.totalorder %s1662_s15, 1  ;;  %s1662_s15 = sphi %s1690_s15, %s14_s15  }
   0x2   : > { %p162_p1 = scmp.lt.s32.totalorder %s1662_s15, 3 }
   0x4   : > { %p163_p2 = pnand %p1567_p0, %p162_p1 }
   0x5   : > { %p188_p3 = scmp.lt.s32.totalorder (!%p163_p2), %s1563_s16, 1 }
   0x6   : > { %166 = sbr.rel (%p163_p2) target bundleno = 283 (0x11b), region = 36 }
   0xb   : > { %v242_v0 = vld [vmem:[%s2283_s2 + $0x18] sm:$0x7]  ;;  %vm371_vm0 = vcmask 1042432   ;;  %v1664_v1 = vmov 0   ;;  %v560_v2 = vld [vmem:[%s2282_s1 + $0x20] sm:$0xff]  ;;  %v558_v3 = vld [vmem:[%s2282_s1 + $0x10] sm:$0xff] }
   0xc   : > { %1654 = vset.pattern.permute.xlu2 %v1664_v1  ;;  %1653 = vset.pattern.permute.xlu1 %v1664_v1  ;;  %v556_v4 = vld [vmem:[%s2282_s1] sm:$0xff]  ;;  %v241_v5 = vld [vmem:[%s2283_s2 + $0x10] sm:$0xff]  ;;  %s2287_s16 = smov (!%p188_p3, %s1563_s16), 1  ;;  %v240_v6 = vld [vmem:[%s2283_s2 + $0x8] sm:$0xff]  ;;  %vm247_vm1 = vcmask 220160   ;;  %vm843_vm2 = vcmask 195584  }
   0xd   : > { %1652 = vset.pattern.permute.xlu0 %v1664_v1  ;;  %1571 = vmatpush.msk.msra.mxu0 %vm371_vm0, %v242_v0  ;;  %s1642_s29 = smul.u32 328, %s2287_s16  ;;  %v239_v7 = vld [vmem:[%s2283_s2] sm:$0xff]  ;;  %v561_v12 = vld [vmem:[%s2282_s1 + $0x28] sm:$0xff]  ;;  %v559_v13 = vld [vmem:[%s2282_s1 + $0x18] sm:$0xff]  ;;  %s1629_s19 = sshll.u32 %s2287_s16, 7  ;;  %vm884_vm3 = vcmask 191488  }
   0xe   : > { %1630 = vmatpush.msk.msra.mxu1 %vm371_vm0, %v242_v0  ;;  %1631 = vmatpush.msk.msra.mxu2 %vm371_vm0, %v242_v0  ;;  %v557_v14 = vld [vmem:[%s2282_s1 + $0x8] sm:$0xff]  ;;  %v564_v19 = vld [vmem:[%s2282_s1 + $0x40] sm:$0xff]  ;;  %v563_v20 = vld [vmem:[%s2282_s1 + $0x38] sm:$0xff]  ;;  %s2094_s21 = scalar_lea.vmem %s2285_s4, %s1629_s19 }
   0xf   : > { %1632 = vmatpush.msk.msra.mxu3 %vm371_vm0, %v242_v0  ;;  %619 = vperm.xlu2 %1654, %v560_v2   ;;  %s1725_s8 = scalar_lea.vmem %s2281_s0, %s1642_s29  ;;  %v562_v21 = vld [vmem:[%s2282_s1 + $0x30] sm:$0xff]  ;;  %v567_v26 = vld [vmem:[%s2282_s1 + $0x58] sm:$0xff]  ;;  %v565_v28 = vld [vmem:[%s2282_s1 + $0x48] sm:$0xff] }
  0x10   : > { %609 = vperm.xlu1 %1653, %v558_v3   ;;  %599 = vperm.xlu0 %1652, %v556_v4   ;;  %v198_v8 = vld [vmem:[%s1725_s8] sm:$0xff]  ;;  %v208_v9 = vld [vmem:[%s1725_s8 + $0x50] sm:$0xff]  ;;  %v229_v11 = vld [vmem:[%s1725_s8 + $0xf8] sm:$0xff] }
  0x11   : > { %388 = vmatpush.msra.mxu0 %v241_v5  ;;  %1633 = vmatpush.msra.mxu1 %v241_v5  ;;  %v218_v10 = vld [vmem:[%s1725_s8 + $0xa0] sm:$0xff]  ;;  %v199_v15 = vld [vmem:[%s1725_s8 + $0x8] sm:$0xff]  ;;  %v209_v16 = vld [vmem:[%s1725_s8 + $0x58] sm:$0xff] }
  0x12   : > { %1634 = vmatpush.msra.mxu2 %v241_v5  ;;  %1635 = vmatpush.msra.mxu3 %v241_v5  ;;  %v219_v17 = vld [vmem:[%s1725_s8 + $0xa8] sm:$0xff]  ;;  %v230_v18 = vld [vmem:[%s1725_s8 + $0x100] sm:$0xff]  ;;  %v200_v22 = vld [vmem:[%s1725_s8 + $0x10] sm:$0xff] }
  0x13   : > { %389 = vmatpush.msra.mxu0 %v240_v6  ;;  %1636 = vmatpush.msra.mxu1 %v240_v6  ;;  %v210_v23 = vld [vmem:[%s1725_s8 + $0x60] sm:$0xff]  ;;  %v220_v24 = vld [vmem:[%s1725_s8 + $0xb0] sm:$0xff]  ;;  %v231_v25 = vld [vmem:[%s1725_s8 + $0x108] sm:$0xff] }
  0x14   : > { %1637 = vmatpush.msra.mxu2 %v240_v6  ;;  %1638 = vmatpush.msra.mxu3 %v240_v6  ;;  %v566_v27 = vld [vmem:[%s2282_s1 + $0x50] sm:$0xff]  ;;  %v201_v29 = vld [vmem:[%s1725_s8 + $0x18] sm:$0xff]  ;;  %v211_v30 = vld [vmem:[%s1725_s8 + $0x68] sm:$0xff] }
  0x15   : > { %390 = vmatpush.msra.mxu0 %v239_v7  ;;  %1639 = vmatpush.msra.mxu1 %v239_v7  ;;  %v221_v31 = vld [vmem:[%s1725_s8 + $0xb8] sm:$0xff]  ;;  %v232_v32 = vld [vmem:[%s1725_s8 + $0x110] sm:$0xff]  ;;  %v569_v34 = vld [vmem:[%s2282_s1 + $0x68] sm:$0xff] }
  0x16   : > { %1640 = vmatpush.msra.mxu2 %v239_v7  ;;  %1641 = vmatpush.msra.mxu3 %v239_v7  ;;  %v570_v33 = vld [vmem:[%s2282_s1 + $0x70] sm:$0xff]  ;;  %v568_v35 = vld [vmem:[%s2282_s1 + $0x60] sm:$0xff]  ;;  %v233_v39 = vld [vmem:[%s1725_s8 + $0x118] sm:$0xff] }
  0x17   : > { %1572 = vmatmul.msk.f32.vlgmr.msra.gmra.mxu0 %vm247_vm1, %v198_v8  ;;  %1582 = vmatmul.msk.f32.vlgmr.msra.gmra.mxu1 %vm247_vm1, %v208_v9  ;;  %v202_v36 = vld [vmem:[%s1725_s8 + $0x20] sm:$0xff]  ;;  %v212_v37 = vld [vmem:[%s1725_s8 + $0x70] sm:$0xff]  ;;  %v573_v40 = vld [vmem:[%s2282_s1 + $0x88] sm:$0xff] }
  0x18   : > { %1592 = vmatmul.msk.f32.vlgmr.msra.gmra.mxu2 %vm247_vm1, %v218_v10  ;;  %1603 = vmatmul.msk.f32.vlgmr.msra.gmra.mxu3 %vm247_vm1, %v229_v11  ;;  %v222_v38 = vld [vmem:[%s1725_s8 + $0xc0] sm:$0xff]  ;;  %v571_v42 = vld [vmem:[%s2282_s1 + $0x78] sm:$0xff]  ;;  %v203_v43 = vld [vmem:[%s1725_s8 + $0x28] sm:$0xff] }
  0x19   : > { %624 = vperm.xlu2 %1654, %v561_v12   ;;  %614 = vperm.xlu1 %1653, %v559_v13   ;;  %v572_v41 = vld [vmem:[%s2282_s1 + $0x80] sm:$0xff]  ;;  %v213_v44 = vld [vmem:[%s1725_s8 + $0x78] sm:$0xff]  ;;  %v223_v45 = vld [vmem:[%s1725_s8 + $0xc8] sm:$0xff] }
  0x1a   : > { %604 = vperm.xlu0 %1652, %v557_v14   ;;  %v234_v46 = vld [vmem:[%s1725_s8 + $0x120] sm:$0xff]  ;;  %v575_v48 = vld [vmem:[%s2282_s1 + $0x98] sm:$0xff]  ;;  %v574_v49 = vld [vmem:[%s2282_s1 + $0x90] sm:$0xff] }
  0x1b   : > { %v576_v47 = vld [vmem:[%s2282_s1 + $0xa0] sm:$0xff]  ;;  %v204_v50 = vld [vmem:[%s1725_s8 + $0x30] sm:$0xff]  ;;  %v235_v53 = vld [vmem:[%s1725_s8 + $0x128] sm:$0xff] }
  0x1c   : > { %v214_v51 = vld [vmem:[%s1725_s8 + $0x80] sm:$0xff]  ;;  %v224_v52 = vld [vmem:[%s1725_s8 + $0xd0] sm:$0xff]  ;;  %v579_v54 = vld [vmem:[%s2282_s1 + $0xb8] sm:$0xff] }
  0x1d   : > { %v578_v55 = vld [vmem:[%s2282_s1 + $0xb0] sm:$0xff]  ;;  %v577_v56 = vld [vmem:[%s2282_s1 + $0xa8] sm:$0xff]  ;;  %v205_v57 = vld [vmem:[%s1725_s8 + $0x38] sm:$0xff] }
  0x1e   : > { %v215_v58 = vld [vmem:[%s1725_s8 + $0x88] sm:$0xff]  ;;  %v225_v59 = vld [vmem:[%s1725_s8 + $0xd8] sm:$0xff]  ;;  %v236_v60 = vld [vmem:[%s1725_s8 + $0x130] sm:$0xff] }
  0x1f   : > { %1573 = vmatmul.msk.f32.gmra.mxu0 %vm247_vm1, %v199_v15  ;;  %1583 = vmatmul.msk.f32.gmra.mxu1 %vm247_vm1, %v209_v16  ;;  %v582_v61 = vld [vmem:[%s2282_s1 + $0xd0] sm:$0xff]  ;;  %v581_v62 = vld [vmem:[%s2282_s1 + $0xc8] sm:$0xff]  ;;  %v580_v63 = vld [vmem:[%s2282_s1 + $0xc0] sm:$0xff] }
  0x20   : > { %1593 = vmatmul.msk.f32.gmra.mxu2 %vm247_vm1, %v219_v17  ;;  %1604 = vmatmul.msk.f32.gmra.mxu3 %vm247_vm1, %v230_v18  ;;  %v206_v0 = vld [vmem:[%s1725_s8 + $0x40] sm:$0xff]  ;;  %v216_v1 = vld [vmem:[%s1725_s8 + $0x90] sm:$0xff]  ;;  %v237_v3 = vld [vmem:[%s1725_s8 + $0x138] sm:$0xff] }
  0x21   : > { %639 = vperm.xlu2 %1654, %v564_v19   ;;  %634 = vperm.xlu1 %1653, %v563_v20   ;;  %v226_v2 = vld [vmem:[%s1725_s8 + $0xe0] sm:$0xff]  ;;  %v585_v4 = vld [vmem:[%s2282_s1 + $0xe8] sm:$0xff]  ;;  %v583_v6 = vld [vmem:[%s2282_s1 + $0xd8] sm:$0xff] }
  0x22   : > { %629 = vperm.xlu0 %1652, %v562_v21   ;;  %v584_v5 = vld [vmem:[%s2282_s1 + $0xe0] sm:$0xff]  ;;  %v207_v7 = vld [vmem:[%s1725_s8 + $0x48] sm:$0xff]  ;;  %v217_v8 = vld [vmem:[%s1725_s8 + $0x98] sm:$0xff] }
  0x23   : > { %v227_v9 = vld [vmem:[%s1725_s8 + $0xe8] sm:$0xff]  ;;  %v238_v10 = vld [vmem:[%s1725_s8 + $0x140] sm:$0xf]  ;;  %v587_v13 = vld [vmem:[%s2282_s1 + $0xf8] sm:$0xff] }
  0x24   : > { %v589_v11 = vld [vmem:[%s2282_s1 + $0x108] sm:$0xff]  ;;  %v588_v12 = vld [vmem:[%s2282_s1 + $0x100] sm:$0xff]  ;;  %v228_v14 = vld [vmem:[%s1725_s8 + $0xf0] sm:$0xff] }
  0x25   : > { %v591_v15 = vld [vmem:[%s2282_s1 + $0x118] sm:$0xff]  ;;  %v586_v16 = vld [vmem:[%s2282_s1 + $0xf0] sm:$0xff]  ;;  %v593_v20 = vld [vmem:[%s2282_s1 + $0x128] sm:$0xff] }
  0x26   : > { %v590_v17 = vld [vmem:[%s2282_s1 + $0x110] sm:$0xff]  ;;  %v592_v21 = vld [vmem:[%s2282_s1 + $0x120] sm:$0xff] }
  0x27   : > { %1574 = vmatmul.msk.f32.gmra.mxu0 %vm247_vm1, %v200_v22  ;;  %1584 = vmatmul.msk.f32.gmra.mxu1 %vm247_vm1, %v210_v23  ;;  %v594_v19 = vld [vmem:[%s2282_s1 + $0x130] sm:$0xff]  ;;  %v596_v23 = vld [vmem:[%s2282_s1 + $0x140] sm:$0xf] }
  0x28   : > { %1594 = vmatmul.msk.f32.gmra.mxu2 %vm247_vm1, %v220_v24  ;;  %1605 = vmatmul.msk.f32.gmra.mxu3 %vm247_vm1, %v231_v25  ;;  %v595_v24 = vld [vmem:[%s2282_s1 + $0x138] sm:$0xff] }
  0x29   : > { %654 = vperm.xlu2 %1654, %v567_v26   ;;  %649 = vperm.xlu1 %1653, %v566_v27  }
  0x2a   : > { %644 = vperm.xlu0 %1652, %v565_v28  }
  0x2f   : > { %1575 = vmatmul.msk.f32.gmra.mxu0 %vm247_vm1, %v201_v29  ;;  %1585 = vmatmul.msk.f32.gmra.mxu1 %vm247_vm1, %v211_v30 }
  0x30   : > { %1595 = vmatmul.msk.f32.gmra.mxu2 %vm247_vm1, %v221_v31  ;;  %1606 = vmatmul.msk.f32.gmra.mxu3 %vm247_vm1, %v232_v32  ;;  %v1934_v32 = vld [vmem:[%s2284_s3] ss:$0 sm:$0xff] }
  0x31   : > { %669 = vperm.xlu2 %1654, %v570_v33   ;;  %664 = vperm.xlu1 %1653, %v569_v34  }
  0x32   : > { %659 = vperm.xlu0 %1652, %v568_v35  }
  0x37   : > { %1576 = vmatmul.msk.f32.gmra.mxu0 %vm247_vm1, %v202_v36  ;;  %1586 = vmatmul.msk.f32.gmra.mxu1 %vm247_vm1, %v212_v37 }
  0x38   : > { %1596 = vmatmul.msk.f32.gmra.mxu2 %vm247_vm1, %v222_v38  ;;  %1607 = vmatmul.msk.f32.gmra.mxu3 %vm247_vm1, %v233_v39 }
  0x39   : > { %684 = vperm.xlu2 %1654, %v573_v40   ;;  %679 = vperm.xlu1 %1653, %v572_v41  }
  0x3a   : > { %674 = vperm.xlu0 %1652, %v571_v42  }
  0x3f   : > { %1577 = vmatmul.msk.f32.gmra.mxu0 %vm247_vm1, %v203_v43  ;;  %1587 = vmatmul.msk.f32.gmra.mxu1 %vm247_vm1, %v213_v44 }
  0x40   : > { %1597 = vmatmul.msk.f32.gmra.mxu2 %vm247_vm1, %v223_v45  ;;  %1608 = vmatmul.msk.f32.gmra.mxu3 %vm247_vm1, %v234_v46 }
  0x41   : > { %699 = vperm.xlu2 %1654, %v576_v47   ;;  %694 = vperm.xlu1 %1653, %v575_v48  }
  0x42   : > { %689 = vperm.xlu0 %1652, %v574_v49  }
  0x47   : > { %1578 = vmatmul.msk.f32.gmra.mxu0 %vm247_vm1, %v204_v50  ;;  %1588 = vmatmul.msk.f32.gmra.mxu1 %vm247_vm1, %v214_v51 }
  0x48   : > { %1598 = vmatmul.msk.f32.gmra.mxu2 %vm247_vm1, %v224_v52  ;;  %1609 = vmatmul.msk.f32.gmra.mxu3 %vm247_vm1, %v235_v53 }
  0x49   : > { %714 = vperm.xlu2 %1654, %v579_v54   ;;  %709 = vperm.xlu1 %1653, %v578_v55  }
  0x4a   : > { %704 = vperm.xlu0 %1652, %v577_v56  }
  0x4f   : > { %1579 = vmatmul.msk.f32.gmra.mxu0 %vm247_vm1, %v205_v57  ;;  %1589 = vmatmul.msk.f32.gmra.mxu1 %vm247_vm1, %v215_v58 }
  0x50   : > { %1599 = vmatmul.msk.f32.gmra.mxu2 %vm247_vm1, %v225_v59  ;;  %1610 = vmatmul.msk.f32.gmra.mxu3 %vm247_vm1, %v236_v60 }
  0x51   : > { %729 = vperm.xlu2 %1654, %v582_v61   ;;  %724 = vperm.xlu1 %1653, %v581_v62  }
  0x52   : > { %719 = vperm.xlu0 %1652, %v580_v63  }
  0x57   : > { %1580 = vmatmul.msk.f32.gmra.mxu0 %vm247_vm1, %v206_v0  ;;  %1590 = vmatmul.msk.f32.gmra.mxu1 %vm247_vm1, %v216_v1 }
  0x58   : > { %1600 = vmatmul.msk.f32.gmra.mxu2 %vm247_vm1, %v226_v2  ;;  %1611 = vmatmul.msk.f32.gmra.mxu3 %vm247_vm1, %v237_v3 }
  0x59   : > { %744 = vperm.xlu2 %1654, %v585_v4   ;;  %739 = vperm.xlu1 %1653, %v584_v5  }
  0x5a   : > { %734 = vperm.xlu0 %1652, %v583_v6  }
  0x5f   : > { %1581 = vmatmul.msk.f32.gmra.mxu0 %vm247_vm1, %v207_v7  ;;  %1591 = vmatmul.msk.f32.gmra.mxu1 %vm247_vm1, %v217_v8 }
  0x60   : > { %1601 = vmatmul.msk.f32.gmra.mxu2 %vm247_vm1, %v227_v9  ;;  %1612 = vmatmul.msk.f32.gmra.mxu3 %vm247_vm1, %v238_v10 }
  0x61   : > { %764 = vperm.xlu2 %1654, %v589_v11   ;;  %759 = vperm.xlu1 %1653, %v588_v12  }
  0x62   : > { %754 = vperm.xlu0 %1652, %v587_v13  }
  0x68   : > { %1602 = vmatmul.msk.f32.gmra.mxu2 %vm247_vm1, %v228_v14 }
  0x69   : > { %774 = vperm.xlu2 %1654, %v591_v15   ;;  %749 = vperm.xlu1 %1653, %v586_v16   ;;  %v1908_v18 = vpop.permute.xlu2 %619 }
  0x6a   : > { %769 = vperm.xlu0 %1652, %v590_v17  }
  0x71   : > { %789 = vperm.xlu2 %1654, %v594_v19   ;;  %784 = vperm.xlu1 %1653, %v593_v20  }
  0x72   : > { %779 = vperm.xlu0 %1652, %v592_v21  }
  0x73   : > { %v1919_v22 = vpop.permute.xlu2 %624 }
  0x79   : > { %799 = vperm.xlu1 %1653, %v596_v23  }
  0x7a   : > { %794 = vperm.xlu0 %1652, %v595_v24  }
  0x7b   : > { %v1927_v25 = vpop.permute.xlu2 %639 }
  0x82   : > { %v610_v26 = vpop.permute.xlu1 %609  ;;  %v600_v27 = vpop.permute.xlu0 %599 }
  0x83   : > { %v655_v28 = vpop.permute.xlu2 %654 }
  0x8b   : > { %v1929_v29 = vpop.permute.xlu2 %669  ;;  %v615_v30 = vpop.permute.xlu1 %614 }
  0x8c   : > { %v605_v31 = vpop.permute.xlu0 %604 }
  0x93   : > { %v1936_v33 = vpop.permute.xlu2 %684  ;;  %v1938_v34 = vpop.permute.xlu1 %634 }
  0x94   : > { %v1940_v35 = vpop.permute.xlu0 %629  ;;  %v392_v36 = vpop.f32.mrf.mxu0 }
  0x95   : > { %v393_v37 = vadd.f32 %v1934_v32, %v392_v36  ;;  %v422_v38 = vpop.f32.mrf.mxu1 }
  0x96   : > { %v423_v39 = vadd.f32 %v1934_v32, %v422_v38 }
  0x97   : > { %v515_v40 = vmax.f32 %v393_v37, 0.0 }
  0x98   : > { %v525_v42 = vmax.f32 %v423_v39, 0.0 }
  0x99   : > { %v802_v41 = vmul.f32 %v600_v27, %v515_v40 }
  0x9b   : > { %844 = vst.msk [vmem:[#allocation2] sm:$0xff] %vm843_vm2, %v802_v41  ;;  %v452_v43 = vpop.f32.mrf.mxu2  ;;  %v1945_v44 = vpop.f32.mrf.mxu3 }
  0x9c   : > { %v453_v45 = vadd.f32 %v1934_v32, %v452_v43  ;;  %v700_v46 = vpop.permute.xlu2 %699  ;;  %v650_v47 = vpop.permute.xlu1 %649 }
  0x9d   : > { %v812_v48 = vmul.f32 %v650_v47, %v525_v42  ;;  %v1948_v49 = vpop.permute.xlu0 %644  ;;  %v395_v50 = vpop.f32.mrf.mxu0 }
  0x9e   : > { %v535_v51 = vmax.f32 %v453_v45, 0.0  ;;  %v396_v52 = vadd.f32 %v1934_v32, %v395_v50  ;;  %v425_v53 = vpop.f32.mrf.mxu1 }
  0x9f   : > { %854 = vst.msk [vmem:[#allocation2 + $0x50] sm:$0xff] %vm843_vm2, %v812_v48  ;;  %v426_v54 = vadd.f32 %v1934_v32, %v425_v53 }
  0xa0   : > { %v822_v55 = vmul.f32 %v700_v46, %v535_v51  ;;  %v516_v56 = vmax.f32 %v396_v52, 0.0 }
  0xa1   : > { %v526_v57 = vmax.f32 %v426_v54, 0.0 }
  0xa2   : > { %864 = vst.msk [vmem:[#allocation2 + $0xa0] sm:$0xff] %vm843_vm2, %v822_v55  ;;  %v803_v58 = vmul.f32 %v605_v31, %v516_v56 }
  0xa3   : > { %v813_v59 = vmul.f32 %v655_v28, %v526_v57  ;;  %v455_v60 = vpop.f32.mrf.mxu2  ;;  %v1954_v61 = vpop.f32.mrf.mxu3 }
  0xa4   : > { %845 = vst.msk [vmem:[#allocation2 + $0x8] sm:$0xff] %vm843_vm2, %v803_v58  ;;  %v715_v62 = vpop.permute.xlu2 %714  ;;  %v665_v63 = vpop.permute.xlu1 %664  ;;  %v456_v46 = vadd.f32 %v1934_v32, %v455_v60 }
  0xa5   : > { %855 = vst.msk [vmem:[#allocation2 + $0x58] sm:$0xff] %vm843_vm2, %v813_v59  ;;  %v660_v0 = vpop.permute.xlu0 %659  ;;  %v398_v1 = vpop.f32.mrf.mxu0 }
  0xa6   : > { %v399_v2 = vadd.f32 %v1934_v32, %v398_v1  ;;  %v428_v3 = vpop.f32.mrf.mxu1  ;;  %v896_v60 = vld [vmem:[#allocation2 + $0x50] sm:$0xff] }
  0xa7   : > { %v429_v4 = vadd.f32 %v1934_v32, %v428_v3 }
  0xa8   : > { %v517_v5 = vmax.f32 %v399_v2, 0.0 }
  0xa9   : > { %v527_v6 = vmax.f32 %v429_v4, 0.0 }
  0xaa   : > { %v804_v7 = vmul.f32 %v610_v26, %v517_v5 }
  0xab   : > { %v814_v8 = vmul.f32 %v660_v0, %v527_v6  ;;  %v458_v9 = vpop.f32.mrf.mxu2  ;;  %v491_v10 = vpop.f32.mrf.mxu3  ;;  %v922_v51 = vld [vmem:[#allocation2 + $0x1] sm:$0xff] }
  0xac   : > { %846 = vst.msk [vmem:[#allocation2 + $0x10] sm:$0xff] %vm843_vm2, %v804_v7  ;;  %v1961_v11 = vpop.permute.xlu2 %729  ;;  %v1963_v12 = vpop.permute.xlu1 %679  ;;  %v492_v36 = vadd.f32 %v1934_v32, %v491_v10  ;;  %v459_v41 = vadd.f32 %v1934_v32, %v458_v9  ;;  %v932_v52 = vld [vmem:[#allocation2 + $0x51] sm:$0xff]  ;;  %v887_v4 = vld [vmem:[#allocation2 + $0x8] sm:$0xff] }
  0xad   : > { %856 = vst.msk [vmem:[#allocation2 + $0x60] sm:$0xff] %vm843_vm2, %v814_v8  ;;  %v1966_v13 = vpop.permute.xlu0 %674  ;;  %v401_v14 = vpop.f32.mrf.mxu0  ;;  %v968_v5 = vmax.f32 %v896_v60, %v932_v52  ;;  %v994_v10 = vld [vmem:[#allocation2 + $0x2] sm:$0xff] }
  0xae   : > { %v402_v15 = vadd.f32 %v1934_v32, %v401_v14  ;;  %v431_v16 = vpop.f32.mrf.mxu1  ;;  %v548_v47 = vmax.f32 %v492_v36, 0.0  ;;  %v537_v53 = vmax.f32 %v459_v41, 0.0 }
  0xaf   : > { %v432_v17 = vadd.f32 %v1934_v32, %v431_v16 }
  0xb0   : > { %v518_v19 = vmax.f32 %v402_v15, 0.0  ;;  %v1004_v15 = vld [vmem:[#allocation2 + $0x52] sm:$0xff] }
  0xb1   : > { %v528_v20 = vmax.f32 %v432_v17, 0.0 }
  0xb2   : > { %v805_v21 = vmul.f32 %v615_v30, %v518_v19 }
  0xb3   : > { %v815_v23 = vmul.f32 %v665_v63, %v528_v20  ;;  %v461_v24 = vpop.f32.mrf.mxu2  ;;  %v1970_v26 = vpop.f32.mrf.mxu3  ;;  %v923_v57 = vld [vmem:[#allocation2 + $0x9] sm:$0xff]  ;;  %v536_v63 = vmax.f32 %v456_v46, 0.0 }
  0xb4   : > { %847 = vst.msk [vmem:[#allocation2 + $0x18] sm:$0xff] %vm843_vm2, %v805_v21  ;;  %v462_v27 = vadd.f32 %v1934_v32, %v461_v24  ;;  %v1974_v28 = vpop.permute.xlu2 %744  ;;  %v1976_v31 = vpop.permute.xlu1 %694  ;;  %v959_v7 = vmax.f32 %v887_v4, %v923_v57  ;;  %v995_v36 = vld [vmem:[#allocation2 + $0xa] sm:$0xff]  ;;  %v2017_v57 = vld [vmem:[#allocation2 + $0x5a] sm:$0xff] }
  0xb5   : > { %857 = vst.msk [vmem:[#allocation2 + $0x68] sm:$0xff] %vm843_vm2, %v815_v23  ;;  %v1980_v37 = vpop.permute.xlu0 %689  ;;  %v404_v38 = vpop.f32.mrf.mxu0  ;;  %v2000_v23 = vadd.f32 %v1934_v32, %v1945_v44 }
  0xb6   : > { %v538_v30 = vmax.f32 %v462_v27, 0.0  ;;  %v405_v39 = vadd.f32 %v1934_v32, %v404_v38  ;;  %v434_v40 = vpop.f32.mrf.mxu1  ;;  %v1040_v27 = vmax.f32 %v968_v5, %v1004_v15 }
  0xb7   : > { %v435_v42 = vadd.f32 %v1934_v32, %v434_v40 }
  0xb8   : > { %v825_v43 = vmul.f32 %v715_v62, %v538_v30  ;;  %v519_v45 = vmax.f32 %v405_v39, 0.0  ;;  %v886_v62 = vld [vmem:[#allocation2] sm:$0xff]  ;;  %v2004_v30 = vadd.f32 %v1934_v32, %v1954_v61  ;;  %v1031_v39 = vmax.f32 %v959_v7, %v995_v36 }
  0xb9   : > { %v529_v48 = vmax.f32 %v435_v42, 0.0 }
  0xba   : > { %867 = vst.msk [vmem:[#allocation2 + $0xb8] sm:$0xff] %vm843_vm2, %v825_v43  ;;  %v806_v50 = vmul.f32 %v1908_v18, %v519_v45 }
  0xbb   : > { %v816_v54 = vmul.f32 %v1929_v29, %v529_v48  ;;  %v464_v55 = vpop.f32.mrf.mxu2  ;;  %v497_v56 = vpop.f32.mrf.mxu3  ;;  %v958_v29 = vmax.f32 %v886_v62, %v922_v51  ;;  %v996_v16 = vld [vmem:[#allocation2 + $0x12] sm:$0xff] }
  0xbc   : > { %848 = vst.msk [vmem:[#allocation2 + $0x20] sm:$0xff] %vm843_vm2, %v806_v50  ;;  %v765_v58 = vpop.permute.xlu2 %764  ;;  %v710_v59 = vpop.permute.xlu1 %709  ;;  %v498_v0 = vadd.f32 %v1934_v32, %v497_v56  ;;  %v1006_v17 = vld [vmem:[#allocation2 + $0x62] sm:$0xff]  ;;  %v465_v19 = vadd.f32 %v1934_v32, %v464_v55  ;;  %v547_v56 = vmax.f32 %v2004_v30, 0.0 }
  0xbd   : > { %858 = vst.msk [vmem:[#allocation2 + $0x70] sm:$0xff] %vm843_vm2, %v816_v54  ;;  %v835_v18 = vmul.f32 %v765_v58, %v548_v47  ;;  %v824_v1 = vmul.f32 %v710_v59, %v537_v53  ;;  %v705_v2 = vpop.permute.xlu0 %704  ;;  %v407_v3 = vpop.f32.mrf.mxu0  ;;  %v1030_v24 = vmax.f32 %v958_v29, %v994_v10  ;;  %v1079_v46 = vmax.f32 %v1040_v27, %v1006_v17  ;;  %v1105_v58 = vld [vmem:[#allocation2 + $0x13] sm:$0xff]  ;;  %v1115_v59 = vld [vmem:[#allocation2 + $0x63] sm:$0xff] }
  0xbe   : > { %v437_v6 = vpop.f32.mrf.mxu1  ;;  %v823_v8 = vmul.f32 %v705_v2, %v536_v63  ;;  %v408_v9 = vadd.f32 %v1934_v32, %v407_v3  ;;  %v550_v20 = vmax.f32 %v498_v0, 0.0  ;;  %v539_v51 = vmax.f32 %v465_v19, 0.0  ;;  %v1187_v10 = vld [vmem:[#allocation2 + $0x64] sm:$0xff] }
  0xbf   : > { %877 = vst.msk [vmem:[#allocation2 + $0x108] sm:$0xff] %vm843_vm2, %v835_v18  ;;  %v438_v14 = vadd.f32 %v1934_v32, %v437_v6  ;;  %v1069_v45 = vmax.f32 %v1030_v24, %v996_v16  ;;  %v546_v54 = vmax.f32 %v2000_v23, 0.0  ;;  %v1151_v18 = vmax.f32 %v1079_v46, %v1115_v59 }
  0xc0   : > { %866 = vst.msk [vmem:[#allocation2 + $0xb0] sm:$0xff] %vm843_vm2, %v824_v1  ;;  %v520_v21 = vmax.f32 %v408_v9, 0.0  ;;  %v899_v9 = vld [vmem:[#allocation2 + $0x68] sm:$0xff] }
  0xc1   : > { %865 = vst.msk [vmem:[#allocation2 + $0xa8] sm:$0xff] %vm843_vm2, %v823_v8  ;;  %v530_v38 = vmax.f32 %v438_v14, 0.0  ;;  %v1141_v0 = vmax.f32 %v1069_v45, %v1105_v58  ;;  %v1177_v8 = vld [vmem:[#allocation2 + $0x14] sm:$0xff] }
  0xc2   : > { %v807_v41 = vmul.f32 %v1919_v22, %v520_v21  ;;  %v2013_v22 = vadd.f32 %v1934_v32, %v1970_v26 }
  0xc3   : > { %v997_v40 = vld [vmem:[#allocation2 + $0x1a] sm:$0xff]  ;;  %v467_v42 = vpop.f32.mrf.mxu2  ;;  %v500_v43 = vpop.f32.mrf.mxu3  ;;  %v817_v47 = vmul.f32 %v1966_v13, %v530_v38  ;;  %v1213_v19 = vmax.f32 %v1141_v0, %v1177_v8 }
  0xc4   : > { %v468_v44 = vadd.f32 %v1934_v32, %v467_v42  ;;  %v775_v48 = vpop.permute.xlu2 %774  ;;  %v725_v50 = vpop.permute.xlu1 %724  ;;  %849 = vst.msk [vmem:[#allocation2 + $0x28] sm:$0xff] %vm843_vm2, %v807_v41  ;;  %v1070_v55 = vmax.f32 %v1031_v39, %v997_v40  ;;  %v1007_v26 = vld [vmem:[#allocation2 + $0x6a] sm:$0xff]  ;;  %v1106_v1 = vld [vmem:[#allocation2 + $0x1b] sm:$0xff]  ;;  %v549_v29 = vmax.f32 %v2013_v22, 0.0  ;;  %v2027_v7 = vadd.f32 %v1934_v32, %v500_v43 }
  0xc5   : > { %v837_v52 = vmul.f32 %v775_v48, %v550_v20  ;;  %v720_v61 = vpop.permute.xlu0 %719  ;;  %v410_v53 = vpop.f32.mrf.mxu0  ;;  %859 = vst.msk [vmem:[#allocation2 + $0x78] sm:$0xff] %vm843_vm2, %v817_v47  ;;  %v935_v6 = vld [vmem:[#allocation2 + $0x69] sm:$0xff]  ;;  %v1223_v20 = vmax.f32 %v1151_v18, %v1187_v10  ;;  %v2036_v39 = vld [vmem:[#allocation2 + $0x1c] sm:$0xff] }
  0xc6   : > { %v440_v13 = vpop.f32.mrf.mxu1  ;;  %v540_v62 = vmax.f32 %v468_v44, 0.0  ;;  %v826_v60 = vmul.f32 %v720_v61, %v539_v51  ;;  %v411_v63 = vadd.f32 %v1934_v32, %v410_v53  ;;  %v2024_v5 = vmax.f32 %v1070_v55, %v1106_v1  ;;  %v890_v53 = vld [vmem:[#allocation2 + $0x20] sm:$0xff]  ;;  %v900_v18 = vld [vmem:[#allocation2 + $0x70] sm:$0xff] }
  0xc7   : > { %879 = vst.msk [vmem:[#allocation2 + $0x118] sm:$0xff] %vm843_vm2, %v837_v52  ;;  %v441_v4 = vadd.f32 %v1934_v32, %v440_v13  ;;  %v908_v21 = vld [vmem:[#allocation2 + $0xb0] sm:$0xff]  ;;  %v971_v40 = vmax.f32 %v899_v9, %v935_v6  ;;  %v551_v47 = vmax.f32 %v2027_v7, 0.0 }
  0xc8   : > { %v827_v2 = vmul.f32 %v725_v50, %v540_v62  ;;  %868 = vst.msk [vmem:[#allocation2 + $0xc0] sm:$0xff] %vm843_vm2, %v826_v60  ;;  %v521_v3 = vmax.f32 %v411_v63, 0.0  ;;  %v944_v24 = vld [vmem:[#allocation2 + $0xb1] sm:$0xff]  ;;  %v2031_v27 = vld [vmem:[#allocation2 + $0xa2] sm:$0xff]  ;;  %v1214_v43 = vmax.f32 %v2024_v5, %v2036_v39 }
  0xc9   : > { %v531_v15 = vmax.f32 %v441_v4, 0.0  ;;  %v1016_v45 = vld [vmem:[#allocation2 + $0xb2] sm:$0xff]  ;;  %v980_v51 = vmax.f32 %v908_v21, %v944_v24  ;;  %v2049_v59 = vmax.f32 %v971_v40, %v1007_v26  ;;  %v2060_v26 = vld [vmem:[#allocation2 + $0xaa] sm:$0xff] }
  0xca   : > { %869 = vst.msk [vmem:[#allocation2 + $0xc8] sm:$0xff] %vm843_vm2, %v827_v2  ;;  %v808_v14 = vmul.f32 %v1940_v35, %v521_v3  ;;  %v2054_v1 = vld [vmem:[#allocation2 + $0x6c] sm:$0xff]  ;;  %v2056_v2 = vld [vmem:[#allocation2 + $0xb4] sm:$0xff] }
  0xcb   : > { %v470_v16 = vpop.f32.mrf.mxu2  ;;  %v503_v17 = vpop.f32.mrf.mxu3  ;;  %v818_v35 = vmul.f32 %v1963_v12, %v531_v15  ;;  %v998_v46 = vld [vmem:[#allocation2 + $0x22] sm:$0xff] }
  0xcc   : > { %v471_v36 = vadd.f32 %v1934_v32, %v470_v16  ;;  %v2034_v38 = vpop.permute.xlu1 %739  ;;  %850 = vst.msk [vmem:[#allocation2 + $0x30] sm:$0xff] %vm843_vm2, %v808_v14  ;;  %v926_v52 = vld [vmem:[#allocation2 + $0x21] sm:$0xff]  ;;  %v1008_v60 = vld [vmem:[#allocation2 + $0x72] sm:$0xff]  ;;  %v2052_v0 = vadd.f32 %v1934_v32, %v503_v17  ;;  %v1052_v16 = vmax.f32 %v980_v51, %v1016_v45 }
  0xcd   : > { %v2040_v41 = vpop.permute.xlu0 %734  ;;  %v413_v42 = vpop.f32.mrf.mxu0  ;;  %v1179_v61 = vld [vmem:[#allocation2 + $0x24] sm:$0xff]  ;;  %860 = vst.msk [vmem:[#allocation2 + $0x80] sm:$0xff] %vm843_vm2, %v818_v35  ;;  %v1189_v63 = vld [vmem:[#allocation2 + $0x74] sm:$0xff]  ;;  %v962_v3 = vmax.f32 %v890_v53, %v926_v52 }
  0xce   : > { %v541_v44 = vmax.f32 %v471_v36, 0.0  ;;  %v414_v48 = vadd.f32 %v1934_v32, %v413_v42  ;;  %v443_v50 = vpop.f32.mrf.mxu1  ;;  %v1252_v55 = vmax.f32 %v1213_v19, %v1179_v61  ;;  %v1288_v62 = vld [vmem:[#allocation2 + $0x25] sm:$0xff]  ;;  %v936_v6 = vld [vmem:[#allocation2 + $0x71] sm:$0xff]  ;;  %v1262_v8 = vmax.f32 %v1223_v20, %v1189_v63 }
  0xcf   : > { %v444_v12 = vadd.f32 %v1934_v32, %v443_v50  ;;  %v1360_v9 = vld [vmem:[#allocation2 + $0x26] sm:$0xff]  ;;  %v1298_v10 = vld [vmem:[#allocation2 + $0x75] sm:$0xff]  ;;  %v972_v24 = vmax.f32 %v900_v18, %v936_v6  ;;  %v552_v51 = vmax.f32 %v2052_v0, 0.0 }
  0xd0   : > { %v828_v13 = vmul.f32 %v1961_v11, %v541_v44  ;;  %v522_v58 = vmax.f32 %v414_v48, 0.0  ;;  %v1324_v4 = vmax.f32 %v1252_v55, %v1288_v62  ;;  %v1334_v19 = vmax.f32 %v1262_v8, %v1298_v10  ;;  %v1370_v36 = vld [vmem:[#allocation2 + $0x76] sm:$0xff]  ;;  %v891_v39 = vld [vmem:[#allocation2 + $0x28] sm:$0xff] }
  0xd1   : > { %v532_v14 = vmax.f32 %v444_v12, 0.0  ;;  %v1017_v20 = vld [vmem:[#allocation2 + $0xba] sm:$0xff]  ;;  %v2063_v40 = vld [vmem:[#allocation2 + $0xc2] sm:$0xff]  ;;  %v2067_v48 = vmax.f32 %v962_v3, %v998_v46 }
  0xd2   : > { %870 = vst.msk [vmem:[#allocation2 + $0xd0] sm:$0xff] %vm843_vm2, %v828_v13  ;;  %v809_v11 = vmul.f32 %v1938_v34, %v522_v58  ;;  %v1396_v17 = vmax.f32 %v1324_v4, %v1360_v9  ;;  %v1406_v45 = vmax.f32 %v1334_v19, %v1370_v36  ;;  %v2070_v50 = vld [vmem:[#allocation2 + $0xc4] sm:$0xff]  ;;  %v945_v52 = vld [vmem:[#allocation2 + $0xb9] sm:$0xff]  ;;  %v1091_v12 = vmax.f32 %v1052_v16, %v2063_v40 }
  0xd3   : > { %v473_v15 = vpop.f32.mrf.mxu2  ;;  %v819_v34 = vmul.f32 %v1936_v33, %v532_v14  ;;  %v506_v42 = vpop.f32.mrf.mxu3  ;;  %v946_v61 = vld [vmem:[#allocation2 + $0xc1] sm:$0xff]  ;;  %v909_v33 = vld [vmem:[#allocation2 + $0xb8] sm:$0xff]  ;;  %v2080_v13 = vmax.f32 %v972_v24, %v1008_v60  ;;  %v999_v62 = vld [vmem:[#allocation2 + $0x2a] sm:$0xff] }
  0xd4   : > { %851 = vst.msk [vmem:[#allocation2 + $0x38] sm:$0xff] %vm843_vm2, %v809_v11  ;;  %v760_v21 = vpop.permute.xlu1 %759  ;;  %v474_v35 = vadd.f32 %v1934_v32, %v473_v15  ;;  %v507_v46 = vadd.f32 %v1934_v32, %v506_v42  ;;  %v910_v58 = vld [vmem:[#allocation2 + $0xc0] sm:$0xff]  ;;  %v1180_v63 = vld [vmem:[#allocation2 + $0x2c] sm:$0xff]  ;;  %v981_v3 = vmax.f32 %v909_v33, %v945_v52  ;;  %v790_v15 = vpop.permute.xlu2 %789 }
  0xd5   : > { %v755_v44 = vpop.permute.xlu0 %754  ;;  %1432 = vst.msk [vmem:[#allocation3] sm:$0xff] %vm843_vm2, %v1396_v17  ;;  %v834_v55 = vmul.f32 %v760_v21, %v547_v56  ;;  %v982_v4 = vmax.f32 %v910_v58, %v946_v61  ;;  %v1127_v6 = vld [vmem:[#allocation2 + $0xc3] sm:$0xff]  ;;  %v1253_v11 = vmax.f32 %v1214_v43, %v1180_v63  ;;  %v416_v56 = vpop.f32.mrf.mxu0  ;;  %v1009_v9 = vld [vmem:[#allocation2 + $0x7a] sm:$0xff]  ;;  %v1361_v19 = vld [vmem:[#allocation2 + $0x2e] sm:$0xff] }
  0xd6   : > { %861 = vst.msk [vmem:[#allocation2 + $0x88] sm:$0xff] %vm843_vm2, %v819_v34  ;;  %v542_v53 = vmax.f32 %v474_v35, 0.0  ;;  %v833_v18 = vmul.f32 %v755_v44, %v546_v54  ;;  %v2084_v8 = vld [vmem:[#allocation2 + $0xbc] sm:$0xff]  ;;  %v446_v60 = vpop.f32.mrf.mxu1  ;;  %v927_v23 = vld [vmem:[#allocation2 + $0x29] sm:$0xff]  ;;  %v553_v10 = vmax.f32 %v507_v46, 0.0  ;;  %v2097_v43 = vmax.f32 %v1091_v12, %v1127_v6 }
  0xd7   : > { %1442 = vst.msk [vmem:[#allocation3 + $0x50] sm:$0xff] %vm843_vm2, %v1406_v45  ;;  %v1289_v54 = vld [vmem:[#allocation2 + $0x2d] sm:$0xff]  ;;  %v2099_v14 = vld [vmem:[#allocation2 + $0x7c] sm:$0xff]  ;;  %v417_v36 = vadd.f32 %v1934_v32, %v416_v56  ;;  %v447_v34 = vadd.f32 %v1934_v32, %v446_v60  ;;  %v1053_v35 = vmax.f32 %v981_v3, %v1017_v20  ;;  %v963_v42 = vmax.f32 %v891_v39, %v927_v23 }
  0xd8   : > { %v829_v30 = vmul.f32 %v2040_v41, %v542_v53  ;;  %876 = vst.msk [vmem:[#allocation2 + $0x100] sm:$0xff] %vm843_vm2, %v834_v55  ;;  %v1325_v41 = vmax.f32 %v1253_v11, %v1289_v54  ;;  %v937_v21 = vld [vmem:[#allocation2 + $0x79] sm:$0xff]  ;;  %v840_v24 = vmul.f32 %v790_v15, %v553_v10  ;;  %v1082_v45 = vmax.f32 %v2049_v59, %v1009_v9 }
  0xd9   : > { %875 = vst.msk [vmem:[#allocation2 + $0xf8] sm:$0xff] %vm843_vm2, %v833_v18  ;;  %v1019_v52 = vld [vmem:[#allocation2 + $0xca] sm:$0xff]  ;;  %v901_v12 = vld [vmem:[#allocation2 + $0x78] sm:$0xff]  ;;  %v2112_v53 = vmax.f32 %v982_v4, %v2063_v40  ;;  %v1235_v20 = vmax.f32 %v2097_v43, %v2070_v50  ;;  %v523_v63 = vmax.f32 %v417_v36, 0.0  ;;  %v533_v59 = vmax.f32 %v447_v34, 0.0 }
  0xda   : > { %871 = vst.msk [vmem:[#allocation2 + $0xd8] sm:$0xff] %vm843_vm2, %v829_v30  ;;  %v1397_v44 = vmax.f32 %v1325_v41, %v1361_v19  ;;  %v2109_v61 = vld [vmem:[#allocation2 + $0xcc] sm:$0xff]  ;;  %v973_v55 = vmax.f32 %v901_v12, %v937_v21  ;;  %v1118_v18 = vld [vmem:[#allocation2 + $0x7b] sm:$0xff]  ;;  %v1092_v3 = vmax.f32 %v1053_v35, %v1019_v52  ;;  %v2125_v11 = vmax.f32 %v963_v42, %v999_v62 }
  0xdb   : > { %v476_v5 = vpop.f32.mrf.mxu2  ;;  %882 = vst.msk [vmem:[#allocation2 + $0x130] sm:$0xff] %vm843_vm2, %v840_v24  ;;  %v1000_v58 = vld [vmem:[#allocation2 + $0x32] sm:$0xff]  ;;  %v2123_v4 = vpop.f32.mrf.mxu3  ;;  %v2127_v30 = vmax.f32 %v1082_v45, %v1118_v18  ;;  %v810_v50 = vmul.f32 %v1927_v25, %v523_v63  ;;  %v820_v10 = vmul.f32 %v1980_v37, %v533_v59 }
  0xdc   : > { %v2102_v16 = vpop.permute.xlu1 %749  ;;  %v1469_v17 = vld [vmem:[#allocation3] sm:$0xff]  ;;  %1433 = vst.msk [vmem:[#allocation3 + $0x8] sm:$0xff] %vm843_vm2, %v1397_v44  ;;  %v2120_v6 = vld [vmem:[#allocation2 + $0x34] sm:$0xff]  ;;  %v477_v40 = vadd.f32 %v1934_v32, %v476_v5  ;;  %v1073_v60 = vmax.f32 %v2067_v48, %v1000_v58  ;;  %v2134_v41 = vmax.f32 %v973_v55, %v1009_v9 }
  0xdd   : > { %1471 = vst.msk [vmem:[%s2094_s21] sm:$0xff] %vm843_vm2, %v1469_v17  ;;  %v770_v46 = vpop.permute.xlu0 %769  ;;  %v928_v56 = vld [vmem:[#allocation2 + $0x31] sm:$0xff]  ;;  %v1010_v23 = vld [vmem:[#allocation2 + $0x82] sm:$0xff]  ;;  %v419_v48 = vpop.f32.mrf.mxu0  ;;  %v1226_v19 = vmax.f32 %v2127_v30, %v2099_v14 }
  0xde   : > { %v1479_v33 = vld [vmem:[#allocation3 + $0x50] sm:$0xff]  ;;  %v2131_v54 = vld [vmem:[#allocation2 + $0x84] sm:$0xff]  ;;  %v892_v43 = vld [vmem:[#allocation2 + $0x30] sm:$0xff]  ;;  %v1083_v62 = vmax.f32 %v2080_v13, %v1010_v23  ;;  %852 = vst.msk [vmem:[#allocation2 + $0x40] sm:$0xff] %vm843_vm2, %v810_v50  ;;  %v543_v17 = vmax.f32 %v477_v40, 0.0  ;;  %v836_v25 = vmul.f32 %v770_v46, %v549_v29  ;;  %v449_v13 = vpop.f32.mrf.mxu1  ;;  %v420_v45 = vadd.f32 %v1934_v32, %v419_v48 }
  0xdf   : > { %1616 = vst.msk [vmem:[%s2094_s21 + $0x28] sm:$0xff] %vm843_vm2, %v1479_v33  ;;  %v1128_v5 = vld [vmem:[#allocation2 + $0xcb] sm:$0xff]  ;;  %v964_v37 = vmax.f32 %v892_v43, %v928_v56  ;;  %v1109_v21 = vld [vmem:[#allocation2 + $0x33] sm:$0xff]  ;;  %v1119_v34 = vld [vmem:[#allocation2 + $0x83] sm:$0xff]  ;;  %v450_v33 = vadd.f32 %v1934_v32, %v449_v13 }
  0xe0   : > { %v2138_v15 = vmax.f32 %v1092_v3, %v1128_v5  ;;  %862 = vst.msk [vmem:[#allocation2 + $0x90] sm:$0xff] %vm843_vm2, %v820_v10  ;;  %v2147_v36 = vmax.f32 %v1073_v60, %v1109_v21  ;;  %v830_v22 = vmul.f32 %v2034_v38, %v543_v17  ;;  %v2152_v14 = vmax.f32 %v1083_v62, %v1119_v34  ;;  %v918_v40 = vld [vmem:[#allocation2 + $0x100] sm:$0xff]  ;;  %v917_v50 = vld [vmem:[#allocation2 + $0xf8] sm:$0xff] }
  0xe1   : > { %v2144_v9 = vld [vmem:[#allocation2 + $0xd4] sm:$0xff]  ;;  %878 = vst.msk [vmem:[#allocation2 + $0x110] sm:$0xff] %vm843_vm2, %v836_v25  ;;  %v524_v55 = vmax.f32 %v420_v45, 0.0  ;;  %v534_v30 = vmax.f32 %v450_v33, 0.0  ;;  %v510_v62 = vadd.f32 %v1934_v32, %v2123_v4 }
  0xe2   : > { %v1274_v35 = vmax.f32 %v1235_v20, %v2144_v9  ;;  %v1020_v42 = vld [vmem:[#allocation2 + $0xd2] sm:$0xff]  ;;  %v1236_v52 = vmax.f32 %v2138_v15, %v2109_v61  ;;  %v2160_v20 = vmax.f32 %v964_v37, %v1000_v58  ;;  %872 = vst.msk [vmem:[#allocation2 + $0xe0] sm:$0xff] %vm843_vm2, %v830_v22  ;;  %v1217_v59 = vmax.f32 %v2147_v36, %v2120_v6  ;;  %v954_v61 = vld [vmem:[#allocation2 + $0x101] sm:$0xff] }
  0xe3   : > { %v479_v39 = vpop.f32.mrf.mxu2  ;;  %v1470_v29 = vld [vmem:[#allocation3 + $0x8] sm:$0xff]  ;;  %v1093_v18 = vmax.f32 %v2112_v53, %v1020_v42  ;;  %v512_v56 = vpop.f32.mrf.mxu3  ;;  %v1227_v58 = vmax.f32 %v2152_v14, %v2131_v54  ;;  %v953_v60 = vld [vmem:[#allocation2 + $0xf9] sm:$0xff]  ;;  %v811_v10 = vmul.f32 %v1948_v49, %v524_v55  ;;  %v821_v53 = vmul.f32 %v1976_v31, %v534_v30 }
  0xe4   : > { %v785_v24 = vpop.permute.xlu1 %784  ;;  %v1310_v44 = vld [vmem:[#allocation2 + $0xd5] sm:$0xff]  ;;  %1472 = vst.msk [vmem:[%s2094_s21 + $0x8] sm:$0xff] %vm843_vm2, %v1470_v29  ;;  %v480_v63 = vadd.f32 %v1934_v32, %v479_v39  ;;  %v990_v31 = vmax.f32 %v918_v40, %v954_v61  ;;  %v989_v21 = vmax.f32 %v917_v50, %v953_v60  ;;  %v554_v45 = vmax.f32 %v510_v62, 0.0  ;;  %v919_v40 = vld [vmem:[#allocation2 + $0x108] sm:$0xff] }
  0xe5   : > { %v1346_v12 = vmax.f32 %v1274_v35, %v1310_v44  ;;  %v780_v46 = vpop.permute.xlu0 %779  ;;  %v1382_v38 = vld [vmem:[#allocation2 + $0xd6] sm:$0xff]  ;;  %v839_v15 = vmul.f32 %v785_v24, %v552_v51  ;;  %853 = vst.msk [vmem:[#allocation2 + $0x48] sm:$0xff] %vm843_vm2, %v811_v10 }
  0xe6   : > { %v1001_v23 = vld [vmem:[#allocation2 + $0x3a] sm:$0xff]  ;;  %v544_v43 = vmax.f32 %v480_v63, 0.0  ;;  %v838_v48 = vmul.f32 %v780_v46, %v551_v47  ;;  %863 = vst.msk [vmem:[#allocation2 + $0x98] sm:$0xff] %vm843_vm2, %v821_v53 }
  0xe7   : > { %v1418_v3 = vmax.f32 %v1346_v12, %v1382_v38  ;;  %v1074_v39 = vmax.f32 %v2125_v11, %v1001_v23  ;;  %v2172_v5 = vld [vmem:[#allocation2 + $0x3c] sm:$0xff]  ;;  %v1129_v25 = vld [vmem:[#allocation2 + $0xd3] sm:$0xff]  ;;  %v513_v11 = vadd.f32 %v1934_v32, %v512_v56  ;;  %v1011_v13 = vld [vmem:[#allocation2 + $0x8a] sm:$0xff]  ;;  %881 = vst.msk [vmem:[#allocation2 + $0x128] sm:$0xff] %vm843_vm2, %v839_v15 }
  0xe8   : > { %v831_v49 = vmul.f32 %v1974_v28, %v544_v43  ;;  %v2184_v37 = vmax.f32 %v1093_v18, %v1129_v25  ;;  %v2186_v4 = vld [vmem:[#allocation2 + $0x8c] sm:$0xff]  ;;  %v1110_v51 = vld [vmem:[#allocation2 + $0x3b] sm:$0xff]  ;;  %v1084_v24 = vmax.f32 %v2134_v41, %v1011_v13  ;;  %880 = vst.msk [vmem:[#allocation2 + $0x120] sm:$0xff] %vm843_vm2, %v838_v48 }
  0xe9   : > { %1454 = vst.msk [vmem:[#allocation3 + $0xb0] sm:$0xff] %vm843_vm2, %v1418_v3  ;;  %v1120_v28 = vld [vmem:[#allocation2 + $0x8b] sm:$0xff]  ;;  %v1265_v7 = vmax.f32 %v1226_v19, %v2186_v4  ;;  %v555_v47 = vmax.f32 %v513_v11, 0.0  ;;  %v913_v35 = vld [vmem:[#allocation2 + $0xd8] sm:$0xff]  ;;  %v1146_v22 = vmax.f32 %v1074_v39, %v1110_v51 }
  0xea   : > { %873 = vst.msk [vmem:[#allocation2 + $0xe8] sm:$0xff] %vm843_vm2, %v831_v49  ;;  %v1301_v29 = vld [vmem:[#allocation2 + $0x8d] sm:$0xff]  ;;  %v949_v42 = vld [vmem:[#allocation2 + $0xd9] sm:$0xff]  ;;  %v2194_v33 = vmax.f32 %v1084_v24, %v1120_v28  ;;  %v1237_v23 = vmax.f32 %v2184_v37, %v2144_v9 }
  0xeb   : > { %v482_v17 = vpop.f32.mrf.mxu2  ;;  %v1021_v44 = vld [vmem:[#allocation2 + $0xda] sm:$0xff]  ;;  %v1337_v41 = vmax.f32 %v1265_v7, %v1301_v29  ;;  %v1373_v46 = vld [vmem:[#allocation2 + $0x8e] sm:$0xff]  ;;  %v985_v50 = vmax.f32 %v913_v35, %v949_v42  ;;  %v1218_v15 = vmax.f32 %v1146_v22, %v2172_v5 }
  0xec   : > { %v483_v0 = vadd.f32 %v1934_v32, %v482_v17  ;;  %v800_v34 = vpop.permute.xlu1 %799  ;;  %v1026_v32 = vld [vmem:[#allocation2 + $0x102] sm:$0xff]  ;;  %v1025_v30 = vld [vmem:[#allocation2 + $0xfa] sm:$0xff]  ;;  %v1027_v53 = vld [vmem:[#allocation2 + $0x10a] sm:$0xff]  ;;  %v1228_v17 = vmax.f32 %v2194_v33, %v2186_v4 }
  0xed   : > { %v1202_v38 = vld [vmem:[#allocation2 + $0xdc] sm:$0xff]  ;;  %v955_v55 = vld [vmem:[#allocation2 + $0x109] sm:$0xff]  ;;  %v842_v18 = vmul.f32 %v800_v34, %v555_v47  ;;  %v795_v3 = vpop.permute.xlu0 %794  ;;  %v1062_v61 = vmax.f32 %v990_v31, %v1026_v32  ;;  %v1409_v56 = vmax.f32 %v1337_v41, %v1373_v46  ;;  %v1061_v10 = vmax.f32 %v989_v21, %v1025_v30  ;;  %v1137_v22 = vld [vmem:[#allocation2 + $0x113] sm:$0xff] }
  0xee   : > { %v545_v12 = vmax.f32 %v483_v0, 0.0  ;;  %v1275_v19 = vmax.f32 %v1236_v52, %v1202_v38  ;;  %v1311_v60 = vld [vmem:[#allocation2 + $0xdd] sm:$0xff]  ;;  %v991_v39 = vmax.f32 %v919_v40, %v955_v55  ;;  %v1028_v52 = vld [vmem:[#allocation2 + $0x112] sm:$0xff]  ;;  %v841_v62 = vmul.f32 %v795_v3, %v554_v45  ;;  %v895_v49 = vld [vmem:[#allocation2 + $0x48] sm:$0xff] }
  0xef   : > { %1445 = vst.msk [vmem:[#allocation3 + $0x68] sm:$0xff] %vm843_vm2, %v1409_v56  ;;  %v2205_v48 = vmax.f32 %v985_v50, %v1021_v44  ;;  %v1100_v11 = vmax.f32 %v1061_v10, %v1027_v53  ;;  %v1101_v31 = vmax.f32 %v1062_v61, %v1028_v52  ;;  %v931_v21 = vld [vmem:[#allocation2 + $0x49] sm:$0xff]  ;;  %v1185_v32 = vld [vmem:[#allocation2 + $0x54] sm:$0xff]  ;;  %v1186_v61 = vld [vmem:[#allocation2 + $0x5c] sm:$0xff] }
  0xf0   : > { %v832_v63 = vmul.f32 %v2102_v16, %v545_v12  ;;  %v1347_v43 = vmax.f32 %v1275_v19, %v1311_v60  ;;  %v1383_v16 = vld [vmem:[#allocation2 + $0xde] sm:$0xff]  ;;  %885 = vst.msk [vmem:[#allocation2 + $0x140] sm:$0xf] %vm884_vm3, %v842_v18  ;;  %v1003_v0 = vld [vmem:[#allocation2 + $0x4a] sm:$0xff]  ;;  %v2209_v51 = vmax.f32 %v991_v39, %v1027_v53  ;;  %v967_v24 = vmax.f32 %v895_v49, %v931_v21  ;;  %v1012_v40 = vld [vmem:[#allocation2 + $0x92] sm:$0xff] }
  0xf1   : > { %v1002_v13 = vld [vmem:[#allocation2 + $0x42] sm:$0xff]  ;;  %883 = vst.msk [vmem:[#allocation2 + $0x138] sm:$0xff] %vm843_vm2, %v841_v62  ;;  %v1136_v5 = vld [vmem:[#allocation2 + $0x10b] sm:$0xff]  ;;  %v905_v12 = vld [vmem:[#allocation2 + $0x98] sm:$0xff]  ;;  %v2217_v38 = vmax.f32 %v1101_v31, %v1137_v22 }
  0xf2   : > { %874 = vst.msk [vmem:[#allocation2 + $0xf0] sm:$0xff] %vm843_vm2, %v832_v63  ;;  %v1419_v25 = vmax.f32 %v1347_v43, %v1383_v16  ;;  %v1075_v28 = vmax.f32 %v2160_v20, %v1002_v13  ;;  %v1183_v7 = vld [vmem:[#allocation2 + $0x44] sm:$0xff]  ;;  %v1184_v34 = vld [vmem:[#allocation2 + $0x4c] sm:$0xff]  ;;  %v1039_v29 = vmax.f32 %v967_v24, %v1003_v0  ;;  %v1114_v41 = vld [vmem:[#allocation2 + $0x5b] sm:$0xff]  ;;  %v2215_v46 = vmax.f32 %v1100_v11, %v1136_v5 }
  0xf3   : > { %v1111_v47 = vld [vmem:[#allocation2 + $0x43] sm:$0xff]  ;;  %v1256_v35 = vmax.f32 %v1217_v59, %v1183_v7  ;;  %v1257_v44 = vmax.f32 %v1218_v15, %v1184_v34  ;;  %v1293_v20 = vld [vmem:[#allocation2 + $0x4d] sm:$0xff]  ;;  %v941_v63 = vld [vmem:[#allocation2 + $0x99] sm:$0xff] }
  0xf4   : > { %1455 = vst.msk [vmem:[#allocation3 + $0xb8] sm:$0xff] %vm843_vm2, %v1419_v25  ;;  %v1147_v42 = vmax.f32 %v1075_v28, %v1111_v47  ;;  %v1292_v45 = vld [vmem:[#allocation2 + $0x45] sm:$0xff]  ;;  %v940_v55 = vld [vmem:[#allocation2 + $0x91] sm:$0xff]  ;;  %v1078_v6 = vmax.f32 %v1039_v29, %v2017_v57  ;;  %v977_v60 = vmax.f32 %v905_v12, %v941_v63  ;;  %v1013_v10 = vld [vmem:[#allocation2 + $0x9a] sm:$0xff] }
  0xf5   : > { %v1328_v19 = vmax.f32 %v1256_v35, %v1292_v45  ;;  %v904_v18 = vld [vmem:[#allocation2 + $0x90] sm:$0xff]  ;;  %v1329_v59 = vmax.f32 %v1257_v44, %v1293_v20  ;;  %v1364_v3 = vld [vmem:[#allocation2 + $0x46] sm:$0xff]  ;;  %v1194_v13 = vld [vmem:[#allocation2 + $0x9c] sm:$0xff] }
  0xf6   : > { %v1219_v36 = vmax.f32 %v1147_v42, %v1183_v7  ;;  %v1365_v30 = vld [vmem:[#allocation2 + $0x4e] sm:$0xff]  ;;  %v976_v50 = vmax.f32 %v904_v18, %v940_v55  ;;  %v1150_v39 = vmax.f32 %v1078_v6, %v1114_v41  ;;  %v1366_v16 = vld [vmem:[#allocation2 + $0x56] sm:$0xff]  ;;  %v1049_v15 = vmax.f32 %v977_v60, %v1013_v10  ;;  %v1123_v0 = vld [vmem:[#allocation2 + $0xa3] sm:$0xff] }
  0xf7   : > { %v1400_v56 = vmax.f32 %v1328_v19, %v1364_v3  ;;  %v1294_v43 = vld [vmem:[#allocation2 + $0x55] sm:$0xff]  ;;  %v1401_v52 = vmax.f32 %v1329_v59, %v1365_v30  ;;  %v1124_v5 = vld [vmem:[#allocation2 + $0xab] sm:$0xff]  ;;  %v950_v44 = vld [vmem:[#allocation2 + $0xe1] sm:$0xff] }
  0xf8   : > { %v1258_v53 = vmax.f32 %v1219_v36, %v1185_v32  ;;  %v1048_v57 = vmax.f32 %v976_v50, %v1012_v40  ;;  %v1222_v25 = vmax.f32 %v1150_v39, %v1186_v61  ;;  %v1088_v31 = vmax.f32 %v1049_v15, %v2060_v26  ;;  %v1193_v21 = vld [vmem:[#allocation2 + $0x94] sm:$0xff]  ;;  %v1195_v34 = vld [vmem:[#allocation2 + $0xa4] sm:$0xff]  ;;  %v1196_v29 = vld [vmem:[#allocation2 + $0xac] sm:$0xff] }
  0xf9   : > { %1436 = vst.msk [vmem:[#allocation3 + $0x20] sm:$0xff] %vm843_vm2, %v1400_v56  ;;  %v1297_v7 = vld [vmem:[#allocation2 + $0x6d] sm:$0xff]  ;;  %v1267_v26 = vmax.f32 %v1228_v17, %v1194_v13  ;;  %v1302_v12 = vld [vmem:[#allocation2 + $0x95] sm:$0xff]  ;;  %v1303_v32 = vld [vmem:[#allocation2 + $0x9d] sm:$0xff] }
  0xfa   : > { %v1330_v49 = vmax.f32 %v1258_v53, %v1294_v43  ;;  %1437 = vst.msk [vmem:[#allocation3 + $0x28] sm:$0xff] %vm843_vm2, %v1401_v52  ;;  %v1087_v11 = vmax.f32 %v1048_v57, %v2031_v27  ;;  %v1261_v24 = vmax.f32 %v1222_v25, %v2054_v1  ;;  %v1369_v47 = vld [vmem:[#allocation2 + $0x6e] sm:$0xff]  ;;  %v1160_v22 = vmax.f32 %v1088_v31, %v1124_v5  ;;  %v1022_v41 = vld [vmem:[#allocation2 + $0xe2] sm:$0xff]  ;;  %v1374_v54 = vld [vmem:[#allocation2 + $0x96] sm:$0xff] }
  0xfb   : > { %v1493_v62 = vld [vmem:[#allocation3 + $0xb4] sm:$0xff]  ;;  %v1266_v27 = vmax.f32 %v1227_v58, %v1193_v21  ;;  %v1208_v63 = vld [vmem:[#allocation2 + $0x10c] sm:$0xff]  ;;  %v1339_v36 = vmax.f32 %v1267_v26, %v1303_v32  ;;  %v1203_v17 = vld [vmem:[#allocation2 + $0xe4] sm:$0xff] }
  0xfc   : > { %1621 = vst.msk [vmem:[%s2094_s21 + $0x50] sm:$0xff] %vm843_vm2, %v1493_v62  ;;  %v1402_v28 = vmax.f32 %v1330_v49, %v1366_v16  ;;  %v1159_v35 = vmax.f32 %v1087_v11, %v1123_v0  ;;  %v1333_v42 = vmax.f32 %v1261_v24, %v1297_v7  ;;  %v1232_v45 = vmax.f32 %v1160_v22, %v1196_v29  ;;  %v1306_v20 = vld [vmem:[#allocation2 + $0xb5] sm:$0xff]  ;;  %v1307_v19 = vld [vmem:[#allocation2 + $0xbd] sm:$0xff]  ;;  %v1312_v39 = vld [vmem:[#allocation2 + $0xe5] sm:$0xff] }
  0xfd   : > { %v914_v55 = vld [vmem:[#allocation2 + $0xe0] sm:$0xff]  ;;  %v1338_v6 = vmax.f32 %v1266_v27, %v1302_v12  ;;  %v1378_v59 = vld [vmem:[#allocation2 + $0xb6] sm:$0xff]  ;;  %v1244_v60 = vmax.f32 %v2215_v46, %v1208_v63  ;;  %v1276_v43 = vmax.f32 %v1237_v23, %v1203_v17  ;;  %v1023_v23 = vld [vmem:[#allocation2 + $0xea] sm:$0xff] }
  0xfe   : > { %1438 = vst.msk [vmem:[#allocation3 + $0x30] sm:$0xff] %vm843_vm2, %v1402_v28  ;;  %v1231_v1 = vmax.f32 %v1159_v35, %v1195_v34  ;;  %v1405_v18 = vmax.f32 %v1333_v42, %v1369_v47  ;;  %v1271_v58 = vmax.f32 %v1232_v45, %v2084_v8  ;;  %v1375_v4 = vld [vmem:[#allocation2 + $0x9e] sm:$0xff]  ;;  %v986_v33 = vmax.f32 %v914_v55, %v950_v44  ;;  %v1209_v50 = vld [vmem:[#allocation2 + $0x114] sm:$0xff]  ;;  %v1204_v5 = vld [vmem:[#allocation2 + $0xec] sm:$0xff] }
  0xff   : > { %v1410_v40 = vmax.f32 %v1338_v6, %v1374_v54  ;;  %v1411_v61 = vmax.f32 %v1339_v36, %v1375_v4  ;;  %v1066_v30 = vld [vmem:[#allocation2 + $0x11a] sm:$0xff]  ;;  %v1211_v53 = vld [vmem:[#allocation2 + $0x124] sm:$0xff]  ;;  %v1245_v52 = vmax.f32 %v2217_v38, %v1209_v50  ;;  %v1348_v25 = vmax.f32 %v1276_v43, %v1312_v39  ;;  %v1024_v21 = vld [vmem:[#allocation2 + $0xf2] sm:$0xff] }
 0x100   : > { %v1270_v14 = vmax.f32 %v1231_v1, %v2056_v2  ;;  %1441 = vst.msk [vmem:[#allocation3 + $0x48] sm:$0xff] %vm843_vm2, %v1405_v18  ;;  %v1379_v56 = vld [vmem:[#allocation2 + $0xbe] sm:$0xff]  ;;  %v1343_v10 = vmax.f32 %v1271_v58, %v1307_v19  ;;  %v1102_v46 = vmax.f32 %v2209_v51, %v1066_v30  ;;  %v1058_v15 = vmax.f32 %v986_v33, %v1022_v41  ;;  %v1384_v38 = vld [vmem:[#allocation2 + $0xe6] sm:$0xff]  ;;  %v1205_v34 = vld [vmem:[#allocation2 + $0xf4] sm:$0xff] }
 0x101   : > { %v1473_v3 = vld [vmem:[#allocation3 + $0x24] sm:$0xff]  ;;  %v1210_v8 = vld [vmem:[#allocation2 + $0x11c] sm:$0xff]  ;;  %1446 = vst.msk [vmem:[#allocation3 + $0x70] sm:$0xff] %vm843_vm2, %v1410_v40  ;;  %v1284_v9 = vmax.f32 %v1245_v52, %v1211_v53  ;;  %v1420_v51 = vmax.f32 %v1348_v25, %v1384_v38  ;;  %v1096_v42 = vmax.f32 %v2205_v48, %v1023_v23  ;;  %v1207_v36 = vld [vmem:[#allocation2 + $0x104] sm:$0xff] }
 0x102   : > { %1613 = vst.msk [vmem:[%s2094_s21 + $0x10] sm:$0xff] %vm843_vm2, %v1473_v3  ;;  %v1342_v2 = vmax.f32 %v1270_v14, %v1306_v20  ;;  %v1415_v57 = vmax.f32 %v1343_v10, %v1379_v56  ;;  %v1138_v49 = vld [vmem:[#allocation2 + $0x11b] sm:$0xff]  ;;  %v1283_v11 = vmax.f32 %v1244_v60, %v1210_v8  ;;  %v1320_v13 = vld [vmem:[#allocation2 + $0x125] sm:$0xff]  ;;  %v1097_v27 = vmax.f32 %v1058_v15, %v1024_v21  ;;  %v1133_v12 = vld [vmem:[#allocation2 + $0xf3] sm:$0xff] }
 0x103   : > { %1447 = vst.msk [vmem:[#allocation3 + $0x78] sm:$0xff] %vm843_vm2, %v1411_v61  ;;  %v1174_v31 = vmax.f32 %v1102_v46, %v1138_v49  ;;  %v1319_v37 = vld [vmem:[#allocation2 + $0x11d] sm:$0xff]  ;;  %v1356_v7 = vmax.f32 %v1284_v9, %v1320_v13  ;;  %v1249_v35 = vld [vmem:[#allocation2 + $0x12c] sm:$0xff] }
 0x104   : > { %v1414_v62 = vmax.f32 %v1342_v2, %v1378_v59  ;;  %v1355_v0 = vmax.f32 %v1283_v11, %v1319_v37  ;;  %v1391_v47 = vld [vmem:[#allocation2 + $0x11e] sm:$0xff]  ;;  %v1392_v22 = vld [vmem:[#allocation2 + $0x126] sm:$0xff]  ;;  %1451 = vst.msk [vmem:[#allocation3 + $0x98] sm:$0xff] %vm843_vm2, %v1415_v57  ;;  %v1169_v19 = vmax.f32 %v1097_v27, %v1133_v12  ;;  %v1393_v48 = vld [vmem:[#allocation2 + $0x12e] sm:$0xff] }
 0x105   : > { %v1474_v16 = vld [vmem:[#allocation3 + $0x2c] sm:$0xff]  ;;  %v1246_v28 = vmax.f32 %v1174_v31, %v1210_v8  ;;  %v1428_v1 = vmax.f32 %v1356_v7, %v1392_v22  ;;  %v1132_v45 = vld [vmem:[#allocation2 + $0xeb] sm:$0xff]  ;;  %v1206_v55 = vld [vmem:[#allocation2 + $0xfc] sm:$0xff]  ;;  %1456 = vst.msk [vmem:[#allocation3 + $0xc0] sm:$0xff] %vm843_vm2, %v1420_v51 }
 0x106   : > { %1614 = vst.msk [vmem:[%s2094_s21 + $0x18] sm:$0xff] %vm843_vm2, %v1474_v16  ;;  %v1427_v29 = vmax.f32 %v1355_v0, %v1391_v47  ;;  %v1321_v41 = vld [vmem:[#allocation2 + $0x12d] sm:$0xff]  ;;  %v1168_v20 = vmax.f32 %v1096_v42, %v1132_v45  ;;  %v1241_v6 = vmax.f32 %v1169_v19, %v1205_v34  ;;  %v1316_v33 = vld [vmem:[#allocation2 + $0x105] sm:$0xff]  ;;  %v1315_v17 = vld [vmem:[#allocation2 + $0xfd] sm:$0xff] }
 0x107   : > { %v1478_v24 = vld [vmem:[#allocation3 + $0x48] sm:$0xff]  ;;  %1450 = vst.msk [vmem:[#allocation3 + $0x90] sm:$0xff] %vm843_vm2, %v1414_v62  ;;  %v1285_v44 = vmax.f32 %v1246_v28, %v1249_v35  ;;  %v1387_v61 = vld [vmem:[#allocation2 + $0xfe] sm:$0xff]  ;;  %v1388_v30 = vld [vmem:[#allocation2 + $0x106] sm:$0xff] }
 0x108   : > { %1615 = vst.msk [vmem:[%s2094_s21 + $0x20] sm:$0xff] %vm843_vm2, %v1478_v24  ;;  %v1483_v26 = vld [vmem:[#allocation3 + $0x6c] sm:$0xff]  ;;  %v1240_v18 = vmax.f32 %v1168_v20, %v1204_v5  ;;  %v1280_v4 = vmax.f32 %v1241_v6, %v1207_v36 }
 0x109   : > { %1617 = vst.msk [vmem:[%s2094_s21 + $0x30] sm:$0xff] %vm843_vm2, %v1483_v26  ;;  %v1357_v63 = vmax.f32 %v1285_v44, %v1321_v41 }
 0x10a   : > { %v1484_v32 = vld [vmem:[#allocation3 + $0x74] sm:$0xff]  ;;  %1463 = vst.msk [vmem:[#allocation3 + $0xf8] sm:$0xff] %vm843_vm2, %v1427_v29  ;;  %v1279_v58 = vmax.f32 %v1240_v18, %v1206_v55  ;;  %v1352_v40 = vmax.f32 %v1280_v4, %v1316_v33 }
 0x10b   : > { %1618 = vst.msk [vmem:[%s2094_s21 + $0x38] sm:$0xff] %vm843_vm2, %v1484_v32  ;;  %v1429_v54 = vmax.f32 %v1357_v63, %v1393_v48  ;;  %v1489_v59 = vld [vmem:[#allocation3 + $0x98] sm:$0xff] }
 0x10c   : > { %1464 = vst.msk [vmem:[#allocation3 + $0x100] sm:$0xff] %vm843_vm2, %v1428_v1  ;;  %v1351_v3 = vmax.f32 %v1279_v58, %v1315_v17  ;;  %v1494_v50 = vld [vmem:[#allocation3 + $0xbc] sm:$0xff]  ;;  %v1424_v60 = vmax.f32 %v1352_v40, %v1388_v30 }
 0x10d   : > { %1465 = vst.msk [vmem:[#allocation3 + $0x108] sm:$0xff] %vm843_vm2, %v1429_v54 }
 0x10e   : > { %v1488_v14 = vld [vmem:[#allocation3 + $0x90] sm:$0xff]  ;;  %1620 = vst.msk [vmem:[%s2094_s21 + $0x48] sm:$0xff] %vm843_vm2, %v1489_v59  ;;  %v1423_v56 = vmax.f32 %v1351_v3, %v1387_v61 }
 0x10f   : > { %1619 = vst.msk [vmem:[%s2094_s21 + $0x40] sm:$0xff] %vm843_vm2, %v1488_v14 }
 0x110   : > { %1622 = vst.msk [vmem:[%s2094_s21 + $0x58] sm:$0xff] %vm843_vm2, %v1494_v50 }
 0x111   : > { %1459 = vst.msk [vmem:[#allocation3 + $0xd8] sm:$0xff] %vm843_vm2, %v1423_v56 }
 0x112   : > { %1460 = vst.msk [vmem:[#allocation3 + $0xe0] sm:$0xff] %vm843_vm2, %v1424_v60 }
 0x113   : > { %v1503_v2 = vld [vmem:[#allocation3 + $0xfc] sm:$0xff] }
 0x114   : > { %1625 = vst.msk [vmem:[%s2094_s21 + $0x70] sm:$0xff] %vm843_vm2, %v1503_v2  ;;  %v1504_v10 = vld [vmem:[#allocation3 + $0x104] sm:$0xff] }
 0x115   : > { %1626 = vst.msk [vmem:[%s2094_s21 + $0x78] sm:$0xff] %vm843_vm2, %v1504_v10 }
 0x118   : > { %v1498_v8 = vld [vmem:[#allocation3 + $0xd8] sm:$0xff] }
 0x119   : > { %1623 = vst.msk [vmem:[%s2094_s21 + $0x60] sm:$0xff] %vm843_vm2, %v1498_v8  ;;  %v1499_v43 = vld [vmem:[#allocation3 + $0xe0] sm:$0xff] }
 0x11a   : > { %1624 = vst.msk [vmem:[%s2094_s21 + $0x68] sm:$0xff] %vm843_vm2, %v1499_v43 }
 0x11b PF: > { %s14_s15 = sadd.s32 1, %s1662_s15  }
 0x11c   : > { %p11_p4 = scmp.ge.s32.totalorder %s14_s15, 4  }
 0x11e   :  { %13 = sbr.rel (!%p11_p4) target bundleno = 1 (0x1), region = 73 }

// kernel: shufflenet_v2_forward.19
= control target key start
LH: loop header
LB: loop body
LE: loop exit
PB: predicated region body
PF: predicated region fallthrough
CT: control target
= control target key end

     0   :  { %s1816_s25 = smov 0   ;;  %s2512_s0 = inlined_call_operand.vmem [shape: f32[2,100,24], index: 0, kind: input, shape index: {}]   ;;  %s2513_s1 = inlined_call_operand.vmem [shape: f32[100,1], index: 1, kind: input, shape index: {}]   ;;  %s2514_s2 = inlined_call_operand.vmem [shape: f32[24,24], index: 2, kind: input, shape index: {}]   ;;  %s2515_s3 = inlined_call_operand.vmem [shape: f32[1,24], index: 3, kind: input, shape index: {}, may-alias: {3,5,7,9,11}]   ;;  %s2516_s4 = inlined_call_operand.vmem [shape: f32[9,1,24], index: 4, kind: input, shape index: {}]   ;;  %s2517_s5 = inlined_call_operand.vmem [shape: f32[1,24], index: 5, kind: input, shape index: {}, may-alias: {3,5,7,9,11}]   ;;  %s2518_s6 = inlined_call_operand.vmem [shape: f32[24,24], index: 6, kind: input, shape index: {}]   ;;  %s2519_s7 = inlined_call_operand.vmem [shape: f32[1,24], index: 7, kind: input, shape index: {}, may-alias: {3,5,7,9,11}]   ;;  %s2520_s8 = inlined_call_operand.vmem [shape: f32[9,1,24], index: 8, kind: input, shape index: {}]   ;;  %s2521_s9 = inlined_call_operand.vmem [shape: f32[1,24], index: 9, kind: input, shape index: {}, may-alias: {3,5,7,9,11}]   ;;  %s2522_s10 = inlined_call_operand.vmem [shape: f32[24,24], index: 10, kind: input, shape index: {}]   ;;  %s2523_s11 = inlined_call_operand.vmem [shape: f32[1,24], index: 11, kind: input, shape index: {}, may-alias: {3,5,7,9,11}]   ;;  %s2524_s12 = inlined_call_operand.vmem [shape: f32[2,4,8,24], index: 12, kind: output, shape index: {0}]   ;;  %s2525_s13 = inlined_call_operand.vmem [shape: f32[2,4,8,24], index: 13, kind: output, shape index: {1}]  }
   0x1 LB: > { %s1613_s26 = sadd.s32 4294967295, %s1743_s25   ;;  %p1617_p0 = scmp.ge.s32.totalorder %s1743_s25, 1  ;;  %s1743_s25 = sphi %s1816_s25, %s24_s25  }
   0x2   : > { %p390_p1 = scmp.lt.s32.totalorder %s1743_s25, 3 }
   0x4   : > { %p391_p2 = pnand %p1617_p0, %p390_p1 }
   0x6   : > { %394 = sbr.rel (%p391_p2) target bundleno = 396 (0x18c), region = 68 }
   0xb   : > { %v583_v0 = vld [vmem:[%s2513_s1] sm:$0xff]  ;;  %v469_v1 = vld [vmem:[%s2514_s2 + $0x10] sm:$0xff]  ;;  %v468_v2 = vld [vmem:[%s2514_s2 + $0x8] sm:$0xff]  ;;  %p439_p3 = scmp.lt.s32.totalorder %s1613_s26, 1  ;;  %v1745_v3 = vmov 0   ;;  %vm474_vm0 = vcmask 195584  }
   0xc   : > { %1701 = vset.pattern.permute.xlu0 %v1745_v3  ;;  %527 = vmatpush.msra.mxu0 %v469_v1  ;;  %v585_v4 = vld [vmem:[%s2513_s1 + $0x10] sm:$0xff]  ;;  %v467_v5 = vld [vmem:[%s2514_s2] sm:$0xff]  ;;  %v584_v8 = vld [vmem:[%s2513_s1 + $0x8] sm:$0xff]  ;;  %vm686_vm1 = vcmask 191488  }
   0xd   : > { %598 = vperm.xlu0 %1701, %v583_v0   ;;  %1682 = vmatpush.msra.mxu3 %v469_v1  ;;  %s2529_s26 = smov (!%p439_p3, %s1613_s26), 1  ;;  %v586_v9 = vld [vmem:[%s2513_s1 + $0x18] sm:$0xff]  ;;  %v587_v10 = vld [vmem:[%s2513_s1 + $0x20] sm:$0xff]  ;;  %v589_v13 = vld [vmem:[%s2513_s1 + $0x30] sm:$0xff] }
   0xe   : > { %528 = vmatpush.msra.mxu0 %v468_v2  ;;  %1702 = vset.pattern.permute.xlu1 %v1745_v3  ;;  %s1691_s20 = smul.u32 104, %s2529_s26  ;;  %v588_v14 = vld [vmem:[%s2513_s1 + $0x28] sm:$0xff]  ;;  %v590_v15 = vld [vmem:[%s2513_s1 + $0x38] sm:$0xff]  ;;  %v591_v19 = vld [vmem:[%s2513_s1 + $0x40] sm:$0xff] }
   0xf   : > { %1683 = vmatpush.msra.mxu3 %v468_v2  ;;  %608 = vperm.xlu1 %1702, %v585_v4   ;;  %v592_v18 = vld [vmem:[%s2513_s1 + $0x48] sm:$0xff]  ;;  %v593_v20 = vld [vmem:[%s2513_s1 + $0x50] sm:$0xff]  ;;  %v595_v23 = vld [vmem:[%s2513_s1 + $0x60] sm:$0xf] }
  0x10   : > { %529 = vmatpush.msra.mxu0 %v467_v5  ;;  %1703 = vset.pattern.permute.xlu2 %v1745_v3  ;;  %s1845_s23 = scalar_lea.vmem %s2512_s0, %s1691_s20  ;;  %v594_v24 = vld [vmem:[%s2513_s1 + $0x58] sm:$0xff]  ;;  %v1927_v30 = vld [vmem:[%s2520_s8] ss:$0 sm:$0xff]  ;;  %v1938_v33 = vld [vmem:[%s2520_s8 + $0x1] ss:$0 sm:$0xff] }
  0x11   : > { %1684 = vmatpush.msra.mxu3 %v467_v5  ;;  %v454_v6 = vld [vmem:[%s1845_s23] sm:$0xff]  ;;  %v463_v7 = vld [vmem:[%s1845_s23 + $0x48] sm:$0xff]  ;;  %v464_v12 = vld [vmem:[%s1845_s23 + $0x50] sm:$0xff]  ;;  %618 = vperm.xlu2 %1703, %v587_v10  }
  0x12   : > { %1623 = vmatmul.msk.f32.vlgmr.msra.gmra.mxu0 %vm474_vm0, %v454_v6  ;;  %1632 = vmatmul.msk.f32.vlgmr.msra.gmra.mxu3 %vm474_vm0, %v463_v7  ;;  %v455_v11 = vld [vmem:[%s1845_s23 + $0x8] sm:$0xff]  ;;  %v1874_v16 = vld [vmem:[%s1845_s23 + $0x10] sm:$0xff]  ;;  %v465_v17 = vld [vmem:[%s1845_s23 + $0x58] sm:$0xff]  ;;  %v746_v32 = vmul.f32 %v1927_v30, %v454_v6 }
  0x13   : > { %v1890_v21 = vld [vmem:[%s1845_s23 + $0x18] sm:$0xff]  ;;  %v466_v22 = vld [vmem:[%s1845_s23 + $0x60] sm:$0xf]  ;;  %v1908_v26 = vld [vmem:[%s1845_s23 + $0x28] sm:$0xff]  ;;  %v747_v52 = vmul.f32 %v1927_v30, %v455_v11 }
  0x14   : > { %v1903_v25 = vld [vmem:[%s1845_s23 + $0x20] sm:$0xff]  ;;  %v1913_v27 = vld [vmem:[%s1845_s23 + $0x30] sm:$0xff]  ;;  %v1918_v28 = vld [vmem:[%s1845_s23 + $0x38] sm:$0xff] }
  0x15   : > { %603 = vperm.xlu0 %1701, %v584_v8   ;;  %v462_v29 = vld [vmem:[%s1845_s23 + $0x40] sm:$0xff]  ;;  %v872_v44 = vld [vmem:[%s1845_s23 + $0xa] sm:$0xff]  ;;  %v1066_v61 = vld [vmem:[%s1845_s23 + $0x14] sm:$0xff] }
  0x16   : > { %v1932_v31 = vld [vmem:[%s2521_s9] ss:$0 sm:$0xff]  ;;  %v801_v34 = vld [vmem:[%s1845_s23 + $0x1] sm:$0xff]  ;;  %v995_v48 = vld [vmem:[%s1845_s23 + $0xb] sm:$0xff] }
  0x17   : > { %613 = vperm.xlu1 %1702, %v586_v9   ;;  %v756_v36 = vadd.f32 %v1932_v31, %v746_v32  ;;  %v816_v37 = vmul.f32 %v1938_v33, %v801_v34  ;;  %v1948_v38 = vld [vmem:[%s2520_s8 + $0x2] ss:$0 sm:$0xff]  ;;  %v1955_v42 = vld [vmem:[%s2520_s8 + $0x3] ss:$0 sm:$0xff]  ;;  %v1964_v47 = vld [vmem:[%s2520_s8 + $0x4] ss:$0 sm:$0xff]  ;;  %v757_v59 = vadd.f32 %v1932_v31, %v747_v52 }
  0x18   : > { %v871_v39 = vld [vmem:[%s1845_s23 + $0x2] sm:$0xff]  ;;  %v940_v46 = vmul.f32 %v1955_v42, %v872_v44  ;;  %v1010_v50 = vmul.f32 %v1964_v47, %v995_v48  ;;  %v1065_v53 = vld [vmem:[%s1845_s23 + $0xc] sm:$0xff]  ;;  %v887_v2 = vmul.f32 %v1948_v38, %v872_v44  ;;  %v1189_v4 = vld [vmem:[%s1845_s23 + $0x15] sm:$0xff] }
  0x19   : > { %623 = vperm.xlu2 %1703, %v588_v14   ;;  %v826_v40 = vadd.f32 %v816_v37, %v756_v36  ;;  %v886_v41 = vmul.f32 %v1948_v38, %v871_v39  ;;  %v1971_v51 = vld [vmem:[%s2520_s8 + $0x5] ss:$0 sm:$0xff]  ;;  %v802_v54 = vld [vmem:[%s1845_s23 + $0x9] sm:$0xff]  ;;  %v1982_v58 = vld [vmem:[%s2520_s8 + $0x6] ss:$0 sm:$0xff] }
  0x1a   : > { %1624 = vmatmul.msk.f32.gmra.mxu0 %vm474_vm0, %v455_v11  ;;  %1633 = vmatmul.msk.f32.gmra.mxu3 %vm474_vm0, %v464_v12  ;;  %v1080_v57 = vmul.f32 %v1971_v51, %v1065_v53  ;;  %v817_v60 = vmul.f32 %v1938_v33, %v802_v54  ;;  %v1134_v63 = vmul.f32 %v1982_v58, %v1066_v61  ;;  %v1991_v0 = vld [vmem:[%s2520_s8 + $0x7] ss:$0 sm:$0xff]  ;;  %v873_v5 = vld [vmem:[%s1845_s23 + $0x12] sm:$0xff]  ;;  %v2007_v9 = vld [vmem:[%s2520_s8 + $0x8] ss:$0 sm:$0xff] }
  0x1b   : > { %v896_v45 = vadd.f32 %v886_v41, %v826_v40  ;;  %v2001_v6 = vld [vmem:[%s2522_s10 + $0x10] sm:$0xff]  ;;  %v1204_v8 = vmul.f32 %v1991_v0, %v1189_v4  ;;  %v941_v11 = vmul.f32 %v1955_v42, %v873_v5  ;;  %v1081_v36 = vmul.f32 %v1971_v51, %v1066_v61  ;;  %v874_v52 = vld [vmem:[%s1845_s23 + $0x1a] sm:$0xff] }
  0x1c   : > { %v827_v1 = vadd.f32 %v817_v60, %v757_v59  ;;  %1449 = vmatpush.msra.mxu2 %v2001_v6  ;;  %v996_v14 = vld [vmem:[%s1845_s23 + $0x13] sm:$0xff]  ;;  %v888_v48 = vmul.f32 %v1948_v38, %v873_v5  ;;  %v1260_v59 = vld [vmem:[%s1845_s23 + $0x1e] sm:$0xff]  ;;  %v942_v61 = vmul.f32 %v1955_v42, %v874_v52 }
  0x1d   : > { %628 = vperm.xlu0 %1701, %v589_v13   ;;  %v950_v49 = vadd.f32 %v940_v46, %v896_v45  ;;  %v1259_v13 = vld [vmem:[%s1845_s23 + $0x16] sm:$0xff] }
  0x1e   : > { %v897_v10 = vadd.f32 %v887_v2, %v827_v1  ;;  %v1275_v2 = vmul.f32 %v2007_v9, %v1260_v59  ;;  %v1294_v59 = vld [vmem:[%s2518_s6] sm:$0xff] }
  0x1f   : > { %633 = vperm.xlu1 %1702, %v590_v15   ;;  %v1020_v56 = vadd.f32 %v1010_v50, %v950_v49  ;;  %v2018_v15 = vld [vmem:[%s2515_s3] ss:$0 sm:$0xff] }
  0x20   : > { %v1190_v49 = vld [vmem:[%s1845_s23 + $0x1d] sm:$0xff] }
  0x21   : > { %638 = vperm.xlu2 %1703, %v591_v19   ;;  %v1090_v62 = vadd.f32 %v1080_v57, %v1020_v56  ;;  %v1274_v19 = vmul.f32 %v2007_v9, %v1259_v13  ;;  %v1205_v56 = vmul.f32 %v1991_v0, %v1190_v49  ;;  %v875_v49 = vld [vmem:[%s1845_s23 + $0x22] sm:$0xff] }
  0x22   : > { %1625 = vmatmul.msk.f32.gmra.mxu0 %vm474_vm0, %v1874_v16  ;;  %1634 = vmatmul.msk.f32.gmra.mxu3 %vm474_vm0, %v465_v17  ;;  %v2023_v17 = vld [vmem:[%s2522_s10 + $0x8] sm:$0xff] }
  0x23   : > { %v1144_v7 = vadd.f32 %v1134_v63, %v1090_v62  ;;  %1450 = vmatpush.msra.mxu2 %v2023_v17  ;;  %v997_v62 = vld [vmem:[%s1845_s23 + $0x1b] sm:$0xff] }
  0x24   : > { %v1012_v4 = vmul.f32 %v1964_v47, %v997_v62  ;;  %v998_v62 = vld [vmem:[%s1845_s23 + $0x23] sm:$0xff] }
  0x25   : > { %643 = vperm.xlu0 %1701, %v592_v18   ;;  %v1214_v18 = vadd.f32 %v1204_v8, %v1144_v7 }
  0x27   : > { %648 = vperm.xlu1 %1702, %v593_v20   ;;  %v951_v20 = vadd.f32 %v941_v11, %v897_v10  ;;  %v1284_v32 = vadd.f32 %v1274_v19, %v1214_v18  ;;  %v749_v10 = vmul.f32 %v1927_v30, %v1890_v21 }
  0x29   : > { %653 = vperm.xlu2 %1703, %v594_v24   ;;  %v803_v24 = vld [vmem:[%s1845_s23 + $0x11] sm:$0xff] }
  0x2a   : > { %1626 = vmatmul.msk.f32.gmra.mxu0 %vm474_vm0, %v1890_v21  ;;  %1635 = vmatmul.msk.f32.gmra.mxu3 %vm474_vm0, %v466_v22  ;;  %v1011_v22 = vmul.f32 %v1964_v47, %v996_v14  ;;  %v818_v37 = vmul.f32 %v1938_v33, %v803_v24 }
  0x2c   : > { %v1021_v34 = vadd.f32 %v1011_v22, %v951_v20  ;;  %v1068_v20 = vld [vmem:[%s1845_s23 + $0x24] sm:$0xff]  ;;  %v759_v22 = vadd.f32 %v1932_v31, %v749_v10  ;;  %v750_v10 = vmul.f32 %v1927_v30, %v1903_v25 }
  0x2d   : > { %658 = vperm.xlu0 %1701, %v595_v23   ;;  %v748_v23 = vmul.f32 %v1927_v30, %v1874_v16  ;;  %v1067_v16 = vld [vmem:[%s1845_s23 + $0x1c] sm:$0xff] }
  0x2e   : > { %v1091_v45 = vadd.f32 %v1081_v36, %v1021_v34  ;;  %v1135_v46 = vmul.f32 %v1982_v58, %v1067_v16  ;;  %v1082_v14 = vmul.f32 %v1971_v51, %v1067_v16  ;;  %v1136_v34 = vmul.f32 %v1982_v58, %v1068_v20 }
  0x2f   : > { %v758_v41 = vadd.f32 %v1932_v31, %v748_v23 }
  0x30   : > { %v1145_v54 = vadd.f32 %v1135_v46, %v1091_v45  ;;  %v1295_v46 = vld [vmem:[%s2518_s6 + $0x8] sm:$0xff] }
  0x31   : > { %v828_v50 = vadd.f32 %v818_v37, %v758_v41  ;;  %v889_v41 = vmul.f32 %v1948_v38, %v874_v52 }
  0x32   : > { %1627 = vmatmul.msk.f32.gmra.mxu0 %vm474_vm0, %v1903_v25  ;;  %v1215_v1 = vadd.f32 %v1205_v56, %v1145_v54  ;;  %v943_v56 = vmul.f32 %v1955_v42, %v875_v49 }
  0x33   : > { %v898_v60 = vadd.f32 %v888_v48, %v828_v50 }
  0x34   : > { %v1285_v13 = vadd.f32 %v1275_v2, %v1215_v1 }
  0x35   : > { %v952_v8 = vadd.f32 %v942_v61, %v898_v60  ;;  %v2092_v60 = vld [vmem:[%s2516_s4] ss:$0 sm:$0xff] }
  0x37   : > { %v1022_v19 = vadd.f32 %v1012_v4, %v952_v8 }
  0x39   : > { %v1092_v37 = vadd.f32 %v1082_v14, %v1022_v19  ;;  %v805_v19 = vld [vmem:[%s1845_s23 + $0x21] sm:$0xff] }
  0x3a   : > { %1628 = vmatmul.msk.f32.gmra.mxu0 %vm474_vm0, %v1908_v26 }
  0x3b   : > { %v1146_v50 = vadd.f32 %v1136_v34, %v1092_v37  ;;  %v820_v34 = vmul.f32 %v1938_v33, %v805_v19 }
  0x42   : > { %1629 = vmatmul.msk.f32.gmra.mxu0 %vm474_vm0, %v1913_v27 }
  0x4a   : > { %1630 = vmatmul.msk.f32.gmra.mxu0 %vm474_vm0, %v1918_v28 }
  0x52   : > { %1631 = vmatmul.msk.f32.gmra.mxu0 %vm474_vm0, %v462_v29  ;;  %v2034_v29 = vld [vmem:[%s2522_s10] sm:$0xff] }
  0x53   : > { %1451 = vmatpush.msra.mxu2 %v2034_v29 }
  0x54   : > { %1662 = vmatmul.msk.f32.vlgmr.msra.gmra.mxu2 %vm474_vm0, %v1284_v32  ;;  %v1296_v32 = vld [vmem:[%s2518_s6 + $0x10] sm:$0xff] }
  0x55   : > { %1344 = vmatpush.msra.mxu1 %v1296_v32  ;;  %1685 = vmatpush.msrb.mxu3 %v1296_v32 }
  0x57   : > { %1345 = vmatpush.msra.mxu1 %v1295_v46  ;;  %1686 = vmatpush.msrb.mxu3 %v1295_v46 }
  0x59   : > { %1346 = vmatpush.msra.mxu1 %v1294_v59  ;;  %1687 = vmatpush.msrb.mxu3 %v1294_v59 }
  0x5b   : > { %1688 = vmatpush.msra.mxu3 %v2001_v6  ;;  %v760_v6 = vadd.f32 %v1932_v31, %v750_v10 }
  0x5c   : > { %1663 = vmatmul.msk.f32.gmra.mxu2 %vm474_vm0, %v1285_v13 }
  0x5d   : > { %1689 = vmatpush.msra.mxu3 %v2023_v17 }
  0x5f   : > { %1690 = vmatpush.msra.mxu3 %v2034_v29  ;;  %v1262_v29 = vld [vmem:[%s1845_s23 + $0x2e] sm:$0xff] }
  0x6b   : > { %v1994_v3 = vpop.permute.xlu2 %618 }
  0x73   : > { %v2050_v57 = vpop.permute.xlu2 %623 }
  0x7b   : > { %v2096_v1 = vpop.permute.xlu2 %638 }
  0x7c   : > { %2526 = vst [vmem:[#allocation5_spill] sm:$0xff] %v2096_v1 }
  0x7f   : > { %v1941_v35 = vpop.permute.xlu0 %598 }
  0x81   : > { %v1957_v43 = vpop.permute.xlu1 %608 }
  0x87   : > { %v1976_v55 = vpop.permute.xlu0 %603 }
  0x89   : > { %v2010_v12 = vpop.permute.xlu1 %613 }
  0x8f   : > { %v2038_v39 = vpop.permute.xlu0 %628  ;;  %v531_v40 = vpop.f32.mrf.mxu0 }
  0x90   : > { %v532_v44 = vadd.f32 %v2018_v15, %v531_v40  ;;  %v1191_v40 = vld [vmem:[%s1845_s23 + $0x25] sm:$0xff] }
  0x91   : > { %v2058_v7 = vpop.permute.xlu1 %633  ;;  %v1206_v48 = vmul.f32 %v1991_v0, %v1191_v40  ;;  %v2122_v40 = vld [vmem:[%s2516_s4 + $0x1] ss:$0 sm:$0xff] }
  0x92   : > { %v570_v53 = vmax.f32 %v532_v44, 0.0 }
  0x93   : > { %v1216_v4 = vadd.f32 %v1206_v48, %v1146_v50  ;;  %v830_v48 = vadd.f32 %v820_v34, %v760_v6 }
  0x94   : > { %v661_v63 = vmul.f32 %v1941_v35, %v570_v53  ;;  %v804_v35 = vld [vmem:[%s1845_s23 + $0x19] sm:$0xff]  ;;  %v1261_v53 = vld [vmem:[%s1845_s23 + $0x26] sm:$0xff] }
  0x95   : > { %v558_v5 = vpop.f32.mrf.mxu3  ;;  %v819_v23 = vmul.f32 %v1938_v33, %v804_v35  ;;  %v1276_v61 = vmul.f32 %v2007_v9, %v1261_v53 }
  0x96   : > { %674 = vst.msk [vmem:[#allocation2] sm:$0xff] %vm474_vm0, %v661_v63  ;;  %v559_v11 = vadd.f32 %v2018_v15, %v558_v5  ;;  %v1013_v5 = vmul.f32 %v1964_v47, %v998_v62 }
  0x97   : > { %v534_v18 = vpop.f32.mrf.mxu0  ;;  %v644_v36 = vpop.permute.xlu0 %643  ;;  %v829_v16 = vadd.f32 %v819_v23, %v759_v22  ;;  %v1286_v14 = vadd.f32 %v1276_v61, %v1216_v4 }
  0x98   : > { %v579_v24 = vmax.f32 %v559_v11, 0.0  ;;  %v535_v21 = vadd.f32 %v2018_v15, %v534_v18  ;;  %v1083_v18 = vmul.f32 %v1971_v51, %v1068_v20 }
  0x99   : > { %v899_v54 = vadd.f32 %v889_v41, %v829_v16  ;;  %v649_v13 = vpop.permute.xlu1 %648  ;;  %1664 = vmatmul.msk.f32.gmra.mxu2 %vm474_vm0, %v1286_v14  ;;  %v1192_v16 = vld [vmem:[%s1845_s23 + $0x2d] sm:$0xff]  ;;  %v890_v41 = vmul.f32 %v1948_v38, %v875_v49  ;;  %v654_v14 = vpop.permute.xlu2 %653 }
  0x9a   : > { %v670_v44 = vmul.f32 %v644_v36, %v579_v24  ;;  %v571_v45 = vmax.f32 %v535_v21, 0.0  ;;  %v2110_v24 = vld [vmem:[%s2517_s5] ss:$0 sm:$0xff]  ;;  %v1069_v21 = vld [vmem:[%s1845_s23 + $0x2c] sm:$0xff]  ;;  %v1207_v46 = vmul.f32 %v1991_v0, %v1192_v16 }
  0x9b   : > { %v1137_v32 = vmul.f32 %v1982_v58, %v1069_v21 }
  0x9c   : > { %683 = vst.msk [vmem:[#allocation2 + $0x48] sm:$0xff] %vm474_vm0, %v670_v44  ;;  %v662_v52 = vmul.f32 %v1976_v55, %v571_v45  ;;  %v953_v55 = vadd.f32 %v943_v56, %v899_v54  ;;  %v2134_v54 = vld [vmem:[%s2516_s4 + $0x2] ss:$0 sm:$0xff]  ;;  %v876_v56 = vld [vmem:[%s1845_s23 + $0x2a] sm:$0xff] }
  0x9d   : > { %v561_v63 = vpop.f32.mrf.mxu3  ;;  %v698_v2 = vld [vmem:[#allocation2] sm:$0xff]  ;;  %v944_v4 = vmul.f32 %v1955_v42, %v876_v56 }
  0x9e   : > { %675 = vst.msk [vmem:[#allocation2 + $0x8] sm:$0xff] %vm474_vm0, %v662_v52  ;;  %v562_v8 = vadd.f32 %v2018_v15, %v561_v63  ;;  %v1023_v35 = vadd.f32 %v1013_v5, %v953_v55  ;;  %v712_v25 = vmul.f32 %v2092_v60, %v698_v2  ;;  %v900_v2 = vadd.f32 %v890_v41, %v830_v48  ;;  %v2159_v41 = vld [vmem:[%s1845_s23 + $0x34] sm:$0xff] }
  0x9f   : > { %v537_v11 = vpop.f32.mrf.mxu0 }
  0xa0   : > { %v580_v22 = vmax.f32 %v562_v8, 0.0  ;;  %v538_v23 = vadd.f32 %v2018_v15, %v537_v11  ;;  %v1093_v20 = vadd.f32 %v1083_v18, %v1023_v35  ;;  %v722_v53 = vadd.f32 %v2110_v24, %v712_v25  ;;  %v999_v11 = vld [vmem:[%s1845_s23 + $0x2b] sm:$0xff] }
  0xa2   : > { %v572_v36 = vmax.f32 %v538_v23, 0.0  ;;  %v671_v37 = vmul.f32 %v649_v13, %v580_v22  ;;  %v1147_v45 = vadd.f32 %v1137_v32, %v1093_v20  ;;  %v954_v22 = vadd.f32 %v944_v4, %v900_v2  ;;  %v2153_v32 = vld [vmem:[%s2516_s4 + $0x3] ss:$0 sm:$0xff]  ;;  %v2186_v4 = vld [vmem:[%s1845_s23 + $0x32] sm:$0xff] }
  0xa3   : > { %v707_v17 = vld [vmem:[#allocation2 + $0x48] sm:$0x3f]  ;;  %v1014_v23 = vmul.f32 %v1964_v47, %v999_v11 }
  0xa4   : > { %v775_v44 = vld [vmem:[#allocation2 + $0x49] sm:$0x3f]  ;;  %v663_v50 = vmul.f32 %v1957_v43, %v572_v36  ;;  %684 = vst.msk [vmem:[#allocation2 + $0x50] sm:$0xff] %vm474_vm0, %v671_v37  ;;  %v721_v49 = vmul.f32 %v2092_v60, %v707_v17  ;;  %v1217_v63 = vadd.f32 %v1207_v46, %v1147_v45  ;;  %v1277_v43 = vmul.f32 %v2007_v9, %v1262_v29 }
  0xa5   : > { %v564_v52 = vpop.f32.mrf.mxu3  ;;  %v766_v59 = vld [vmem:[#allocation2 + $0x1] sm:$0xff]  ;;  %v845_v61 = vld [vmem:[#allocation2 + $0x4a] sm:$0x3f]  ;;  %v790_v10 = vmul.f32 %v2122_v40, %v775_v44  ;;  %v1024_v16 = vadd.f32 %v1014_v23, %v954_v22  ;;  %v1084_v17 = vmul.f32 %v1971_v51, %v1069_v21  ;;  %v751_v44 = vmul.f32 %v1927_v30, %v1908_v26 }
  0xa6   : > { %v699_v62 = vld [vmem:[#allocation2 + $0x8] sm:$0xff]  ;;  %676 = vst.msk [vmem:[#allocation2 + $0x10] sm:$0xff] %vm474_vm0, %v663_v50  ;;  %v565_v55 = vadd.f32 %v2018_v15, %v564_v52  ;;  %v781_v5 = vmul.f32 %v2122_v40, %v766_v59  ;;  %v731_v8 = vadd.f32 %v2110_v24, %v721_v49  ;;  %v1287_v19 = vadd.f32 %v1277_v43, %v1217_v63  ;;  %v1193_v52 = vld [vmem:[%s1845_s23 + $0x35] sm:$0xff]  ;;  %v2181_v63 = vld [vmem:[%s2516_s4 + $0x5] ss:$0 sm:$0xff] }
  0xa7   : > { %v540_v13 = vpop.f32.mrf.mxu0  ;;  %v836_v35 = vld [vmem:[#allocation2 + $0x2] sm:$0xff]  ;;  %v713_v18 = vmul.f32 %v2092_v60, %v699_v62  ;;  %v860_v34 = vmul.f32 %v2134_v54, %v845_v61  ;;  %v1094_v49 = vadd.f32 %v1084_v17, %v1024_v16  ;;  %v1138_v29 = vmul.f32 %v1982_v58, %v2159_v41  ;;  %v1000_v16 = vld [vmem:[%s1845_s23 + $0x33] sm:$0xff] }
  0xa8   : > { %v581_v25 = vmax.f32 %v565_v55, 0.0  ;;  %v541_v6 = vadd.f32 %v2018_v15, %v540_v13  ;;  %v791_v20 = vadd.f32 %v781_v5, %v722_v53  ;;  %v806_v36 = vld [vmem:[%s1845_s23 + $0x29] sm:$0xff]  ;;  %v800_v37 = vadd.f32 %v790_v10, %v731_v8  ;;  %1665 = vmatmul.msk.f32.gmra.mxu2 %vm474_vm0, %v1287_v19  ;;  %v2176_v62 = vld [vmem:[%s2516_s4 + $0x4] ss:$0 sm:$0xff] }
  0xa9   : > { %v851_v48 = vmul.f32 %v2134_v54, %v836_v35  ;;  %v723_v50 = vadd.f32 %v2110_v24, %v713_v18  ;;  %v761_v59 = vadd.f32 %v1932_v31, %v751_v44  ;;  %v821_v21 = vmul.f32 %v1938_v33, %v806_v36 }
  0xaa   : > { %v573_v45 = vmax.f32 %v541_v6, 0.0  ;;  %v672_v46 = vmul.f32 %v654_v14, %v581_v25  ;;  %v1208_v2 = vmul.f32 %v1991_v0, %v1193_v52  ;;  %v870_v10 = vadd.f32 %v860_v34, %v800_v37  ;;  %v1263_v25 = vld [vmem:[%s1845_s23 + $0x36] sm:$0xff] }
  0xab   : > { %v907_v53 = vld [vmem:[#allocation2 + $0x52] sm:$0x3f]  ;;  %v861_v26 = vadd.f32 %v851_v48, %v791_v20  ;;  %v1148_v11 = vadd.f32 %v1138_v29, %v1094_v49  ;;  %v831_v13 = vadd.f32 %v821_v21, %v761_v59  ;;  %v891_v14 = vmul.f32 %v1948_v38, %v876_v56  ;;  %v659_v48 = vpop.permute.xlu0 %658 }
  0xac   : > { %v664_v61 = vmul.f32 %v2010_v12, %v573_v45  ;;  %685 = vst.msk [vmem:[#allocation2 + $0x58] sm:$0xff] %vm474_vm0, %v672_v46  ;;  %v922_v43 = vmul.f32 %v2153_v32, %v907_v53  ;;  %v945_v6 = vmul.f32 %v1955_v42, %v2186_v4  ;;  %v1278_v29 = vmul.f32 %v2007_v9, %v1263_v25 }
  0xad   : > { %v567_v12 = vpop.f32.mrf.mxu3  ;;  %v837_v55 = vld [vmem:[#allocation2 + $0xa] sm:$0xff]  ;;  %v1218_v46 = vadd.f32 %v1208_v2, %v1148_v11  ;;  %v901_v52 = vadd.f32 %v891_v14, %v831_v13 }
  0xae   : > { %v960_v5 = vld [vmem:[#allocation2 + $0xb] sm:$0xff]  ;;  %677 = vst.msk [vmem:[#allocation2 + $0x18] sm:$0xff] %vm474_vm0, %v664_v61  ;;  %v568_v35 = vadd.f32 %v2018_v15, %v567_v12  ;;  %v913_v18 = vmul.f32 %v2153_v32, %v837_v55  ;;  %v932_v36 = vadd.f32 %v922_v43, %v870_v10  ;;  %v852_v49 = vmul.f32 %v2134_v54, %v837_v55  ;;  %v2206_v43 = vld [vmem:[%s2516_s4 + $0x6] ss:$0 sm:$0xff] }
  0xaf   : > { %v1030_v8 = vld [vmem:[#allocation2 + $0xc] sm:$0xff]  ;;  %v975_v19 = vmul.f32 %v2176_v62, %v960_v5  ;;  %v543_v20 = vpop.f32.mrf.mxu0  ;;  %v1015_v12 = vmul.f32 %v1964_v47, %v1000_v16  ;;  %v1288_v10 = vadd.f32 %v1278_v29, %v1218_v46  ;;  %v955_v11 = vadd.f32 %v945_v6, %v901_v52 }
  0xb0   : > { %v767_v22 = vld [vmem:[#allocation2 + $0x9] sm:$0xff]  ;;  %v1045_v34 = vmul.f32 %v2181_v63, %v1030_v8  ;;  %v582_v17 = vmax.f32 %v568_v35, 0.0  ;;  %v544_v44 = vadd.f32 %v2018_v15, %v543_v20  ;;  %v923_v45 = vadd.f32 %v913_v18, %v861_v26  ;;  %v2210_v26 = vld [vmem:[%s1845_s23 + $0x3c] sm:$0xff]  ;;  %v2223_v35 = vld [vmem:[%s2516_s4 + $0x8] ss:$0 sm:$0xff] }
  0xb1   : > { %v700_v23 = vld [vmem:[#allocation2 + $0x10] sm:$0xff]  ;;  %v782_v56 = vmul.f32 %v2122_v40, %v767_v22  ;;  %v1194_v22 = vld [vmem:[%s1845_s23 + $0x3d] sm:$0xff]  ;;  %1666 = vmatmul.msk.f32.gmra.mxu2 %vm474_vm0, %v1288_v10  ;;  %v752_v46 = vmul.f32 %v1927_v30, %v1913_v27 }
  0xb2   : > { %v714_v37 = vmul.f32 %v2092_v60, %v700_v23  ;;  %v673_v59 = vmul.f32 %v659_v48, %v582_v17  ;;  %v574_v21 = vmax.f32 %v544_v44, 0.0  ;;  %v985_v61 = vadd.f32 %v975_v19, %v923_v45 }
  0xb3   : > { %v792_v53 = vadd.f32 %v782_v56, %v723_v50  ;;  %v2215_v50 = vld [vmem:[%s2516_s4 + $0x7] ss:$0 sm:$0xff]  ;;  %v969_v2 = vld [vmem:[#allocation2 + $0x53] sm:$0x3f]  ;;  %v1085_v19 = vmul.f32 %v1971_v51, %v2159_v41  ;;  %v1209_v56 = vmul.f32 %v1991_v0, %v1194_v22 }
  0xb4   : > { %v1039_v55 = vld [vmem:[#allocation2 + $0x54] sm:$0x3f]  ;;  %v724_v8 = vadd.f32 %v2110_v24, %v714_v37  ;;  %687 = vst.msk [vmem:[#allocation2 + $0x60] sm:$0xf] %vm686_vm1, %v673_v59  ;;  %v665_v13 = vmul.f32 %v1994_v3, %v574_v21  ;;  %v1055_v14 = vadd.f32 %v1045_v34, %v985_v61  ;;  %v984_v18 = vmul.f32 %v2176_v62, %v969_v2  ;;  %v1264_v21 = vld [vmem:[%s1845_s23 + $0x3e] sm:$0xff] }
  0xb5   : > { %v862_v5 = vadd.f32 %v852_v49, %v792_v53  ;;  %v1031_v23 = vld [vmem:[#allocation2 + $0x14] sm:$0xff]  ;;  %v1054_v6 = vmul.f32 %v2181_v63, %v1039_v55  ;;  %v1025_v3 = vadd.f32 %v1015_v12, %v955_v11  ;;  %v1139_v34 = vmul.f32 %v1982_v58, %v2210_v26 }
  0xb6   : > { %v1154_v25 = vld [vmem:[#allocation2 + $0x15] sm:$0xff]  ;;  %678 = vst.msk [vmem:[#allocation2 + $0x20] sm:$0xff] %vm474_vm0, %v665_v13  ;;  %v1107_v37 = vmul.f32 %v2206_v43, %v1031_v23  ;;  %v994_v16 = vadd.f32 %v984_v18, %v932_v36  ;;  %v1046_v12 = vmul.f32 %v2181_v63, %v1031_v23  ;;  %v762_v23 = vadd.f32 %v1932_v31, %v752_v46 }
  0xb7   : > { %v1224_v20 = vld [vmem:[#allocation2 + $0x16] sm:$0xff]  ;;  %v1169_v41 = vmul.f32 %v2215_v50, %v1154_v25  ;;  %v546_v48 = vpop.f32.mrf.mxu0  ;;  %v1095_v11 = vadd.f32 %v1085_v19, %v1025_v3  ;;  %v1279_v25 = vmul.f32 %v2007_v9, %v1264_v21 }
  0xb8   : > { %v838_v17 = vld [vmem:[#allocation2 + $0x12] sm:$0xff]  ;;  %v1239_v53 = vmul.f32 %v2223_v35, %v1224_v20  ;;  %v547_v36 = vadd.f32 %v2018_v15, %v546_v48  ;;  %v1117_v61 = vadd.f32 %v1107_v37, %v1055_v14  ;;  %v1064_v22 = vadd.f32 %v1054_v6, %v994_v16 }
  0xb9   : > { %v961_v44 = vld [vmem:[#allocation2 + $0x13] sm:$0xff]  ;;  %v914_v49 = vmul.f32 %v2153_v32, %v838_v17  ;;  %v853_v2 = vmul.f32 %v2134_v54, %v838_v17  ;;  %v1149_v37 = vadd.f32 %v1139_v34, %v1095_v11 }
  0xba   : > { %v768_v45 = vld [vmem:[#allocation2 + $0x11] sm:$0xff]  ;;  %v976_v29 = vmul.f32 %v2176_v62, %v961_v44  ;;  %v575_v13 = vmax.f32 %v547_v36, 0.0  ;;  %v1179_v18 = vadd.f32 %v1169_v41, %v1117_v61 }
  0xbb   : > { %v783_v52 = vmul.f32 %v2122_v40, %v768_v45  ;;  %v701_v59 = vld [vmem:[#allocation2 + $0x18] sm:$0xff]  ;;  %v924_v27 = vadd.f32 %v914_v49, %v862_v5 }
  0xbc   : > { %v715_v10 = vmul.f32 %v2092_v60, %v701_v59  ;;  %v807_v20 = vld [vmem:[%s1845_s23 + $0x31] sm:$0xff]  ;;  %v1101_v44 = vld [vmem:[#allocation2 + $0x5c] sm:$0x3f]  ;;  %v666_v5 = vmul.f32 %v2050_v57, %v575_v13 }
  0xbd   : > { %v793_v55 = vadd.f32 %v783_v52, %v724_v8  ;;  %v1163_v45 = vld [vmem:[#allocation2 + $0x5d] sm:$0x3f]  ;;  %v986_v48 = vadd.f32 %v976_v29, %v924_v27  ;;  %v1249_v8 = vadd.f32 %v1239_v53, %v1179_v18  ;;  %v1116_v17 = vmul.f32 %v2206_v43, %v1101_v44 }
  0xbe   : > { %v1233_v1 = vld [vmem:[#allocation2 + $0x5e] sm:$0x3f]  ;;  %v725_v19 = vadd.f32 %v2110_v24, %v715_v10  ;;  %v1178_v6 = vmul.f32 %v2215_v50, %v1163_v45  ;;  %v1219_v29 = vadd.f32 %v1209_v56, %v1149_v37  ;;  %679 = vst.msk [vmem:[#allocation2 + $0x28] sm:$0xff] %vm474_vm0, %v666_v5  ;;  %v822_v21 = vmul.f32 %v1938_v33, %v807_v20 }
  0xbf   : > { %v863_v14 = vadd.f32 %v853_v2, %v793_v55  ;;  %v1248_v3 = vmul.f32 %v2223_v35, %v1233_v1  ;;  %v1032_v41 = vld [vmem:[#allocation2 + $0x1c] sm:$0xff]  ;;  %v1056_v16 = vadd.f32 %v1046_v12, %v986_v48  ;;  %1652 = vmatmul.msk.f32.vlgmr.msra.gmra.mxu1 %vm474_vm0, %v1249_v8  ;;  %v1126_v34 = vadd.f32 %v1116_v17, %v1064_v22  ;;  %v549_v36 = vpop.f32.mrf.mxu0 }
  0xc0   : > { %v1155_v49 = vld [vmem:[#allocation2 + $0x1d] sm:$0xff]  ;;  %v1108_v57 = vmul.f32 %v2206_v43, %v1032_v41  ;;  %v550_v27 = vadd.f32 %v2018_v15, %v549_v36  ;;  %v1047_v18 = vmul.f32 %v2181_v63, %v1032_v41  ;;  %v1289_v22 = vadd.f32 %v1279_v25, %v1219_v29 }
  0xc1   : > { %v1225_v52 = vld [vmem:[#allocation2 + $0x1e] sm:$0xff]  ;;  %v1170_v1 = vmul.f32 %v2215_v50, %v1155_v49  ;;  %v1188_v55 = vadd.f32 %v1178_v6, %v1126_v34  ;;  %v832_v6 = vadd.f32 %v822_v21, %v762_v23  ;;  %v1086_v21 = vmul.f32 %v1971_v51, %v2210_v26 }
  0xc2   : > { %v839_v46 = vld [vmem:[#allocation2 + $0x1a] sm:$0xff]  ;;  %v1240_v61 = vmul.f32 %v2223_v35, %v1225_v52  ;;  %v1118_v10 = vadd.f32 %v1108_v57, %v1056_v16  ;;  %v576_v45 = vmax.f32 %v550_v27, 0.0  ;;  %1667 = vmatmul.msk.f32.gmra.mxu2 %vm474_vm0, %v1289_v22  ;;  %v1195_v26 = vld [vmem:[%s1845_s23 + $0x45] sm:$0xff] }
  0xc3   : > { %v962_v53 = vld [vmem:[#allocation2 + $0x1b] sm:$0xff]  ;;  %v915_v56 = vmul.f32 %v2153_v32, %v839_v46  ;;  %v1258_v48 = vadd.f32 %v1248_v3, %v1188_v55  ;;  %v854_v17 = vmul.f32 %v2134_v54, %v839_v46 }
  0xc4   : > { %v769_v59 = vld [vmem:[#allocation2 + $0x19] sm:$0xff]  ;;  %v977_v12 = vmul.f32 %v2176_v62, %v962_v53  ;;  %v1180_v37 = vadd.f32 %v1170_v1, %v1118_v10  ;;  %v667_v25 = vmul.f32 %v2038_v39, %v576_v45 }
  0xc5   : > { %v702_v2 = vld [vmem:[#allocation2 + $0x20] sm:$0xff]  ;;  %v784_v11 = vmul.f32 %v2122_v40, %v769_v59  ;;  %v925_v13 = vadd.f32 %v915_v56, %v863_v14  ;;  %v892_v14 = vmul.f32 %v1948_v38, %v2186_v4  ;;  %1661 = vmatmul.msk.f32.vlgmr.msrb.gmra.mxu3 %vm474_vm0, %v1258_v48 }
  0xc6   : > { %v716_v20 = vmul.f32 %v2092_v60, %v702_v2  ;;  %v2269_v44 = vld [vmem:[%s1845_s23 + $0x3a] sm:$0xff]  ;;  %v1250_v41 = vadd.f32 %v1240_v61, %v1180_v37  ;;  %v1033_v49 = vld [vmem:[#allocation2 + $0x24] sm:$0xff]  ;;  %680 = vst.msk [vmem:[#allocation2 + $0x30] sm:$0xff] %vm474_vm0, %v667_v25 }
  0xc7   : > { %v794_v5 = vadd.f32 %v784_v11, %v725_v19  ;;  %v987_v8 = vadd.f32 %v977_v12, %v925_v13  ;;  %v1001_v16 = vld [vmem:[%s1845_s23 + $0x3b] sm:$0xff]  ;;  %v946_v3 = vmul.f32 %v1955_v42, %v2269_v44  ;;  %v1156_v52 = vld [vmem:[#allocation2 + $0x25] sm:$0xff]  ;;  %v902_v57 = vadd.f32 %v892_v14, %v832_v6  ;;  %v552_v36 = vpop.f32.mrf.mxu0 }
  0xc8   : > { %v1226_v29 = vld [vmem:[#allocation2 + $0x26] sm:$0xff]  ;;  %v726_v23 = vadd.f32 %v2110_v24, %v716_v20  ;;  %1653 = vmatmul.msk.f32.gmra.mxu1 %vm474_vm0, %v1250_v41  ;;  %v1109_v39 = vmul.f32 %v2206_v43, %v1033_v49  ;;  %v1016_v59 = vmul.f32 %v1964_v47, %v1001_v16  ;;  %v1171_v1 = vmul.f32 %v2215_v50, %v1156_v52  ;;  %v808_v6 = vld [vmem:[%s1845_s23 + $0x39] sm:$0xff] }
  0xc9   : > { %v1057_v19 = vadd.f32 %v1047_v18, %v987_v8  ;;  %v864_v34 = vadd.f32 %v854_v17, %v794_v5  ;;  %v840_v4 = vld [vmem:[#allocation2 + $0x22] sm:$0xff]  ;;  %v1241_v61 = vmul.f32 %v2223_v35, %v1226_v29  ;;  %v553_v27 = vadd.f32 %v2018_v15, %v552_v36 }
  0xca   : > { %v963_v46 = vld [vmem:[#allocation2 + $0x23] sm:$0xff]  ;;  %v916_v56 = vmul.f32 %v2153_v32, %v840_v4  ;;  %v956_v11 = vadd.f32 %v946_v3, %v902_v57  ;;  %v1048_v22 = vmul.f32 %v2181_v63, %v1033_v49  ;;  %v855_v45 = vmul.f32 %v2134_v54, %v840_v4 }
  0xcb   : > { %v770_v53 = vld [vmem:[#allocation2 + $0x21] sm:$0xff]  ;;  %v1119_v55 = vadd.f32 %v1109_v39, %v1057_v19  ;;  %v978_v10 = vmul.f32 %v2176_v62, %v963_v46  ;;  %v577_v37 = vmax.f32 %v553_v27, 0.0  ;;  %v1210_v16 = vmul.f32 %v1991_v0, %v1195_v26 }
  0xcc   : > { %v785_v12 = vmul.f32 %v2122_v40, %v770_v53  ;;  %v2292_v2 = vld [vmem:[%s1845_s23 + $0x44] sm:$0xff]  ;;  %v926_v18 = vadd.f32 %v916_v56, %v864_v34  ;;  %v1026_v8 = vadd.f32 %v1016_v59, %v956_v11  ;;  %v753_v41 = vmul.f32 %v1927_v30, %v1918_v28 }
  0xcd   : > { %v703_v13 = vld [vmem:[#allocation2 + $0x28] sm:$0xff]  ;;  %v1181_v5 = vadd.f32 %v1171_v1, %v1119_v55  ;;  %v1140_v17 = vmul.f32 %v1982_v58, %v2292_v2  ;;  %v668_v3 = vmul.f32 %v2058_v7, %v577_v37  ;;  %v823_v53 = vmul.f32 %v1938_v33, %v808_v6 }
  0xce   : > { %v795_v20 = vadd.f32 %v785_v12, %v726_v23  ;;  %v1265_v48 = vld [vmem:[%s1845_s23 + $0x46] sm:$0xff]  ;;  %v988_v14 = vadd.f32 %v978_v10, %v926_v18  ;;  %v717_v25 = vmul.f32 %v2092_v60, %v703_v13  ;;  %v1096_v19 = vadd.f32 %v1086_v21, %v1026_v8  ;;  %v1227_v39 = vld [vmem:[#allocation2 + $0x2e] sm:$0xff] }
  0xcf   : > { %v1251_v49 = vadd.f32 %v1241_v61, %v1181_v5  ;;  %v1280_v52 = vmul.f32 %v2007_v9, %v1265_v48  ;;  %v2310_v29 = vld [vmem:[%s1845_s23 + $0x42] sm:$0xff]  ;;  %v1034_v34 = vld [vmem:[#allocation2 + $0x2c] sm:$0xff]  ;;  %v763_v46 = vadd.f32 %v1932_v31, %v753_v41  ;;  %681 = vst.msk [vmem:[#allocation2 + $0x38] sm:$0xff] %vm474_vm0, %v668_v3  ;;  %v893_v1 = vmul.f32 %v1948_v38, %v2269_v44  ;;  %v555_v61 = vpop.f32.mrf.mxu0 }
  0xd0   : > { %v1058_v23 = vadd.f32 %v1048_v22, %v988_v14  ;;  %v1157_v57 = vld [vmem:[#allocation2 + $0x2d] sm:$0xff]  ;;  %v865_v4 = vadd.f32 %v855_v45, %v795_v20  ;;  %v1110_v28 = vmul.f32 %v2206_v43, %v1034_v34  ;;  %v727_v21 = vadd.f32 %v2110_v24, %v717_v25  ;;  %v1002_v18 = vld [vmem:[%s1845_s23 + $0x43] sm:$0xff] }
  0xd1   : > { %1654 = vmatmul.msk.f32.gmra.mxu1 %vm474_vm0, %v1251_v49  ;;  %v841_v7 = vld [vmem:[#allocation2 + $0x2a] sm:$0xff]  ;;  %v1172_v56 = vmul.f32 %v2215_v50, %v1157_v57  ;;  %v1242_v12 = vmul.f32 %v2223_v35, %v1227_v39  ;;  %v1150_v55 = vadd.f32 %v1140_v17, %v1096_v19  ;;  %v556_v10 = vadd.f32 %v2018_v15, %v555_v61  ;;  %v809_v57 = vld [vmem:[%s1845_s23 + $0x41] sm:$0xff] }
  0xd2   : > { %v964_v59 = vld [vmem:[#allocation2 + $0x2b] sm:$0xff]  ;;  %v917_v27 = vmul.f32 %v2153_v32, %v841_v7  ;;  %v1120_v11 = vadd.f32 %v1110_v28, %v1058_v23  ;;  %v833_v20 = vadd.f32 %v823_v53, %v763_v46  ;;  %v947_v45 = vmul.f32 %v1955_v42, %v2310_v29  ;;  %v740_v23 = vld [vmem:[%s1845_s23 + $0x40] sm:$0xff] }
  0xd3   : > { %v771_v36 = vld [vmem:[#allocation2 + $0x29] sm:$0xff]  ;;  %v979_v26 = vmul.f32 %v2176_v62, %v964_v59  ;;  %v1220_v44 = vadd.f32 %v1210_v16, %v1150_v55  ;;  %v578_v48 = vmax.f32 %v556_v10, 0.0  ;;  %v856_v15 = vmul.f32 %v2134_v54, %v841_v7 }
  0xd4   : > { %v786_v13 = vmul.f32 %v2122_v40, %v771_v36  ;;  %v927_v22 = vadd.f32 %v917_v27, %v865_v4  ;;  %v1182_v37 = vadd.f32 %v1172_v56, %v1120_v11  ;;  %v903_v6 = vadd.f32 %v893_v1, %v833_v20  ;;  %v2332_v25 = vld [vmem:[%s1845_s23 + $0x4c] sm:$0xff] }
  0xd5   : > { %v1290_v17 = vadd.f32 %v1280_v52, %v1220_v44  ;;  %v1017_v14 = vmul.f32 %v1964_v47, %v1002_v18  ;;  %v2527_v41 = vld [vmem:[#allocation5_spill] sm:$0xff]  ;;  %v1049_v49 = vmul.f32 %v2181_v63, %v1034_v34  ;;  %v1087_v52 = vmul.f32 %v1971_v51, %v2292_v2  ;;  %v704_v28 = vld [vmem:[#allocation2 + $0x30] sm:$0xff] }
  0xd6   : > { %v796_v5 = vadd.f32 %v786_v13, %v727_v21  ;;  %v989_v8 = vadd.f32 %v979_v26, %v927_v22  ;;  %v669_v16 = vmul.f32 %v2527_v41, %v578_v48  ;;  %v1252_v3 = vadd.f32 %v1242_v12, %v1182_v37  ;;  %v1196_v19 = vld [vmem:[%s1845_s23 + $0x4d] sm:$0xff]  ;;  %v1158_v4 = vld [vmem:[#allocation2 + $0x35] sm:$0xff] }
  0xd7   : > { %v1035_v39 = vld [vmem:[#allocation2 + $0x34] sm:$0xff]  ;;  %1668 = vmatmul.msk.f32.gmra.mxu2 %vm474_vm0, %v1290_v17  ;;  %v957_v53 = vadd.f32 %v947_v45, %v903_v6  ;;  %v1141_v36 = vmul.f32 %v1982_v58, %v2332_v25  ;;  %v1173_v61 = vmul.f32 %v2215_v50, %v1158_v4  ;;  %v1211_v12 = vmul.f32 %v1991_v0, %v1196_v19  ;;  %v933_v6 = vld [vmem:[%s1845_s23 + $0x4a] sm:$0xff] }
  0xd8   : > { %v866_v46 = vadd.f32 %v856_v15, %v796_v5  ;;  %682 = vst.msk [vmem:[#allocation2 + $0x40] sm:$0xff] %vm474_vm0, %v669_v16  ;;  %v1059_v7 = vadd.f32 %v1049_v49, %v989_v8  ;;  %v1111_v34 = vmul.f32 %v2206_v43, %v1035_v39  ;;  %v842_v59 = vld [vmem:[#allocation2 + $0x32] sm:$0xff]  ;;  %v718_v11 = vmul.f32 %v2092_v60, %v704_v28 }
  0xd9   : > { %1655 = vmatmul.msk.f32.gmra.mxu1 %vm474_vm0, %v1252_v3  ;;  %v965_v21 = vld [vmem:[#allocation2 + $0x33] sm:$0xff]  ;;  %v918_v51 = vmul.f32 %v2153_v32, %v842_v59  ;;  %v1027_v2 = vadd.f32 %v1017_v14, %v957_v53  ;;  %v754_v18 = vmul.f32 %v1927_v30, %v740_v23  ;;  %v824_v22 = vmul.f32 %v1938_v33, %v809_v57  ;;  %v1003_v49 = vld [vmem:[%s1845_s23 + $0x4b] sm:$0xff] }
  0xda   : > { %v772_v1 = vld [vmem:[#allocation2 + $0x31] sm:$0xff]  ;;  %v1121_v27 = vadd.f32 %v1111_v34, %v1059_v7  ;;  %v980_v55 = vmul.f32 %v2176_v62, %v965_v21  ;;  %v728_v0 = vadd.f32 %v2110_v24, %v718_v11  ;;  %v1050_v8 = vmul.f32 %v2181_v63, %v1035_v39 }
  0xdb   : > { %v1228_v56 = vld [vmem:[#allocation2 + $0x36] sm:$0xff]  ;;  %v1266_v10 = vld [vmem:[%s1845_s23 + $0x4e] sm:$0xff]  ;;  %v787_v26 = vmul.f32 %v2122_v40, %v772_v1  ;;  %v928_v13 = vadd.f32 %v918_v51, %v866_v46  ;;  %v1097_v58 = vadd.f32 %v1087_v52, %v1027_v2  ;;  %v764_v5 = vadd.f32 %v1932_v31, %v754_v18  ;;  %v2380_v51 = vld [vmem:[%s2520_s8 + $0x5] ss:$0 sm:$0xff] }
  0xdc   : > { %v1183_v44 = vadd.f32 %v1173_v61, %v1121_v27  ;;  %v1243_v20 = vmul.f32 %v2223_v35, %v1228_v56  ;;  %v1281_v37 = vmul.f32 %v2007_v9, %v1266_v10  ;;  %v857_v41 = vmul.f32 %v2134_v54, %v842_v59  ;;  %v705_v57 = vld [vmem:[#allocation2 + $0x38] sm:$0xff] }
  0xdd   : > { %v990_v45 = vadd.f32 %v980_v55, %v928_v13  ;;  %v1151_v48 = vadd.f32 %v1141_v36, %v1097_v58  ;;  %v797_v17 = vadd.f32 %v787_v26, %v728_v0  ;;  %v834_v16 = vadd.f32 %v824_v22, %v764_v5  ;;  %v1127_v1 = vld [vmem:[%s1845_s23 + $0x54] sm:$0xff] }
  0xde   : > { %v1253_v15 = vadd.f32 %v1243_v20, %v1183_v44  ;;  %v894_v3 = vmul.f32 %v1948_v38, %v2310_v29  ;;  %v948_v52 = vmul.f32 %v1955_v42, %v933_v6  ;;  %v1018_v7 = vmul.f32 %v1964_v47, %v1003_v49  ;;  %v1197_v2 = vld [vmem:[%s1845_s23 + $0x55] sm:$0xff]  ;;  %v2403_v6 = vld [vmem:[%s2520_s8 + $0x7] ss:$0 sm:$0xff] }
  0xdf   : > { %v1036_v30 = vld [vmem:[#allocation2 + $0x3c] sm:$0xff]  ;;  %v1221_v33 = vadd.f32 %v1211_v12, %v1151_v48  ;;  %v1060_v9 = vadd.f32 %v1050_v8, %v990_v45  ;;  %v867_v46 = vadd.f32 %v857_v41, %v797_v17  ;;  %v1037_v21 = vld [vmem:[#allocation2 + $0x44] sm:$0xff]  ;;  %v719_v61 = vmul.f32 %v2092_v60, %v705_v57 }
  0xe0   : > { %v1159_v14 = vld [vmem:[#allocation2 + $0x3d] sm:$0xff]  ;;  %v1112_v31 = vmul.f32 %v2206_v43, %v1036_v30  ;;  %v904_v36 = vadd.f32 %v894_v3, %v834_v16  ;;  %v1088_v47 = vmul.f32 %v2380_v51, %v2332_v25  ;;  %v1051_v10 = vmul.f32 %v2181_v63, %v1036_v30  ;;  %v1160_v11 = vld [vmem:[#allocation2 + $0x45] sm:$0xff] }
  0xe1   : > { %1656 = vmatmul.msk.f32.gmra.mxu1 %vm474_vm0, %v1253_v15  ;;  %v843_v19 = vld [vmem:[#allocation2 + $0x3a] sm:$0xff]  ;;  %v1291_v4 = vadd.f32 %v1281_v37, %v1221_v33  ;;  %v1174_v29 = vmul.f32 %v2215_v50, %v1159_v14  ;;  %v729_v13 = vadd.f32 %v2110_v24, %v719_v61  ;;  %v844_v58 = vld [vmem:[#allocation2 + $0x42] sm:$0xff]  ;;  %v1113_v44 = vmul.f32 %v2206_v43, %v1037_v21 }
  0xe2   : > { %v966_v23 = vld [vmem:[#allocation2 + $0x3b] sm:$0xff]  ;;  %v919_v53 = vmul.f32 %v2153_v32, %v843_v19  ;;  %v1122_v38 = vadd.f32 %v1112_v31, %v1060_v9  ;;  %v958_v26 = vadd.f32 %v948_v52, %v904_v36  ;;  %v2392_v25 = vld [vmem:[%s2520_s8 + $0x6] ss:$0 sm:$0xff]  ;;  %v858_v0 = vmul.f32 %v2134_v54, %v843_v19  ;;  %v741_v9 = vld [vmem:[%s1845_s23 + $0x48] sm:$0x3f] }
  0xe3   : > { %v1229_v39 = vld [vmem:[#allocation2 + $0x3e] sm:$0xff]  ;;  %1669 = vmatmul.msk.f32.gmra.mxu2 %vm474_vm0, %v1291_v4  ;;  %v981_v59 = vmul.f32 %v2176_v62, %v966_v23  ;;  %v1142_v20 = vmul.f32 %v2392_v25, %v1127_v1  ;;  %v1267_v37 = vld [vmem:[%s1845_s23 + $0x56] sm:$0xff]  ;;  %v1175_v17 = vmul.f32 %v2215_v50, %v1160_v11  ;;  %v1212_v30 = vmul.f32 %v2403_v6, %v1197_v2  ;;  %v1230_v16 = vld [vmem:[#allocation2 + $0x46] sm:$0xff] }
  0xe4   : > { %v773_v28 = vld [vmem:[#allocation2 + $0x39] sm:$0xff]  ;;  %v929_v34 = vadd.f32 %v919_v53, %v867_v46  ;;  %v1184_v56 = vadd.f32 %v1174_v29, %v1122_v38  ;;  %v1244_v42 = vmul.f32 %v2223_v35, %v1229_v39  ;;  %v774_v18 = vld [vmem:[#allocation2 + $0x41] sm:$0xff]  ;;  %v1028_v48 = vadd.f32 %v1018_v7, %v958_v26  ;;  %v810_v31 = vld [vmem:[%s1845_s23 + $0x49] sm:$0x3f] }
  0xe5   : > { %v788_v12 = vmul.f32 %v2122_v40, %v773_v28  ;;  %v706_v27 = vld [vmem:[#allocation2 + $0x40] sm:$0xff]  ;;  %v920_v14 = vmul.f32 %v2153_v32, %v844_v58  ;;  %v789_v33 = vmul.f32 %v2122_v40, %v774_v18  ;;  %v2414_v19 = vld [vmem:[%s2520_s8 + $0x8] ss:$0 sm:$0xff]  ;;  %v859_v40 = vmul.f32 %v2134_v54, %v844_v58  ;;  %v906_v39 = vld [vmem:[#allocation2 + $0x4a] sm:$0xff] }
  0xe6   : > { %v991_v55 = vadd.f32 %v981_v59, %v929_v34  ;;  %v1254_v22 = vadd.f32 %v1244_v42, %v1184_v56  ;;  %v967_v15 = vld [vmem:[#allocation2 + $0x43] sm:$0xff]  ;;  %v720_v8 = vmul.f32 %v2092_v60, %v706_v27  ;;  %v1098_v3 = vadd.f32 %v1088_v47, %v1028_v48  ;;  %v1038_v52 = vld [vmem:[#allocation2 + $0x4c] sm:$0xff]  ;;  %v1731_v34 = vld [vmem:[%s2520_s8] ss:$0 sm:$0xff] }
  0xe7   : > { %v798_v5 = vadd.f32 %v788_v12, %v729_v13  ;;  %v1282_v23 = vmul.f32 %v2414_v19, %v1267_v37  ;;  %v982_v57 = vmul.f32 %v2176_v62, %v967_v15  ;;  %v880_v28 = vld [vmem:[%s1845_s23 + $0x4a] sm:$0x3f]  ;;  %v1245_v38 = vmul.f32 %v2223_v35, %v1230_v16  ;;  %v1732_v54 = vld [vmem:[%s2520_s8 + $0x1] ss:$0 sm:$0xff]  ;;  %v934_v47 = vld [vmem:[%s1845_s23 + $0x52] sm:$0x3f] }
  0xe8   : > { %v1061_v45 = vadd.f32 %v1051_v10, %v991_v55  ;;  %v730_v49 = vadd.f32 %v2110_v24, %v720_v8  ;;  %v1152_v46 = vadd.f32 %v1142_v20, %v1098_v3  ;;  %v1052_v29 = vmul.f32 %v2181_v63, %v1037_v21  ;;  %v968_v7 = vld [vmem:[#allocation2 + $0x4b] sm:$0xff]  ;;  %v1733_v27 = vld [vmem:[%s2521_s9] ss:$0 sm:$0xff]  ;;  %v1734_v10 = vld [vmem:[%s2520_s8 + $0x2] ss:$0 sm:$0xff] }
  0xe9   : > { %1657 = vmatmul.msk.f32.gmra.mxu1 %vm474_vm0, %v1254_v22  ;;  %v868_v60 = vadd.f32 %v858_v0, %v798_v5  ;;  %v755_v59 = vmul.f32 %v1731_v34, %v741_v9  ;;  %v825_v36 = vmul.f32 %v1732_v54, %v810_v31  ;;  %v921_v42 = vmul.f32 %v2153_v32, %v906_v39  ;;  %v1161_v12 = vld [vmem:[#allocation2 + $0x4d] sm:$0xff]  ;;  %v1735_v20 = vld [vmem:[%s2520_s8 + $0x3] ss:$0 sm:$0xff]  ;;  %v1162_v8 = vld [vmem:[#allocation2 + $0x55] sm:$0xff] }
  0xea   : > { %v1123_v41 = vadd.f32 %v1113_v44, %v1061_v45  ;;  %v799_v24 = vadd.f32 %v789_v33, %v730_v49  ;;  %v1222_v1 = vadd.f32 %v1212_v30, %v1152_v46  ;;  %v1114_v21 = vmul.f32 %v2206_v43, %v1038_v52  ;;  %v1004_v18 = vld [vmem:[%s1845_s23 + $0x53] sm:$0x3f]  ;;  %v1736_v30 = vld [vmem:[%s2520_s8 + $0x4] ss:$0 sm:$0xff]  ;;  %v1128_v3 = vld [vmem:[%s1845_s23 + $0x5c] sm:$0x3f] }
  0xeb   : > { %v930_v53 = vadd.f32 %v920_v14, %v868_v60  ;;  %v765_v55 = vadd.f32 %v1733_v27, %v755_v59  ;;  %v895_v11 = vmul.f32 %v1734_v10, %v880_v28  ;;  %v983_v32 = vmul.f32 %v2176_v62, %v968_v7  ;;  %v1100_v22 = vld [vmem:[#allocation2 + $0x54] sm:$0xff] }
  0xec   : > { %v1185_v4 = vadd.f32 %v1175_v17, %v1123_v41  ;;  %v869_v56 = vadd.f32 %v859_v40, %v799_v24  ;;  %v1292_v26 = vadd.f32 %v1282_v23, %v1222_v1  ;;  %v949_v0 = vmul.f32 %v1735_v20, %v934_v47  ;;  %v1231_v37 = vld [vmem:[#allocation2 + $0x4e] sm:$0xff]  ;;  %v1232_v49 = vld [vmem:[#allocation2 + $0x56] sm:$0xff]  ;;  %v1726_v1 = vld [vmem:[%s2519_s7] ss:$0 sm:$0xff] }
  0xed   : > { %v992_v61 = vadd.f32 %v982_v57, %v930_v53  ;;  %v835_v44 = vadd.f32 %v825_v36, %v765_v55  ;;  %v1176_v48 = vmul.f32 %v2215_v50, %v1161_v12  ;;  %v1053_v62 = vmul.f32 %v2181_v63, %v1038_v52  ;;  %v1074_v15 = vld [vmem:[%s1845_s23 + $0x54] sm:$0x3f]  ;;  %v1198_v57 = vld [vmem:[%s1845_s23 + $0x5d] sm:$0x3f] }
  0xee   : > { %v1255_v2 = vadd.f32 %v1245_v38, %v1185_v4  ;;  %v931_v58 = vadd.f32 %v921_v42, %v869_v56  ;;  %1670 = vmatmul.msk.f32.gmra.mxu2 %vm474_vm0, %v1292_v26  ;;  %v1019_v14 = vmul.f32 %v1736_v30, %v1004_v18  ;;  %v1115_v16 = vmul.f32 %v2206_v43, %v1100_v22  ;;  %v1268_v52 = vld [vmem:[%s1845_s23 + $0x5e] sm:$0x3f]  ;;  %s1680_s23 = sshll.u32 %s2529_s26, 5 }
  0xef   : > { %v1062_v13 = vadd.f32 %v1052_v29, %v992_v61  ;;  %v905_v17 = vadd.f32 %v895_v11, %v835_v44  ;;  %v1246_v60 = vmul.f32 %v2223_v35, %v1231_v37  ;;  %v1089_v63 = vmul.f32 %v2380_v51, %v1074_v15  ;;  %s2472_s28 = scalar_lea.vmem %s2525_s13, %s1680_s23  ;;  %s2485_s15 = scalar_lea.vmem %s2524_s12, %s1680_s23 }
  0xf0   : > { %v993_v5 = vadd.f32 %v983_v32, %v931_v58  ;;  %v1177_v23 = vmul.f32 %v2215_v50, %v1162_v8  ;;  %v1143_v4 = vmul.f32 %v2392_v25, %v1128_v3  ;;  %v1247_v53 = vmul.f32 %v2223_v35, %v1232_v49  ;;  %v1725_v35 = vld [vmem:[%s2523_s11] ss:$0 sm:$0xff]  ;;  %v1453_v25 = vpop.f32.mrf.mxu2 }
  0xf1   : > { %1658 = vmatmul.msk.f32.gmra.mxu1 %vm474_vm0, %v1255_v2  ;;  %v1124_v45 = vadd.f32 %v1114_v21, %v1062_v13  ;;  %v959_v9 = vadd.f32 %v949_v0, %v905_v17  ;;  %v1213_v24 = vmul.f32 %v2403_v6, %v1198_v57  ;;  %v1283_v38 = vmul.f32 %v2414_v19, %v1268_v52 }
  0xf2   : > { %v1063_v41 = vadd.f32 %v1053_v62, %v993_v5  ;;  %v1454_v7 = vadd.f32 %v1725_v35, %v1453_v25 }
  0xf3   : > { %v1186_v33 = vadd.f32 %v1176_v48, %v1124_v45  ;;  %v1029_v39 = vadd.f32 %v1019_v14, %v959_v9 }
  0xf4   : > { %v1125_v31 = vadd.f32 %v1115_v16, %v1063_v41  ;;  %v1483_v34 = vmax.f32 %v1454_v7, 0.0 }
  0xf5   : > { %v1256_v40 = vadd.f32 %v1246_v60, %v1186_v33  ;;  %v1099_v43 = vadd.f32 %v1089_v63, %v1029_v39 }
  0xf6   : > { %v1187_v46 = vadd.f32 %v1177_v23, %v1125_v31  ;;  %1493 = vst.msk [vmem:[#allocation4] sm:$0xff] %vm474_vm0, %v1483_v34 }
  0xf7   : > { %v1153_v51 = vadd.f32 %v1143_v4, %v1099_v43 }
  0xf8   : > { %v1257_v28 = vadd.f32 %v1247_v53, %v1187_v46  ;;  %v1456_v19 = vpop.f32.mrf.mxu2 }
  0xf9   : > { %1659 = vmatmul.msk.f32.gmra.mxu1 %vm474_vm0, %v1256_v40  ;;  %v1223_v50 = vadd.f32 %v1213_v24, %v1153_v51 }
  0xfb   : > { %v1293_v29 = vadd.f32 %v1283_v38, %v1223_v50 }
  0xfd   : > { %1671 = vmatmul.msk.f32.vlgmr.msra.gmra.mxu3 %vm474_vm0, %v1293_v29  ;;  %v1505_v6 = vld [vmem:[#allocation4] sm:$0xff] }
  0xfe   : > { %1506 = vst.msk [vmem:[%s2472_s28] sm:$0xff] %vm474_vm0, %v1505_v6 }
 0x101   : > { %1660 = vmatmul.msk.f32.gmra.mxu1 %vm474_vm0, %v1257_v28 }
 0x11c   : > { %v1459_v59 = vpop.f32.mrf.mxu2 }
 0x11d   : > { %v1460_v54 = vadd.f32 %v1725_v35, %v1459_v59 }
 0x11f   : > { %v1485_v36 = vmax.f32 %v1460_v54, 0.0 }
 0x121   : > { %1495 = vst.msk [vmem:[#allocation4 + $0x10] sm:$0xff] %vm474_vm0, %v1485_v36 }
 0x12b   : > { %v1462_v61 = vpop.f32.mrf.mxu2 }
 0x12c   : > { %v1463_v56 = vadd.f32 %v1725_v35, %v1462_v61 }
 0x12e   : > { %v1486_v47 = vmax.f32 %v1463_v56, 0.0 }
 0x130   : > { %1496 = vst.msk [vmem:[#allocation4 + $0x18] sm:$0xff] %vm474_vm0, %v1486_v47 }
 0x134   : > { %v1465_v12 = vpop.f32.mrf.mxu2 }
 0x137   : > { %v1510_v55 = vld [vmem:[#allocation4 + $0x14] sm:$0xff] }
 0x138   : > { %1673 = vst.msk [vmem:[%s2472_s28 + $0x8] sm:$0xff] %vm474_vm0, %v1510_v55 }
 0x13c   : > { %v1348_v42 = vpop.f32.mrf.mxu1 }
 0x13d   : > { %v1349_v2 = vadd.f32 %v1726_v1, %v1348_v42 }
 0x13f   : > { %v1378_v21 = vmax.f32 %v1349_v2, 0.0 }
 0x141   : > { %1388 = vst.msk [vmem:[#allocation3] sm:$0xff] %vm474_vm0, %v1378_v21 }
 0x145   : > { %v1351_v27 = vpop.f32.mrf.mxu1  ;;  %v1468_v26 = vpop.f32.mrf.mxu2 }
 0x146   : > { %v1469_v13 = vadd.f32 %v1725_v35, %v1468_v26 }
 0x148   : > { %v1503_v10 = vld [vmem:[#allocation3] sm:$0xff]  ;;  %v1375_v11 = vpop.f32.mrf.mxu3  ;;  %v1488_v32 = vmax.f32 %v1469_v13, 0.0 }
 0x149   : > { %1504 = vst.msk [vmem:[%s2485_s15] sm:$0xff] %vm474_vm0, %v1503_v10 }
 0x14a   : > { %1498 = vst.msk [vmem:[#allocation4 + $0x28] sm:$0xff] %vm474_vm0, %v1488_v32 }
 0x14e   : > { %v1354_v58 = vpop.f32.mrf.mxu1 }
 0x14f   : > { %v1355_v18 = vadd.f32 %v1726_v1, %v1354_v58 }
 0x151   : > { %v1380_v22 = vmax.f32 %v1355_v18, 0.0  ;;  %v1516_v0 = vld [vmem:[#allocation4 + $0x28] sm:$0xff] }
 0x152   : > { %1675 = vst.msk [vmem:[%s2472_s28 + $0x10] sm:$0xff] %vm474_vm0, %v1516_v0 }
 0x153   : > { %1390 = vst.msk [vmem:[#allocation3 + $0x10] sm:$0xff] %vm474_vm0, %v1380_v22 }
 0x156   : > { %v1357_v44 = vpop.f32.mrf.mxu1 }
 0x157   : > { %v1358_v20 = vadd.f32 %v1726_v1, %v1357_v44 }
 0x159   : > { %v1381_v45 = vmax.f32 %v1358_v20, 0.0 }
 0x15a   : > { %v1471_v48 = vpop.f32.mrf.mxu2 }
 0x15b   : > { %1391 = vst.msk [vmem:[#allocation3 + $0x18] sm:$0xff] %vm474_vm0, %v1381_v45 }
 0x15e   : > { %v1360_v37 = vpop.f32.mrf.mxu1 }
 0x162   : > { %v1507_v5 = vld [vmem:[#allocation3 + $0x14] sm:$0xff] }
 0x163   : > { %1672 = vst.msk [vmem:[%s2485_s15 + $0x8] sm:$0xff] %vm474_vm0, %v1507_v5 }
 0x166   : > { %v1363_v62 = vpop.f32.mrf.mxu1  ;;  %v1474_v8 = vpop.f32.mrf.mxu2 }
 0x167   : > { %v1364_v15 = vadd.f32 %v1726_v1, %v1363_v62  ;;  %v1475_v17 = vadd.f32 %v1725_v35, %v1474_v8 }
 0x169   : > { %v1383_v30 = vmax.f32 %v1364_v15, 0.0  ;;  %v1490_v14 = vmax.f32 %v1475_v17, 0.0 }
 0x16b   : > { %1393 = vst.msk [vmem:[#allocation3 + $0x28] sm:$0xff] %vm474_vm0, %v1383_v30 }
 0x16c   : > { %1500 = vst.msk [vmem:[#allocation4 + $0x38] sm:$0xff] %vm474_vm0, %v1490_v14 }
 0x16e   : > { %v1366_v33 = vpop.f32.mrf.mxu1 }
 0x171   : > { %v1477_v16 = vpop.f32.mrf.mxu2 }
 0x172   : > { %v1513_v41 = vld [vmem:[#allocation3 + $0x28] sm:$0xff]  ;;  %v1478_v60 = vadd.f32 %v1725_v35, %v1477_v16 }
 0x173   : > { %1674 = vst.msk [vmem:[%s2485_s15 + $0x10] sm:$0xff] %vm474_vm0, %v1513_v41 }
 0x174   : > { %v1491_v9 = vmax.f32 %v1478_v60, 0.0 }
 0x176   : > { %v1369_v3 = vpop.f32.mrf.mxu1  ;;  %1501 = vst.msk [vmem:[#allocation4 + $0x40] sm:$0xff] %vm474_vm0, %v1491_v9 }
 0x177   : > { %v1370_v49 = vadd.f32 %v1726_v1, %v1369_v3 }
 0x179   : > { %v1385_v63 = vmax.f32 %v1370_v49, 0.0 }
 0x17b   : > { %1395 = vst.msk [vmem:[#allocation3 + $0x38] sm:$0xff] %vm474_vm0, %v1385_v63 }
 0x17d   : > { %v1522_v57 = vld [vmem:[#allocation4 + $0x3c] sm:$0xff] }
 0x17e   : > { %v1372_v31 = vpop.f32.mrf.mxu1  ;;  %1677 = vst.msk [vmem:[%s2472_s28 + $0x18] sm:$0xff] %vm474_vm0, %v1522_v57 }
 0x17f   : > { %v1373_v23 = vadd.f32 %v1726_v1, %v1372_v31 }
 0x180   : > { %v1480_v39 = vpop.f32.mrf.mxu3 }
 0x181   : > { %v1386_v40 = vmax.f32 %v1373_v23, 0.0 }
 0x183   : > { %1396 = vst.msk [vmem:[#allocation3 + $0x40] sm:$0xff] %vm474_vm0, %v1386_v40 }
 0x18a   : > { %v1519_v4 = vld [vmem:[#allocation3 + $0x3c] sm:$0xff] }
 0x18b   : > { %1676 = vst.msk [vmem:[%s2485_s15 + $0x18] sm:$0xff] %vm474_vm0, %v1519_v4 }
 0x18c PF: > { %s24_s25 = sadd.s32 1, %s1743_s25  }
 0x18d   : > { %p21_p4 = scmp.ge.s32.totalorder %s24_s25, 4  }
 0x18f   :  { %23 = sbr.rel (!%p21_p4) target bundleno = 1 (0x1), region = 132 }

// kernel: shufflenet_v2_forward.20
= control target key start
LH: loop header
LB: loop body
LE: loop exit
PB: predicated region body
PF: predicated region fallthrough
CT: control target
= control target key end

     0   :  { %s773_s27 = smov 0   ;;  %s882_s0 = inlined_call_operand.vmem [shape: f32[2,36,24], index: 0, kind: input, shape index: {}]   ;;  %s883_s1 = inlined_call_operand.vmem [shape: f32[36,1], index: 1, kind: input, shape index: {}]   ;;  %s884_s2 = inlined_call_operand.vmem [shape: f32[24,24], index: 2, kind: input, shape index: {}]   ;;  %s885_s3 = inlined_call_operand.vmem [shape: f32[1,24], index: 3, kind: input, shape index: {}, may-alias: {3,5,7}]   ;;  %s886_s4 = inlined_call_operand.vmem [shape: f32[9,1,24], index: 4, kind: input, shape index: {}]   ;;  %s887_s5 = inlined_call_operand.vmem [shape: f32[1,24], index: 5, kind: input, shape index: {}, may-alias: {3,5,7}]   ;;  %s888_s6 = inlined_call_operand.vmem [shape: f32[24,24], index: 6, kind: input, shape index: {}]   ;;  %s889_s7 = inlined_call_operand.vmem [shape: f32[1,24], index: 7, kind: input, shape index: {}, may-alias: {3,5,7}]   ;;  %s890_s8 = inlined_call_operand.vmem [shape: f32[2,4,4,24], index: 8, kind: output, shape index: {}]  }
   0x1 LB: > { %s655_s28 = sadd.s32 4294967295, %s725_s27   ;;  %p659_p0 = scmp.ge.s32.totalorder %s725_s27, 1  ;;  %s725_s27 = sphi %s773_s27, %s18_s27  }
   0x2   : > { %p262_p1 = scmp.lt.s32.totalorder %s725_s27, 3 }
   0x4   : > { %p263_p2 = pnand %p659_p0, %p262_p1 }
   0x5   : > { %p296_p3 = scmp.lt.s32.totalorder (!%p263_p2), %s655_s28, 1 }
   0x6   : > { %266 = sbr.rel (%p263_p2) target bundleno = 340 (0x154), region = 52 }
   0xb   : > { %v313_v0 = vld [vmem:[%s884_s2 + $0x10] sm:$0xff]  ;;  %v312_v1 = vld [vmem:[%s884_s2 + $0x8] sm:$0xff]  ;;  %v311_v2 = vld [vmem:[%s884_s2] sm:$0xff]  ;;  %s892_s28 = smov (!%p296_p3, %s655_s28), 1  ;;  %vm318_vm0 = vcmask 195584   ;;  %v727_v3 = vmov 0  }
   0xc   : > { %347 = vmatpush.msra.mxu0 %v313_v0  ;;  %685 = vmatpush.msra.mxu1 %v313_v0  ;;  %v374_v4 = vld [vmem:[%s883_s1 + $0x18] sm:$0xff]  ;;  %s694_s15 = smul.u32 40, %s892_s28  ;;  %v372_v5 = vld [vmem:[%s883_s1 + $0x8] sm:$0xff]  ;;  %v375_v6 = vld [vmem:[%s883_s1 + $0x20] sm:$0xf]  ;;  %vm410_vm1 = vcmask 191488  }
   0xd   : > { %686 = vmatpush.msra.mxu2 %v313_v0  ;;  %705 = vset.pattern.permute.xlu1 %v727_v3  ;;  %v371_v10 = vld [vmem:[%s883_s1] sm:$0xff]  ;;  %v373_v11 = vld [vmem:[%s883_s1 + $0x10] sm:$0xff]  ;;  %v541_v15 = vld [vmem:[%s888_s6 + $0x8] sm:$0xff]  ;;  %s684_s17 = sshll.u32 %s892_s28, 4  ;;  %vm587_vm2 = vcmask 193536  }
   0xe   : > { %348 = vmatpush.msra.mxu0 %v312_v1  ;;  %687 = vmatpush.msra.mxu1 %v312_v1  ;;  %s300_s22 = scalar_lea.vmem %s882_s0, %s694_s15  ;;  %v542_v14 = vld [vmem:[%s888_s6 + $0x10] sm:$0xff]  ;;  %v540_v18 = vld [vmem:[%s888_s6] sm:$0xff]  ;;  %s305_s20 = scalar_lea.vmem %s890_s8, %s684_s17 }
   0xf   : > { %688 = vmatpush.msra.mxu2 %v312_v1  ;;  %704 = vset.pattern.permute.xlu0 %v727_v3  ;;  %v306_v7 = vld [vmem:[%s300_s22] sm:$0xff]  ;;  %v308_v8 = vld [vmem:[%s300_s22 + $0x10] sm:$0xff]  ;;  %v309_v9 = vld [vmem:[%s300_s22 + $0x18] sm:$0xff] }
  0x10   : > { %349 = vmatpush.msra.mxu0 %v311_v2  ;;  %689 = vmatpush.msra.mxu1 %v311_v2  ;;  %v307_v12 = vld [vmem:[%s300_s22 + $0x8] sm:$0xff]  ;;  %v310_v13 = vld [vmem:[%s300_s22 + $0x20] sm:$0xf] }
  0x11   : > { %690 = vmatpush.msra.mxu2 %v311_v2  ;;  %393 = vperm.xlu1 %705, %v374_v4   ;;  %v707_v19 = vld [vmem:[%s885_s3] ss:$0 sm:$0xff]  ;;  %v710_v40 = vld [vmem:[%s886_s4 + $0x1] ss:$0 sm:$0xff]  ;;  %v711_v53 = vld [vmem:[%s886_s4 + $0x2] ss:$0 sm:$0xff] }
  0x12   : > { %383 = vperm.xlu0 %704, %v372_v5   ;;  %706 = vset.pattern.permute.xlu2 %v727_v3  ;;  %v709_v36 = vld [vmem:[%s886_s4] ss:$0 sm:$0xff]  ;;  %v712_v0 = vld [vmem:[%s886_s4 + $0x3] ss:$0 sm:$0xff] }
  0x13   : > { %663 = vmatmul.msk.f32.vlgmr.msra.gmra.mxu0 %vm318_vm0, %v306_v7  ;;  %665 = vmatmul.msk.f32.vlgmr.msra.gmra.mxu1 %vm318_vm0, %v308_v8  ;;  %v708_v39 = vld [vmem:[%s887_s5] ss:$0 sm:$0xff] }
  0x14   : > { %666 = vmatmul.msk.f32.vlgmr.msra.gmra.mxu2 %vm318_vm0, %v309_v9  ;;  %398 = vperm.xlu2 %706, %v375_v6  }
  0x15   : > { %569 = vmatpush.msrb.mxu1 %v542_v14  ;;  %691 = vmatpush.msra.mxu3 %v542_v14 }
  0x17   : > { %570 = vmatpush.msrb.mxu1 %v541_v15  ;;  %692 = vmatpush.msra.mxu3 %v541_v15  ;;  %v713_v15 = vld [vmem:[%s886_s4 + $0x4] ss:$0 sm:$0xff] }
  0x19   : > { %378 = vperm.xlu1 %705, %v371_v10   ;;  %571 = vmatpush.msrb.mxu1 %v540_v18 }
  0x1a   : > { %388 = vperm.xlu0 %704, %v373_v11   ;;  %693 = vmatpush.msra.mxu3 %v540_v18 }
  0x1b   : > { %664 = vmatmul.msk.f32.gmra.mxu0 %vm318_vm0, %v307_v12 }
  0x1c   : > { %667 = vmatmul.msk.f32.gmra.mxu2 %vm318_vm0, %v310_v13 }
  0x6e   : > { %v399_v47 = vpop.permute.xlu2 %398 }
  0x83   : > { %v394_v16 = vpop.permute.xlu1 %393 }
  0x84   : > { %v384_v17 = vpop.permute.xlu0 %383 }
  0x8b   : > { %v379_v25 = vpop.permute.xlu1 %378 }
  0x8c   : > { %v389_v24 = vpop.permute.xlu0 %388 }
  0x90   : > { %v351_v20 = vpop.f32.mrf.mxu0  ;;  %v357_v21 = vpop.f32.mrf.mxu1 }
  0x91   : > { %v352_v22 = vadd.f32 %v707_v19, %v351_v20  ;;  %v358_v23 = vadd.f32 %v707_v19, %v357_v21 }
  0x93   : > { %v366_v26 = vmax.f32 %v352_v22, 0.0  ;;  %v368_v27 = vmax.f32 %v358_v23, 0.0 }
  0x95   : > { %v403_v28 = vmul.f32 %v389_v24, %v368_v27  ;;  %v401_v29 = vmul.f32 %v379_v25, %v366_v26  ;;  %v715_v26 = vld [vmem:[%s886_s4 + $0x6] ss:$0 sm:$0xff] }
  0x97   : > { %408 = vst.msk [vmem:[#allocation2 + $0x10] sm:$0xff] %vm318_vm0, %v403_v28  ;;  %v360_v30 = vpop.f32.mrf.mxu2 }
  0x98   : > { %406 = vst.msk [vmem:[#allocation2] sm:$0xff] %vm318_vm0, %v401_v29  ;;  %v361_v31 = vadd.f32 %v707_v19, %v360_v30  ;;  %v354_v32 = vpop.f32.mrf.mxu0 }
  0x99   : > { %v355_v33 = vadd.f32 %v707_v19, %v354_v32 }
  0x9a   : > { %v369_v34 = vmax.f32 %v361_v31, 0.0 }
  0x9b   : > { %v367_v35 = vmax.f32 %v355_v33, 0.0 }
  0x9c   : > { %v404_v37 = vmul.f32 %v394_v16, %v369_v34  ;;  %v716_v34 = vld [vmem:[%s886_s4 + $0x7] ss:$0 sm:$0xff] }
  0x9d   : > { %v402_v38 = vmul.f32 %v384_v17, %v367_v35  ;;  %v714_v17 = vld [vmem:[%s886_s4 + $0x5] ss:$0 sm:$0xff] }
  0x9e   : > { %409 = vst.msk [vmem:[#allocation2 + $0x18] sm:$0xff] %vm318_vm0, %v404_v37  ;;  %v419_v41 = vld [vmem:[#allocation2 + $0x10] sm:$0x3f] }
  0x9f   : > { %407 = vst.msk [vmem:[#allocation2 + $0x8] sm:$0xff] %vm318_vm0, %v402_v38  ;;  %v363_v42 = vpop.f32.mrf.mxu2  ;;  %v426_v43 = vmul.f32 %v709_v36, %v419_v41  ;;  %v432_v44 = vld [vmem:[#allocation2 + $0x11] sm:$0x3f]  ;;  %v417_v46 = vld [vmem:[#allocation2] sm:$0xff] }
  0xa0   : > { %v364_v45 = vadd.f32 %v707_v19, %v363_v42  ;;  %v440_v50 = vmul.f32 %v710_v40, %v432_v44  ;;  %v424_v51 = vmul.f32 %v709_v36, %v417_v46  ;;  %v446_v54 = vld [vmem:[#allocation2 + $0x12] sm:$0x3f]  ;;  %v717_v46 = vld [vmem:[%s886_s4 + $0x8] ss:$0 sm:$0xff] }
  0xa1   : > { %v429_v49 = vadd.f32 %v708_v39, %v426_v43  ;;  %v454_v2 = vmul.f32 %v711_v53, %v446_v54  ;;  %v486_v23 = vld [vmem:[#allocation2 + $0x10] sm:$0xff] }
  0xa2   : > { %v370_v48 = vmax.f32 %v364_v45, 0.0  ;;  %v427_v60 = vadd.f32 %v708_v39, %v424_v51  ;;  %v494_v35 = vmul.f32 %v714_v17, %v486_v23 }
  0xa3   : > { %v443_v58 = vadd.f32 %v440_v50, %v429_v49 }
  0xa4   : > { %v405_v52 = vmul.f32 %v399_v47, %v370_v48 }
  0xa5   : > { %v460_v7 = vld [vmem:[#allocation2 + $0x16] sm:$0x3f]  ;;  %v457_v11 = vadd.f32 %v454_v2, %v443_v58 }
  0xa6   : > { %411 = vst.msk [vmem:[#allocation2 + $0x20] sm:$0xf] %vm410_vm1, %v405_v52  ;;  %v418_v55 = vld [vmem:[#allocation2 + $0x8] sm:$0xff]  ;;  %v468_v16 = vmul.f32 %v712_v0, %v460_v7  ;;  %v474_v27 = vld [vmem:[#allocation2 + $0x17] sm:$0x3f] }
  0xa7   : > { %v430_v56 = vld [vmem:[#allocation2 + $0x1] sm:$0xff]  ;;  %v431_v57 = vld [vmem:[#allocation2 + $0x9] sm:$0xff]  ;;  %v425_v59 = vmul.f32 %v709_v36, %v418_v55  ;;  %v493_v24 = vmul.f32 %v714_v17, %v418_v55  ;;  %v500_v32 = vld [vmem:[#allocation2 + $0x14] sm:$0xff]  ;;  %v482_v41 = vmul.f32 %v713_v15, %v474_v27 }
  0xa8   : > { %v438_v61 = vmul.f32 %v710_v40, %v430_v56  ;;  %v444_v62 = vld [vmem:[#allocation2 + $0x2] sm:$0xff]  ;;  %v445_v63 = vld [vmem:[#allocation2 + $0xa] sm:$0xff]  ;;  %v439_v4 = vmul.f32 %v710_v40, %v431_v57  ;;  %v471_v33 = vadd.f32 %v468_v16, %v457_v11  ;;  %v487_v36 = vld [vmem:[#allocation2 + $0x18] sm:$0x3f]  ;;  %v508_v43 = vmul.f32 %v715_v26, %v500_v32 }
  0xa9   : > { %v458_v1 = vld [vmem:[#allocation2 + $0x6] sm:$0xff]  ;;  %v428_v3 = vadd.f32 %v708_v39, %v425_v59  ;;  %v452_v6 = vmul.f32 %v711_v53, %v444_v62  ;;  %v453_v8 = vmul.f32 %v711_v53, %v445_v63  ;;  %v459_v9 = vld [vmem:[#allocation2 + $0xe] sm:$0xff]  ;;  %v495_v49 = vmul.f32 %v714_v17, %v487_v36  ;;  %v527_v51 = vld [vmem:[#allocation2 + $0x16] sm:$0xff] }
  0xaa   : > { %v441_v5 = vadd.f32 %v438_v61, %v427_v60  ;;  %v472_v10 = vld [vmem:[#allocation2 + $0x7] sm:$0xff]  ;;  %v466_v14 = vmul.f32 %v712_v0, %v458_v1  ;;  %v473_v18 = vld [vmem:[#allocation2 + $0xf] sm:$0xff]  ;;  %v467_v20 = vmul.f32 %v712_v0, %v459_v9  ;;  %v485_v48 = vadd.f32 %v482_v41, %v471_v33 }
  0xab   : > { %v442_v12 = vadd.f32 %v439_v4, %v428_v3  ;;  %v480_v22 = vmul.f32 %v713_v15, %v472_v10  ;;  %v499_v25 = vld [vmem:[#allocation2 + $0xc] sm:$0xff]  ;;  %v481_v31 = vmul.f32 %v713_v15, %v473_v18  ;;  %v514_v40 = vld [vmem:[#allocation2 + $0x15] sm:$0xff]  ;;  %v534_v53 = vmul.f32 %v717_v46, %v459_v9  ;;  %v718_v4 = vld [vmem:[%s889_s7] ss:$0 sm:$0xff] }
  0xac   : > { %v455_v13 = vadd.f32 %v452_v6, %v441_v5  ;;  %v513_v30 = vld [vmem:[#allocation2 + $0xd] sm:$0xff]  ;;  %v507_v38 = vmul.f32 %v715_v26, %v499_v25  ;;  %v522_v50 = vmul.f32 %v716_v34, %v514_v40  ;;  %v535_v58 = vmul.f32 %v717_v46, %v527_v51 }
  0xad   : > { %v456_v19 = vadd.f32 %v453_v8, %v442_v12  ;;  %v521_v42 = vmul.f32 %v716_v34, %v513_v30  ;;  %v501_v44 = vld [vmem:[#allocation2 + $0x1c] sm:$0x3f]  ;;  %v498_v59 = vadd.f32 %v495_v49, %v485_v48 }
  0xae   : > { %v469_v21 = vadd.f32 %v466_v14, %v455_v13  ;;  %v509_v55 = vmul.f32 %v715_v26, %v501_v44  ;;  %v515_v60 = vld [vmem:[#allocation2 + $0x1d] sm:$0x3f] }
  0xaf   : > { %v470_v28 = vadd.f32 %v467_v20, %v456_v19  ;;  %v523_v63 = vmul.f32 %v716_v34, %v515_v60  ;;  %v528_v0 = vld [vmem:[#allocation2 + $0x1e] sm:$0x3f] }
  0xb0   : > { %v483_v29 = vadd.f32 %v480_v22, %v469_v21  ;;  %v512_v62 = vadd.f32 %v509_v55, %v498_v59  ;;  %v536_v2 = vmul.f32 %v717_v46, %v528_v0 }
  0xb1   : > { %v484_v39 = vadd.f32 %v481_v31, %v470_v28 }
  0xb2   : > { %v496_v37 = vadd.f32 %v493_v24, %v483_v29  ;;  %v526_v1 = vadd.f32 %v523_v63, %v512_v62 }
  0xb3   : > { %v497_v47 = vadd.f32 %v494_v35, %v484_v39 }
  0xb4   : > { %v510_v45 = vadd.f32 %v507_v38, %v496_v37  ;;  %v539_v3 = vadd.f32 %v536_v2, %v526_v1 }
  0xb5   : > { %v511_v54 = vadd.f32 %v508_v43, %v497_v47 }
  0xb6   : > { %v524_v52 = vadd.f32 %v521_v42, %v510_v45 }
  0xb7   : > { %v525_v57 = vadd.f32 %v522_v50, %v511_v54 }
  0xb8   : > { %v537_v56 = vadd.f32 %v534_v53, %v524_v52 }
  0xb9   : > { %v538_v61 = vadd.f32 %v535_v58, %v525_v57 }
  0xba   : > { %676 = vmatmul.msk.f32.vlgmr.msrb.gmra.mxu1 %vm318_vm0, %v537_v56 }
  0xbb   : > { %677 = vmatmul.msk.f32.vlgmr.msra.gmra.mxu3 %vm318_vm0, %v538_v61 }
  0xc3   : > { %678 = vmatmul.msk.f32.gmra.mxu3 %vm318_vm0, %v539_v3 }
 0x137   : > { %v573_v5 = vpop.f32.mrf.mxu1 }
 0x138   : > { %v574_v6 = vadd.f32 %v718_v4, %v573_v5 }
 0x13a   : > { %v582_v7 = vmax.f32 %v574_v6, 0.0 }
 0x13c   : > { %585 = vst.msk [vmem:[#allocation3] sm:$0xff] %vm318_vm0, %v582_v7 }
 0x13e   : > { %v576_v8 = vpop.f32.mrf.mxu3 }
 0x13f   : > { %v577_v9 = vadd.f32 %v718_v4, %v576_v8 }
 0x141   : > { %v583_v10 = vmax.f32 %v577_v9, 0.0 }
 0x143   : > { %v589_v11 = vld [vmem:[#allocation3] sm:$0xf]  ;;  %586 = vst.msk [vmem:[#allocation3 + $0x8] sm:$0xff] %vm318_vm0, %v583_v10 }
 0x144   : > { %590 = vst.msk [vmem:[%s305_s20] sm:$0xf] %vm410_vm1, %v589_v11 }
 0x146   : > { %v579_v12 = vpop.f32.mrf.mxu3 }
 0x147   : > { %v580_v13 = vadd.f32 %v718_v4, %v579_v12 }
 0x149   : > { %v584_v14 = vmax.f32 %v580_v13, 0.0 }
 0x14a   : > { %v591_v15 = vld [vmem:[#allocation3 + $0x6] sm:$0xf]  ;;  %v594_v16 = vld [vmem:[#allocation3 + $0xc] sm:$0xf] }
 0x14b   : > { %588 = vst.msk [vmem:[#allocation3 + $0x10] sm:$0x3f] %vm587_vm2, %v584_v14 }
 0x14c   : > { %679 = vst.msk [vmem:[%s305_s20 + $0x4] sm:$0xf] %vm410_vm1, %v591_v15 }
 0x14d   : > { %680 = vst.msk [vmem:[%s305_s20 + $0x8] sm:$0xf] %vm410_vm1, %v594_v16 }
 0x152   : > { %v597_v17 = vld [vmem:[#allocation3 + $0x12] sm:$0xf] }
 0x153   : > { %681 = vst.msk [vmem:[%s305_s20 + $0xc] sm:$0xf] %vm410_vm1, %v597_v17 }
 0x154 PF: > { %s18_s27 = sadd.s32 1, %s725_s27  }
 0x155   : > { %p15_p4 = scmp.ge.s32.totalorder %s18_s27, 4  }
 0x157   :  { %17 = sbr.rel (!%p15_p4) target bundleno = 1 (0x1), region = 93 }

// kernel: shufflenet_v2_forward.23
= control target key start
LH: loop header
LB: loop body
LE: loop exit
PB: predicated region body
PF: predicated region fallthrough
CT: control target
= control target key end

     0   :  { %s1184_s25 = smov 0   ;;  %s1463_s0 = inlined_call_operand.vmem [shape: f32[2,36,48], index: 0, kind: input, shape index: {}]   ;;  %s1464_s1 = inlined_call_operand.vmem [shape: f32[36,1], index: 1, kind: input, shape index: {}]   ;;  %s1465_s2 = inlined_call_operand.vmem [shape: f32[48,48], index: 2, kind: input, shape index: {}]   ;;  %s1466_s3 = inlined_call_operand.vmem [shape: f32[1,48], index: 3, kind: input, shape index: {}, may-alias: {3,5,7,9,11}]   ;;  %s1467_s4 = inlined_call_operand.vmem [shape: f32[9,1,48], index: 4, kind: input, shape index: {}]   ;;  %s1468_s5 = inlined_call_operand.vmem [shape: f32[1,48], index: 5, kind: input, shape index: {}, may-alias: {3,5,7,9,11}]   ;;  %s1469_s6 = inlined_call_operand.vmem [shape: f32[48,48], index: 6, kind: input, shape index: {}]   ;;  %s1470_s7 = inlined_call_operand.vmem [shape: f32[1,48], index: 7, kind: input, shape index: {}, may-alias: {3,5,7,9,11}]   ;;  %s1471_s8 = inlined_call_operand.vmem [shape: f32[9,1,48], index: 8, kind: input, shape index: {}]   ;;  %s1472_s9 = inlined_call_operand.vmem [shape: f32[1,48], index: 9, kind: input, shape index: {}, may-alias: {3,5,7,9,11}]   ;;  %s1473_s10 = inlined_call_operand.vmem [shape: f32[48,48], index: 10, kind: input, shape index: {}]   ;;  %s1474_s11 = inlined_call_operand.vmem [shape: f32[1,48], index: 11, kind: input, shape index: {}, may-alias: {3,5,7,9,11}]   ;;  %s1475_s12 = inlined_call_operand.vmem [shape: f32[2,2,4,48], index: 12, kind: output, shape index: {0}]   ;;  %s1476_s13 = inlined_call_operand.vmem [shape: f32[2,2,4,48], index: 13, kind: output, shape index: {1}]  }
   0x1 LB: > { %s1020_s26 = sadd.s32 4294967295, %s1111_s25   ;;  %p1024_p0 = scmp.ge.s32.totalorder %s1111_s25, 1  ;;  %s1111_s25 = sphi %s1184_s25, %s24_s25  }
   0x2   : > { %p390_p1 = scmp.lt.s32.totalorder %s1111_s25, 3 }
   0x4   : > { %p391_p2 = pnand %p1024_p0, %p390_p1 }
   0x5   : > { %p439_p3 = scmp.lt.s32.totalorder (!%p391_p2), %s1020_s26, 1 }
   0x6   : > { %394 = sbr.rel (%p391_p2) target bundleno = 337 (0x151), region = 68 }
   0xb   : > { %v464_v0 = vld [vmem:[%s1465_s2 + $0x28] sm:$0xff]  ;;  %v463_v1 = vld [vmem:[%s1465_s2 + $0x20] sm:$0xff]  ;;  %v462_v2 = vld [vmem:[%s1465_s2 + $0x18] sm:$0xff]  ;;  %s1478_s26 = smov (!%p439_p3, %s1020_s26), 1  ;;  %v1113_v3 = vmov 0   ;;  %vm469_vm0 = vcmask 392192  }
   0xc   : > { %495 = vmatpush.msra.mxu0 %v464_v0  ;;  %1063 = vmatpush.msra.mxu3 %v464_v0  ;;  %v522_v4 = vld [vmem:[%s1464_s1] sm:$0xff]  ;;  %v524_v5 = vld [vmem:[%s1464_s1 + $0x10] sm:$0xff]  ;;  %v460_v8 = vld [vmem:[%s1465_s2 + $0x8] sm:$0xff]  ;;  %s1069_s28 = smul.u32 40, %s1478_s26  ;;  %vm561_vm1 = vcmask 388096   ;;  %s1061_s17 = sshll.u32 %s1478_s26, 3 }
   0xd   : > { %1079 = vset.pattern.permute.xlu0 %v1113_v3  ;;  %1080 = vset.pattern.permute.xlu1 %v1113_v3  ;;  %v461_v6 = vld [vmem:[%s1465_s2 + $0x10] sm:$0xff]  ;;  %v526_v7 = vld [vmem:[%s1464_s1 + $0x20] sm:$0xf]  ;;  %v523_v12 = vld [vmem:[%s1464_s1 + $0x8] sm:$0xff]  ;;  %s453_s20 = scalar_lea.vmem %s1476_s13, %s1061_s17  ;;  %s448_s24 = scalar_lea.vmem %s1475_s12, %s1061_s17 }
   0xe   : > { %496 = vmatpush.msra.mxu0 %v463_v1  ;;  %1064 = vmatpush.msra.mxu3 %v463_v1  ;;  %s1222_s14 = scalar_lea.vmem %s1463_s0, %s1069_s28  ;;  %v459_v9 = vld [vmem:[%s1465_s2] sm:$0xff]  ;;  %v525_v13 = vld [vmem:[%s1464_s1 + $0x18] sm:$0xff]  ;;  %v876_v34 = vld [vmem:[%s1473_s10 + $0x28] sm:$0xff] }
   0xf   : > { %529 = vperm.xlu0 %1079, %v522_v4   ;;  %539 = vperm.xlu1 %1080, %v524_v5   ;;  %v454_v10 = vld [vmem:[%s1222_s14] sm:$0xff]  ;;  %v457_v11 = vld [vmem:[%s1222_s14 + $0x18] sm:$0xff]  ;;  %v455_v14 = vld [vmem:[%s1222_s14 + $0x8] sm:$0xff] }
  0x10   : > { %497 = vmatpush.msra.mxu0 %v462_v2  ;;  %1065 = vmatpush.msra.mxu3 %v462_v2  ;;  %v458_v15 = vld [vmem:[%s1222_s14 + $0x20] sm:$0xf]  ;;  %v1242_v16 = vld [vmem:[%s1222_s14 + $0x10] sm:$0xff]  ;;  %v669_v29 = vld [vmem:[%s1222_s14 + $0x6] sm:$0xff] }
  0x11   : > { %1081 = vset.pattern.permute.xlu2 %v1113_v3  ;;  %v1249_v17 = vld [vmem:[%s1471_s8] ss:$0 sm:$0xff]  ;;  %v1260_v20 = vld [vmem:[%s1471_s8 + $0x1] ss:$0 sm:$0xff]  ;;  %v1268_v24 = vld [vmem:[%s1471_s8 + $0x2] ss:$0 sm:$0xff]  ;;  %900 = vmatpush.msra.mxu2 %v876_v34 }
  0x12   : > { %498 = vmatpush.msra.mxu0 %v461_v6  ;;  %1066 = vmatpush.msra.mxu3 %v461_v6  ;;  %v1254_v18 = vld [vmem:[%s1472_s9] ss:$0 sm:$0xff]  ;;  %v593_v19 = vmul.f32 %v1249_v17, %v454_v10  ;;  %v613_v21 = vld [vmem:[%s1222_s14 + $0x1] sm:$0xff]  ;;  %v594_v36 = vmul.f32 %v1249_v17, %v455_v14  ;;  %v874_v41 = vld [vmem:[%s1473_s10 + $0x18] sm:$0xff] }
  0x13   : > { %549 = vperm.xlu2 %1081, %v526_v7   ;;  %v621_v23 = vmul.f32 %v1260_v20, %v613_v21  ;;  %v641_v25 = vld [vmem:[%s1222_s14 + $0x2] sm:$0xff]  ;;  %v873_v42 = vld [vmem:[%s1473_s10 + $0x10] sm:$0xff]  ;;  %v822_v43 = vld [vmem:[%s1469_s6 + $0x18] sm:$0xff] }
  0x14   : > { %499 = vmatpush.msra.mxu0 %v460_v8  ;;  %1067 = vmatpush.msra.mxu3 %v460_v8  ;;  %v596_v22 = vadd.f32 %v1254_v18, %v593_v19  ;;  %v649_v27 = vmul.f32 %v1268_v24, %v641_v25  ;;  %v1275_v28 = vld [vmem:[%s1471_s8 + $0x3] ss:$0 sm:$0xff]  ;;  %v1282_v32 = vld [vmem:[%s1471_s8 + $0x4] ss:$0 sm:$0xff]  ;;  %v697_v33 = vld [vmem:[%s1222_s14 + $0x7] sm:$0xff]  ;;  %v597_v44 = vadd.f32 %v1254_v18, %v594_v36 }
  0x15   : > { %v677_v31 = vmul.f32 %v1275_v28, %v669_v29  ;;  %v875_v35 = vld [vmem:[%s1473_s10 + $0x20] sm:$0xff]  ;;  %v705_v38 = vmul.f32 %v1282_v32, %v697_v33  ;;  %v824_v39 = vld [vmem:[%s1469_s6 + $0x28] sm:$0xff]  ;;  %v821_v63 = vld [vmem:[%s1469_s6 + $0x10] sm:$0xff] }
  0x16   : > { %500 = vmatpush.msra.mxu0 %v459_v9  ;;  %1068 = vmatpush.msra.mxu3 %v459_v9  ;;  %v624_v26 = vadd.f32 %v621_v23, %v596_v22  ;;  %v823_v40 = vld [vmem:[%s1469_s6 + $0x20] sm:$0xff]  ;;  %v614_v45 = vld [vmem:[%s1222_s14 + $0x9] sm:$0xff]  ;;  %v1345_v62 = vld [vmem:[%s1471_s8 + $0x8] ss:$0 sm:$0xff] }
  0x17   : > { %1030 = vmatmul.msk.f32.vlgmr.msra.gmra.mxu0 %vm469_vm0, %v454_v10  ;;  %1033 = vmatmul.msk.f32.vlgmr.msra.gmra.mxu3 %vm469_vm0, %v457_v11  ;;  %v642_v46 = vld [vmem:[%s1222_s14 + $0xa] sm:$0xff]  ;;  %v622_v48 = vmul.f32 %v1260_v20, %v614_v45  ;;  %v1317_v51 = vld [vmem:[%s1471_s8 + $0x5] ss:$0 sm:$0xff]  ;;  %v1323_v53 = vld [vmem:[%s1471_s8 + $0x6] ss:$0 sm:$0xff] }
  0x18   : > { %534 = vperm.xlu0 %1079, %v523_v12   ;;  %544 = vperm.xlu1 %1080, %v525_v13   ;;  %v652_v30 = vadd.f32 %v649_v27, %v624_v26  ;;  %v670_v47 = vld [vmem:[%s1222_s14 + $0xe] sm:$0xff]  ;;  %v650_v49 = vmul.f32 %v1268_v24, %v642_v46  ;;  %v1328_v54 = vld [vmem:[%s1466_s3] ss:$0 sm:$0xff]  ;;  %v1334_v56 = vld [vmem:[%s1471_s8 + $0x7] ss:$0 sm:$0xff]  ;;  %v731_v60 = vmul.f32 %v1317_v51, %v455_v14 }
  0x19   : > { %848 = vmatpush.msra.mxu1 %v824_v39  ;;  %901 = vmatpush.msra.mxu2 %v875_v35  ;;  %v751_v52 = vld [vmem:[%s1222_s14 + $0xc] sm:$0xff]  ;;  %v625_v58 = vadd.f32 %v622_v48, %v597_v44  ;;  %v678_v59 = vmul.f32 %v1275_v28, %v670_v47  ;;  %v871_v2 = vld [vmem:[%s1473_s10] sm:$0xff]  ;;  %v813_v13 = vmul.f32 %v1345_v62, %v670_v47  ;;  %v752_v26 = vld [vmem:[%s1222_s14 + $0x14] sm:$0xff] }
  0x1a   : > { %v680_v37 = vadd.f32 %v677_v31, %v652_v30  ;;  %v779_v55 = vld [vmem:[%s1222_s14 + $0xd] sm:$0xff]  ;;  %v759_v61 = vmul.f32 %v1323_v53, %v751_v52  ;;  %v819_v8 = vld [vmem:[%s1469_s6] sm:$0xff]  ;;  %v732_v19 = vmul.f32 %v1317_v51, %v1242_v16  ;;  %v760_v29 = vmul.f32 %v1323_v53, %v752_v26 }
  0x1b   : > { %849 = vmatpush.msra.mxu1 %v823_v40  ;;  %902 = vmatpush.msra.mxu2 %v874_v41  ;;  %v872_v57 = vld [vmem:[%s1473_s10 + $0x8] sm:$0xff]  ;;  %v653_v3 = vadd.f32 %v650_v49, %v625_v58  ;;  %v787_v5 = vmul.f32 %v1334_v56, %v779_v55  ;;  %v615_v27 = vld [vmem:[%s1222_s14 + $0x11] sm:$0x3f]  ;;  %v699_v49 = vld [vmem:[%s1222_s14 + $0x17] sm:$0x3f] }
  0x1c   : > { %v708_v50 = vadd.f32 %v705_v38, %v680_v37  ;;  %v820_v1 = vld [vmem:[%s1469_s6 + $0x8] sm:$0xff]  ;;  %v623_v31 = vmul.f32 %v1260_v20, %v615_v27  ;;  %v643_v36 = vld [vmem:[%s1222_s14 + $0x12] sm:$0x3f]  ;;  %v707_v52 = vmul.f32 %v1282_v32, %v699_v49 }
  0x1d   : > { %850 = vmatpush.msra.mxu1 %v822_v43  ;;  %903 = vmatpush.msra.mxu2 %v873_v42  ;;  %v698_v6 = vld [vmem:[%s1222_s14 + $0xf] sm:$0xff]  ;;  %v681_v11 = vadd.f32 %v678_v59, %v653_v3  ;;  %v651_v39 = vmul.f32 %v1268_v24, %v643_v36  ;;  %v725_v59 = vld [vmem:[%s1222_s14 + $0x18] sm:$0x3f] }
  0x1e   : > { %v734_v4 = vadd.f32 %v731_v60, %v708_v50  ;;  %v706_v9 = vmul.f32 %v1282_v32, %v698_v6  ;;  %v806_v20 = vld [vmem:[%s1222_s14 + $0x16] sm:$0xff] }
  0x1f   : > { %1031 = vmatmul.msk.f32.gmra.mxu0 %vm469_vm0, %v455_v14  ;;  %1034 = vmatmul.msk.f32.gmra.mxu3 %vm469_vm0, %v458_v15  ;;  %v588_v14 = vld [vmem:[%s1222_s14 + $0x10] sm:$0x3f]  ;;  %v671_v41 = vld [vmem:[%s1222_s14 + $0x16] sm:$0x3f]  ;;  %v814_v44 = vmul.f32 %v1345_v62, %v806_v20 }
  0x20   : > { %851 = vmatpush.msra.mxu1 %v821_v63  ;;  %904 = vmatpush.msra.mxu2 %v872_v57  ;;  %v762_v12 = vadd.f32 %v759_v61, %v734_v4  ;;  %v595_v21 = vmul.f32 %v1249_v17, %v588_v14  ;;  %v709_v25 = vadd.f32 %v706_v9, %v681_v11 }
  0x21   : > { %v679_v46 = vmul.f32 %v1275_v28, %v671_v41  ;;  %v733_v63 = vmul.f32 %v1317_v51, %v725_v59  ;;  %v753_v28 = vld [vmem:[%s1222_s14 + $0x1c] sm:$0x3f] }
  0x22   : > { %852 = vmatpush.msra.mxu1 %v820_v1  ;;  %905 = vmatpush.msra.mxu2 %v871_v2  ;;  %v790_v23 = vadd.f32 %v787_v5, %v762_v12  ;;  %v598_v30 = vadd.f32 %v1254_v18, %v595_v21  ;;  %v735_v35 = vadd.f32 %v732_v19, %v709_v25  ;;  %v1094_v5 = vld [vmem:[%s1467_s4] ss:$0 sm:$0xff] }
  0x23   : > { %v761_v4 = vmul.f32 %v1323_v53, %v753_v28  ;;  %v781_v51 = vld [vmem:[%s1222_s14 + $0x1d] sm:$0x3f] }
  0x24   : > { %853 = vmatpush.msra.mxu1 %v819_v8  ;;  %v816_v34 = vadd.f32 %v813_v13, %v790_v23  ;;  %v626_v38 = vadd.f32 %v623_v31, %v598_v30  ;;  %v763_v18 = vadd.f32 %v760_v29, %v735_v35  ;;  %v807_v12 = vld [vmem:[%s1222_s14 + $0x1e] sm:$0x3f]  ;;  %v1098_v35 = vld [vmem:[%s1467_s4 + $0x4] ss:$0 sm:$0xff] }
  0x25   : > { %v815_v14 = vmul.f32 %v1345_v62, %v807_v12  ;;  %v1093_v21 = vld [vmem:[%s1468_s5] ss:$0 sm:$0xff]  ;;  %v1095_v23 = vld [vmem:[%s1467_s4 + $0x1] ss:$0 sm:$0xff]  ;;  %v1096_v62 = vld [vmem:[%s1467_s4 + $0x2] ss:$0 sm:$0xff] }
  0x26   : > { %1054 = vmatmul.msk.f32.vlgmr.msra.gmra.mxu2 %vm469_vm0, %v816_v34  ;;  %v654_v45 = vadd.f32 %v651_v39, %v626_v38  ;;  %v1097_v30 = vld [vmem:[%s1467_s4 + $0x3] ss:$0 sm:$0xff]  ;;  %v1099_v38 = vld [vmem:[%s1467_s4 + $0x5] ss:$0 sm:$0xff] }
  0x27   : > { %1032 = vmatmul.msk.f32.gmra.mxu0 %vm469_vm0, %v1242_v16  ;;  %v780_v16 = vld [vmem:[%s1222_s14 + $0x15] sm:$0xff] }
  0x28   : > { %v788_v37 = vmul.f32 %v1334_v56, %v780_v16  ;;  %v682_v50 = vadd.f32 %v679_v46, %v654_v45 }
  0x2a   : > { %v791_v48 = vadd.f32 %v788_v37, %v763_v18  ;;  %v710_v61 = vadd.f32 %v707_v52, %v682_v50  ;;  %v1100_v18 = vld [vmem:[%s1467_s4 + $0x6] ss:$0 sm:$0xff] }
  0x2c   : > { %v817_v58 = vadd.f32 %v814_v44, %v791_v48  ;;  %v736_v3 = vadd.f32 %v733_v63, %v710_v61 }
  0x2e   : > { %1055 = vmatmul.msk.f32.gmra.mxu2 %vm469_vm0, %v817_v58  ;;  %v764_v9 = vadd.f32 %v761_v4, %v736_v3 }
  0x81   : > { %v1350_v0 = vpop.permute.xlu1 %539  ;;  %v530_v15 = vpop.permute.xlu0 %529 }
  0x8a   : > { %v545_v43 = vpop.permute.xlu1 %544  ;;  %v535_v60 = vpop.permute.xlu0 %534 }
  0x94   : > { %v502_v7 = vpop.f32.mrf.mxu0 }
  0x95   : > { %v503_v10 = vadd.f32 %v1328_v54, %v502_v7  ;;  %v550_v7 = vpop.permute.xlu2 %549 }
  0x97   : > { %v517_v22 = vmax.f32 %v503_v10, 0.0  ;;  %v789_v10 = vmul.f32 %v1334_v56, %v781_v51 }
  0x99   : > { %v552_v33 = vmul.f32 %v530_v15, %v517_v22  ;;  %v792_v13 = vadd.f32 %v789_v10, %v764_v9 }
  0x9a   : > { %v511_v17 = vpop.f32.mrf.mxu3 }
  0x9b   : > { %557 = vst.msk [vmem:[#allocation2] sm:$0xff] %vm469_vm0, %v552_v33  ;;  %v512_v40 = vadd.f32 %v1328_v54, %v511_v17  ;;  %v818_v56 = vadd.f32 %v815_v14, %v792_v13 }
  0x9c   : > { %v505_v42 = vpop.f32.mrf.mxu0 }
  0x9d   : > { %v506_v24 = vadd.f32 %v1328_v54, %v505_v42  ;;  %v520_v47 = vmax.f32 %v512_v40, 0.0  ;;  %1056 = vmatmul.msk.f32.gmra.mxu2 %vm469_vm0, %v818_v56 }
  0x9f   : > { %v518_v55 = vmax.f32 %v506_v24, 0.0  ;;  %v555_v57 = vmul.f32 %v545_v43, %v520_v47  ;;  %v1101_v24 = vld [vmem:[%s1467_s4 + $0x7] ss:$0 sm:$0xff] }
  0xa1   : > { %v553_v1 = vmul.f32 %v535_v60, %v518_v55  ;;  %560 = vst.msk [vmem:[#allocation2 + $0x18] sm:$0xff] %vm469_vm0, %v555_v57  ;;  %v1102_v57 = vld [vmem:[%s1467_s4 + $0x8] ss:$0 sm:$0xff] }
  0xa2   : > { %v514_v2 = vpop.f32.mrf.mxu3  ;;  %v573_v8 = vld [vmem:[#allocation2] sm:$0xff] }
  0xa3   : > { %558 = vst.msk [vmem:[#allocation2 + $0x8] sm:$0xff] %vm469_vm0, %v553_v1  ;;  %v515_v32 = vadd.f32 %v1328_v54, %v514_v2  ;;  %v580_v22 = vmul.f32 %v1094_v5, %v573_v8 }
  0xa4   : > { %v508_v6 = vpop.f32.mrf.mxu0 }
  0xa5   : > { %v509_v11 = vadd.f32 %v1328_v54, %v508_v6  ;;  %v521_v53 = vmax.f32 %v515_v32, 0.0  ;;  %v583_v27 = vadd.f32 %v1093_v21, %v580_v22 }
  0xa7   : > { %v519_v15 = vmax.f32 %v509_v11, 0.0  ;;  %v556_v19 = vmul.f32 %v550_v7, %v521_v53 }
  0xa9   : > { %v554_v54 = vmul.f32 %v1350_v0, %v519_v15  ;;  %562 = vst.msk [vmem:[#allocation2 + $0x20] sm:$0xf] %vm561_vm1, %v556_v19 }
  0xaa   : > { %v599_v25 = vld [vmem:[#allocation2 + $0x1] sm:$0xff] }
  0xab   : > { %v627_v26 = vld [vmem:[#allocation2 + $0x2] sm:$0xff]  ;;  %559 = vst.msk [vmem:[#allocation2 + $0x10] sm:$0xff] %vm469_vm0, %v554_v54  ;;  %v607_v29 = vmul.f32 %v1095_v23, %v599_v25 }
  0xac   : > { %v574_v31 = vld [vmem:[#allocation2 + $0x8] sm:$0xff]  ;;  %v635_v34 = vmul.f32 %v1096_v62, %v627_v26 }
  0xad   : > { %v655_v33 = vld [vmem:[#allocation2 + $0x6] sm:$0xff]  ;;  %v610_v0 = vadd.f32 %v607_v29, %v583_v27  ;;  %v581_v36 = vmul.f32 %v1094_v5, %v574_v31  ;;  %v718_v45 = vmul.f32 %v1099_v38, %v574_v31 }
  0xae   : > { %v683_v16 = vld [vmem:[#allocation2 + $0x7] sm:$0xff]  ;;  %v663_v37 = vmul.f32 %v1097_v30, %v655_v33 }
  0xaf   : > { %v638_v17 = vadd.f32 %v635_v34, %v610_v0  ;;  %v691_v40 = vmul.f32 %v1098_v35, %v683_v16  ;;  %v584_v42 = vadd.f32 %v1093_v21, %v581_v36 }
  0xb0   : > { %v739_v33 = vld [vmem:[#allocation2 + $0x1c] sm:$0x3f] }
  0xb1   : > { %v666_v39 = vadd.f32 %v663_v37, %v638_v17  ;;  %v747_v17 = vmul.f32 %v1100_v18, %v739_v33  ;;  %v767_v37 = vld [vmem:[#allocation2 + $0x1d] sm:$0x3f] }
  0xb2   : > { %v600_v20 = vld [vmem:[#allocation2 + $0x9] sm:$0xff]  ;;  %v601_v59 = vld [vmem:[#allocation2 + $0x11] sm:$0x3f] }
  0xb3   : > { %v628_v41 = vld [vmem:[#allocation2 + $0xa] sm:$0xff]  ;;  %v608_v43 = vmul.f32 %v1095_v23, %v600_v20  ;;  %v694_v44 = vadd.f32 %v691_v40, %v666_v39  ;;  %v629_v3 = vld [vmem:[#allocation2 + $0x12] sm:$0x3f]  ;;  %v609_v51 = vmul.f32 %v1095_v23, %v601_v59  ;;  %v712_v23 = vld [vmem:[#allocation2 + $0x18] sm:$0x3f]  ;;  %v775_v40 = vmul.f32 %v1101_v24, %v767_v37 }
  0xb4   : > { %v737_v46 = vld [vmem:[#allocation2 + $0xc] sm:$0xff]  ;;  %v636_v50 = vmul.f32 %v1096_v62, %v628_v41  ;;  %v657_v10 = vld [vmem:[#allocation2 + $0x16] sm:$0x3f]  ;;  %v637_v12 = vmul.f32 %v1096_v62, %v629_v3  ;;  %v720_v62 = vmul.f32 %v1099_v38, %v712_v23  ;;  %v794_v20 = vld [vmem:[#allocation2 + $0x1e] sm:$0x3f] }
  0xb5   : > { %v656_v47 = vld [vmem:[#allocation2 + $0xe] sm:$0xff]  ;;  %v611_v49 = vadd.f32 %v608_v43, %v584_v42  ;;  %v721_v52 = vadd.f32 %v718_v45, %v694_v44  ;;  %v745_v55 = vmul.f32 %v1100_v18, %v737_v46  ;;  %v665_v56 = vmul.f32 %v1097_v30, %v657_v10  ;;  %v793_v25 = vld [vmem:[#allocation2 + $0x16] sm:$0xff]  ;;  %v907_v43 = vpop.f32.mrf.mxu2 }
  0xb6   : > { %v765_v48 = vld [vmem:[#allocation2 + $0xd] sm:$0xff]  ;;  %v664_v1 = vmul.f32 %v1097_v30, %v656_v47  ;;  %v800_v8 = vmul.f32 %v1102_v57, %v656_v47  ;;  %v766_v19 = vld [vmem:[#allocation2 + $0x15] sm:$0xff]  ;;  %v801_v16 = vmul.f32 %v1102_v57, %v793_v25  ;;  %v802_v42 = vmul.f32 %v1102_v57, %v794_v20 }
  0xb7   : > { %v575_v58 = vld [vmem:[#allocation2 + $0x10] sm:$0x3f]  ;;  %v639_v63 = vadd.f32 %v636_v50, %v611_v49  ;;  %v748_v28 = vadd.f32 %v745_v55, %v721_v52  ;;  %v773_v2 = vmul.f32 %v1101_v24, %v765_v48  ;;  %v774_v31 = vmul.f32 %v1101_v24, %v766_v19  ;;  %v1103_v50 = vld [vmem:[%s1470_s7] ss:$0 sm:$0xff] }
  0xb8   : > { %v684_v60 = vld [vmem:[#allocation2 + $0xf] sm:$0xff]  ;;  %v582_v61 = vmul.f32 %v1094_v5, %v575_v58  ;;  %v685_v5 = vld [vmem:[#allocation2 + $0x17] sm:$0x3f] }
  0xb9   : > { %v711_v4 = vld [vmem:[#allocation2 + $0x10] sm:$0xff]  ;;  %v667_v6 = vadd.f32 %v664_v1, %v639_v63  ;;  %v776_v7 = vadd.f32 %v773_v2, %v748_v28  ;;  %v692_v9 = vmul.f32 %v1098_v35, %v684_v60  ;;  %v693_v27 = vmul.f32 %v1098_v35, %v685_v5 }
  0xba   : > { %v585_v32 = vadd.f32 %v1093_v21, %v582_v61  ;;  %v738_v11 = vld [vmem:[#allocation2 + $0x14] sm:$0xff]  ;;  %v719_v15 = vmul.f32 %v1099_v38, %v711_v4  ;;  %v1104_v38 = vld [vmem:[%s1474_s11] ss:$0 sm:$0xff] }
  0xbb   : > { %v803_v13 = vadd.f32 %v800_v8, %v776_v7  ;;  %v695_v14 = vadd.f32 %v692_v9, %v667_v6  ;;  %v746_v21 = vmul.f32 %v1100_v18, %v738_v11  ;;  %v908_v44 = vadd.f32 %v1104_v38, %v907_v43 }
  0xbc   : > { %v612_v53 = vadd.f32 %v609_v51, %v585_v32 }
  0xbd   : > { %1051 = vmatmul.msk.f32.vlgmr.msra.gmra.mxu1 %vm469_vm0, %v803_v13  ;;  %v722_v54 = vadd.f32 %v719_v15, %v695_v14  ;;  %v916_v18 = vmax.f32 %v908_v44, 0.0  ;;  %v910_v45 = vpop.f32.mrf.mxu2 }
  0xbe   : > { %v640_v22 = vadd.f32 %v637_v12, %v612_v53  ;;  %v911_v46 = vadd.f32 %v1104_v38, %v910_v45 }
  0xbf   : > { %v749_v29 = vadd.f32 %v746_v21, %v722_v54  ;;  %919 = vst.msk [vmem:[#allocation4] sm:$0xff] %vm469_vm0, %v916_v18 }
  0xc0   : > { %v668_v26 = vadd.f32 %v665_v56, %v640_v22  ;;  %v917_v24 = vmax.f32 %v911_v46, 0.0 }
  0xc1   : > { %v777_v34 = vadd.f32 %v774_v31, %v749_v29 }
  0xc2   : > { %v696_v0 = vadd.f32 %v693_v27, %v668_v26  ;;  %920 = vst.msk [vmem:[#allocation4 + $0x8] sm:$0xff] %vm469_vm0, %v917_v24 }
  0xc3   : > { %v804_v30 = vadd.f32 %v801_v16, %v777_v34 }
  0xc4   : > { %v723_v36 = vadd.f32 %v720_v62, %v696_v0 }
  0xc5   : > { %1052 = vmatmul.msk.f32.gmra.mxu1 %vm469_vm0, %v804_v30 }
  0xc6   : > { %v750_v39 = vadd.f32 %v747_v17, %v723_v36  ;;  %v924_v47 = vld [vmem:[#allocation4] sm:$0xf] }
  0xc7   : > { %925 = vst.msk [vmem:[%s453_s20] sm:$0xf] %vm561_vm1, %v924_v47 }
  0xc8   : > { %v778_v41 = vadd.f32 %v775_v40, %v750_v39 }
  0xc9   : > { %v929_v49 = vld [vmem:[#allocation4 + $0xc] sm:$0xf] }
  0xca   : > { %v805_v35 = vadd.f32 %v802_v42, %v778_v41  ;;  %1058 = vst.msk [vmem:[%s453_s20 + $0x4] sm:$0xf] %vm561_vm1, %v929_v49 }
  0xcd   : > { %1053 = vmatmul.msk.f32.gmra.mxu1 %vm469_vm0, %v805_v35 }
 0x120   : > { %v913_v48 = vpop.f32.mrf.mxu2 }
 0x13a   : > { %v855_v52 = vpop.f32.mrf.mxu1 }
 0x13b   : > { %v856_v55 = vadd.f32 %v1103_v50, %v855_v52 }
 0x13d   : > { %v864_v57 = vmax.f32 %v856_v55, 0.0 }
 0x13f   : > { %867 = vst.msk [vmem:[#allocation3] sm:$0xff] %vm469_vm0, %v864_v57 }
 0x142   : > { %v858_v58 = vpop.f32.mrf.mxu1 }
 0x143   : > { %v859_v59 = vadd.f32 %v1103_v50, %v858_v58 }
 0x145   : > { %v865_v60 = vmax.f32 %v859_v59, 0.0 }
 0x146   : > { %v922_v61 = vld [vmem:[#allocation3] sm:$0xf] }
 0x147   : > { %923 = vst.msk [vmem:[%s448_s24] sm:$0xf] %vm561_vm1, %v922_v61 }
 0x148   : > { %868 = vst.msk [vmem:[#allocation3 + $0x8] sm:$0xff] %vm469_vm0, %v865_v60 }
 0x14a   : > { %v861_v63 = vpop.f32.mrf.mxu1 }
 0x14f   : > { %v926_v1 = vld [vmem:[#allocation3 + $0xc] sm:$0xf] }
 0x150   : > { %1057 = vst.msk [vmem:[%s448_s24 + $0x4] sm:$0xf] %vm561_vm1, %v926_v1 }
 0x151 PF: > { %s24_s25 = sadd.s32 1, %s1111_s25  }
 0x152   : > { %p21_p4 = scmp.ge.s32.totalorder %s24_s25, 4  }
 0x154   :  { %23 = sbr.rel (!%p21_p4) target bundleno = 1 (0x1), region = 128 }

// kernel: shufflenet_v2_forward.24
= control target key start
LH: loop header
LB: loop body
LE: loop exit
PB: predicated region body
PF: predicated region fallthrough
CT: control target
= control target key end

     0   :  { %s646_s27 = smov 0   ;;  %s750_s0 = inlined_call_operand.vmem [shape: f32[2,16,48], index: 0, kind: input, shape index: {}]   ;;  %s751_s1 = inlined_call_operand.vmem [shape: f32[16,1], index: 1, kind: input, shape index: {}]   ;;  %s752_s2 = inlined_call_operand.vmem [shape: f32[48,48], index: 2, kind: input, shape index: {}]   ;;  %s753_s3 = inlined_call_operand.vmem [shape: f32[1,48], index: 3, kind: input, shape index: {}, may-alias: {3,5,7}]   ;;  %s754_s4 = inlined_call_operand.vmem [shape: f32[9,1,48], index: 4, kind: input, shape index: {}]   ;;  %s755_s5 = inlined_call_operand.vmem [shape: f32[1,48], index: 5, kind: input, shape index: {}, may-alias: {3,5,7}]   ;;  %s756_s6 = inlined_call_operand.vmem [shape: f32[48,48], index: 6, kind: input, shape index: {}]   ;;  %s757_s7 = inlined_call_operand.vmem [shape: f32[1,48], index: 7, kind: input, shape index: {}, may-alias: {3,5,7}]   ;;  %s758_s8 = inlined_call_operand.vmem [shape: f32[2,2,2,48], index: 8, kind: output, shape index: {}]  }
   0x1 LB: > { %s539_s28 = sadd.s32 4294967295, %s598_s27   ;;  %p543_p0 = scmp.ge.s32.totalorder %s598_s27, 1  ;;  %s598_s27 = sphi %s646_s27, %s18_s27  }
   0x2   : > { %p262_p1 = scmp.lt.s32.totalorder %s598_s27, 3 }
   0x4   : > { %p263_p2 = pnand %p543_p0, %p262_p1 }
   0x5   : > { %p296_p3 = scmp.lt.s32.totalorder (!%p263_p2), %s539_s28, 1 }
   0x6   : > { %266 = sbr.rel (%p263_p2) target bundleno = 323 (0x143), region = 52 }
   0xb   : > { %v313_v0 = vld [vmem:[%s752_s2 + $0x28] sm:$0xff]  ;;  %v312_v1 = vld [vmem:[%s752_s2 + $0x20] sm:$0xff]  ;;  %v311_v2 = vld [vmem:[%s752_s2 + $0x18] sm:$0xff]  ;;  %s760_s28 = smov (!%p296_p3, %s539_s28), 1  ;;  %v600_v3 = vmov 0   ;;  %vm318_vm0 = vcmask 392192  }
   0xc   : > { %335 = vmatpush.msra.mxu0 %v313_v0  ;;  %564 = vmatpush.msra.mxu2 %v313_v0  ;;  %v350_v4 = vld [vmem:[%s751_s1] sm:$0xff]  ;;  %v310_v5 = vld [vmem:[%s752_s2 + $0x10] sm:$0xff]  ;;  %s562_s17 = sshll.u32 %s760_s28, 4  ;;  %v309_v6 = vld [vmem:[%s752_s2 + $0x8] sm:$0xff]  ;;  %vm476_vm1 = vcmask 390144   ;;  %s563_s23 = sshll.u32 %s760_s28, 2 }
   0xd   : > { %579 = vset.pattern.permute.xlu0 %v600_v3  ;;  %s300_s22 = scalar_lea.vmem %s750_s0, %s562_s17  ;;  %v308_v7 = vld [vmem:[%s752_s2] sm:$0xff]  ;;  %v351_v10 = vld [vmem:[%s751_s1 + $0x8] sm:$0xff]  ;;  %v445_v13 = vld [vmem:[%s756_s6 + $0x18] sm:$0xff]  ;;  %s305_s26 = scalar_lea.vmem %s758_s8, %s563_s23  ;;  %vm479_vm2 = vcmask 386048  }
   0xe   : > { %336 = vmatpush.msra.mxu0 %v312_v1  ;;  %565 = vmatpush.msra.mxu2 %v312_v1  ;;  %v306_v8 = vld [vmem:[%s300_s22] sm:$0xff]  ;;  %v307_v9 = vld [vmem:[%s300_s22 + $0x8] sm:$0xff]  ;;  %v444_v14 = vld [vmem:[%s756_s6 + $0x10] sm:$0xff] }
   0xf   : > { %354 = vperm.xlu0 %579, %v350_v4   ;;  %v447_v11 = vld [vmem:[%s756_s6 + $0x28] sm:$0xff]  ;;  %v446_v12 = vld [vmem:[%s756_s6 + $0x20] sm:$0xff] }
  0x10   : > { %337 = vmatpush.msra.mxu0 %v311_v2  ;;  %566 = vmatpush.msra.mxu2 %v311_v2  ;;  %v443_v15 = vld [vmem:[%s756_s6 + $0x8] sm:$0xff]  ;;  %v442_v16 = vld [vmem:[%s756_s6] sm:$0xff] }
  0x11   : > { %465 = vmatpush.msra.mxu1 %v447_v11  ;;  %v580_v17 = vld [vmem:[%s753_s3] ss:$0 sm:$0xff]  ;;  %v583_v30 = vld [vmem:[%s754_s4 + $0x1] ss:$0 sm:$0xff]  ;;  %v584_v34 = vld [vmem:[%s754_s4 + $0x2] ss:$0 sm:$0xff] }
  0x12   : > { %338 = vmatpush.msra.mxu0 %v310_v5  ;;  %567 = vmatpush.msra.mxu2 %v310_v5  ;;  %v582_v28 = vld [vmem:[%s754_s4] ss:$0 sm:$0xff]  ;;  %v585_v38 = vld [vmem:[%s754_s4 + $0x3] ss:$0 sm:$0xff]  ;;  %v586_v41 = vld [vmem:[%s754_s4 + $0x4] ss:$0 sm:$0xff] }
  0x13   : > { %466 = vmatpush.msra.mxu1 %v446_v12  ;;  %v581_v29 = vld [vmem:[%s755_s5] ss:$0 sm:$0xff]  ;;  %v587_v46 = vld [vmem:[%s754_s4 + $0x5] ss:$0 sm:$0xff]  ;;  %v588_v50 = vld [vmem:[%s754_s4 + $0x6] ss:$0 sm:$0xff] }
  0x14   : > { %339 = vmatpush.msra.mxu0 %v309_v6  ;;  %568 = vmatpush.msra.mxu2 %v309_v6  ;;  %v589_v54 = vld [vmem:[%s754_s4 + $0x7] ss:$0 sm:$0xff]  ;;  %v590_v58 = vld [vmem:[%s754_s4 + $0x8] ss:$0 sm:$0xff]  ;;  %v591_v1 = vld [vmem:[%s757_s7] ss:$0 sm:$0xff] }
  0x15   : > { %467 = vmatpush.msra.mxu1 %v445_v13 }
  0x16   : > { %340 = vmatpush.msra.mxu0 %v308_v7  ;;  %569 = vmatpush.msra.mxu2 %v308_v7 }
  0x17   : > { %548 = vmatmul.msk.f32.vlgmr.msra.gmra.mxu0 %vm318_vm0, %v306_v8  ;;  %549 = vmatmul.msk.f32.vlgmr.msra.gmra.mxu2 %vm318_vm0, %v307_v9 }
  0x18   : > { %359 = vperm.xlu0 %579, %v351_v10   ;;  %468 = vmatpush.msra.mxu1 %v444_v14 }
  0x1a   : > { %469 = vmatpush.msra.mxu1 %v443_v15 }
  0x1c   : > { %470 = vmatpush.msra.mxu1 %v442_v16 }
  0x81   : > { %v355_v18 = vpop.permute.xlu0 %354 }
  0x8a   : > { %v360_v26 = vpop.permute.xlu0 %359 }
  0x94   : > { %v342_v19 = vpop.f32.mrf.mxu0 }
  0x95   : > { %v343_v20 = vadd.f32 %v580_v17, %v342_v19 }
  0x97   : > { %v348_v21 = vmax.f32 %v343_v20, 0.0 }
  0x99   : > { %v362_v22 = vmul.f32 %v355_v18, %v348_v21 }
  0x9a   : > { %v345_v23 = vpop.f32.mrf.mxu2 }
  0x9b   : > { %364 = vst.msk [vmem:[#allocation2] sm:$0xff] %vm318_vm0, %v362_v22  ;;  %v346_v24 = vadd.f32 %v580_v17, %v345_v23 }
  0x9d   : > { %v349_v25 = vmax.f32 %v346_v24, 0.0 }
  0x9f   : > { %v363_v27 = vmul.f32 %v360_v26, %v349_v25 }
  0xa1   : > { %365 = vst.msk [vmem:[#allocation2 + $0x8] sm:$0xff] %vm318_vm0, %v363_v27 }
  0xa2   : > { %v371_v31 = vld [vmem:[#allocation2] sm:$0x3f] }
  0xa3   : > { %v378_v32 = vld [vmem:[#allocation2 + $0x1] sm:$0x3f]  ;;  %v376_v33 = vmul.f32 %v582_v28, %v371_v31 }
  0xa4   : > { %v386_v35 = vld [vmem:[#allocation2 + $0x2] sm:$0x3f]  ;;  %v384_v37 = vmul.f32 %v583_v30, %v378_v32 }
  0xa5   : > { %v377_v36 = vadd.f32 %v581_v29, %v376_v33  ;;  %v392_v40 = vmul.f32 %v584_v34, %v386_v35 }
  0xa7   : > { %v385_v39 = vadd.f32 %v384_v37, %v377_v36 }
  0xa8   : > { %v394_v42 = vld [vmem:[#allocation2 + $0x4] sm:$0x3f]  ;;  %v434_v59 = vld [vmem:[#allocation2 + $0xa] sm:$0x3f] }
  0xa9   : > { %v402_v43 = vld [vmem:[#allocation2 + $0x5] sm:$0x3f]  ;;  %v393_v44 = vadd.f32 %v392_v40, %v385_v39  ;;  %v400_v45 = vmul.f32 %v585_v38, %v394_v42  ;;  %v440_v63 = vmul.f32 %v590_v58, %v434_v59 }
  0xaa   : > { %v410_v47 = vld [vmem:[#allocation2 + $0x6] sm:$0x3f]  ;;  %v408_v49 = vmul.f32 %v586_v41, %v402_v43 }
  0xab   : > { %v401_v48 = vadd.f32 %v400_v45, %v393_v44  ;;  %v418_v51 = vld [vmem:[#allocation2 + $0x8] sm:$0x3f]  ;;  %v416_v53 = vmul.f32 %v587_v46, %v410_v47 }
  0xac   : > { %v426_v55 = vld [vmem:[#allocation2 + $0x9] sm:$0x3f]  ;;  %v424_v57 = vmul.f32 %v588_v50, %v418_v51 }
  0xad   : > { %v409_v52 = vadd.f32 %v408_v49, %v401_v48  ;;  %v432_v61 = vmul.f32 %v589_v54, %v426_v55 }
  0xaf   : > { %v417_v56 = vadd.f32 %v416_v53, %v409_v52 }
  0xb1   : > { %v425_v60 = vadd.f32 %v424_v57, %v417_v56 }
  0xb3   : > { %v433_v62 = vadd.f32 %v432_v61, %v425_v60 }
  0xb5   : > { %v441_v0 = vadd.f32 %v440_v63, %v433_v62 }
  0xb7   : > { %558 = vmatmul.msk.f32.vlgmr.msra.gmra.mxu1 %vm318_vm0, %v441_v0 }
 0x134   : > { %v472_v2 = vpop.f32.mrf.mxu1 }
 0x135   : > { %v473_v3 = vadd.f32 %v591_v1, %v472_v2 }
 0x137   : > { %v475_v4 = vmax.f32 %v473_v3, 0.0 }
 0x139   : > { %477 = vst.msk [vmem:[#allocation3] sm:$0x3f] %vm476_vm1, %v475_v4 }
 0x140   : > { %v478_v5 = vld [vmem:[#allocation3] sm:$0x3]  ;;  %v481_v6 = vld [vmem:[#allocation3 + $0x4] sm:$0x3] }
 0x141   : > { %480 = vst.msk [vmem:[%s305_s26] sm:$0x3] %vm479_vm2, %v478_v5 }
 0x142   : > { %559 = vst.msk [vmem:[%s305_s26 + $0x2] sm:$0x3] %vm479_vm2, %v481_v6 }
 0x143 PF: > { %s18_s27 = sadd.s32 1, %s598_s27  }
 0x144   : > { %p15_p4 = scmp.ge.s32.totalorder %s18_s27, 4  }
 0x146   :  { %17 = sbr.rel (!%p15_p4) target bundleno = 1 (0x1), region = 91 }

// kernel: shufflenet_v2_forward.31
= control target key start
LH: loop header
LB: loop body
LE: loop exit
PB: predicated region body
PF: predicated region fallthrough
CT: control target
= control target key end

     0   :  { %s996_s25 = smov 0   ;;  %s1222_s0 = inlined_call_operand.vmem [shape: f32[2,16,96], index: 0, kind: input, shape index: {}]   ;;  %s1223_s1 = inlined_call_operand.vmem [shape: f32[16,1], index: 1, kind: input, shape index: {}]   ;;  %s1224_s2 = inlined_call_operand.vmem [shape: f32[96,96], index: 2, kind: input, shape index: {}]   ;;  %s1225_s3 = inlined_call_operand.vmem [shape: f32[1,96], index: 3, kind: input, shape index: {}, may-alias: {3,5,7,9,11}]   ;;  %s1226_s4 = inlined_call_operand.vmem [shape: f32[9,1,96], index: 4, kind: input, shape index: {}]   ;;  %s1227_s5 = inlined_call_operand.vmem [shape: f32[1,96], index: 5, kind: input, shape index: {}, may-alias: {3,5,7,9,11}]   ;;  %s1228_s6 = inlined_call_operand.vmem [shape: f32[96,96], index: 6, kind: input, shape index: {}]   ;;  %s1229_s7 = inlined_call_operand.vmem [shape: f32[1,96], index: 7, kind: input, shape index: {}, may-alias: {3,5,7,9,11}]   ;;  %s1230_s8 = inlined_call_operand.vmem [shape: f32[9,1,96], index: 8, kind: input, shape index: {}]   ;;  %s1231_s9 = inlined_call_operand.vmem [shape: f32[1,96], index: 9, kind: input, shape index: {}, may-alias: {3,5,7,9,11}]   ;;  %s1232_s10 = inlined_call_operand.vmem [shape: f32[96,96], index: 10, kind: input, shape index: {}]   ;;  %s1233_s11 = inlined_call_operand.vmem [shape: f32[1,96], index: 11, kind: input, shape index: {}, may-alias: {3,5,7,9,11}]   ;;  %s1234_s12 = inlined_call_operand.vmem [shape: f32[2,1,2,96], index: 12, kind: output, shape index: {0}]   ;;  %s1235_s13 = inlined_call_operand.vmem [shape: f32[2,1,2,96], index: 13, kind: output, shape index: {1}]  }
   0x1 LB: > { %s840_s26 = sadd.s32 4294967295, %s923_s25   ;;  %p844_p0 = scmp.ge.s32.totalorder %s923_s25, 1  ;;  %s923_s25 = sphi %s996_s25, %s24_s25  }
   0x2   : > { %p390_p1 = scmp.lt.s32.totalorder %s923_s25, 3 }
   0x4   : > { %p391_p2 = pnand %p844_p0, %p390_p1 }
   0x5   : > { %p437_p3 = scmp.lt.s32.totalorder (!%p391_p2), %s840_s26, 1 }
   0x6   : > { %394 = sbr.rel (%p391_p2) target bundleno = 334 (0x14e), region = 68 }
   0xb   : > { %v463_v0 = vld [vmem:[%s1224_s2 + $0x58] sm:$0xff]  ;;  %v462_v1 = vld [vmem:[%s1224_s2 + $0x50] sm:$0xff]  ;;  %v461_v2 = vld [vmem:[%s1224_s2 + $0x48] sm:$0xff]  ;;  %v925_v3 = vmov 0   ;;  %s1237_s26 = smov (!%p437_p3, %s840_s26), 1  ;;  %vm468_vm0 = vcmask 785408  }
   0xc   : > { %479 = vmatpush.msra.mxu0 %v463_v0  ;;  %872 = vmatpush.msra.mxu3 %v463_v0  ;;  %v460_v4 = vld [vmem:[%s1224_s2 + $0x40] sm:$0xff]  ;;  %v459_v6 = vld [vmem:[%s1224_s2 + $0x38] sm:$0xff]  ;;  %v458_v7 = vld [vmem:[%s1224_s2 + $0x30] sm:$0xff]  ;;  %s871_s17 = sshll.u32 %s1237_s26, 4  ;;  %vm708_vm1 = vcmask 783360   ;;  %s847_s18 = sshll.u32 %s1237_s26, 1 }
   0xd   : > { %893 = vset.pattern.permute.xlu0 %v925_v3  ;;  %v500_v5 = vld [vmem:[%s1223_s1] sm:$0xff]  ;;  %v457_v8 = vld [vmem:[%s1224_s2 + $0x28] sm:$0xff]  ;;  %v455_v11 = vld [vmem:[%s1224_s2 + $0x18] sm:$0xff]  ;;  %s1049_s24 = scalar_lea.vmem %s1222_s0, %s871_s17  ;;  %s449_s21 = scalar_lea.vmem %s1235_s13, %s847_s18  ;;  %vm752_vm2 = vcmask 779264  }
   0xe   : > { %480 = vmatpush.msra.mxu0 %v462_v1  ;;  %873 = vmatpush.msra.mxu3 %v462_v1  ;;  %v501_v9 = vld [vmem:[%s1223_s1 + $0x8] sm:$0xff]  ;;  %v456_v10 = vld [vmem:[%s1224_s2 + $0x20] sm:$0xff]  ;;  %v454_v12 = vld [vmem:[%s1224_s2 + $0x10] sm:$0xff]  ;;  %s445_s28 = scalar_lea.vmem %s1234_s12, %s847_s18 }
   0xf   : > { %504 = vperm.xlu0 %893, %v500_v5   ;;  %v453_v13 = vld [vmem:[%s1224_s2 + $0x8] sm:$0xff]  ;;  %v452_v14 = vld [vmem:[%s1224_s2] sm:$0xff]  ;;  %v721_v17 = vld [vmem:[%s1232_s10 + $0x58] sm:$0xff] }
  0x10   : > { %481 = vmatpush.msra.mxu0 %v461_v2  ;;  %874 = vmatpush.msra.mxu3 %v461_v2  ;;  %v450_v15 = vld [vmem:[%s1049_s24] sm:$0xff]  ;;  %v451_v16 = vld [vmem:[%s1049_s24 + $0x8] sm:$0xff]  ;;  %v720_v18 = vld [vmem:[%s1232_s10 + $0x50] sm:$0xff] }
  0x11   : > { %733 = vmatpush.msra.mxu2 %v721_v17  ;;  %v896_v19 = vld [vmem:[%s1230_s8] ss:$0 sm:$0xff]  ;;  %v719_v21 = vld [vmem:[%s1232_s10 + $0x48] sm:$0xff]  ;;  %v897_v24 = vld [vmem:[%s1230_s8 + $0x1] ss:$0 sm:$0xff] }
  0x12   : > { %482 = vmatpush.msra.mxu0 %v460_v4  ;;  %875 = vmatpush.msra.mxu3 %v460_v4  ;;  %v533_v20 = vld [vmem:[%s1049_s24] sm:$0x3f]  ;;  %v679_v26 = vld [vmem:[%s1228_s6 + $0x58] sm:$0xff]  ;;  %v678_v32 = vld [vmem:[%s1228_s6 + $0x50] sm:$0xff] }
  0x13   : > { %734 = vmatpush.msra.mxu2 %v720_v18  ;;  %v895_v22 = vld [vmem:[%s1231_s9] ss:$0 sm:$0xff]  ;;  %v538_v23 = vmul.f32 %v896_v19, %v533_v20  ;;  %v548_v25 = vld [vmem:[%s1049_s24 + $0x1] sm:$0x3f]  ;;  %691 = vmatpush.msra.mxu1 %v679_v26  ;;  %v717_v33 = vld [vmem:[%s1232_s10 + $0x38] sm:$0xff] }
  0x14   : > { %483 = vmatpush.msra.mxu0 %v459_v6  ;;  %876 = vmatpush.msra.mxu3 %v459_v6  ;;  %v718_v27 = vld [vmem:[%s1232_s10 + $0x40] sm:$0xff]  ;;  %v554_v29 = vmul.f32 %v897_v24, %v548_v25  ;;  %v677_v34 = vld [vmem:[%s1228_s6 + $0x48] sm:$0xff]  ;;  %v716_v35 = vld [vmem:[%s1232_s10 + $0x30] sm:$0xff] }
  0x15   : > { %735 = vmatpush.msra.mxu2 %v719_v21  ;;  %v539_v28 = vadd.f32 %v895_v22, %v538_v23  ;;  %v898_v30 = vld [vmem:[%s1230_s8 + $0x2] ss:$0 sm:$0xff]  ;;  %692 = vmatpush.msra.mxu1 %v678_v32  ;;  %v715_v39 = vld [vmem:[%s1232_s10 + $0x28] sm:$0xff]  ;;  %v675_v40 = vld [vmem:[%s1228_s6 + $0x38] sm:$0xff] }
  0x16   : > { %484 = vmatpush.msra.mxu0 %v458_v7  ;;  %877 = vmatpush.msra.mxu3 %v458_v7  ;;  %v564_v31 = vld [vmem:[%s1049_s24 + $0x2] sm:$0x3f]  ;;  %v674_v42 = vld [vmem:[%s1228_s6 + $0x30] sm:$0xff]  ;;  %v713_v43 = vld [vmem:[%s1232_s10 + $0x18] sm:$0xff] }
  0x17   : > { %509 = vperm.xlu0 %893, %v501_v9   ;;  %736 = vmatpush.msra.mxu2 %v718_v27  ;;  %v555_v36 = vadd.f32 %v554_v29, %v539_v28  ;;  %v570_v37 = vmul.f32 %v898_v30, %v564_v31  ;;  %v676_v38 = vld [vmem:[%s1228_s6 + $0x40] sm:$0xff]  ;;  %v673_v53 = vld [vmem:[%s1228_s6 + $0x28] sm:$0xff]  ;;  %v712_v54 = vld [vmem:[%s1232_s10 + $0x10] sm:$0xff] }
  0x18   : > { %485 = vmatpush.msra.mxu0 %v457_v8  ;;  %878 = vmatpush.msra.mxu3 %v457_v8  ;;  %v714_v41 = vld [vmem:[%s1232_s10 + $0x20] sm:$0xff]  ;;  %v628_v56 = vld [vmem:[%s1049_s24 + $0x8] sm:$0x3f]  ;;  %v671_v2 = vld [vmem:[%s1228_s6 + $0x18] sm:$0xff] }
  0x19   : > { %737 = vmatpush.msra.mxu2 %v717_v33  ;;  %693 = vmatpush.msra.mxu1 %v677_v34  ;;  %v571_v44 = vadd.f32 %v570_v37, %v555_v36  ;;  %v580_v45 = vld [vmem:[%s1049_s24 + $0x4] sm:$0x3f]  ;;  %v899_v46 = vld [vmem:[%s1230_s8 + $0x3] ss:$0 sm:$0xff]  ;;  %v660_v4 = vld [vmem:[%s1049_s24 + $0xa] sm:$0x3f] }
  0x1a   : > { %486 = vmatpush.msra.mxu0 %v456_v10  ;;  %879 = vmatpush.msra.mxu3 %v456_v10  ;;  %v596_v47 = vld [vmem:[%s1049_s24 + $0x5] sm:$0x3f]  ;;  %v900_v48 = vld [vmem:[%s1230_s8 + $0x4] ss:$0 sm:$0xff]  ;;  %v586_v50 = vmul.f32 %v899_v46, %v580_v45  ;;  %v670_v7 = vld [vmem:[%s1228_s6 + $0x10] sm:$0xff] }
  0x1b   : > { %738 = vmatpush.msra.mxu2 %v716_v35  ;;  %694 = vmatpush.msra.mxu1 %v676_v38  ;;  %v612_v49 = vld [vmem:[%s1049_s24 + $0x6] sm:$0x3f]  ;;  %v901_v51 = vld [vmem:[%s1230_s8 + $0x5] ss:$0 sm:$0xff]  ;;  %v602_v55 = vmul.f32 %v900_v48, %v596_v47  ;;  %v894_v10 = vld [vmem:[%s1225_s3] ss:$0 sm:$0xff] }
  0x1c   : > { %487 = vmatpush.msra.mxu0 %v455_v11  ;;  %880 = vmatpush.msra.mxu3 %v455_v11  ;;  %v902_v52 = vld [vmem:[%s1230_s8 + $0x6] ss:$0 sm:$0xff]  ;;  %v587_v57 = vadd.f32 %v586_v50, %v571_v44  ;;  %v618_v58 = vmul.f32 %v901_v51, %v612_v49  ;;  %v903_v59 = vld [vmem:[%s1230_s8 + $0x7] ss:$0 sm:$0xff]  ;;  %v711_v61 = vld [vmem:[%s1232_s10 + $0x8] sm:$0xff] }
  0x1d   : > { %739 = vmatpush.msra.mxu2 %v715_v39  ;;  %695 = vmatpush.msra.mxu1 %v675_v40  ;;  %v672_v60 = vld [vmem:[%s1228_s6 + $0x20] sm:$0xff]  ;;  %v644_v62 = vld [vmem:[%s1049_s24 + $0x9] sm:$0x3f]  ;;  %v634_v0 = vmul.f32 %v902_v52, %v628_v56  ;;  %v904_v1 = vld [vmem:[%s1230_s8 + $0x8] ss:$0 sm:$0xff] }
  0x1e   : > { %488 = vmatpush.msra.mxu0 %v454_v12  ;;  %881 = vmatpush.msra.mxu3 %v454_v12  ;;  %v603_v63 = vadd.f32 %v602_v55, %v587_v57  ;;  %v710_v3 = vld [vmem:[%s1232_s10] sm:$0xff]  ;;  %v650_v6 = vmul.f32 %v903_v59, %v644_v62  ;;  %v666_v9 = vmul.f32 %v904_v1, %v660_v4  ;;  %v669_v11 = vld [vmem:[%s1228_s6 + $0x8] sm:$0xff] }
  0x1f   : > { %740 = vmatpush.msra.mxu2 %v714_v41  ;;  %696 = vmatpush.msra.mxu1 %v674_v42  ;;  %v906_v25 = vld [vmem:[%s1226_s4] ss:$0 sm:$0xff]  ;;  %v907_v27 = vld [vmem:[%s1226_s4 + $0x1] ss:$0 sm:$0xff]  ;;  %v908_v31 = vld [vmem:[%s1226_s4 + $0x2] ss:$0 sm:$0xff] }
  0x20   : > { %489 = vmatpush.msra.mxu0 %v453_v13  ;;  %882 = vmatpush.msra.mxu3 %v453_v13  ;;  %v619_v5 = vadd.f32 %v618_v58, %v603_v63  ;;  %v668_v13 = vld [vmem:[%s1228_s6] sm:$0xff]  ;;  %v914_v55 = vld [vmem:[%s1226_s4 + $0x8] ss:$0 sm:$0xff] }
  0x21   : > { %741 = vmatpush.msra.mxu2 %v713_v43  ;;  %697 = vmatpush.msra.mxu1 %v673_v53  ;;  %v905_v26 = vld [vmem:[%s1227_s5] ss:$0 sm:$0xff]  ;;  %v909_v35 = vld [vmem:[%s1226_s4 + $0x3] ss:$0 sm:$0xff]  ;;  %v910_v38 = vld [vmem:[%s1226_s4 + $0x4] ss:$0 sm:$0xff] }
  0x22   : > { %490 = vmatpush.msra.mxu0 %v452_v14  ;;  %883 = vmatpush.msra.mxu3 %v452_v14  ;;  %v635_v8 = vadd.f32 %v634_v0, %v619_v5  ;;  %v911_v43 = vld [vmem:[%s1226_s4 + $0x5] ss:$0 sm:$0xff]  ;;  %v912_v47 = vld [vmem:[%s1226_s4 + $0x6] ss:$0 sm:$0xff]  ;;  %v913_v51 = vld [vmem:[%s1226_s4 + $0x7] ss:$0 sm:$0xff] }
  0x23   : > { %849 = vmatmul.msk.f32.vlgmr.msra.gmra.mxu0 %vm468_vm0, %v450_v15  ;;  %850 = vmatmul.msk.f32.vlgmr.msra.gmra.mxu3 %vm468_vm0, %v451_v16  ;;  %v916_v62 = vld [vmem:[%s1233_s11] ss:$0 sm:$0xff] }
  0x24   : > { %742 = vmatpush.msra.mxu2 %v712_v54  ;;  %698 = vmatpush.msra.mxu1 %v672_v60  ;;  %v651_v12 = vadd.f32 %v650_v6, %v635_v8 }
  0x26   : > { %743 = vmatpush.msra.mxu2 %v711_v61  ;;  %699 = vmatpush.msra.mxu1 %v671_v2  ;;  %v667_v16 = vadd.f32 %v666_v9, %v651_v12 }
  0x28   : > { %744 = vmatpush.msra.mxu2 %v710_v3  ;;  %700 = vmatpush.msra.mxu1 %v670_v7  ;;  %v915_v3 = vld [vmem:[%s1229_s7] ss:$0 sm:$0xff] }
  0x29   : > { %868 = vmatmul.msk.f32.vlgmr.msra.gmra.mxu2 %vm468_vm0, %v667_v16 }
  0x2a   : > { %701 = vmatpush.msra.mxu1 %v669_v11 }
  0x2c   : > { %702 = vmatpush.msra.mxu1 %v668_v13 }
  0x81   : > { %v505_v14 = vpop.permute.xlu0 %504 }
  0x89   : > { %v510_v23 = vpop.permute.xlu0 %509 }
  0xa0   : > { %v492_v15 = vpop.f32.mrf.mxu0 }
  0xa1   : > { %v493_v17 = vadd.f32 %v894_v10, %v492_v15 }
  0xa3   : > { %v498_v18 = vmax.f32 %v493_v17, 0.0 }
  0xa5   : > { %v512_v19 = vmul.f32 %v505_v14, %v498_v18 }
  0xa6   : > { %v495_v20 = vpop.f32.mrf.mxu3 }
  0xa7   : > { %514 = vst.msk [vmem:[#allocation2] sm:$0xff] %vm468_vm0, %v512_v19  ;;  %v496_v21 = vadd.f32 %v894_v10, %v495_v20 }
  0xa9   : > { %v499_v22 = vmax.f32 %v496_v21, 0.0 }
  0xab   : > { %v513_v24 = vmul.f32 %v510_v23, %v499_v22 }
  0xac   : > { %v746_v63 = vpop.f32.mrf.mxu2 }
  0xad   : > { %515 = vst.msk [vmem:[#allocation2 + $0x8] sm:$0xff] %vm468_vm0, %v513_v24  ;;  %v747_v0 = vadd.f32 %v916_v62, %v746_v63 }
  0xae   : > { %v526_v28 = vld [vmem:[#allocation2] sm:$0x3f] }
  0xaf   : > { %v540_v29 = vld [vmem:[#allocation2 + $0x1] sm:$0x3f]  ;;  %v531_v30 = vmul.f32 %v906_v25, %v526_v28  ;;  %v749_v1 = vmax.f32 %v747_v0, 0.0 }
  0xb0   : > { %v556_v32 = vld [vmem:[#allocation2 + $0x2] sm:$0x3f]  ;;  %v546_v34 = vmul.f32 %v907_v27, %v540_v29 }
  0xb1   : > { %v532_v33 = vadd.f32 %v905_v26, %v531_v30  ;;  %v562_v37 = vmul.f32 %v908_v31, %v556_v32  ;;  %750 = vst.msk [vmem:[#allocation4] sm:$0x3f] %vm708_vm1, %v749_v1 }
  0xb3   : > { %v547_v36 = vadd.f32 %v546_v34, %v532_v33 }
  0xb4   : > { %v572_v39 = vld [vmem:[#allocation2 + $0x4] sm:$0x3f]  ;;  %v652_v56 = vld [vmem:[#allocation2 + $0xa] sm:$0x3f] }
  0xb5   : > { %v588_v40 = vld [vmem:[#allocation2 + $0x5] sm:$0x3f]  ;;  %v563_v41 = vadd.f32 %v562_v37, %v547_v36  ;;  %v578_v42 = vmul.f32 %v909_v35, %v572_v39  ;;  %v658_v60 = vmul.f32 %v914_v55, %v652_v56 }
  0xb6   : > { %v604_v44 = vld [vmem:[#allocation2 + $0x6] sm:$0x3f]  ;;  %v594_v46 = vmul.f32 %v910_v38, %v588_v40 }
  0xb7   : > { %v579_v45 = vadd.f32 %v578_v42, %v563_v41  ;;  %v620_v48 = vld [vmem:[#allocation2 + $0x8] sm:$0x3f]  ;;  %v610_v50 = vmul.f32 %v911_v43, %v604_v44 }
  0xb8   : > { %v636_v52 = vld [vmem:[#allocation2 + $0x9] sm:$0x3f]  ;;  %v626_v54 = vmul.f32 %v912_v47, %v620_v48  ;;  %v754_v2 = vld [vmem:[#allocation4] sm:$0x3] }
  0xb9   : > { %v595_v49 = vadd.f32 %v594_v46, %v579_v45  ;;  %v642_v58 = vmul.f32 %v913_v51, %v636_v52  ;;  %755 = vst.msk [vmem:[%s449_s21] sm:$0x3] %vm752_vm2, %v754_v2 }
  0xbb   : > { %v611_v53 = vadd.f32 %v610_v50, %v595_v49 }
  0xbd   : > { %v627_v57 = vadd.f32 %v626_v54, %v611_v53 }
  0xbf   : > { %v643_v59 = vadd.f32 %v642_v58, %v627_v57 }
  0xc1   : > { %v659_v61 = vadd.f32 %v658_v60, %v643_v59 }
  0xc3   : > { %867 = vmatmul.msk.f32.vlgmr.msra.gmra.mxu1 %vm468_vm0, %v659_v61 }
 0x140   : > { %v704_v4 = vpop.f32.mrf.mxu1 }
 0x141   : > { %v705_v5 = vadd.f32 %v915_v3, %v704_v4 }
 0x143   : > { %v707_v6 = vmax.f32 %v705_v5, 0.0 }
 0x145   : > { %709 = vst.msk [vmem:[#allocation3] sm:$0x3f] %vm708_vm1, %v707_v6 }
 0x14c   : > { %v751_v7 = vld [vmem:[#allocation3] sm:$0x3] }
 0x14d   : > { %753 = vst.msk [vmem:[%s445_s28] sm:$0x3] %vm752_vm2, %v751_v7 }
 0x14e PF: > { %s24_s25 = sadd.s32 1, %s923_s25  }
 0x14f   : > { %p21_p4 = scmp.ge.s32.totalorder %s24_s25, 4  }
 0x151   :  { %23 = sbr.rel (!%p21_p4) target bundleno = 1 (0x1), region = 126 }

// kernel: shufflenet_v2_forward.32
= control target key start
LH: loop header
LB: loop body
LE: loop exit
PB: predicated region body
PF: predicated region fallthrough
CT: control target
= control target key end

     0   :  { %s600_s27 = smov 0   ;;  %s742_s0 = inlined_call_operand.vmem [shape: f32[2,9,96], index: 0, kind: input, shape index: {}]   ;;  %s743_s1 = inlined_call_operand.vmem [shape: f32[9,1], index: 1, kind: input, shape index: {}]   ;;  %s744_s2 = inlined_call_operand.vmem [shape: f32[96,96], index: 2, kind: input, shape index: {}]   ;;  %s745_s3 = inlined_call_operand.vmem [shape: f32[1,96], index: 3, kind: input, shape index: {}, may-alias: {3,5,7}]   ;;  %s746_s4 = inlined_call_operand.vmem [shape: f32[9,1,96], index: 4, kind: input, shape index: {}]   ;;  %s747_s5 = inlined_call_operand.vmem [shape: f32[1,96], index: 5, kind: input, shape index: {}, may-alias: {3,5,7}]   ;;  %s748_s6 = inlined_call_operand.vmem [shape: f32[96,96], index: 6, kind: input, shape index: {}]   ;;  %s749_s7 = inlined_call_operand.vmem [shape: f32[1,96], index: 7, kind: input, shape index: {}, may-alias: {3,5,7}]   ;;  %s750_s8 = inlined_call_operand.vmem [shape: f32[2,1,1,96], index: 8, kind: output, shape index: {}]  }
   0x1 LB: > { %s502_s28 = sadd.s32 4294967295, %s552_s27   ;;  %p506_p0 = scmp.ge.s32.totalorder %s552_s27, 1  ;;  %s552_s27 = sphi %s600_s27, %s18_s27  }
   0x2   : > { %p262_p1 = scmp.lt.s32.totalorder %s552_s27, 3 }
   0x4   : > { %p263_p2 = pnand %p506_p0, %p262_p1 }
   0x5   : > { %p294_p3 = scmp.lt.s32.totalorder (!%p263_p2), %s502_s28, 1 }
   0x6   : > { %266 = sbr.rel (%p263_p2) target bundleno = 334 (0x14e), region = 52 }
   0xb   : > { %v315_v0 = vld [vmem:[%s744_s2 + $0x58] sm:$0xff]  ;;  %v314_v1 = vld [vmem:[%s744_s2 + $0x50] sm:$0xff]  ;;  %v313_v2 = vld [vmem:[%s744_s2 + $0x48] sm:$0xff]  ;;  %v554_v3 = vmov 0   ;;  %s752_s28 = smov (!%p294_p3, %s502_s28), 1  ;;  %vm320_vm0 = vcmask 785408  }
   0xc   : > { %331 = vmatpush.msra.mxu0 %v315_v0  ;;  %523 = vmatpush.msra.mxu2 %v315_v0  ;;  %v312_v4 = vld [vmem:[%s744_s2 + $0x40] sm:$0xff]  ;;  %v311_v6 = vld [vmem:[%s744_s2 + $0x38] sm:$0xff]  ;;  %v310_v7 = vld [vmem:[%s744_s2 + $0x30] sm:$0xff]  ;;  %s522_s9 = sshll.u32 %s752_s28, 4  ;;  %vm367_vm1 = vcmask 778240  }
   0xd   : > { %544 = vset.pattern.permute.xlu0 %v554_v3  ;;  %v352_v5 = vld [vmem:[%s743_s1] sm:$0xff]  ;;  %v309_v8 = vld [vmem:[%s744_s2 + $0x28] sm:$0xff]  ;;  %v307_v11 = vld [vmem:[%s744_s2 + $0x18] sm:$0xff]  ;;  %s298_s16 = scalar_lea.vmem %s742_s0, %s522_s9  ;;  %s301_s9 = scalar_lea.vmem %s750_s8, %s752_s28 }
   0xe   : > { %332 = vmatpush.msra.mxu0 %v314_v1  ;;  %524 = vmatpush.msra.mxu2 %v314_v1  ;;  %v353_v9 = vld [vmem:[%s743_s1 + $0x8] sm:$0x1]  ;;  %v308_v10 = vld [vmem:[%s744_s2 + $0x20] sm:$0xff]  ;;  %v306_v12 = vld [vmem:[%s744_s2 + $0x10] sm:$0xff] }
   0xf   : > { %356 = vperm.xlu0 %544, %v352_v5   ;;  %v305_v13 = vld [vmem:[%s744_s2 + $0x8] sm:$0xff]  ;;  %v304_v14 = vld [vmem:[%s744_s2] sm:$0xff]  ;;  %v426_v17 = vld [vmem:[%s748_s6 + $0x58] sm:$0xff] }
  0x10   : > { %333 = vmatpush.msra.mxu0 %v313_v2  ;;  %525 = vmatpush.msra.mxu2 %v313_v2  ;;  %v302_v15 = vld [vmem:[%s298_s16] sm:$0xff]  ;;  %v303_v16 = vld [vmem:[%s298_s16 + $0x8] sm:$0x1]  ;;  %v425_v18 = vld [vmem:[%s748_s6 + $0x50] sm:$0xff] }
  0x11   : > { %435 = vmatpush.msra.mxu1 %v426_v17  ;;  %v424_v19 = vld [vmem:[%s748_s6 + $0x48] sm:$0xff]  ;;  %v423_v20 = vld [vmem:[%s748_s6 + $0x40] sm:$0xff]  ;;  %v422_v21 = vld [vmem:[%s748_s6 + $0x38] sm:$0xff] }
  0x12   : > { %334 = vmatpush.msra.mxu0 %v312_v4  ;;  %526 = vmatpush.msra.mxu2 %v312_v4  ;;  %v421_v22 = vld [vmem:[%s748_s6 + $0x30] sm:$0xff]  ;;  %v420_v23 = vld [vmem:[%s748_s6 + $0x28] sm:$0xff]  ;;  %v419_v24 = vld [vmem:[%s748_s6 + $0x20] sm:$0xff] }
  0x13   : > { %436 = vmatpush.msra.mxu1 %v425_v18  ;;  %v418_v25 = vld [vmem:[%s748_s6 + $0x18] sm:$0xff]  ;;  %v417_v26 = vld [vmem:[%s748_s6 + $0x10] sm:$0xff]  ;;  %v545_v27 = vld [vmem:[%s745_s3] ss:$0 sm:$0xff] }
  0x14   : > { %335 = vmatpush.msra.mxu0 %v311_v6  ;;  %527 = vmatpush.msra.mxu2 %v311_v6  ;;  %v416_v28 = vld [vmem:[%s748_s6 + $0x8] sm:$0xff]  ;;  %v415_v29 = vld [vmem:[%s748_s6] sm:$0xff] }
  0x15   : > { %437 = vmatpush.msra.mxu1 %v424_v19  ;;  %v372_v40 = vld [vmem:[%s746_s4] sm:$0x1]  ;;  %v511_v44 = vld [vmem:[%s746_s4 + $0x1] sm:$0x1]  ;;  %v512_v47 = vld [vmem:[%s746_s4 + $0x2] sm:$0x1] }
  0x16   : > { %336 = vmatpush.msra.mxu0 %v310_v7  ;;  %528 = vmatpush.msra.mxu2 %v310_v7  ;;  %v369_v41 = vld [vmem:[%s747_s5] sm:$0x1]  ;;  %v513_v51 = vld [vmem:[%s746_s4 + $0x3] sm:$0x1]  ;;  %v514_v55 = vld [vmem:[%s746_s4 + $0x4] sm:$0x1] }
  0x17   : > { %361 = vperm.xlu0 %544, %v353_v9   ;;  %438 = vmatpush.msra.mxu1 %v423_v20  ;;  %v515_v59 = vld [vmem:[%s746_s4 + $0x5] sm:$0x1]  ;;  %v516_v63 = vld [vmem:[%s746_s4 + $0x6] sm:$0x1]  ;;  %v517_v3 = vld [vmem:[%s746_s4 + $0x7] sm:$0x1] }
  0x18   : > { %337 = vmatpush.msra.mxu0 %v309_v8  ;;  %529 = vmatpush.msra.mxu2 %v309_v8  ;;  %v518_v7 = vld [vmem:[%s746_s4 + $0x8] sm:$0x1] }
  0x19   : > { %439 = vmatpush.msra.mxu1 %v422_v21 }
  0x1a   : > { %338 = vmatpush.msra.mxu0 %v308_v10  ;;  %530 = vmatpush.msra.mxu2 %v308_v10 }
  0x1b   : > { %440 = vmatpush.msra.mxu1 %v421_v22 }
  0x1c   : > { %339 = vmatpush.msra.mxu0 %v307_v11  ;;  %531 = vmatpush.msra.mxu2 %v307_v11 }
  0x1d   : > { %441 = vmatpush.msra.mxu1 %v420_v23 }
  0x1e   : > { %340 = vmatpush.msra.mxu0 %v306_v12  ;;  %532 = vmatpush.msra.mxu2 %v306_v12 }
  0x1f   : > { %442 = vmatpush.msra.mxu1 %v419_v24 }
  0x20   : > { %341 = vmatpush.msra.mxu0 %v305_v13  ;;  %533 = vmatpush.msra.mxu2 %v305_v13  ;;  %v427_v13 = vld [vmem:[%s749_s7] sm:$0x1] }
  0x21   : > { %443 = vmatpush.msra.mxu1 %v418_v25 }
  0x22   : > { %342 = vmatpush.msra.mxu0 %v304_v14  ;;  %534 = vmatpush.msra.mxu2 %v304_v14 }
  0x23   : > { %509 = vmatmul.msk.f32.vlgmr.msra.gmra.mxu0 %vm320_vm0, %v302_v15  ;;  %510 = vmatmul.msk.f32.vlgmr.msra.gmra.mxu2 %vm320_vm0, %v303_v16 }
  0x24   : > { %444 = vmatpush.msra.mxu1 %v417_v26 }
  0x26   : > { %445 = vmatpush.msra.mxu1 %v416_v28 }
  0x28   : > { %446 = vmatpush.msra.mxu1 %v415_v29 }
  0x81   : > { %v357_v30 = vpop.permute.xlu0 %356 }
  0x89   : > { %v362_v38 = vpop.permute.xlu0 %361 }
  0xa0   : > { %v344_v31 = vpop.f32.mrf.mxu0 }
  0xa1   : > { %v345_v32 = vadd.f32 %v545_v27, %v344_v31 }
  0xa3   : > { %v350_v33 = vmax.f32 %v345_v32, 0.0 }
  0xa5   : > { %v364_v34 = vmul.f32 %v357_v30, %v350_v33 }
  0xa6   : > { %v347_v35 = vpop.f32.mrf.mxu2 }
  0xa7   : > { %366 = vst.msk [vmem:[#allocation2] sm:$0xff] %vm320_vm0, %v364_v34  ;;  %v348_v36 = vadd.f32 %v545_v27, %v347_v35 }
  0xa9   : > { %v351_v37 = vmax.f32 %v348_v36, 0.0 }
  0xab   : > { %v365_v39 = vmul.f32 %v362_v38, %v351_v37 }
  0xad   : > { %368 = vst.msk [vmem:[#allocation2 + $0x8] sm:$0x1] %vm367_vm1, %v365_v39 }
  0xae   : > { %v371_v42 = vld [vmem:[#allocation2] sm:$0x1]  ;;  %v375_v43 = vld [vmem:[#allocation2 + $0x1] sm:$0x1]  ;;  %v380_v46 = vld [vmem:[#allocation2 + $0x2] sm:$0x1] }
  0xaf   : > { %v373_v45 = vmul.f32 %v372_v40, %v371_v42  ;;  %v378_v49 = vmul.f32 %v511_v44, %v375_v43  ;;  %v385_v50 = vld [vmem:[#allocation2 + $0x3] sm:$0x1]  ;;  %v383_v53 = vmul.f32 %v512_v47, %v380_v46  ;;  %v390_v54 = vld [vmem:[#allocation2 + $0x4] sm:$0x1]  ;;  %v395_v58 = vld [vmem:[#allocation2 + $0x5] sm:$0x1] }
  0xb0   : > { %v388_v57 = vmul.f32 %v513_v51, %v385_v50  ;;  %v393_v61 = vmul.f32 %v514_v55, %v390_v54  ;;  %v400_v62 = vld [vmem:[#allocation2 + $0x6] sm:$0x1]  ;;  %v398_v1 = vmul.f32 %v515_v59, %v395_v58  ;;  %v405_v2 = vld [vmem:[#allocation2 + $0x7] sm:$0x1] }
  0xb1   : > { %v374_v48 = vadd.f32 %v373_v45, %v369_v41  ;;  %v403_v5 = vmul.f32 %v516_v63, %v400_v62  ;;  %v408_v9 = vmul.f32 %v517_v3, %v405_v2 }
  0xb3   : > { %v379_v52 = vadd.f32 %v378_v49, %v374_v48 }
  0xb4   : > { %v410_v6 = vld [vmem:[#allocation2 + $0x8] sm:$0x1] }
  0xb5   : > { %v384_v56 = vadd.f32 %v383_v53, %v379_v52  ;;  %v413_v11 = vmul.f32 %v518_v7, %v410_v6 }
  0xb7   : > { %v389_v60 = vadd.f32 %v388_v57, %v384_v56 }
  0xb9   : > { %v394_v0 = vadd.f32 %v393_v61, %v389_v60 }
  0xbb   : > { %v399_v4 = vadd.f32 %v398_v1, %v394_v0 }
  0xbd   : > { %v404_v8 = vadd.f32 %v403_v5, %v399_v4 }
  0xbf   : > { %v409_v10 = vadd.f32 %v408_v9, %v404_v8 }
  0xc1   : > { %v414_v12 = vadd.f32 %v413_v11, %v409_v10 }
  0xc3   : > { %519 = vmatmul.msk.f32.vlgmr.msra.gmra.mxu1 %vm320_vm0, %v414_v12 }
 0x140   : > { %v448_v14 = vpop.f32.mrf.mxu1 }
 0x141   : > { %v449_v15 = vadd.f32 %v448_v14, %v427_v13 }
 0x143   : > { %v451_v16 = vmax.f32 %v449_v15, 0.0 }
 0x145   : > { %452 = vst.msk [vmem:[#allocation3] sm:$0x1] %vm367_vm1, %v451_v16 }
 0x14c   : > { %v453_v17 = vld [vmem:[#allocation3] sm:$0x1] }
 0x14d   : > { %454 = vst.msk [vmem:[%s301_s9] sm:$0x1] %vm367_vm1, %v453_v17 }
 0x14e PF: > { %s18_s27 = sadd.s32 1, %s552_s27  }
 0x14f   : > { %p15_p4 = scmp.ge.s32.totalorder %s18_s27, 4  }
 0x151   :  { %17 = sbr.rel (!%p15_p4) target bundleno = 1 (0x1), region = 90 }

// kernel: shufflenet_v2_forward.35
= control target key start
LH: loop header
LB: loop body
LE: loop exit
PB: predicated region body
PF: predicated region fallthrough
CT: control target
= control target key end

     0   :  { %vm230_vm0 = vcmask 523264   ;;  %vm575_vm1 = vcmask 1041408   ;;  %vm577_vm2 = vcmask 1045508   ;;  %vm579_vm3 = vcmask 1043456   ;;  %s1242_s1 = inlined_call_operand.vmem [shape: f32[192,1024], index: 1, kind: input, shape index: {}]   ;;  %s1243_s0 = inlined_call_operand.vmem [shape: f32[2,192], index: 0, kind: input, shape index: {}]   ;;  %s1244_s2 = inlined_call_operand.vmem [shape: f32[1,1024], index: 2, kind: input, shape index: {}]   ;;  %s1245_s3 = inlined_call_operand.vmem [shape: f32[2,1024], index: 3, kind: output, shape index: {}]  }
   0x1   :  { %v135_v0 = vld [vmem:[%s1242_s1 + $0x3c0] sm:$0xff]  ;;  %v136_v1 = vld [vmem:[%s1242_s1 + $0x3c8] sm:$0xff]  ;;  %v201_v33 = vld [vmem:[%s1242_s1 + $0x5d0] sm:$0xff] }
   0x2   :  { %v200_v2 = vld [vmem:[%s1242_s1 + $0x5c8] sm:$0xff]  ;;  %233 = vmatpush.msra.mxu0 %v135_v0  ;;  %273 = vmatpush.msra.mxu2 %v136_v1  ;;  %v127_v3 = vld [vmem:[%s1242_s1 + $0x380] sm:$0xff]  ;;  %v193_v37 = vld [vmem:[%s1242_s1 + $0x590] sm:$0xff] }
   0x3   :  { %v128_v4 = vld [vmem:[%s1242_s1 + $0x388] sm:$0xff]  ;;  %301 = vmatpush.msra.mxu3 %v200_v2  ;;  %v119_v6 = vld [vmem:[%s1242_s1 + $0x340] sm:$0xff]  ;;  %v137_v38 = vld [vmem:[%s1242_s1 + $0x3d0] sm:$0xff] }
   0x4   :  { %v192_v5 = vld [vmem:[%s1242_s1 + $0x588] sm:$0xff]  ;;  %v199_v7 = vld [vmem:[%s1242_s1 + $0x5c0] sm:$0xff]  ;;  %234 = vmatpush.msra.mxu0 %v127_v3  ;;  %274 = vmatpush.msra.mxu2 %v128_v4  ;;  %v185_v41 = vld [vmem:[%s1242_s1 + $0x550] sm:$0xff] }
   0x5   :  { %v120_v8 = vld [vmem:[%s1242_s1 + $0x348] sm:$0xff]  ;;  %v191_v10 = vld [vmem:[%s1242_s1 + $0x580] sm:$0xff]  ;;  %302 = vmatpush.msra.mxu3 %v192_v5  ;;  %261 = vmatpush.msra.mxu1 %v199_v7  ;;  %v129_v42 = vld [vmem:[%s1242_s1 + $0x390] sm:$0xff] }
   0x6   :  { %v184_v9 = vld [vmem:[%s1242_s1 + $0x548] sm:$0xff]  ;;  %v111_v11 = vld [vmem:[%s1242_s1 + $0x300] sm:$0xff]  ;;  %235 = vmatpush.msra.mxu0 %v119_v6  ;;  %275 = vmatpush.msra.mxu2 %v120_v8  ;;  %v177_v46 = vld [vmem:[%s1242_s1 + $0x510] sm:$0xff] }
   0x7   :  { %v112_v12 = vld [vmem:[%s1242_s1 + $0x308] sm:$0xff]  ;;  %v183_v14 = vld [vmem:[%s1242_s1 + $0x540] sm:$0xff]  ;;  %303 = vmatpush.msra.mxu3 %v184_v9  ;;  %262 = vmatpush.msra.mxu1 %v191_v10  ;;  %v121_v47 = vld [vmem:[%s1242_s1 + $0x350] sm:$0xff] }
   0x8   :  { %v176_v13 = vld [vmem:[%s1242_s1 + $0x508] sm:$0xff]  ;;  %v103_v15 = vld [vmem:[%s1242_s1 + $0x2c0] sm:$0xff]  ;;  %236 = vmatpush.msra.mxu0 %v111_v11  ;;  %276 = vmatpush.msra.mxu2 %v112_v12  ;;  %v169_v50 = vld [vmem:[%s1242_s1 + $0x4d0] sm:$0xff] }
   0x9   :  { %v104_v16 = vld [vmem:[%s1242_s1 + $0x2c8] sm:$0xff]  ;;  %v175_v18 = vld [vmem:[%s1242_s1 + $0x500] sm:$0xff]  ;;  %304 = vmatpush.msra.mxu3 %v176_v13  ;;  %263 = vmatpush.msra.mxu1 %v183_v14  ;;  %v113_v51 = vld [vmem:[%s1242_s1 + $0x310] sm:$0xff] }
   0xa   :  { %v168_v17 = vld [vmem:[%s1242_s1 + $0x4c8] sm:$0xff]  ;;  %v95_v19 = vld [vmem:[%s1242_s1 + $0x280] sm:$0xff]  ;;  %237 = vmatpush.msra.mxu0 %v103_v15  ;;  %277 = vmatpush.msra.mxu2 %v104_v16  ;;  %v161_v54 = vld [vmem:[%s1242_s1 + $0x490] sm:$0xff] }
   0xb   :  { %v96_v20 = vld [vmem:[%s1242_s1 + $0x288] sm:$0xff]  ;;  %v167_v22 = vld [vmem:[%s1242_s1 + $0x4c0] sm:$0xff]  ;;  %305 = vmatpush.msra.mxu3 %v168_v17  ;;  %264 = vmatpush.msra.mxu1 %v175_v18  ;;  %v105_v55 = vld [vmem:[%s1242_s1 + $0x2d0] sm:$0xff] }
   0xc   :  { %v160_v21 = vld [vmem:[%s1242_s1 + $0x488] sm:$0xff]  ;;  %v87_v23 = vld [vmem:[%s1242_s1 + $0x240] sm:$0xff]  ;;  %238 = vmatpush.msra.mxu0 %v95_v19  ;;  %278 = vmatpush.msra.mxu2 %v96_v20  ;;  %v153_v58 = vld [vmem:[%s1242_s1 + $0x450] sm:$0xff] }
   0xd   :  { %v88_v24 = vld [vmem:[%s1242_s1 + $0x248] sm:$0xff]  ;;  %v159_v26 = vld [vmem:[%s1242_s1 + $0x480] sm:$0xff]  ;;  %306 = vmatpush.msra.mxu3 %v160_v21  ;;  %265 = vmatpush.msra.mxu1 %v167_v22  ;;  %v97_v59 = vld [vmem:[%s1242_s1 + $0x290] sm:$0xff] }
   0xe   :  { %v152_v25 = vld [vmem:[%s1242_s1 + $0x448] sm:$0xff]  ;;  %v79_v27 = vld [vmem:[%s1242_s1 + $0x200] sm:$0xff]  ;;  %239 = vmatpush.msra.mxu0 %v87_v23  ;;  %279 = vmatpush.msra.mxu2 %v88_v24  ;;  %v145_v62 = vld [vmem:[%s1242_s1 + $0x410] sm:$0xff] }
   0xf   :  { %v80_v28 = vld [vmem:[%s1242_s1 + $0x208] sm:$0xff]  ;;  %v151_v30 = vld [vmem:[%s1242_s1 + $0x440] sm:$0xff]  ;;  %307 = vmatpush.msra.mxu3 %v152_v25  ;;  %266 = vmatpush.msra.mxu1 %v159_v26  ;;  %v89_v1 = vld [vmem:[%s1242_s1 + $0x250] sm:$0xff] }
  0x10   :  { %v144_v29 = vld [vmem:[%s1242_s1 + $0x408] sm:$0xff]  ;;  %v71_v31 = vld [vmem:[%s1242_s1 + $0x1c0] sm:$0xff]  ;;  %240 = vmatpush.msra.mxu0 %v79_v27  ;;  %280 = vmatpush.msra.mxu2 %v80_v28  ;;  %v138_v2 = vld [vmem:[%s1242_s1 + $0x3d8] sm:$0xff] }
  0x11   :  { %v72_v32 = vld [vmem:[%s1242_s1 + $0x1c8] sm:$0xff]  ;;  %v143_v34 = vld [vmem:[%s1242_s1 + $0x400] sm:$0xff]  ;;  %308 = vmatpush.msra.mxu3 %v144_v29  ;;  %267 = vmatpush.msra.mxu1 %v151_v30  ;;  %v202_v3 = vld [vmem:[%s1242_s1 + $0x5d8] sm:$0xff] }
  0x12   :  { %v63_v35 = vld [vmem:[%s1242_s1 + $0x180] sm:$0xff]  ;;  %v64_v36 = vld [vmem:[%s1242_s1 + $0x188] sm:$0xff]  ;;  %241 = vmatpush.msra.mxu0 %v71_v31  ;;  %281 = vmatpush.msra.mxu2 %v72_v32  ;;  %v81_v5 = vld [vmem:[%s1242_s1 + $0x210] sm:$0xff] }
  0x13   :  { %341 = vmatpush.msrb.mxu3 %v201_v33  ;;  %268 = vmatpush.msra.mxu1 %v143_v34  ;;  %v55_v39 = vld [vmem:[%s1242_s1 + $0x140] sm:$0xff]  ;;  %v56_v40 = vld [vmem:[%s1242_s1 + $0x148] sm:$0xff]  ;;  %v130_v6 = vld [vmem:[%s1242_s1 + $0x398] sm:$0xff] }
  0x14   :  { %242 = vmatpush.msra.mxu0 %v63_v35  ;;  %282 = vmatpush.msra.mxu2 %v64_v36  ;;  %v47_v43 = vld [vmem:[%s1242_s1 + $0x100] sm:$0xff]  ;;  %v48_v44 = vld [vmem:[%s1242_s1 + $0x108] sm:$0xff]  ;;  %v194_v7 = vld [vmem:[%s1242_s1 + $0x598] sm:$0xff] }
  0x15   :  { %342 = vmatpush.msrb.mxu3 %v193_v37  ;;  %313 = vmatpush.msrb.mxu1 %v137_v38  ;;  %v14_v45 = vld [vmem:[%s1243_s0] sm:$0xf]  ;;  %v40_v49 = vld [vmem:[%s1242_s1 + $0xc8] sm:$0xff]  ;;  %v73_v9 = vld [vmem:[%s1242_s1 + $0x1d0] sm:$0xff] }
  0x16   :  { %243 = vmatpush.msra.mxu0 %v55_v39  ;;  %283 = vmatpush.msra.mxu2 %v56_v40  ;;  %226 = vst [vmem:[#allocation1] ss:$4 sm:$0xff] %v14_v45  ;;  %v39_v48 = vld [vmem:[%s1242_s1 + $0xc0] sm:$0xff]  ;;  %v32_v53 = vld [vmem:[%s1242_s1 + $0x88] sm:$0xff]  ;;  %v122_v10 = vld [vmem:[%s1242_s1 + $0x358] sm:$0xff] }
  0x17   :  { %343 = vmatpush.msrb.mxu3 %v185_v41  ;;  %314 = vmatpush.msrb.mxu1 %v129_v42  ;;  %v31_v52 = vld [vmem:[%s1242_s1 + $0x80] sm:$0xff]  ;;  %v24_v57 = vld [vmem:[%s1242_s1 + $0x48] sm:$0xff]  ;;  %v186_v11 = vld [vmem:[%s1242_s1 + $0x558] sm:$0xff] }
  0x18   :  { %244 = vmatpush.msra.mxu0 %v47_v43  ;;  %284 = vmatpush.msra.mxu2 %v48_v44  ;;  %v23_v56 = vld [vmem:[%s1242_s1 + $0x40] sm:$0xff]  ;;  %v16_v61 = vld [vmem:[%s1242_s1 + $0x8] sm:$0xff]  ;;  %v65_v13 = vld [vmem:[%s1242_s1 + $0x190] sm:$0xff] }
  0x19   :  { %344 = vmatpush.msrb.mxu3 %v177_v46  ;;  %315 = vmatpush.msrb.mxu1 %v121_v47  ;;  %v15_v60 = vld [vmem:[%s1242_s1] sm:$0xff]  ;;  %v114_v14 = vld [vmem:[%s1242_s1 + $0x318] sm:$0xff]  ;;  %v57_v17 = vld [vmem:[%s1242_s1 + $0x150] sm:$0xff] }
  0x1a   :  { %245 = vmatpush.msra.mxu0 %v39_v48  ;;  %285 = vmatpush.msra.mxu2 %v40_v49  ;;  %v139_v4 = vld [vmem:[%s1242_s1 + $0x3e0] sm:$0xff]  ;;  %v178_v15 = vld [vmem:[%s1242_s1 + $0x518] sm:$0xff]  ;;  %v49_v22 = vld [vmem:[%s1242_s1 + $0x110] sm:$0xff] }
  0x1b   :  { %345 = vmatpush.msrb.mxu3 %v169_v50  ;;  %316 = vmatpush.msrb.mxu1 %v113_v51  ;;  %v131_v8 = vld [vmem:[%s1242_s1 + $0x3a0] sm:$0xff]  ;;  %v106_v18 = vld [vmem:[%s1242_s1 + $0x2d8] sm:$0xff]  ;;  %v41_v26 = vld [vmem:[%s1242_s1 + $0xd0] sm:$0xff] }
  0x1c   :  { %246 = vmatpush.msra.mxu0 %v31_v52  ;;  %286 = vmatpush.msra.mxu2 %v32_v53  ;;  %v123_v12 = vld [vmem:[%s1242_s1 + $0x360] sm:$0xff]  ;;  %v170_v19 = vld [vmem:[%s1242_s1 + $0x4d8] sm:$0xff]  ;;  %v33_v30 = vld [vmem:[%s1242_s1 + $0x90] sm:$0xff] }
  0x1d   :  { %346 = vmatpush.msrb.mxu3 %v161_v54  ;;  %317 = vmatpush.msrb.mxu1 %v105_v55  ;;  %v809_v63 = vld.sshfl [vmem:[#allocation1] sm:$0xff pattern:$0x73625140]  ;;  %v811_v0 = vld.sshfl [vmem:[#allocation1 + $0x8] sm:$0xff pattern:$0x73625140] }
  0x1e   :  { %247 = vmatpush.msra.mxu0 %v23_v56  ;;  %287 = vmatpush.msra.mxu2 %v24_v57  ;;  %v115_v16 = vld [vmem:[%s1242_s1 + $0x320] sm:$0xff]  ;;  %v98_v21 = vld [vmem:[%s1242_s1 + $0x298] sm:$0xff]  ;;  %v140_v33 = vld [vmem:[%s1242_s1 + $0x3e8] sm:$0xff] }
  0x1f   :  { %347 = vmatpush.msrb.mxu3 %v153_v58  ;;  %318 = vmatpush.msrb.mxu1 %v97_v59  ;;  %v107_v20 = vld [vmem:[%s1242_s1 + $0x2e0] sm:$0xff]  ;;  %v162_v23 = vld [vmem:[%s1242_s1 + $0x498] sm:$0xff]  ;;  %v25_v34 = vld [vmem:[%s1242_s1 + $0x50] sm:$0xff] }
  0x20   :  { %248 = vmatpush.msra.mxu0 %v15_v60  ;;  %288 = vmatpush.msra.mxu2 %v16_v61  ;;  %v99_v24 = vld [vmem:[%s1242_s1 + $0x2a0] sm:$0xff]  ;;  %v90_v25 = vld [vmem:[%s1242_s1 + $0x258] sm:$0xff]  ;;  %v132_v37 = vld [vmem:[%s1242_s1 + $0x3a8] sm:$0xff] }
  0x21   :  { %348 = vmatpush.msrb.mxu3 %v145_v62  ;;  %289 = vmatmul.f32.vlgmr.msra.gmra.mxu2 %v809_v63  ;;  %v154_v27 = vld [vmem:[%s1242_s1 + $0x458] sm:$0xff]  ;;  %v91_v28 = vld [vmem:[%s1242_s1 + $0x260] sm:$0xff]  ;;  %v17_v38 = vld [vmem:[%s1242_s1 + $0x10] sm:$0xff] }
  0x22   :  { %593 = vmatmul.msk.f32.vlgmr.msra.gmra.mxu3 %vm230_vm0, %v811_v0  ;;  %319 = vmatpush.msrb.mxu1 %v89_v1  ;;  %v82_v29 = vld [vmem:[%s1242_s1 + $0x218] sm:$0xff]  ;;  %v83_v32 = vld [vmem:[%s1242_s1 + $0x220] sm:$0xff]  ;;  %v124_v42 = vld [vmem:[%s1242_s1 + $0x368] sm:$0xff] }
  0x23   :  { %353 = vmatpush.msrb.mxu0 %v138_v2  ;;  %381 = vmatpush.msrb.mxu2 %v202_v3  ;;  %v146_v31 = vld [vmem:[%s1242_s1 + $0x418] sm:$0xff]  ;;  %v75_v36 = vld [vmem:[%s1242_s1 + $0x1e0] sm:$0xff]  ;;  %v116_v46 = vld [vmem:[%s1242_s1 + $0x328] sm:$0xff] }
  0x24   :  { %393 = vmatpush.msra.mxu3 %v139_v4  ;;  %320 = vmatpush.msrb.mxu1 %v81_v5  ;;  %v74_v35 = vld [vmem:[%s1242_s1 + $0x1d8] sm:$0xff]  ;;  %v67_v40 = vld [vmem:[%s1242_s1 + $0x1a0] sm:$0xff]  ;;  %v108_v50 = vld [vmem:[%s1242_s1 + $0x2e8] sm:$0xff] }
  0x25   :  { %354 = vmatpush.msrb.mxu0 %v130_v6  ;;  %382 = vmatpush.msrb.mxu2 %v194_v7  ;;  %v66_v39 = vld [vmem:[%s1242_s1 + $0x198] sm:$0xff]  ;;  %v203_v41 = vld [vmem:[%s1242_s1 + $0x5e0] sm:$0xff]  ;;  %v100_v54 = vld [vmem:[%s1242_s1 + $0x2a8] sm:$0xff] }
  0x26   :  { %394 = vmatpush.msra.mxu3 %v131_v8  ;;  %321 = vmatpush.msrb.mxu1 %v73_v9  ;;  %v58_v43 = vld [vmem:[%s1242_s1 + $0x158] sm:$0xff]  ;;  %v59_v44 = vld [vmem:[%s1242_s1 + $0x160] sm:$0xff]  ;;  %v92_v58 = vld [vmem:[%s1242_s1 + $0x268] sm:$0xff] }
  0x27   :  { %355 = vmatpush.msrb.mxu0 %v122_v10  ;;  %383 = vmatpush.msrb.mxu2 %v186_v11  ;;  %v195_v45 = vld [vmem:[%s1242_s1 + $0x5a0] sm:$0xff]  ;;  %v50_v47 = vld [vmem:[%s1242_s1 + $0x118] sm:$0xff]  ;;  %v84_v62 = vld [vmem:[%s1242_s1 + $0x228] sm:$0xff] }
  0x28   :  { %395 = vmatpush.msra.mxu3 %v123_v12  ;;  %322 = vmatpush.msrb.mxu1 %v65_v13  ;;  %v51_v48 = vld [vmem:[%s1242_s1 + $0x120] sm:$0xff]  ;;  %v42_v51 = vld [vmem:[%s1242_s1 + $0xd8] sm:$0xff]  ;;  %v76_v4 = vld [vmem:[%s1242_s1 + $0x1e8] sm:$0xff] }
  0x29   :  { %356 = vmatpush.msrb.mxu0 %v114_v14  ;;  %384 = vmatpush.msrb.mxu2 %v178_v15  ;;  %v187_v49 = vld [vmem:[%s1242_s1 + $0x560] sm:$0xff]  ;;  %v34_v55 = vld [vmem:[%s1242_s1 + $0x98] sm:$0xff]  ;;  %v204_v5 = vld [vmem:[%s1242_s1 + $0x5e8] sm:$0xff] }
  0x2a   :  { %396 = vmatpush.msra.mxu3 %v115_v16  ;;  %249 = vmatmul.f32.vlgmr.msra.gmra.mxu0 %v809_v63  ;;  %v43_v52 = vld [vmem:[%s1242_s1 + $0xe0] sm:$0xff]  ;;  %v26_v59 = vld [vmem:[%s1242_s1 + $0x58] sm:$0xff]  ;;  %v68_v8 = vld [vmem:[%s1242_s1 + $0x1a8] sm:$0xff] }
  0x2b   :  { %323 = vmatpush.msrb.mxu1 %v57_v17  ;;  %357 = vmatpush.msrb.mxu0 %v106_v18  ;;  %v179_v53 = vld [vmem:[%s1242_s1 + $0x520] sm:$0xff]  ;;  %v18_v1 = vld [vmem:[%s1242_s1 + $0x18] sm:$0xff]  ;;  %v196_v9 = vld [vmem:[%s1242_s1 + $0x5a8] sm:$0xff] }
  0x2c   :  { %385 = vmatpush.msrb.mxu2 %v170_v19  ;;  %397 = vmatpush.msra.mxu3 %v107_v20  ;;  %v35_v56 = vld [vmem:[%s1242_s1 + $0xa0] sm:$0xff]  ;;  %v142_v7 = vld [vmem:[%s1242_s1 + $0x3f8] sm:$0xff]  ;;  %v141_v10 = vld [vmem:[%s1242_s1 + $0x3f0] sm:$0xff] }
  0x2d   :  { %592 = vmatmul.msk.f32.vlgmr.msra.gmra.mxu1 %vm230_vm0, %v811_v0  ;;  %358 = vmatpush.msrb.mxu0 %v98_v21  ;;  %v171_v57 = vld [vmem:[%s1242_s1 + $0x4e0] sm:$0xff]  ;;  %v134_v11 = vld [vmem:[%s1242_s1 + $0x3b8] sm:$0xff]  ;;  %v60_v12 = vld [vmem:[%s1242_s1 + $0x168] sm:$0xff] }
  0x2e   :  { %324 = vmatpush.msrb.mxu1 %v49_v22  ;;  %386 = vmatpush.msrb.mxu2 %v162_v23  ;;  %v27_v60 = vld [vmem:[%s1242_s1 + $0x60] sm:$0xff]  ;;  %v188_v13 = vld [vmem:[%s1242_s1 + $0x568] sm:$0xff]  ;;  %v133_v14 = vld [vmem:[%s1242_s1 + $0x3b0] sm:$0xff] }
  0x2f   :  { %398 = vmatpush.msra.mxu3 %v99_v24  ;;  %359 = vmatpush.msrb.mxu0 %v90_v25  ;;  %v163_v61 = vld [vmem:[%s1242_s1 + $0x4a0] sm:$0xff]  ;;  %v126_v15 = vld [vmem:[%s1242_s1 + $0x378] sm:$0xff]  ;;  %v52_v16 = vld [vmem:[%s1242_s1 + $0x128] sm:$0xff] }
  0x30   :  { %325 = vmatpush.msrb.mxu1 %v41_v26  ;;  %387 = vmatpush.msrb.mxu2 %v154_v27  ;;  %v19_v2 = vld [vmem:[%s1242_s1 + $0x20] sm:$0xff]  ;;  %v180_v17 = vld [vmem:[%s1242_s1 + $0x528] sm:$0xff]  ;;  %v125_v18 = vld [vmem:[%s1242_s1 + $0x370] sm:$0xff] }
  0x31   :  { %399 = vmatpush.msra.mxu3 %v91_v28  ;;  %360 = vmatpush.msrb.mxu0 %v82_v29  ;;  %v155_v3 = vld [vmem:[%s1242_s1 + $0x460] sm:$0xff]  ;;  %v44_v19 = vld [vmem:[%s1242_s1 + $0xe8] sm:$0xff]  ;;  %v117_v21 = vld [vmem:[%s1242_s1 + $0x330] sm:$0xff] }
  0x32   :  { %326 = vmatpush.msrb.mxu1 %v33_v30  ;;  %388 = vmatpush.msrb.mxu2 %v146_v31  ;;  %v147_v6 = vld [vmem:[%s1242_s1 + $0x420] sm:$0xff]  ;;  %v172_v20 = vld [vmem:[%s1242_s1 + $0x4e8] sm:$0xff]  ;;  %v118_v22 = vld [vmem:[%s1242_s1 + $0x338] sm:$0xff] }
  0x33   :  { %400 = vmatpush.msra.mxu3 %v83_v32  ;;  %361 = vmatpush.msrb.mxu0 %v74_v35  ;;  %v36_v23 = vld [vmem:[%s1242_s1 + $0xa8] sm:$0xff]  ;;  %v109_v25 = vld [vmem:[%s1242_s1 + $0x2f0] sm:$0xff]  ;;  %v110_v26 = vld [vmem:[%s1242_s1 + $0x2f8] sm:$0xff] }
  0x34   :  { %433 = vmatpush.msra.mxu2 %v140_v33  ;;  %327 = vmatpush.msrb.mxu1 %v25_v34  ;;  %v164_v24 = vld [vmem:[%s1242_s1 + $0x4a8] sm:$0xff]  ;;  %v101_v29 = vld [vmem:[%s1242_s1 + $0x2b0] sm:$0xff]  ;;  %v102_v30 = vld [vmem:[%s1242_s1 + $0x2b8] sm:$0xff] }
  0x35   :  { %401 = vmatpush.msra.mxu3 %v75_v36  ;;  %362 = vmatpush.msrb.mxu0 %v66_v39  ;;  %v28_v27 = vld [vmem:[%s1242_s1 + $0x68] sm:$0xff]  ;;  %v93_v33 = vld [vmem:[%s1242_s1 + $0x270] sm:$0xff]  ;;  %v94_v35 = vld [vmem:[%s1242_s1 + $0x278] sm:$0xff] }
  0x36   :  { %434 = vmatpush.msra.mxu2 %v132_v37  ;;  %328 = vmatpush.msrb.mxu1 %v17_v38  ;;  %v156_v28 = vld [vmem:[%s1242_s1 + $0x468] sm:$0xff]  ;;  %v205_v34 = vld [vmem:[%s1242_s1 + $0x5f0] sm:$0xff]  ;;  %v206_v36 = vld [vmem:[%s1242_s1 + $0x5f8] sm:$0xff] }
  0x37   :  { %402 = vmatpush.msra.mxu3 %v67_v40  ;;  %363 = vmatpush.msrb.mxu0 %v58_v43  ;;  %v20_v31 = vld [vmem:[%s1242_s1 + $0x28] sm:$0xff]  ;;  %v85_v37 = vld [vmem:[%s1242_s1 + $0x230] sm:$0xff]  ;;  %v86_v39 = vld [vmem:[%s1242_s1 + $0x238] sm:$0xff] }
  0x38   :  { %421 = vmatpush.msra.mxu1 %v203_v41  ;;  %435 = vmatpush.msra.mxu2 %v124_v42  ;;  %v148_v32 = vld [vmem:[%s1242_s1 + $0x428] sm:$0xff]  ;;  %v197_v38 = vld [vmem:[%s1242_s1 + $0x5b0] sm:$0xff]  ;;  %v198_v40 = vld [vmem:[%s1242_s1 + $0x5b8] sm:$0xff] }
  0x39   :  { %403 = vmatpush.msra.mxu3 %v59_v44  ;;  %364 = vmatpush.msrb.mxu0 %v50_v47  ;;  %v77_v41 = vld [vmem:[%s1242_s1 + $0x1f0] sm:$0xff]  ;;  %v78_v43 = vld [vmem:[%s1242_s1 + $0x1f8] sm:$0xff] }
  0x3a   :  { %422 = vmatpush.msra.mxu1 %v195_v45  ;;  %436 = vmatpush.msra.mxu2 %v116_v46  ;;  %v189_v42 = vld [vmem:[%s1242_s1 + $0x570] sm:$0xff]  ;;  %v190_v44 = vld [vmem:[%s1242_s1 + $0x578] sm:$0xff] }
  0x3b   :  { %404 = vmatpush.msra.mxu3 %v51_v48  ;;  %365 = vmatpush.msrb.mxu0 %v42_v51  ;;  %v69_v45 = vld [vmem:[%s1242_s1 + $0x1b0] sm:$0xff]  ;;  %v70_v47 = vld [vmem:[%s1242_s1 + $0x1b8] sm:$0xff] }
  0x3c   :  { %423 = vmatpush.msra.mxu1 %v187_v49  ;;  %437 = vmatpush.msra.mxu2 %v108_v50  ;;  %v181_v46 = vld [vmem:[%s1242_s1 + $0x530] sm:$0xff]  ;;  %v182_v48 = vld [vmem:[%s1242_s1 + $0x538] sm:$0xff] }
  0x3d   :  { %405 = vmatpush.msra.mxu3 %v43_v52  ;;  %366 = vmatpush.msrb.mxu0 %v34_v55  ;;  %v173_v49 = vld [vmem:[%s1242_s1 + $0x4f0] sm:$0xff]  ;;  %v62_v51 = vld [vmem:[%s1242_s1 + $0x178] sm:$0xff] }
  0x3e   :  { %424 = vmatpush.msra.mxu1 %v179_v53  ;;  %438 = vmatpush.msra.mxu2 %v100_v54  ;;  %v61_v50 = vld [vmem:[%s1242_s1 + $0x170] sm:$0xff]  ;;  %v174_v52 = vld [vmem:[%s1242_s1 + $0x4f8] sm:$0xff] }
  0x3f   :  { %406 = vmatpush.msra.mxu3 %v35_v56  ;;  %595 = vmatmul.msk.f32.vlgmr.msrb.gmra.mxu2 %vm230_vm0, %v811_v0  ;;  %v165_v53 = vld [vmem:[%s1242_s1 + $0x4b0] sm:$0xff]  ;;  %v54_v55 = vld [vmem:[%s1242_s1 + $0x138] sm:$0xff] }
  0x40   :  { %594 = vmatmul.msk.f32.vlgmr.msrb.gmra.mxu3 %vm230_vm0, %v811_v0  ;;  %425 = vmatpush.msra.mxu1 %v171_v57  ;;  %v53_v54 = vld [vmem:[%s1242_s1 + $0x130] sm:$0xff]  ;;  %v166_v56 = vld [vmem:[%s1242_s1 + $0x4b8] sm:$0xff] }
  0x41   :  { %439 = vmatpush.msra.mxu2 %v92_v58  ;;  %367 = vmatpush.msrb.mxu0 %v26_v59  ;;  %v157_v57 = vld [vmem:[%s1242_s1 + $0x470] sm:$0xff]  ;;  %v46_v59 = vld [vmem:[%s1242_s1 + $0xf8] sm:$0xff] }
  0x42   :  { %407 = vmatpush.msra.mxu3 %v27_v60  ;;  %426 = vmatpush.msra.mxu1 %v163_v61  ;;  %v45_v58 = vld [vmem:[%s1242_s1 + $0xf0] sm:$0xff]  ;;  %v158_v60 = vld [vmem:[%s1242_s1 + $0x478] sm:$0xff] }
  0x43   :  { %440 = vmatpush.msra.mxu2 %v84_v62  ;;  %368 = vmatpush.msrb.mxu0 %v18_v1  ;;  %v149_v61 = vld [vmem:[%s1242_s1 + $0x430] sm:$0xff]  ;;  %v38_v1 = vld [vmem:[%s1242_s1 + $0xb8] sm:$0xff] }
  0x44   :  { %408 = vmatpush.msra.mxu3 %v19_v2  ;;  %329 = vmatmul.f32.vlgmr.msrb.gmra.mxu1 %v809_v63  ;;  %v37_v62 = vld [vmem:[%s1242_s1 + $0xb0] sm:$0xff]  ;;  %v150_v2 = vld [vmem:[%s1242_s1 + $0x438] sm:$0xff] }
  0x45   :  { %369 = vmatmul.f32.vlgmr.msrb.gmra.mxu0 %v809_v63  ;;  %427 = vmatpush.msra.mxu1 %v155_v3  ;;  %v29_v3 = vld [vmem:[%s1242_s1 + $0x70] sm:$0xff] }
  0x46   :  { %441 = vmatpush.msra.mxu2 %v76_v4  ;;  %461 = vmatpush.msrb.mxu3 %v204_v5  ;;  %v30_v4 = vld [vmem:[%s1242_s1 + $0x78] sm:$0xff]  ;;  %v21_v5 = vld [vmem:[%s1242_s1 + $0x30] sm:$0xff] }
  0x47   :  { %428 = vmatpush.msra.mxu1 %v147_v6  ;;  %513 = vmatpush.msra.mxu0 %v142_v7  ;;  %v22_v6 = vld [vmem:[%s1242_s1 + $0x38] sm:$0xff]  ;;  %v207_v7 = vld [vmem:[%s1244_s2] sm:$0xff] }
  0x48   :  { %442 = vmatpush.msra.mxu2 %v68_v8  ;;  %462 = vmatpush.msrb.mxu3 %v196_v9  ;;  %v210_v8 = vperm.slane %v207_v7, 1 }
  0x49   :  { %473 = vmatpush.msrb.mxu1 %v141_v10  ;;  %514 = vmatpush.msra.mxu0 %v134_v11 }
  0x4a   :  { %443 = vmatpush.msra.mxu2 %v60_v12  ;;  %463 = vmatpush.msrb.mxu3 %v188_v13  ;;  %v209_v13 = vperm.slane %v207_v7, 0 }
  0x4b   :  { %474 = vmatpush.msrb.mxu1 %v133_v14  ;;  %515 = vmatpush.msra.mxu0 %v126_v15  ;;  %v211_v14 = vperm.slane %v207_v7, 2 }
  0x4c   :  { %444 = vmatpush.msra.mxu2 %v52_v16  ;;  %464 = vmatpush.msrb.mxu3 %v180_v17  ;;  %v212_v17 = vperm.slane %v207_v7, 3 }
  0x4d   :  { %475 = vmatpush.msrb.mxu1 %v125_v18  ;;  %409 = vmatmul.f32.vlgmr.msra.gmra.mxu3 %v809_v63 }
  0x4e   :  { %445 = vmatpush.msra.mxu2 %v44_v19  ;;  %465 = vmatpush.msrb.mxu3 %v172_v20 }
  0x4f   :  { %476 = vmatpush.msrb.mxu1 %v117_v21  ;;  %516 = vmatpush.msra.mxu0 %v118_v22 }
  0x50   :  { %446 = vmatpush.msra.mxu2 %v36_v23  ;;  %466 = vmatpush.msrb.mxu3 %v164_v24 }
  0x51   :  { %477 = vmatpush.msrb.mxu1 %v109_v25  ;;  %517 = vmatpush.msra.mxu0 %v110_v26 }
  0x52   :  { %447 = vmatpush.msra.mxu2 %v28_v27  ;;  %467 = vmatpush.msrb.mxu3 %v156_v28 }
  0x53   :  { %478 = vmatpush.msrb.mxu1 %v101_v29  ;;  %518 = vmatpush.msra.mxu0 %v102_v30 }
  0x54   :  { %448 = vmatpush.msra.mxu2 %v20_v31  ;;  %468 = vmatpush.msrb.mxu3 %v148_v32 }
  0x55   :  { %449 = vmatmul.f32.vlgmr.msra.gmra.mxu2 %v809_v63  ;;  %479 = vmatpush.msrb.mxu1 %v93_v33 }
  0x56   :  { %501 = vmatpush.msra.mxu3 %v205_v34  ;;  %519 = vmatpush.msra.mxu0 %v94_v35 }
  0x57   :  { %541 = vmatpush.msrb.mxu2 %v206_v36  ;;  %597 = vmatmul.msk.f32.vlgmr.msrb.gmra.mxu3 %vm230_vm0, %v811_v0 }
  0x58   :  { %480 = vmatpush.msrb.mxu1 %v85_v37  ;;  %502 = vmatpush.msra.mxu3 %v197_v38  ;;  %v214_v37 = vperm.slane %v207_v7, 5 }
  0x59   :  { %520 = vmatpush.msra.mxu0 %v86_v39  ;;  %542 = vmatpush.msrb.mxu2 %v198_v40 }
  0x5a   :  { %481 = vmatpush.msrb.mxu1 %v77_v41  ;;  %503 = vmatpush.msra.mxu3 %v189_v42  ;;  %v213_v42 = vperm.slane %v207_v7, 4 }
  0x5b   :  { %521 = vmatpush.msra.mxu0 %v78_v43  ;;  %543 = vmatpush.msrb.mxu2 %v190_v44  ;;  %v215_v43 = vperm.slane %v207_v7, 6 }
  0x5c   :  { %482 = vmatpush.msrb.mxu1 %v69_v45  ;;  %504 = vmatpush.msra.mxu3 %v181_v46  ;;  %v216_v45 = vperm.slane %v207_v7, 7 }
  0x5d   :  { %522 = vmatpush.msra.mxu0 %v70_v47  ;;  %544 = vmatpush.msrb.mxu2 %v182_v48 }
  0x5e   :  { %596 = vmatmul.msk.f32.vlgmr.msra.gmra.mxu1 %vm230_vm0, %v811_v0  ;;  %505 = vmatpush.msra.mxu3 %v173_v49 }
  0x5f   :  { %483 = vmatpush.msrb.mxu1 %v61_v50  ;;  %523 = vmatpush.msra.mxu0 %v62_v51 }
  0x60   :  { %545 = vmatpush.msrb.mxu2 %v174_v52  ;;  %506 = vmatpush.msra.mxu3 %v165_v53 }
  0x61   :  { %484 = vmatpush.msrb.mxu1 %v53_v54  ;;  %524 = vmatpush.msra.mxu0 %v54_v55 }
  0x62   :  { %546 = vmatpush.msrb.mxu2 %v166_v56  ;;  %507 = vmatpush.msra.mxu3 %v157_v57 }
  0x63   :  { %485 = vmatpush.msrb.mxu1 %v45_v58  ;;  %525 = vmatpush.msra.mxu0 %v46_v59 }
  0x64   :  { %547 = vmatpush.msrb.mxu2 %v158_v60  ;;  %508 = vmatpush.msra.mxu3 %v149_v61 }
  0x65   :  { %486 = vmatpush.msrb.mxu1 %v37_v62  ;;  %526 = vmatpush.msra.mxu0 %v38_v1 }
  0x66   :  { %548 = vmatpush.msrb.mxu2 %v150_v2  ;;  %598 = vmatmul.msk.f32.vlgmr.msra.gmra.mxu3 %vm230_vm0, %v811_v0 }
  0x67   :  { %599 = vmatmul.msk.f32.vlgmr.msrb.gmra.mxu2 %vm230_vm0, %v811_v0  ;;  %487 = vmatpush.msrb.mxu1 %v29_v3 }
  0x68   :  { %527 = vmatpush.msra.mxu0 %v30_v4 }
  0x69   :  { %488 = vmatpush.msrb.mxu1 %v21_v5 }
  0x6a   :  { %528 = vmatpush.msra.mxu0 %v22_v6  ;;  %489 = vmatmul.f32.vlgmr.msrb.gmra.mxu1 %v809_v63 }
  0x6b   :  { %529 = vmatmul.f32.vlgmr.msra.gmra.mxu0 %v809_v63 }
  0xa4   :  { %v290_v9 = vpop.f32.mrf.mxu2 }
  0xa5   :  { %v291_v11 = vadd.f32 %v290_v9, %v210_v8  ;;  %v310_v12 = vpop.f32.mrf.mxu3 }
  0xa7   :  { %v250_v0 = vpop.f32.mrf.mxu0  ;;  %v311_v15 = vadd.f32 %v310_v12, %v291_v11 }
  0xa8   :  { %v251_v16 = vadd.f32 %v250_v0, %v209_v13 }
  0xa9   :  { %v554_v63 = vmax.f32 %v311_v15, 0.0 }
  0xaa   :  { %v270_v10 = vpop.f32.mrf.mxu1 }
  0xab   :  { %v271_v22 = vadd.f32 %v270_v10, %v251_v16  ;;  %v569_v28 = vrot.slane %v554_v63, 6 }
  0xad   :  { %v553_v29 = vmax.f32 %v271_v22, 0.0 }
  0xaf   :  { %v576_v33 = vsel %vm575_vm1, %v553_v29, %v569_v28 }
  0xc1   :  { %v330_v18 = vpop.f32.mrf.mxu1 }
  0xc2   :  { %v331_v19 = vadd.f32 %v330_v18, %v211_v14  ;;  %v370_v20 = vpop.f32.mrf.mxu0  ;;  %v390_v21 = vpop.f32.mrf.mxu2 }
  0xc3   :  { %v371_v23 = vadd.f32 %v370_v20, %v212_v17  ;;  %v350_v24 = vpop.f32.mrf.mxu3 }
  0xc4   :  { %v351_v25 = vadd.f32 %v350_v24, %v331_v19 }
  0xc5   :  { %v391_v26 = vadd.f32 %v390_v21, %v371_v23 }
  0xc6   :  { %v555_v27 = vmax.f32 %v351_v25, 0.0 }
  0xc7   :  { %v556_v30 = vmax.f32 %v391_v26, 0.0 }
  0xc8   :  { %v570_v31 = vrot.slane %v555_v27, 4 }
  0xc9   :  { %v571_v32 = vrot.slane %v556_v30, 2 }
  0xcb   :  { %v578_v34 = vsel %vm577_vm2, %v570_v31, %v571_v32 }
  0xcc   :  { %v580_v35 = vsel %vm579_vm3, %v576_v33, %v578_v34 }
  0xcd   :  { %586 = vst [vmem:[%s1245_s3] sm:$0xff] %v580_v35 }
  0xd0   :  { %v410_v36 = vpop.f32.mrf.mxu3 }
  0xd1   :  { %v411_v46 = vadd.f32 %v410_v36, %v213_v42 }
  0xd8   :  { %v450_v38 = vpop.f32.mrf.mxu2 }
  0xd9   :  { %v451_v40 = vadd.f32 %v450_v38, %v214_v37 }
  0xda   :  { %v470_v41 = vpop.f32.mrf.mxu3 }
  0xdb   :  { %v430_v39 = vpop.f32.mrf.mxu1  ;;  %v471_v44 = vadd.f32 %v470_v41, %v451_v40 }
  0xdc   :  { %v431_v55 = vadd.f32 %v430_v39, %v411_v46 }
  0xdd   :  { %v558_v50 = vmax.f32 %v471_v44, 0.0 }
  0xde   :  { %v557_v61 = vmax.f32 %v431_v55, 0.0 }
  0xdf   :  { %v572_v58 = vrot.slane %v558_v50, 6 }
  0xe1   :  { %v581_v1 = vsel %vm575_vm1, %v557_v61, %v572_v58 }
  0xe7   :  { %v490_v47 = vpop.f32.mrf.mxu1 }
  0xe8   :  { %v491_v48 = vadd.f32 %v490_v47, %v215_v43  ;;  %v530_v49 = vpop.f32.mrf.mxu0 }
  0xe9   :  { %v531_v51 = vadd.f32 %v530_v49, %v216_v45  ;;  %v510_v52 = vpop.f32.mrf.mxu3 }
  0xea   :  { %v511_v53 = vadd.f32 %v510_v52, %v491_v48  ;;  %v550_v54 = vpop.f32.mrf.mxu2 }
  0xeb   :  { %v551_v56 = vadd.f32 %v550_v54, %v531_v51 }
  0xec   :  { %v559_v57 = vmax.f32 %v511_v53, 0.0 }
  0xed   :  { %v560_v59 = vmax.f32 %v551_v56, 0.0 }
  0xee   :  { %v573_v60 = vrot.slane %v559_v57, 4 }
  0xef   :  { %v574_v62 = vrot.slane %v560_v59, 2 }
  0xf1   :  { %v582_v2 = vsel %vm577_vm2, %v573_v60, %v574_v62 }
  0xf2   :  { %v583_v3 = vsel %vm579_vm3, %v581_v1, %v582_v2 }
  0xf3   :  { %587 = vst [vmem:[%s1245_s3 + $0x8] sm:$0xff] %v583_v3 }

</bundles_post_ra>
